<compile_context>
chip_gen: v6e
topology: v6e:2x2x1
jax: 0.10.0
libtpu: 0.0.40
codegen_flags: <defaults>
</compile_context>

<pallas_src>
import functools
import math

import jax
import jax.numpy as jnp
import numpy as np
from jax import lax
from jax.experimental import pallas as pl
from jax.experimental.pallas import tpu as pltpu

CPAD = 128                       # lane-dense output-channel padding
ROW_ALIGN = 16                   # bf16 sublane tile height -> keep row strides aligned
VMEM_LIMIT = 48 * 1024 * 1024    # explicit scoped-VMEM ceiling (fits v5e/v6e/v7x)
TILE_BUDGET = 6 * 1024 * 1024    # target working-set bytes per (image, row-tile) step


def _round_up(x, m):
    return ((x + m - 1) // m) * m


# ----------------------------------------------------------------------------
# Pallas kernel: multi-tap matmul with f32 accumulation + fused bias (+ ReLU).
# One grid step per (image, row-tile).  Conv taps are static (dy, dx) offsets into
# the halo-inclusive, flattened (row, col) input tile.
# ----------------------------------------------------------------------------
def _tap_conv_kernel(x_ref, w_ref, b_ref, o_ref, *dx_bufs,
                     taps, shift_slots, wv, th, l0, relu):
    """x_ref : (T_IN, Cin)  bf16   halo-inclusive input rows (flat (row, col))
       w_ref : (T, Cin, CPAD) bf16 per-tap weights (BN folded)
       b_ref : (1, CPAD) f32       per-image bias
       o_ref : (th*wv, CPAD)       output rows of this tile
       dx_bufs: one (l0, Cin) bf16 VMEM scratch per distinct column shift dx > 0."""
    slot_of = dict(shift_slots)

    # Pay the sublane-misaligned column shift once per distinct dx (not once per tap):
    # copy into an aligned scratch; dx == 0 taps read x_ref directly (their offsets are
    # multiples of wv, itself a multiple of 16 -> aligned, no relayout).
    for dx, slot in shift_slots:
        dx_bufs[slot][...] = x_ref[dx:dx + l0, :]

    bias = b_ref[...]                                       # (1, CPAD) f32

    def row_body(oh, carry):
        base = pl.multiple_of(oh * wv, ROW_ALIGN)
        # accumulate all taps while this Wv-row chunk is live (a few vregs)
        acc = jnp.zeros((wv, CPAD), jnp.float32)
        for t, (dy, dx) in enumerate(taps):
            start = pl.multiple_of(base + dy * wv, ROW_ALIGN)
            if dx == 0:
                rows = x_ref[pl.ds(start, wv), :]
            else:
                rows = dx_bufs[slot_of[dx]][pl.ds(start, wv), :]
            acc = acc + jnp.dot(rows, w_ref[t],
                                preferred_element_type=jnp.float32)
        y = acc + bias                                      # f32 epilogue (v5e-friendly)
        if relu:
            y = jnp.maximum(y, 0.0)
        o_ref[pl.ds(base, wv), :] = y.astype(o_ref.dtype)
        return carry

    lax.fori_loop(0, th, row_body, 0)


def conv_taps(x_tiles, w_stack, bias_img, *, taps, wv, th, relu, out_dtype):
    """x_tiles : [N, HT, T_IN, Cin] bf16 (halo-replicated row tiles)
       w_stack : [T, Cin, CPAD] bf16;  bias_img: [N, 1, CPAD] f32
       -> [N, HT, th*wv, CPAD] out_dtype."""
    N, HT, T_IN, Cin = x_tiles.shape
    T, Cin_w, Cout = w_stack.shape
    assert Cin_w == Cin and Cout == CPAD and T == len(taps)
    dymax = max(dy for dy, _ in taps)
    dxmax = max(dx for _, dx in taps)
    l0 = (th + dymax) * wv
    assert l0 + dxmax <= T_IN
    dxs = sorted({dx for _, dx in taps if dx > 0})
    shift_slots = tuple((dx, i) for i, dx in enumerate(dxs))

    kernel = functools.partial(
        _tap_conv_kernel, taps=tuple(taps), shift_slots=shift_slots,
        wv=wv, th=th, l0=l0, relu=relu)

    return pl.pallas_call(
        kernel,
        out_shape=jax.ShapeDtypeStruct((N, HT, th * wv, CPAD), out_dtype),
        grid_spec=pltpu.PrefetchScalarGridSpec(
            num_scalar_prefetch=0,
            grid=(N, HT),
            in_specs=[
                pl.BlockSpec((None, None, T_IN, Cin), lambda n, h: (n, h, 0, 0)),
                pl.BlockSpec((T, Cin, CPAD), lambda n, h: (0, 0, 0)),
                pl.BlockSpec((None, 1, CPAD), lambda n, h: (n, 0, 0)),
            ],
            out_specs=pl.BlockSpec((None, None, th * wv, CPAD),
                                   lambda n, h: (n, h, 0, 0)),
            scratch_shapes=[pltpu.VMEM((l0, Cin), jnp.bfloat16)
                            for _ in range(len(dxs))],
        ),
        compiler_params=pltpu.CompilerParams(
            dimension_semantics=("parallel", "parallel"),
            vmem_limit_bytes=VMEM_LIMIT),
    )(x_tiles, w_stack, bias_img)


# ----------------------------------------------------------------------------
# Conv wrapper: slice to logical channels -> pad (+ space-to-depth for stride 2) ->
# halo-replicated row tiles -> tap kernel -> reshape/slice back to NHWC.
# ----------------------------------------------------------------------------
def _choose_th(oh, wv, cin, n_dx):
    # per output row: bf16 x rows (double-buffered) + per-dx scratch copies
    #                 + bf16 output rows (double-buffered)
    row_bytes = wv * cin * 2 * (2 + max(1, n_dx)) + wv * CPAD * 2 * 2
    th = max(1, TILE_BUDGET // max(row_bytes, 1))
    return int(min(oh, th))


def apply_conv(x, prep, *, relu=True, out_dtype=jnp.bfloat16, bias_img=None):
    x = x.astype(jnp.bfloat16)
    N, H, W, C = x.shape
    c_src = prep["cin_src"]
    taps = prep["taps"]

    if prep["stride"] == 1:
        P = prep["pad"]
        OH, OW = H, W
        img = jnp.pad(x[..., :c_src], ((0, 0), (P, 0), (P, 0), (0, 0)))
    else:
        # 3x3 / stride-2 / pad-1 conv via space-to-depth -> 2x2-tap stride-1 conv,
        # carrying only the logical channels (no 128-padded phases).
        assert H % 2 == 0 and W % 2 == 0, "stride-2 path requires even H, W"
        OH, OW = H // 2, W // 2
        xp = jnp.pad(x[..., :c_src], ((0, 0), (1, 1), (1, 1), (0, 0)))
        phases = [xp[:, ph::2, pw::2, :][:, :OH + 1, :OW + 1, :]
                  for ph in (0, 1) for pw in (0, 1)]
        img = jnp.concatenate(phases, axis=-1)              # (N, OH+1, OW+1, 4*c_src)

    cin_k = prep["w"].shape[1]
    if img.shape[-1] < cin_k:                               # pad K up to packed width
        img = jnp.pad(img, ((0, 0), (0, 0), (0, 0), (0, cin_k - img.shape[-1])))

    dymax = max(dy for dy, _ in taps)
    dxmax = max(dx for _, dx in taps)
    wv = _round_up(OW + dxmax, ROW_ALIGN)                   # sublane-aligned row stride
    n_dx = len({dx for _, dx in taps if dx > 0})
    th = _choose_th(OH, wv, cin_k, n_dx)
    ht = -(-OH // th)
    h_need = ht * th + dymax + 1
    img = jnp.pad(img, ((0, 0),
                        (0, h_need - img.shape[1]),
                        (0, wv - img.shape[2]),
                        (0, 0)))

    # halo-replicated row tiles: (N, HT, TH + dymax + 1, Wv, Cin) -> flatten rows
    t_rows = th + dymax + 1
    tiles = [img[:, i * th:i * th + t_rows] for i in range(ht)]
    x_tiles = jnp.stack(tiles, axis=1).reshape(N, ht, t_rows * wv, cin_k)

    if bias_img is None:
        bias_img = jnp.broadcast_to(prep["bias"][None, None, :], (N, 1, CPAD))
    out = conv_taps(x_tiles, prep["w"], bias_img.astype(jnp.float32),
                    taps=taps, wv=wv, th=th, relu=relu, out_dtype=out_dtype)
    out = out.reshape(N, ht * th, wv, CPAD)
    return out[:, :OH, :OW, :]


# ----------------------------------------------------------------------------
# Bilinear upsample, align_corners=True, via dense interpolation matmuls (no gathers)
# ----------------------------------------------------------------------------
def _interp_matrix(size_in, size_out):
    A = np.zeros((size_out, size_in), np.float32)
    if size_in == 1 or size_out == 1:
        A[:, 0] = 1.0
        return jnp.asarray(A)
    pos = np.arange(size_out) * (size_in - 1) / (size_out - 1)
    lo = np.floor(pos).astype(np.int64)
    hi = np.minimum(lo + 1, size_in - 1)
    frac = (pos - lo).astype(np.float32)
    A[np.arange(size_out), lo] += 1.0 - frac
    A[np.arange(size_out), hi] += frac
    return jnp.asarray(A)


def upsample_bilinear(x, factor):
    N, H, W, C = x.shape
    Ah = _interp_matrix(H, H * factor)
    Aw = _interp_matrix(W, W * factor)
    y = jnp.einsum('oh,nhwc->nowc', Ah, x.astype(jnp.float32))
    y = jnp.einsum('pw,nowc->nopc', Aw, y)
    return y


# ----------------------------------------------------------------------------
# Parameter construction: random conv+BN layers (deterministic), then folding /
# packing into the kernel-ready (taps, weights, bias) form.
# ----------------------------------------------------------------------------
def make_layer(key, kh, kw, cin, cout, *, has_bn=True):
    k1, k2, k3 = jax.random.split(key, 3)
    fan_in = kh * kw * cin
    w = jax.random.normal(k1, (kh, kw, cin, cout), jnp.float32) / math.sqrt(fan_in)
    if has_bn:
        scale = 1.0 + 0.1 * jax.random.normal(k2, (cout,), jnp.float32)
    else:
        scale = jnp.ones((cout,), jnp.float32)
    bias = 0.1 * jax.random.normal(k3, (cout,), jnp.float32)
    return {"w": w, "scale": scale, "bias": bias}


def _fold(layer):
    # fold BN scale into the conv weights (convs carry no bias of their own)
    return layer["w"] * layer["scale"][None, None, None, :], layer["bias"]


def _pad_cout(w, b):
    cout = w.shape[-1]
    w = jnp.pad(w, [(0, 0)] * (w.ndim - 1) + [(0, CPAD - cout)])
    b = jnp.pad(b, (0, CPAD - cout))
    return w, b


def prep_s1(layer, cin_src, *, dilation=1):
    w, b = _fold(layer)
    kh, kw, cin, _ = w.shape
    assert cin_src >= cin
    w = jnp.pad(w, ((0, 0), (0, 0), (0, cin_src - cin), (0, 0)))
    w, b = _pad_cout(w, b)
    pad = dilation * (kh - 1) // 2
    taps = tuple((i * dilation, j * dilation) for i in range(kh) for j in range(kw))
    return {"stride": 1, "pad": pad, "taps": taps, "cin_src": cin_src,
            "w": w.reshape(kh * kw, cin_src, CPAD).astype(jnp.bfloat16),
            "bias": b.astype(jnp.float32)}


def prep_s2(layer, c_src, *, round_k_to_128=True):
    """3x3 / stride-2 / pad-1 conv repacked as a 2x2-tap stride-1 conv over the
    space-to-depth (4-phase) input carrying only the logical channels."""
    w, b = _fold(layer)
    kh, kw, cin, _ = w.shape
    assert kh == 3 and kw == 3 and cin == c_src
    w, b = _pad_cout(w, b)
    w_ext = jnp.pad(w, ((0, 1), (0, 1), (0, 0), (0, 0)))    # zero taps for index 3
    taps = tuple((qh, qw) for qh in (0, 1) for qw in (0, 1))
    phase_order = [(ph, pw) for ph in (0, 1) for pw in (0, 1)]
    wst = jnp.stack(
        [jnp.concatenate([w_ext[2 * qh + ph, 2 * qw + pw] for (ph, pw) in phase_order],
                         axis=0)
         for (qh, qw) in taps], axis=0)                      # (4, 4*c_src, CPAD)
    k_in = 4 * c_src
    k_pack = _round_up(k_in, CPAD) if round_k_to_128 else k_in
    wst = jnp.pad(wst, ((0, 0), (0, k_pack - k_in), (0, 0)))
    return {"stride": 2, "pad": 1, "taps": taps, "cin_src": c_src,
            "w": wst.astype(jnp.bfloat16), "bias": b.astype(jnp.float32)}


def prep_aspp_branches(l1x1, l_d1, l_d2, l_d3, cin_src, ac):
    """Fuse ASPP's 1x1 branch and the three dilated 3x3 branches (rates 1/2/3) into one
    tap-accumulation layer emitting [b0|b1|b2|b3] = 4*ac (=128, lane-dense) channels."""
    assert 4 * ac == CPAD
    pad = 3                                     # max dilation * (3-1)//2
    taps, w_taps, b_parts = [], [], []
    for bi, (layer, k, d) in enumerate([(l1x1, 1, 1), (l_d1, 3, 1),
                                        (l_d2, 3, 2), (l_d3, 3, 3)]):
        w, b = _fold(layer)                     # [k,k,cin,ac]
        w = jnp.pad(w, ((0, 0), (0, 0), (0, cin_src - w.shape[2]), (0, 0)))
        b_parts.append(b)
        off = pad - d * (k - 1) // 2
        for i in range(k):
            for j in range(k):
                taps.append((off + i * d, off + j * d))
                w_taps.append(jnp.pad(w[i, j],
                                      ((0, 0), (bi * ac, CPAD - (bi + 1) * ac))))
    return {"stride": 1, "pad": pad, "taps": tuple(taps), "cin_src": cin_src,
            "w": jnp.stack(w_taps, axis=0).astype(jnp.bfloat16),
            "bias": jnp.concatenate(b_parts, 0).astype(jnp.float32)}


def prep_aspp_proj(proj_layer, pool_layer, cin_f4_eff, ac):
    """1x1 projection over the fused-branch tensor; the global-pool branch is folded
    into a per-image bias (computed in the forward wrapper, tiny dense math)."""
    wp, bp = _fold(proj_layer)
    wp = wp[0, 0]                               # [5*ac, ac]
    w_main = jnp.pad(wp[:4 * ac], ((0, CPAD - 4 * ac), (0, CPAD - ac)))
    b_main = jnp.pad(bp, (0, CPAD - ac))
    main = {"stride": 1, "pad": 0, "taps": ((0, 0),), "cin_src": CPAD,
            "w": w_main[None].astype(jnp.bfloat16),
            "bias": b_main.astype(jnp.float32)}
    wpool, bpool = _fold(pool_layer)
    gp = {"w_pool": jnp.pad(wpool[0, 0], ((0, cin_f4_eff - wpool.shape[2]), (0, 0))),
          "b_pool": bpool,
          "w_gp": jnp.pad(wp[4 * ac:], ((0, 0), (0, CPAD - ac)))}
    return main, gp


def prep_dec1(layer, ac):
    """3x3 decoder conv over concat([upsampled ASPP (128-wide), low-level proj (128-wide)])."""
    w, b = _fold(layer)                         # [3,3,ac+12,ac]
    c_low = w.shape[2] - ac
    w_up = jnp.pad(w[:, :, :ac, :], ((0, 0), (0, 0), (0, CPAD - ac), (0, CPAD - ac)))
    w_lo = jnp.pad(w[:, :, ac:, :], ((0, 0), (0, 0), (0, CPAD - c_low), (0, CPAD - ac)))
    we = jnp.concatenate([w_up, w_lo], axis=2)               # [3,3,256,128]
    be = jnp.pad(b, (0, CPAD - ac))
    taps = tuple((i, j) for i in range(3) for j in range(3))
    return {"stride": 1, "pad": 1, "taps": taps, "cin_src": 2 * CPAD,
            "w": we.reshape(9, 2 * CPAD, CPAD).astype(jnp.bfloat16),
            "bias": be.astype(jnp.float32)}


def make_params(key, in_channels=3, num_classes=11):
    ks = jax.random.split(key, 16)
    ac = 32
    raw = {
        # synthetic encoder (stand-in for efficientnet-b7), strides 2/4/8/16
        "enc1": make_layer(ks[0], 3, 3, in_channels, 16),
        "enc2": make_layer(ks[1], 3, 3, 16, 24),     # low-level (/4)
        "enc3": make_layer(ks[2], 3, 3, 24, 40),
        "enc4": make_layer(ks[3], 3, 3, 40, 64),     # high-level (/16)
        # ASPP (channels 64->32, atrous rates scaled to 1/2/3 for the small stand-in)
        "aspp0": make_layer(ks[4], 1, 1, 64, ac),
        "aspp1": make_layer(ks[5], 3, 3, 64, ac),
        "aspp2": make_layer(ks[6], 3, 3, 64, ac),
        "aspp3": make_layer(ks[7], 3, 3, 64, ac),
        "aspp_pool": make_layer(ks[8], 1, 1, 64, ac),
        "aspp_proj": make_layer(ks[9], 1, 1, 5 * ac, ac),
        "aspp_out": make_layer(ks[10], 3, 3, ac, ac),
        # decoder
        "dec_low": make_layer(ks[11], 1, 1, 24, 12),
        "dec1": make_layer(ks[12], 3, 3, ac + 12, ac),
        "dec2": make_layer(ks[13], 3, 3, ac, ac),
        # segmentation head (no BN, no activation)
        "head": make_layer(ks[14], 3, 3, ac, num_classes, has_bn=False),
    }
    P = {"num_classes": num_classes, "ac": ac}
    # stride-2 encoder: contraction carries 4*c_logical channels (padded to 128-multiples)
    P["enc1"] = prep_s2(raw["enc1"], in_channels, round_k_to_128=False)   # K = 12
    P["enc2"] = prep_s2(raw["enc2"], 16)                                  # K = 128
    P["enc3"] = prep_s2(raw["enc3"], 24)                                  # K = 128
    P["enc4"] = prep_s2(raw["enc4"], 40)                                  # K = 256
    # stride-1 convs contract only over the logical channels of their input
    P["aspp_br"] = prep_aspp_branches(raw["aspp0"], raw["aspp1"], raw["aspp2"],
                                      raw["aspp3"], 64, ac)
    P["aspp_proj"], P["gp"] = prep_aspp_proj(raw["aspp_proj"], raw["aspp_pool"],
                                             CPAD, ac)
    P["aspp_out"] = prep_s1(raw["aspp_out"], ac)
    P["dec_low"] = prep_s1(raw["dec_low"], 24)
    P["dec1"] = prep_dec1(raw["dec1"], ac)
    P["dec2"] = prep_s1(raw["dec2"], ac)
    P["head"] = prep_s1(raw["head"], ac)
    return P


# ----------------------------------------------------------------------------
# Forward pass
# ----------------------------------------------------------------------------
def deeplabv3plus_forward(x_nchw, P):
    x = jnp.transpose(x_nchw, (0, 2, 3, 1)).astype(jnp.bfloat16)   # NCHW -> NHWC, bf16

    # encoder
    f1 = apply_conv(x,  P["enc1"])        # /2   (16 logical ch)
    f2 = apply_conv(f1, P["enc2"])        # /4   (24) low-level
    f3 = apply_conv(f2, P["enc3"])        # /8   (40)
    f4 = apply_conv(f3, P["enc4"])        # /16  (64) high-level

    # ASPP: 1x1 + three dilated 3x3 branches fused into one 128-wide kernel call
    br = apply_conv(f4, P["aspp_br"])

    # global-average-pool branch folded into the projection's per-image bias
    gp_in = jnp.mean(f4.astype(jnp.float32), axis=(1, 2))                  # [N, 128]
    gp = jnp.maximum(gp_in @ P["gp"]["w_pool"] + P["gp"]["b_pool"], 0.0)   # [N, ac]
    bias_img = (P["aspp_proj"]["bias"][None, :] + gp @ P["gp"]["w_gp"])[:, None, :]
    aspp = apply_conv(br, P["aspp_proj"], bias_img=bias_img)   # 1x1 proj + BN + ReLU
    aspp = apply_conv(aspp, P["aspp_out"])                     # 3x3 refine

    # decoder (upsample only the 32 logical channels, re-pad to 128 for the concat)
    ac = P["ac"]
    up = upsample_bilinear(aspp[..., :ac], 4)                  # /16 -> /4, f32
    up = jnp.pad(up.astype(jnp.bfloat16),
                 ((0, 0), (0, 0), (0, 0), (0, CPAD - ac)))
    low = apply_conv(f2, P["dec_low"])                         # 1x1 low-level projection
    d = jnp.concatenate([up, low], axis=-1)                    # 256 stored (44 logical)
    d = apply_conv(d, P["dec1"])
    d = apply_conv(d, P["dec2"])

    # segmentation head (bf16, upcast after slicing to num_classes) + final upsample
    logits = apply_conv(d, P["head"], relu=False, out_dtype=jnp.bfloat16)
    logits = logits[..., :P["num_classes"]].astype(jnp.float32)
    logits = upsample_bilinear(logits, 4)                      # /4 -> /1
    return jnp.transpose(logits, (0, 3, 1, 2))                 # NHWC -> NCHW


# ----------------------------------------------------------------------------
if __name__ == "__main__":
    N, C_IN, H, W = 2, 3, 32, 32
    NUM_CLASSES = 11

    x = jax.random.normal(jax.random.PRNGKey(0), (N, C_IN, H, W), jnp.float32)
    params = make_params(jax.random.PRNGKey(42), in_channels=C_IN,
                         num_classes=NUM_CLASSES)

    fwd = jax.jit(lambda inp: deeplabv3plus_forward(inp, params))
    out = jax.block_until_ready(fwd(x))

    assert out.shape == (N, NUM_CLASSES, H, W), out.shape
    assert bool(jnp.all(jnp.isfinite(out)))
    print("KERNEL_OK")
</pallas_src>

<mosaic_0001>
module attributes {stable_mosaic.version = 11 : i64} {
  func.func @_tap_conv_kernel(%arg0: i32, %arg1: i32, %arg2: memref<1x1x576x12xbf16, #tpu.memory_space<vmem>>, %arg3: memref<4x12x128xbf16, #tpu.memory_space<vmem>>, %arg4: memref<1x1x128xf32, #tpu.memory_space<vmem>>, %arg5: memref<1x1x512x128xbf16, #tpu.memory_space<vmem>>, %arg6: memref<544x12xbf16, #tpu.memory_space<vmem>>) attributes {dimension_semantics = [#tpu.dimension_semantics<parallel>, #tpu.dimension_semantics<parallel>], iteration_bounds = array<i64: 2, 1>, scalar_prefetch = 0 : i64, scratch_operands = 1 : i64, tpu.core_type = #tpu.core_type<tc>, window_params = [{transform_indices = @transform_0, window_bounds = array<i64: 1, 1, 576, 12>}, {pipeline_mode = #tpu.pipeline_mode<synchronous>, transform_indices = @transform_1, window_bounds = array<i64: 4, 12, 128>}, {transform_indices = @transform_2, window_bounds = array<i64: 1, 1, 128>}, {transform_indices = @transform_3, window_bounds = array<i64: 1, 1, 512, 128>}]} {
    %c0 = arith.constant 0 : index
    %c0_0 = arith.constant 0 : index
    %c1 = arith.constant 1 : index
    %c0_1 = arith.constant 0 : index
    %0 = vector.load %arg2[%c0, %c0_0, %c1, %c0_1] : memref<1x1x576x12xbf16, #tpu.memory_space<vmem>>, vector<1x1x544x12xbf16>
    %1 = vector.shape_cast %0 : vector<1x1x544x12xbf16> to vector<544x12xbf16>
    %c0_2 = arith.constant 0 : index
    %c0_3 = arith.constant 0 : index
    %2 = vector.load %arg6[%c0_2, %c0_3] : memref<544x12xbf16, #tpu.memory_space<vmem>>, vector<544x12xbf16>
    tpu.vector_store %arg6[%c0_2, %c0_3], %1 {strides = array<i32>} : memref<544x12xbf16, #tpu.memory_space<vmem>>, vector<544x12xbf16>,
    %c0_4 = arith.constant 0 : index
    %c0_5 = arith.constant 0 : index
    %c0_6 = arith.constant 0 : index
    %3 = vector.load %arg4[%c0_4, %c0_5, %c0_6] : memref<1x1x128xf32, #tpu.memory_space<vmem>>, vector<1x1x128xf32>
    %4 = vector.shape_cast %3 : vector<1x1x128xf32> to vector<1x128xf32>
    %c0_i32 = arith.constant 0 : i32
    %c16_i32 = arith.constant 16 : i32
    %5 = arith.addi %c0_i32, %c16_i32 : i32
    %c1_i32 = arith.constant 1 : i32
    scf.for %arg7 = %c0_i32 to %5 step %c1_i32  : i32 {
      %c32_i32 = arith.constant 32 : i32
      %6 = arith.muli %arg7, %c32_i32 : i32
      %7 = tpu.assume_multiple %6, 16 : i32
      %cst = arith.constant 0.000000e+00 : f32
      %8 = vector.broadcast %cst : f32 to vector<32x128xf32>
      %c0_i32_8 = arith.constant 0 : i32
      %9 = arith.addi %7, %c0_i32_8 : i32
      %10 = tpu.assume_multiple %9, 16 : i32
      %c0_9 = arith.constant 0 : index
      %c0_10 = arith.constant 0 : index
      %11 = arith.index_cast %10 : i32 to index
      %c0_11 = arith.constant 0 : index
      %12 = vector.load %arg2[%c0_9, %c0_10, %11, %c0_11] : memref<1x1x576x12xbf16, #tpu.memory_space<vmem>>, vector<1x1x32x12xbf16>
      %13 = vector.shape_cast %12 : vector<1x1x32x12xbf16> to vector<32x12xbf16>
      %c0_12 = arith.constant 0 : index
      %c0_13 = arith.constant 0 : index
      %c0_14 = arith.constant 0 : index
      %14 = vector.load %arg3[%c0_12, %c0_13, %c0_14] : memref<4x12x128xbf16, #tpu.memory_space<vmem>>, vector<1x12x128xbf16>
      %15 = vector.shape_cast %14 : vector<1x12x128xbf16> to vector<12x128xbf16>
      %cst_15 = arith.constant dense<0.000000e+00> : vector<32x128xf32>
      %16 = tpu.matmul %13, %15, %cst_15 {dimension_numbers = #tpu.dot_dimension_numbers<[1], [0], [0], [1], [0, 0, 1, 1], [], []>} : vector<32x12xbf16>, vector<12x128xbf16>, vector<32x128xf32> -> vector<32x128xf32>
      %17 = arith.addf %8, %16 : vector<32x128xf32>
      %c0_i32_16 = arith.constant 0 : i32
      %18 = arith.addi %7, %c0_i32_16 : i32
      %19 = tpu.assume_multiple %18, 16 : i32
      %20 = arith.index_cast %19 : i32 to index
      %c0_17 = arith.constant 0 : index
      %21 = vector.load %arg6[%20, %c0_17] : memref<544x12xbf16, #tpu.memory_space<vmem>>, vector<32x12xbf16>
      %c1_18 = arith.constant 1 : index
      %c0_19 = arith.constant 0 : index
      %c0_20 = arith.constant 0 : index
      %22 = vector.load %arg3[%c1_18, %c0_19, %c0_20] : memref<4x12x128xbf16, #tpu.memory_space<vmem>>, vector<1x12x128xbf16>
      %23 = vector.shape_cast %22 : vector<1x12x128xbf16> to vector<12x128xbf16>
      %cst_21 = arith.constant dense<0.000000e+00> : vector<32x128xf32>
      %24 = tpu.matmul %21, %23, %cst_21 {dimension_numbers = #tpu.dot_dimension_numbers<[1], [0], [0], [1], [0, 0, 1, 1], [], []>} : vector<32x12xbf16>, vector<12x128xbf16>, vector<32x128xf32> -> vector<32x128xf32>
      %25 = arith.addf %17, %24 : vector<32x128xf32>
      %c32_i32_22 = arith.constant 32 : i32
      %26 = arith.addi %7, %c32_i32_22 : i32
      %27 = tpu.assume_multiple %26, 16 : i32
      %c0_23 = arith.constant 0 : index
      %c0_24 = arith.constant 0 : index
      %28 = arith.index_cast %27 : i32 to index
      %c0_25 = arith.constant 0 : index
      %29 = vector.load %arg2[%c0_23, %c0_24, %28, %c0_25] : memref<1x1x576x12xbf16, #tpu.memory_space<vmem>>, vector<1x1x32x12xbf16>
      %30 = vector.shape_cast %29 : vector<1x1x32x12xbf16> to vector<32x12xbf16>
      %c2 = arith.constant 2 : index
      %c0_26 = arith.constant 0 : index
      %c0_27 = arith.constant 0 : index
      %31 = vector.load %arg3[%c2, %c0_26, %c0_27] : memref<4x12x128xbf16, #tpu.memory_space<vmem>>, vector<1x12x128xbf16>
      %32 = vector.shape_cast %31 : vector<1x12x128xbf16> to vector<12x128xbf16>
      %cst_28 = arith.constant dense<0.000000e+00> : vector<32x128xf32>
      %33 = tpu.matmul %30, %32, %cst_28 {dimension_numbers = #tpu.dot_dimension_numbers<[1], [0], [0], [1], [0, 0, 1, 1], [], []>} : vector<32x12xbf16>, vector<12x128xbf16>, vector<32x128xf32> -> vector<32x128xf32>
      %34 = arith.addf %25, %33 : vector<32x128xf32>
      %c32_i32_29 = arith.constant 32 : i32
      %35 = arith.addi %7, %c32_i32_29 : i32
      %36 = tpu.assume_multiple %35, 16 : i32
      %37 = arith.index_cast %36 : i32 to index
      %c0_30 = arith.constant 0 : index
      %38 = vector.load %arg6[%37, %c0_30] : memref<544x12xbf16, #tpu.memory_space<vmem>>, vector<32x12xbf16>
      %c3 = arith.constant 3 : index
      %c0_31 = arith.constant 0 : index
      %c0_32 = arith.constant 0 : index
      %39 = vector.load %arg3[%c3, %c0_31, %c0_32] : memref<4x12x128xbf16, #tpu.memory_space<vmem>>, vector<1x12x128xbf16>
      %40 = vector.shape_cast %39 : vector<1x12x128xbf16> to vector<12x128xbf16>
      %cst_33 = arith.constant dense<0.000000e+00> : vector<32x128xf32>
      %41 = tpu.matmul %38, %40, %cst_33 {dimension_numbers = #tpu.dot_dimension_numbers<[1], [0], [0], [1], [0, 0, 1, 1], [], []>} : vector<32x12xbf16>, vector<12x128xbf16>, vector<32x128xf32> -> vector<32x128xf32>
      %42 = arith.addf %34, %41 : vector<32x128xf32>
      %43 = vector.broadcast %4 : vector<1x128xf32> to vector<32x128xf32>
      %44 = arith.addf %42, %43 : vector<32x128xf32>
      %cst_34 = arith.constant 0.000000e+00 : f32
      %45 = vector.broadcast %cst_34 : f32 to vector<32x128xf32>
      %46 = arith.maximumf %44, %45 : vector<32x128xf32>
      %47 = arith.truncf %46 : vector<32x128xf32> to vector<32x128xbf16>
      %c0_35 = arith.constant 0 : index
      %c0_36 = arith.constant 0 : index
      %48 = arith.index_cast %7 : i32 to index
      %c0_37 = arith.constant 0 : index
      %49 = vector.load %arg5[%c0_35, %c0_36, %48, %c0_37] : memref<1x1x512x128xbf16, #tpu.memory_space<vmem>>, vector<1x1x32x128xbf16>
      %50 = vector.shape_cast %49 : vector<1x1x32x128xbf16> to vector<32x128xbf16>
      %51 = vector.shape_cast %47 : vector<32x128xbf16> to vector<1x1x32x128xbf16>
      tpu.vector_store %arg5[%c0_35, %c0_36, %48, %c0_37], %51 {strides = array<i32>} : memref<1x1x512x128xbf16, #tpu.memory_space<vmem>>, vector<1x1x32x128xbf16>,
    }
    %c16_i32_7 = arith.constant 16 : i32
    return
  }
  func.func @transform_0(%arg0: i32, %arg1: i32) -> (i32, i32, i32, i32) {
    %c0_i32 = arith.constant 0 : i32
    %c0_i32_0 = arith.constant 0 : i32
    %c0_i32_1 = arith.constant 0 : i32
    return %arg0, %arg1, %c0_i32, %c0_i32_0 : i32, i32, i32, i32
  }
  func.func @transform_1(%arg0: i32, %arg1: i32) -> (i32, i32, i32) {
    %c0_i32 = arith.constant 0 : i32
    %c0_i32_0 = arith.constant 0 : i32
    %c0_i32_1 = arith.constant 0 : i32
    %c0_i32_2 = arith.constant 0 : i32
    return %c0_i32, %c0_i32_0, %c0_i32_1 : i32, i32, i32
  }
  func.func @transform_2(%arg0: i32, %arg1: i32) -> (i32, i32, i32) {
    %c0_i32 = arith.constant 0 : i32
    %c0_i32_0 = arith.constant 0 : i32
    %c0_i32_1 = arith.constant 0 : i32
    return %arg0, %c0_i32, %c0_i32_0 : i32, i32, i32
  }
  func.func @transform_3(%arg0: i32, %arg1: i32) -> (i32, i32, i32, i32) {
    %c0_i32 = arith.constant 0 : i32
    %c0_i32_0 = arith.constant 0 : i32
    %c0_i32_1 = arith.constant 0 : i32
    return %arg0, %arg1, %c0_i32, %c0_i32_0 : i32, i32, i32, i32
  }
}

module attributes {stable_mosaic.version = 11 : i64} {
  func.func @_tap_conv_kernel(%arg0: i32, %arg1: i32, %arg2: memref<1x1x160x128xbf16, #tpu.memory_space<vmem>>, %arg3: memref<4x128x128xbf16, #tpu.memory_space<vmem>>, %arg4: memref<1x1x128xf32, #tpu.memory_space<vmem>>, %arg5: memref<1x1x128x128xbf16, #tpu.memory_space<vmem>>, %arg6: memref<144x128xbf16, #tpu.memory_space<vmem>>) attributes {dimension_semantics = [#tpu.dimension_semantics<parallel>, #tpu.dimension_semantics<parallel>], iteration_bounds = array<i64: 2, 1>, scalar_prefetch = 0 : i64, scratch_operands = 1 : i64, tpu.core_type = #tpu.core_type<tc>, window_params = [{transform_indices = @transform_0, window_bounds = array<i64: 1, 1, 160, 128>}, {pipeline_mode = #tpu.pipeline_mode<synchronous>, transform_indices = @transform_1, window_bounds = array<i64: 4, 128, 128>}, {transform_indices = @transform_2, window_bounds = array<i64: 1, 1, 128>}, {transform_indices = @transform_3, window_bounds = array<i64: 1, 1, 128, 128>}]} {
    %c0 = arith.constant 0 : index
    %c0_0 = arith.constant 0 : index
    %c1 = arith.constant 1 : index
    %c0_1 = arith.constant 0 : index
    %0 = vector.load %arg2[%c0, %c0_0, %c1, %c0_1] : memref<1x1x160x128xbf16, #tpu.memory_space<vmem>>, vector<1x1x144x128xbf16>
    %1 = vector.shape_cast %0 : vector<1x1x144x128xbf16> to vector<144x128xbf16>
    %c0_2 = arith.constant 0 : index
    %c0_3 = arith.constant 0 : index
    %2 = vector.load %arg6[%c0_2, %c0_3] : memref<144x128xbf16, #tpu.memory_space<vmem>>, vector<144x128xbf16>
    tpu.vector_store %arg6[%c0_2, %c0_3], %1 {strides = array<i32>} : memref<144x128xbf16, #tpu.memory_space<vmem>>, vector<144x128xbf16>,
    %c0_4 = arith.constant 0 : index
    %c0_5 = arith.constant 0 : index
    %c0_6 = arith.constant 0 : index
    %3 = vector.load %arg4[%c0_4, %c0_5, %c0_6] : memref<1x1x128xf32, #tpu.memory_space<vmem>>, vector<1x1x128xf32>
    %4 = vector.shape_cast %3 : vector<1x1x128xf32> to vector<1x128xf32>
    %c0_i32 = arith.constant 0 : i32
    %c8_i32 = arith.constant 8 : i32
    %5 = arith.addi %c0_i32, %c8_i32 : i32
    %c1_i32 = arith.constant 1 : i32
    scf.for %arg7 = %c0_i32 to %5 step %c1_i32  : i32 {
      %c16_i32 = arith.constant 16 : i32
      %6 = arith.muli %arg7, %c16_i32 : i32
      %7 = tpu.assume_multiple %6, 16 : i32
      %cst = arith.constant 0.000000e+00 : f32
      %8 = vector.broadcast %cst : f32 to vector<16x128xf32>
      %c0_i32_8 = arith.constant 0 : i32
      %9 = arith.addi %7, %c0_i32_8 : i32
      %10 = tpu.assume_multiple %9, 16 : i32
      %c0_9 = arith.constant 0 : index
      %c0_10 = arith.constant 0 : index
      %11 = arith.index_cast %10 : i32 to index
      %c0_11 = arith.constant 0 : index
      %12 = vector.load %arg2[%c0_9, %c0_10, %11, %c0_11] : memref<1x1x160x128xbf16, #tpu.memory_space<vmem>>, vector<1x1x16x128xbf16>
      %13 = vector.shape_cast %12 : vector<1x1x16x128xbf16> to vector<16x128xbf16>
      %c0_12 = arith.constant 0 : index
      %c0_13 = arith.constant 0 : index
      %c0_14 = arith.constant 0 : index
      %14 = vector.load %arg3[%c0_12, %c0_13, %c0_14] : memref<4x128x128xbf16, #tpu.memory_space<vmem>>, vector<1x128x128xbf16>
      %15 = vector.shape_cast %14 : vector<1x128x128xbf16> to vector<128x128xbf16>
      %cst_15 = arith.constant dense<0.000000e+00> : vector<16x128xf32>
      %16 = tpu.matmul %13, %15, %cst_15 {dimension_numbers = #tpu.dot_dimension_numbers<[1], [0], [0], [1], [0, 0, 1, 1], [], []>} : vector<16x128xbf16>, vector<128x128xbf16>, vector<16x128xf32> -> vector<16x128xf32>
      %17 = arith.addf %8, %16 : vector<16x128xf32>
      %c0_i32_16 = arith.constant 0 : i32
      %18 = arith.addi %7, %c0_i32_16 : i32
      %19 = tpu.assume_multiple %18, 16 : i32
      %20 = arith.index_cast %19 : i32 to index
      %c0_17 = arith.constant 0 : index
      %21 = vector.load %arg6[%20, %c0_17] : memref<144x128xbf16, #tpu.memory_space<vmem>>, vector<16x128xbf16>
      %c1_18 = arith.constant 1 : index
      %c0_19 = arith.constant 0 : index
      %c0_20 = arith.constant 0 : index
      %22 = vector.load %arg3[%c1_18, %c0_19, %c0_20] : memref<4x128x128xbf16, #tpu.memory_space<vmem>>, vector<1x128x128xbf16>
      %23 = vector.shape_cast %22 : vector<1x128x128xbf16> to vector<128x128xbf16>
      %cst_21 = arith.constant dense<0.000000e+00> : vector<16x128xf32>
      %24 = tpu.matmul %21, %23, %cst_21 {dimension_numbers = #tpu.dot_dimension_numbers<[1], [0], [0], [1], [0, 0, 1, 1], [], []>} : vector<16x128xbf16>, vector<128x128xbf16>, vector<16x128xf32> -> vector<16x128xf32>
      %25 = arith.addf %17, %24 : vector<16x128xf32>
      %c16_i32_22 = arith.constant 16 : i32
      %26 = arith.addi %7, %c16_i32_22 : i32
      %27 = tpu.assume_multiple %26, 16 : i32
      %c0_23 = arith.constant 0 : index
      %c0_24 = arith.constant 0 : index
      %28 = arith.index_cast %27 : i32 to index
      %c0_25 = arith.constant 0 : index
      %29 = vector.load %arg2[%c0_23, %c0_24, %28, %c0_25] : memref<1x1x160x128xbf16, #tpu.memory_space<vmem>>, vector<1x1x16x128xbf16>
      %30 = vector.shape_cast %29 : vector<1x1x16x128xbf16> to vector<16x128xbf16>
      %c2 = arith.constant 2 : index
      %c0_26 = arith.constant 0 : index
      %c0_27 = arith.constant 0 : index
      %31 = vector.load %arg3[%c2, %c0_26, %c0_27] : memref<4x128x128xbf16, #tpu.memory_space<vmem>>, vector<1x128x128xbf16>
      %32 = vector.shape_cast %31 : vector<1x128x128xbf16> to vector<128x128xbf16>
      %cst_28 = arith.constant dense<0.000000e+00> : vector<16x128xf32>
      %33 = tpu.matmul %30, %32, %cst_28 {dimension_numbers = #tpu.dot_dimension_numbers<[1], [0], [0], [1], [0, 0, 1, 1], [], []>} : vector<16x128xbf16>, vector<128x128xbf16>, vector<16x128xf32> -> vector<16x128xf32>
      %34 = arith.addf %25, %33 : vector<16x128xf32>
      %c16_i32_29 = arith.constant 16 : i32
      %35 = arith.addi %7, %c16_i32_29 : i32
      %36 = tpu.assume_multiple %35, 16 : i32
      %37 = arith.index_cast %36 : i32 to index
      %c0_30 = arith.constant 0 : index
      %38 = vector.load %arg6[%37, %c0_30] : memref<144x128xbf16, #tpu.memory_space<vmem>>, vector<16x128xbf16>
      %c3 = arith.constant 3 : index
      %c0_31 = arith.constant 0 : index
      %c0_32 = arith.constant 0 : index
      %39 = vector.load %arg3[%c3, %c0_31, %c0_32] : memref<4x128x128xbf16, #tpu.memory_space<vmem>>, vector<1x128x128xbf16>
      %40 = vector.shape_cast %39 : vector<1x128x128xbf16> to vector<128x128xbf16>
      %cst_33 = arith.constant dense<0.000000e+00> : vector<16x128xf32>
      %41 = tpu.matmul %38, %40, %cst_33 {dimension_numbers = #tpu.dot_dimension_numbers<[1], [0], [0], [1], [0, 0, 1, 1], [], []>} : vector<16x128xbf16>, vector<128x128xbf16>, vector<16x128xf32> -> vector<16x128xf32>
      %42 = arith.addf %34, %41 : vector<16x128xf32>
      %43 = vector.broadcast %4 : vector<1x128xf32> to vector<16x128xf32>
      %44 = arith.addf %42, %43 : vector<16x128xf32>
      %cst_34 = arith.constant 0.000000e+00 : f32
      %45 = vector.broadcast %cst_34 : f32 to vector<16x128xf32>
      %46 = arith.maximumf %44, %45 : vector<16x128xf32>
      %47 = arith.truncf %46 : vector<16x128xf32> to vector<16x128xbf16>
      %c0_35 = arith.constant 0 : index
      %c0_36 = arith.constant 0 : index
      %48 = arith.index_cast %7 : i32 to index
      %c0_37 = arith.constant 0 : index
      %49 = vector.load %arg5[%c0_35, %c0_36, %48, %c0_37] : memref<1x1x128x128xbf16, #tpu.memory_space<vmem>>, vector<1x1x16x128xbf16>
      %50 = vector.shape_cast %49 : vector<1x1x16x128xbf16> to vector<16x128xbf16>
      %51 = vector.shape_cast %47 : vector<16x128xbf16> to vector<1x1x16x128xbf16>
      tpu.vector_store %arg5[%c0_35, %c0_36, %48, %c0_37], %51 {strides = array<i32>} : memref<1x1x128x128xbf16, #tpu.memory_space<vmem>>, vector<1x1x16x128xbf16>,
    }
    %c8_i32_7 = arith.constant 8 : i32
    return
  }
  func.func @transform_0(%arg0: i32, %arg1: i32) -> (i32, i32, i32, i32) {
    %c0_i32 = arith.constant 0 : i32
    %c0_i32_0 = arith.constant 0 : i32
    %c0_i32_1 = arith.constant 0 : i32
    return %arg0, %arg1, %c0_i32, %c0_i32_0 : i32, i32, i32, i32
  }
  func.func @transform_1(%arg0: i32, %arg1: i32) -> (i32, i32, i32) {
    %c0_i32 = arith.constant 0 : i32
    %c0_i32_0 = arith.constant 0 : i32
    %c0_i32_1 = arith.constant 0 : i32
    %c0_i32_2 = arith.constant 0 : i32
    return %c0_i32, %c0_i32_0, %c0_i32_1 : i32, i32, i32
  }
  func.func @transform_2(%arg0: i32, %arg1: i32) -> (i32, i32, i32) {
    %c0_i32 = arith.constant 0 : i32
    %c0_i32_0 = arith.constant 0 : i32
    %c0_i32_1 = arith.constant 0 : i32
    return %arg0, %c0_i32, %c0_i32_0 : i32, i32, i32
  }
  func.func @transform_3(%arg0: i32, %arg1: i32) -> (i32, i32, i32, i32) {
    %c0_i32 = arith.constant 0 : i32
    %c0_i32_0 = arith.constant 0 : i32
    %c0_i32_1 = arith.constant 0 : i32
    return %arg0, %arg1, %c0_i32, %c0_i32_0 : i32, i32, i32, i32
  }
}

module attributes {stable_mosaic.version = 11 : i64} {
  func.func @_tap_conv_kernel(%arg0: i32, %arg1: i32, %arg2: memref<1x1x96x128xbf16, #tpu.memory_space<vmem>>, %arg3: memref<4x128x128xbf16, #tpu.memory_space<vmem>>, %arg4: memref<1x1x128xf32, #tpu.memory_space<vmem>>, %arg5: memref<1x1x64x128xbf16, #tpu.memory_space<vmem>>, %arg6: memref<80x128xbf16, #tpu.memory_space<vmem>>) attributes {dimension_semantics = [#tpu.dimension_semantics<parallel>, #tpu.dimension_semantics<parallel>], iteration_bounds = array<i64: 2, 1>, scalar_prefetch = 0 : i64, scratch_operands = 1 : i64, tpu.core_type = #tpu.core_type<tc>, window_params = [{transform_indices = @transform_0, window_bounds = array<i64: 1, 1, 96, 128>}, {pipeline_mode = #tpu.pipeline_mode<synchronous>, transform_indices = @transform_1, window_bounds = array<i64: 4, 128, 128>}, {transform_indices = @transform_2, window_bounds = array<i64: 1, 1, 128>}, {transform_indices = @transform_3, window_bounds = array<i64: 1, 1, 64, 128>}]} {
    %c0 = arith.constant 0 : index
    %c0_0 = arith.constant 0 : index
    %c1 = arith.constant 1 : index
    %c0_1 = arith.constant 0 : index
    %0 = vector.load %arg2[%c0, %c0_0, %c1, %c0_1] : memref<1x1x96x128xbf16, #tpu.memory_space<vmem>>, vector<1x1x80x128xbf16>
    %1 = vector.shape_cast %0 : vector<1x1x80x128xbf16> to vector<80x128xbf16>
    %c0_2 = arith.constant 0 : index
    %c0_3 = arith.constant 0 : index
    %2 = vector.load %arg6[%c0_2, %c0_3] : memref<80x128xbf16, #tpu.memory_space<vmem>>, vector<80x128xbf16>
    tpu.vector_store %arg6[%c0_2, %c0_3], %1 {strides = array<i32>} : memref<80x128xbf16, #tpu.memory_space<vmem>>, vector<80x128xbf16>,
    %c0_4 = arith.constant 0 : index
    %c0_5 = arith.constant 0 : index
    %c0_6 = arith.constant 0 : index
    %3 = vector.load %arg4[%c0_4, %c0_5, %c0_6] : memref<1x1x128xf32, #tpu.memory_space<vmem>>, vector<1x1x128xf32>
    %4 = vector.shape_cast %3 : vector<1x1x128xf32> to vector<1x128xf32>
    %c0_i32 = arith.constant 0 : i32
    %c4_i32 = arith.constant 4 : i32
    %5 = arith.addi %c0_i32, %c4_i32 : i32
    %c1_i32 = arith.constant 1 : i32
    scf.for %arg7 = %c0_i32 to %5 step %c1_i32  : i32 {
      %c16_i32 = arith.constant 16 : i32
      %6 = arith.muli %arg7, %c16_i32 : i32
      %7 = tpu.assume_multiple %6, 16 : i32
      %cst = arith.constant 0.000000e+00 : f32
      %8 = vector.broadcast %cst : f32 to vector<16x128xf32>
      %c0_i32_8 = arith.constant 0 : i32
      %9 = arith.addi %7, %c0_i32_8 : i32
      %10 = tpu.assume_multiple %9, 16 : i32
      %c0_9 = arith.constant 0 : index
      %c0_10 = arith.constant 0 : index
      %11 = arith.index_cast %10 : i32 to index
      %c0_11 = arith.constant 0 : index
      %12 = vector.load %arg2[%c0_9, %c0_10, %11, %c0_11] : memref<1x1x96x128xbf16, #tpu.memory_space<vmem>>, vector<1x1x16x128xbf16>
      %13 = vector.shape_cast %12 : vector<1x1x16x128xbf16> to vector<16x128xbf16>
      %c0_12 = arith.constant 0 : index
      %c0_13 = arith.constant 0 : index
      %c0_14 = arith.constant 0 : index
      %14 = vector.load %arg3[%c0_12, %c0_13, %c0_14] : memref<4x128x128xbf16, #tpu.memory_space<vmem>>, vector<1x128x128xbf16>
      %15 = vector.shape_cast %14 : vector<1x128x128xbf16> to vector<128x128xbf16>
      %cst_15 = arith.constant dense<0.000000e+00> : vector<16x128xf32>
      %16 = tpu.matmul %13, %15, %cst_15 {dimension_numbers = #tpu.dot_dimension_numbers<[1], [0], [0], [1], [0, 0, 1, 1], [], []>} : vector<16x128xbf16>, vector<128x128xbf16>, vector<16x128xf32> -> vector<16x128xf32>
      %17 = arith.addf %8, %16 : vector<16x128xf32>
      %c0_i32_16 = arith.constant 0 : i32
      %18 = arith.addi %7, %c0_i32_16 : i32
      %19 = tpu.assume_multiple %18, 16 : i32
      %20 = arith.index_cast %19 : i32 to index
      %c0_17 = arith.constant 0 : index
      %21 = vector.load %arg6[%20, %c0_17] : memref<80x128xbf16, #tpu.memory_space<vmem>>, vector<16x128xbf16>
      %c1_18 = arith.constant 1 : index
      %c0_19 = arith.constant 0 : index
      %c0_20 = arith.constant 0 : index
      %22 = vector.load %arg3[%c1_18, %c0_19, %c0_20] : memref<4x128x128xbf16, #tpu.memory_space<vmem>>, vector<1x128x128xbf16>
      %23 = vector.shape_cast %22 : vector<1x128x128xbf16> to vector<128x128xbf16>
      %cst_21 = arith.constant dense<0.000000e+00> : vector<16x128xf32>
      %24 = tpu.matmul %21, %23, %cst_21 {dimension_numbers = #tpu.dot_dimension_numbers<[1], [0], [0], [1], [0, 0, 1, 1], [], []>} : vector<16x128xbf16>, vector<128x128xbf16>, vector<16x128xf32> -> vector<16x128xf32>
      %25 = arith.addf %17, %24 : vector<16x128xf32>
      %c16_i32_22 = arith.constant 16 : i32
      %26 = arith.addi %7, %c16_i32_22 : i32
      %27 = tpu.assume_multiple %26, 16 : i32
      %c0_23 = arith.constant 0 : index
      %c0_24 = arith.constant 0 : index
      %28 = arith.index_cast %27 : i32 to index
      %c0_25 = arith.constant 0 : index
      %29 = vector.load %arg2[%c0_23, %c0_24, %28, %c0_25] : memref<1x1x96x128xbf16, #tpu.memory_space<vmem>>, vector<1x1x16x128xbf16>
      %30 = vector.shape_cast %29 : vector<1x1x16x128xbf16> to vector<16x128xbf16>
      %c2 = arith.constant 2 : index
      %c0_26 = arith.constant 0 : index
      %c0_27 = arith.constant 0 : index
      %31 = vector.load %arg3[%c2, %c0_26, %c0_27] : memref<4x128x128xbf16, #tpu.memory_space<vmem>>, vector<1x128x128xbf16>
      %32 = vector.shape_cast %31 : vector<1x128x128xbf16> to vector<128x128xbf16>
      %cst_28 = arith.constant dense<0.000000e+00> : vector<16x128xf32>
      %33 = tpu.matmul %30, %32, %cst_28 {dimension_numbers = #tpu.dot_dimension_numbers<[1], [0], [0], [1], [0, 0, 1, 1], [], []>} : vector<16x128xbf16>, vector<128x128xbf16>, vector<16x128xf32> -> vector<16x128xf32>
      %34 = arith.addf %25, %33 : vector<16x128xf32>
      %c16_i32_29 = arith.constant 16 : i32
      %35 = arith.addi %7, %c16_i32_29 : i32
      %36 = tpu.assume_multiple %35, 16 : i32
      %37 = arith.index_cast %36 : i32 to index
      %c0_30 = arith.constant 0 : index
      %38 = vector.load %arg6[%37, %c0_30] : memref<80x128xbf16, #tpu.memory_space<vmem>>, vector<16x128xbf16>
      %c3 = arith.constant 3 : index
      %c0_31 = arith.constant 0 : index
      %c0_32 = arith.constant 0 : index
      %39 = vector.load %arg3[%c3, %c0_31, %c0_32] : memref<4x128x128xbf16, #tpu.memory_space<vmem>>, vector<1x128x128xbf16>
      %40 = vector.shape_cast %39 : vector<1x128x128xbf16> to vector<128x128xbf16>
      %cst_33 = arith.constant dense<0.000000e+00> : vector<16x128xf32>
      %41 = tpu.matmul %38, %40, %cst_33 {dimension_numbers = #tpu.dot_dimension_numbers<[1], [0], [0], [1], [0, 0, 1, 1], [], []>} : vector<16x128xbf16>, vector<128x128xbf16>, vector<16x128xf32> -> vector<16x128xf32>
      %42 = arith.addf %34, %41 : vector<16x128xf32>
      %43 = vector.broadcast %4 : vector<1x128xf32> to vector<16x128xf32>
      %44 = arith.addf %42, %43 : vector<16x128xf32>
      %cst_34 = arith.constant 0.000000e+00 : f32
      %45 = vector.broadcast %cst_34 : f32 to vector<16x128xf32>
      %46 = arith.maximumf %44, %45 : vector<16x128xf32>
      %47 = arith.truncf %46 : vector<16x128xf32> to vector<16x128xbf16>
      %c0_35 = arith.constant 0 : index
      %c0_36 = arith.constant 0 : index
      %48 = arith.index_cast %7 : i32 to index
      %c0_37 = arith.constant 0 : index
      %49 = vector.load %arg5[%c0_35, %c0_36, %48, %c0_37] : memref<1x1x64x128xbf16, #tpu.memory_space<vmem>>, vector<1x1x16x128xbf16>
      %50 = vector.shape_cast %49 : vector<1x1x16x128xbf16> to vector<16x128xbf16>
      %51 = vector.shape_cast %47 : vector<16x128xbf16> to vector<1x1x16x128xbf16>
      tpu.vector_store %arg5[%c0_35, %c0_36, %48, %c0_37], %51 {strides = array<i32>} : memref<1x1x64x128xbf16, #tpu.memory_space<vmem>>, vector<1x1x16x128xbf16>,
    }
    %c4_i32_7 = arith.constant 4 : i32
    return
  }
  func.func @transform_0(%arg0: i32, %arg1: i32) -> (i32, i32, i32, i32) {
    %c0_i32 = arith.constant 0 : i32
    %c0_i32_0 = arith.constant 0 : i32
    %c0_i32_1 = arith.constant 0 : i32
    return %arg0, %arg1, %c0_i32, %c0_i32_0 : i32, i32, i32, i32
  }
  func.func @transform_1(%arg0: i32, %arg1: i32) -> (i32, i32, i32) {
    %c0_i32 = arith.constant 0 : i32
    %c0_i32_0 = arith.constant 0 : i32
    %c0_i32_1 = arith.constant 0 : i32
    %c0_i32_2 = arith.constant 0 : i32
    return %c0_i32, %c0_i32_0, %c0_i32_1 : i32, i32, i32
  }
  func.func @transform_2(%arg0: i32, %arg1: i32) -> (i32, i32, i32) {
    %c0_i32 = arith.constant 0 : i32
    %c0_i32_0 = arith.constant 0 : i32
    %c0_i32_1 = arith.constant 0 : i32
    return %arg0, %c0_i32, %c0_i32_0 : i32, i32, i32
  }
  func.func @transform_3(%arg0: i32, %arg1: i32) -> (i32, i32, i32, i32) {
    %c0_i32 = arith.constant 0 : i32
    %c0_i32_0 = arith.constant 0 : i32
    %c0_i32_1 = arith.constant 0 : i32
    return %arg0, %arg1, %c0_i32, %c0_i32_0 : i32, i32, i32, i32
  }
}

module attributes {stable_mosaic.version = 11 : i64} {
  func.func @_tap_conv_kernel(%arg0: i32, %arg1: i32, %arg2: memref<1x1x64x256xbf16, #tpu.memory_space<vmem>>, %arg3: memref<4x256x128xbf16, #tpu.memory_space<vmem>>, %arg4: memref<1x1x128xf32, #tpu.memory_space<vmem>>, %arg5: memref<1x1x32x128xbf16, #tpu.memory_space<vmem>>, %arg6: memref<48x256xbf16, #tpu.memory_space<vmem>>) attributes {dimension_semantics = [#tpu.dimension_semantics<parallel>, #tpu.dimension_semantics<parallel>], iteration_bounds = array<i64: 2, 1>, scalar_prefetch = 0 : i64, scratch_operands = 1 : i64, tpu.core_type = #tpu.core_type<tc>, window_params = [{transform_indices = @transform_0, window_bounds = array<i64: 1, 1, 64, 256>}, {pipeline_mode = #tpu.pipeline_mode<synchronous>, transform_indices = @transform_1, window_bounds = array<i64: 4, 256, 128>}, {transform_indices = @transform_2, window_bounds = array<i64: 1, 1, 128>}, {transform_indices = @transform_3, window_bounds = array<i64: 1, 1, 32, 128>}]} {
    %c0 = arith.constant 0 : index
    %c0_0 = arith.constant 0 : index
    %c1 = arith.constant 1 : index
    %c0_1 = arith.constant 0 : index
    %0 = vector.load %arg2[%c0, %c0_0, %c1, %c0_1] : memref<1x1x64x256xbf16, #tpu.memory_space<vmem>>, vector<1x1x48x256xbf16>
    %1 = vector.shape_cast %0 : vector<1x1x48x256xbf16> to vector<48x256xbf16>
    %c0_2 = arith.constant 0 : index
    %c0_3 = arith.constant 0 : index
    %2 = vector.load %arg6[%c0_2, %c0_3] : memref<48x256xbf16, #tpu.memory_space<vmem>>, vector<48x256xbf16>
    tpu.vector_store %arg6[%c0_2, %c0_3], %1 {strides = array<i32>} : memref<48x256xbf16, #tpu.memory_space<vmem>>, vector<48x256xbf16>,
    %c0_4 = arith.constant 0 : index
    %c0_5 = arith.constant 0 : index
    %c0_6 = arith.constant 0 : index
    %3 = vector.load %arg4[%c0_4, %c0_5, %c0_6] : memref<1x1x128xf32, #tpu.memory_space<vmem>>, vector<1x1x128xf32>
    %4 = vector.shape_cast %3 : vector<1x1x128xf32> to vector<1x128xf32>
    %c0_i32 = arith.constant 0 : i32
    %c2_i32 = arith.constant 2 : i32
    %5 = arith.addi %c0_i32, %c2_i32 : i32
    %c1_i32 = arith.constant 1 : i32
    scf.for %arg7 = %c0_i32 to %5 step %c1_i32  : i32 {
      %c16_i32 = arith.constant 16 : i32
      %6 = arith.muli %arg7, %c16_i32 : i32
      %7 = tpu.assume_multiple %6, 16 : i32
      %cst = arith.constant 0.000000e+00 : f32
      %8 = vector.broadcast %cst : f32 to vector<16x128xf32>
      %c0_i32_8 = arith.constant 0 : i32
      %9 = arith.addi %7, %c0_i32_8 : i32
      %10 = tpu.assume_multiple %9, 16 : i32
      %c0_9 = arith.constant 0 : index
      %c0_10 = arith.constant 0 : index
      %11 = arith.index_cast %10 : i32 to index
      %c0_11 = arith.constant 0 : index
      %12 = vector.load %arg2[%c0_9, %c0_10, %11, %c0_11] : memref<1x1x64x256xbf16, #tpu.memory_space<vmem>>, vector<1x1x16x256xbf16>
      %13 = vector.shape_cast %12 : vector<1x1x16x256xbf16> to vector<16x256xbf16>
      %c0_12 = arith.constant 0 : index
      %c0_13 = arith.constant 0 : index
      %c0_14 = arith.constant 0 : index
      %14 = vector.load %arg3[%c0_12, %c0_13, %c0_14] : memref<4x256x128xbf16, #tpu.memory_space<vmem>>, vector<1x256x128xbf16>
      %15 = vector.shape_cast %14 : vector<1x256x128xbf16> to vector<256x128xbf16>
      %cst_15 = arith.constant dense<0.000000e+00> : vector<16x128xf32>
      %16 = tpu.matmul %13, %15, %cst_15 {dimension_numbers = #tpu.dot_dimension_numbers<[1], [0], [0], [1], [0, 0, 1, 1], [], []>} : vector<16x256xbf16>, vector<256x128xbf16>, vector<16x128xf32> -> vector<16x128xf32>
      %17 = arith.addf %8, %16 : vector<16x128xf32>
      %c0_i32_16 = arith.constant 0 : i32
      %18 = arith.addi %7, %c0_i32_16 : i32
      %19 = tpu.assume_multiple %18, 16 : i32
      %20 = arith.index_cast %19 : i32 to index
      %c0_17 = arith.constant 0 : index
      %21 = vector.load %arg6[%20, %c0_17] : memref<48x256xbf16, #tpu.memory_space<vmem>>, vector<16x256xbf16>
      %c1_18 = arith.constant 1 : index
      %c0_19 = arith.constant 0 : index
      %c0_20 = arith.constant 0 : index
      %22 = vector.load %arg3[%c1_18, %c0_19, %c0_20] : memref<4x256x128xbf16, #tpu.memory_space<vmem>>, vector<1x256x128xbf16>
      %23 = vector.shape_cast %22 : vector<1x256x128xbf16> to vector<256x128xbf16>
      %cst_21 = arith.constant dense<0.000000e+00> : vector<16x128xf32>
      %24 = tpu.matmul %21, %23, %cst_21 {dimension_numbers = #tpu.dot_dimension_numbers<[1], [0], [0], [1], [0, 0, 1, 1], [], []>} : vector<16x256xbf16>, vector<256x128xbf16>, vector<16x128xf32> -> vector<16x128xf32>
      %25 = arith.addf %17, %24 : vector<16x128xf32>
      %c16_i32_22 = arith.constant 16 : i32
      %26 = arith.addi %7, %c16_i32_22 : i32
      %27 = tpu.assume_multiple %26, 16 : i32
      %c0_23 = arith.constant 0 : index
      %c0_24 = arith.constant 0 : index
      %28 = arith.index_cast %27 : i32 to index
      %c0_25 = arith.constant 0 : index
      %29 = vector.load %arg2[%c0_23, %c0_24, %28, %c0_25] : memref<1x1x64x256xbf16, #tpu.memory_space<vmem>>, vector<1x1x16x256xbf16>
      %30 = vector.shape_cast %29 : vector<1x1x16x256xbf16> to vector<16x256xbf16>
      %c2 = arith.constant 2 : index
      %c0_26 = arith.constant 0 : index
      %c0_27 = arith.constant 0 : index
      %31 = vector.load %arg3[%c2, %c0_26, %c0_27] : memref<4x256x128xbf16, #tpu.memory_space<vmem>>, vector<1x256x128xbf16>
      %32 = vector.shape_cast %31 : vector<1x256x128xbf16> to vector<256x128xbf16>
      %cst_28 = arith.constant dense<0.000000e+00> : vector<16x128xf32>
      %33 = tpu.matmul %30, %32, %cst_28 {dimension_numbers = #tpu.dot_dimension_numbers<[1], [0], [0], [1], [0, 0, 1, 1], [], []>} : vector<16x256xbf16>, vector<256x128xbf16>, vector<16x128xf32> -> vector<16x128xf32>
      %34 = arith.addf %25, %33 : vector<16x128xf32>
      %c16_i32_29 = arith.constant 16 : i32
      %35 = arith.addi %7, %c16_i32_29 : i32
      %36 = tpu.assume_multiple %35, 16 : i32
      %37 = arith.index_cast %36 : i32 to index
      %c0_30 = arith.constant 0 : index
      %38 = vector.load %arg6[%37, %c0_30] : memref<48x256xbf16, #tpu.memory_space<vmem>>, vector<16x256xbf16>
      %c3 = arith.constant 3 : index
      %c0_31 = arith.constant 0 : index
      %c0_32 = arith.constant 0 : index
      %39 = vector.load %arg3[%c3, %c0_31, %c0_32] : memref<4x256x128xbf16, #tpu.memory_space<vmem>>, vector<1x256x128xbf16>
      %40 = vector.shape_cast %39 : vector<1x256x128xbf16> to vector<256x128xbf16>
      %cst_33 = arith.constant dense<0.000000e+00> : vector<16x128xf32>
      %41 = tpu.matmul %38, %40, %cst_33 {dimension_numbers = #tpu.dot_dimension_numbers<[1], [0], [0], [1], [0, 0, 1, 1], [], []>} : vector<16x256xbf16>, vector<256x128xbf16>, vector<16x128xf32> -> vector<16x128xf32>
      %42 = arith.addf %34, %41 : vector<16x128xf32>
      %43 = vector.broadcast %4 : vector<1x128xf32> to vector<16x128xf32>
      %44 = arith.addf %42, %43 : vector<16x128xf32>
      %cst_34 = arith.constant 0.000000e+00 : f32
      %45 = vector.broadcast %cst_34 : f32 to vector<16x128xf32>
      %46 = arith.maximumf %44, %45 : vector<16x128xf32>
      %47 = arith.truncf %46 : vector<16x128xf32> to vector<16x128xbf16>
      %c0_35 = arith.constant 0 : index
      %c0_36 = arith.constant 0 : index
      %48 = arith.index_cast %7 : i32 to index
      %c0_37 = arith.constant 0 : index
      %49 = vector.load %arg5[%c0_35, %c0_36, %48, %c0_37] : memref<1x1x32x128xbf16, #tpu.memory_space<vmem>>, vector<1x1x16x128xbf16>
      %50 = vector.shape_cast %49 : vector<1x1x16x128xbf16> to vector<16x128xbf16>
      %51 = vector.shape_cast %47 : vector<16x128xbf16> to vector<1x1x16x128xbf16>
      tpu.vector_store %arg5[%c0_35, %c0_36, %48, %c0_37], %51 {strides = array<i32>} : memref<1x1x32x128xbf16, #tpu.memory_space<vmem>>, vector<1x1x16x128xbf16>,
    }
    %c2_i32_7 = arith.constant 2 : i32
    return
  }
  func.func @transform_0(%arg0: i32, %arg1: i32) -> (i32, i32, i32, i32) {
    %c0_i32 = arith.constant 0 : i32
    %c0_i32_0 = arith.constant 0 : i32
    %c0_i32_1 = arith.constant 0 : i32
    return %arg0, %arg1, %c0_i32, %c0_i32_0 : i32, i32, i32, i32
  }
  func.func @transform_1(%arg0: i32, %arg1: i32) -> (i32, i32, i32) {
    %c0_i32 = arith.constant 0 : i32
    %c0_i32_0 = arith.constant 0 : i32
    %c0_i32_1 = arith.constant 0 : i32
    %c0_i32_2 = arith.constant 0 : i32
    return %c0_i32, %c0_i32_0, %c0_i32_1 : i32, i32, i32
  }
  func.func @transform_2(%arg0: i32, %arg1: i32) -> (i32, i32, i32) {
    %c0_i32 = arith.constant 0 : i32
    %c0_i32_0 = arith.constant 0 : i32
    %c0_i32_1 = arith.constant 0 : i32
    return %arg0, %c0_i32, %c0_i32_0 : i32, i32, i32
  }
  func.func @transform_3(%arg0: i32, %arg1: i32) -> (i32, i32, i32, i32) {
    %c0_i32 = arith.constant 0 : i32
    %c0_i32_0 = arith.constant 0 : i32
    %c0_i32_1 = arith.constant 0 : i32
    return %arg0, %arg1, %c0_i32, %c0_i32_0 : i32, i32, i32, i32
  }
}

module attributes {stable_mosaic.version = 11 : i64} {
  func.func @_tap_conv_kernel(%arg0: i32, %arg1: i32, %arg2: memref<1x1x48x128xbf16, #tpu.memory_space<vmem>>, %arg3: memref<1x128x128xbf16, #tpu.memory_space<vmem>>, %arg4: memref<1x1x128xf32, #tpu.memory_space<vmem>>, %arg5: memref<1x1x32x128xbf16, #tpu.memory_space<vmem>>) attributes {dimension_semantics = [#tpu.dimension_semantics<parallel>, #tpu.dimension_semantics<parallel>], iteration_bounds = array<i64: 2, 1>, scalar_prefetch = 0 : i64, scratch_operands = 0 : i64, tpu.core_type = #tpu.core_type<tc>, window_params = [{transform_indices = @transform_0, window_bounds = array<i64: 1, 1, 48, 128>}, {pipeline_mode = #tpu.pipeline_mode<synchronous>, transform_indices = @transform_1, window_bounds = array<i64: 1, 128, 128>}, {transform_indices = @transform_2, window_bounds = array<i64: 1, 1, 128>}, {transform_indices = @transform_3, window_bounds = array<i64: 1, 1, 32, 128>}]} {
    %c0 = arith.constant 0 : index
    %c0_0 = arith.constant 0 : index
    %c0_1 = arith.constant 0 : index
    %0 = vector.load %arg4[%c0, %c0_0, %c0_1] : memref<1x1x128xf32, #tpu.memory_space<vmem>>, vector<1x1x128xf32>
    %1 = vector.shape_cast %0 : vector<1x1x128xf32> to vector<1x128xf32>
    %c0_i32 = arith.constant 0 : i32
    %c2_i32 = arith.constant 2 : i32
    %2 = arith.addi %c0_i32, %c2_i32 : i32
    %c1_i32 = arith.constant 1 : i32
    scf.for %arg6 = %c0_i32 to %2 step %c1_i32  : i32 {
      %c16_i32 = arith.constant 16 : i32
      %3 = arith.muli %arg6, %c16_i32 : i32
      %4 = tpu.assume_multiple %3, 16 : i32
      %cst = arith.constant 0.000000e+00 : f32
      %5 = vector.broadcast %cst : f32 to vector<16x128xf32>
      %c0_i32_3 = arith.constant 0 : i32
      %6 = arith.addi %4, %c0_i32_3 : i32
      %7 = tpu.assume_multiple %6, 16 : i32
      %c0_4 = arith.constant 0 : index
      %c0_5 = arith.constant 0 : index
      %8 = arith.index_cast %7 : i32 to index
      %c0_6 = arith.constant 0 : index
      %9 = vector.load %arg2[%c0_4, %c0_5, %8, %c0_6] : memref<1x1x48x128xbf16, #tpu.memory_space<vmem>>, vector<1x1x16x128xbf16>
      %10 = vector.shape_cast %9 : vector<1x1x16x128xbf16> to vector<16x128xbf16>
      %c0_7 = arith.constant 0 : index
      %c0_8 = arith.constant 0 : index
      %c0_9 = arith.constant 0 : index
      %11 = vector.load %arg3[%c0_7, %c0_8, %c0_9] : memref<1x128x128xbf16, #tpu.memory_space<vmem>>, vector<1x128x128xbf16>
      %12 = vector.shape_cast %11 : vector<1x128x128xbf16> to vector<128x128xbf16>
      %cst_10 = arith.constant dense<0.000000e+00> : vector<16x128xf32>
      %13 = tpu.matmul %10, %12, %cst_10 {dimension_numbers = #tpu.dot_dimension_numbers<[1], [0], [0], [1], [0, 0, 1, 1], [], []>} : vector<16x128xbf16>, vector<128x128xbf16>, vector<16x128xf32> -> vector<16x128xf32>
      %14 = arith.addf %5, %13 : vector<16x128xf32>
      %15 = vector.broadcast %1 : vector<1x128xf32> to vector<16x128xf32>
      %16 = arith.addf %14, %15 : vector<16x128xf32>
      %cst_11 = arith.constant 0.000000e+00 : f32
      %17 = vector.broadcast %cst_11 : f32 to vector<16x128xf32>
      %18 = arith.maximumf %16, %17 : vector<16x128xf32>
      %19 = arith.truncf %18 : vector<16x128xf32> to vector<16x128xbf16>
      %c0_12 = arith.constant 0 : index
      %c0_13 = arith.constant 0 : index
      %20 = arith.index_cast %4 : i32 to index
      %c0_14 = arith.constant 0 : index
      %21 = vector.load %arg5[%c0_12, %c0_13, %20, %c0_14] : memref<1x1x32x128xbf16, #tpu.memory_space<vmem>>, vector<1x1x16x128xbf16>
      %22 = vector.shape_cast %21 : vector<1x1x16x128xbf16> to vector<16x128xbf16>
      %23 = vector.shape_cast %19 : vector<16x128xbf16> to vector<1x1x16x128xbf16>
      tpu.vector_store %arg5[%c0_12, %c0_13, %20, %c0_14], %23 {strides = array<i32>} : memref<1x1x32x128xbf16, #tpu.memory_space<vmem>>, vector<1x1x16x128xbf16>,
    }
    %c2_i32_2 = arith.constant 2 : i32
    return
  }
  func.func @transform_0(%arg0: i32, %arg1: i32) -> (i32, i32, i32, i32) {
    %c0_i32 = arith.constant 0 : i32
    %c0_i32_0 = arith.constant 0 : i32
    %c0_i32_1 = arith.constant 0 : i32
    return %arg0, %arg1, %c0_i32, %c0_i32_0 : i32, i32, i32, i32
  }
  func.func @transform_1(%arg0: i32, %arg1: i32) -> (i32, i32, i32) {
    %c0_i32 = arith.constant 0 : i32
    %c0_i32_0 = arith.constant 0 : i32
    %c0_i32_1 = arith.constant 0 : i32
    %c0_i32_2 = arith.constant 0 : i32
    return %c0_i32, %c0_i32_0, %c0_i32_1 : i32, i32, i32
  }
  func.func @transform_2(%arg0: i32, %arg1: i32) -> (i32, i32, i32) {
    %c0_i32 = arith.constant 0 : i32
    %c0_i32_0 = arith.constant 0 : i32
    %c0_i32_1 = arith.constant 0 : i32
    return %arg0, %c0_i32, %c0_i32_0 : i32, i32, i32
  }
  func.func @transform_3(%arg0: i32, %arg1: i32) -> (i32, i32, i32, i32) {
    %c0_i32 = arith.constant 0 : i32
    %c0_i32_0 = arith.constant 0 : i32
    %c0_i32_1 = arith.constant 0 : i32
    return %arg0, %arg1, %c0_i32, %c0_i32_0 : i32, i32, i32, i32
  }
}

module attributes {stable_mosaic.version = 11 : i64} {
  func.func @_tap_conv_kernel(%arg0: i32, %arg1: i32, %arg2: memref<1x1x144x64xbf16, #tpu.memory_space<vmem>>, %arg3: memref<28x64x128xbf16, #tpu.memory_space<vmem>>, %arg4: memref<1x1x128xf32, #tpu.memory_space<vmem>>, %arg5: memref<1x1x32x128xbf16, #tpu.memory_space<vmem>>, %arg6: memref<128x64xbf16, #tpu.memory_space<vmem>>, %arg7: memref<128x64xbf16, #tpu.memory_space<vmem>>, %arg8: memref<128x64xbf16, #tpu.memory_space<vmem>>, %arg9: memref<128x64xbf16, #tpu.memory_space<vmem>>, %arg10: memref<128x64xbf16, #tpu.memory_space<vmem>>, %arg11: memref<128x64xbf16, #tpu.memory_space<vmem>>) attributes {dimension_semantics = [#tpu.dimension_semantics<parallel>, #tpu.dimension_semantics<parallel>], iteration_bounds = array<i64: 2, 1>, scalar_prefetch = 0 : i64, scratch_operands = 6 : i64, tpu.core_type = #tpu.core_type<tc>, window_params = [{transform_indices = @transform_0, window_bounds = array<i64: 1, 1, 144, 64>}, {pipeline_mode = #tpu.pipeline_mode<synchronous>, transform_indices = @transform_1, window_bounds = array<i64: 28, 64, 128>}, {transform_indices = @transform_2, window_bounds = array<i64: 1, 1, 128>}, {transform_indices = @transform_3, window_bounds = array<i64: 1, 1, 32, 128>}]} {
    %c0 = arith.constant 0 : index
    %c0_0 = arith.constant 0 : index
    %c1 = arith.constant 1 : index
    %c0_1 = arith.constant 0 : index
    %0 = vector.load %arg2[%c0, %c0_0, %c1, %c0_1] : memref<1x1x144x64xbf16, #tpu.memory_space<vmem>>, vector<1x1x128x64xbf16>
    %1 = vector.shape_cast %0 : vector<1x1x128x64xbf16> to vector<128x64xbf16>
    %c0_2 = arith.constant 0 : index
    %c0_3 = arith.constant 0 : index
    %2 = vector.load %arg6[%c0_2, %c0_3] : memref<128x64xbf16, #tpu.memory_space<vmem>>, vector<128x64xbf16>
    tpu.vector_store %arg6[%c0_2, %c0_3], %1 {strides = array<i32>} : memref<128x64xbf16, #tpu.memory_space<vmem>>, vector<128x64xbf16>,
    %c0_4 = arith.constant 0 : index
    %c0_5 = arith.constant 0 : index
    %c2 = arith.constant 2 : index
    %c0_6 = arith.constant 0 : index
    %3 = vector.load %arg2[%c0_4, %c0_5, %c2, %c0_6] : memref<1x1x144x64xbf16, #tpu.memory_space<vmem>>, vector<1x1x128x64xbf16>
    %4 = vector.shape_cast %3 : vector<1x1x128x64xbf16> to vector<128x64xbf16>
    %c0_7 = arith.constant 0 : index
    %c0_8 = arith.constant 0 : index
    %5 = vector.load %arg7[%c0_7, %c0_8] : memref<128x64xbf16, #tpu.memory_space<vmem>>, vector<128x64xbf16>
    tpu.vector_store %arg7[%c0_7, %c0_8], %4 {strides = array<i32>} : memref<128x64xbf16, #tpu.memory_space<vmem>>, vector<128x64xbf16>,
    %c0_9 = arith.constant 0 : index
    %c0_10 = arith.constant 0 : index
    %c3 = arith.constant 3 : index
    %c0_11 = arith.constant 0 : index
    %6 = vector.load %arg2[%c0_9, %c0_10, %c3, %c0_11] : memref<1x1x144x64xbf16, #tpu.memory_space<vmem>>, vector<1x1x128x64xbf16>
    %7 = vector.shape_cast %6 : vector<1x1x128x64xbf16> to vector<128x64xbf16>
    %c0_12 = arith.constant 0 : index
    %c0_13 = arith.constant 0 : index
    %8 = vector.load %arg8[%c0_12, %c0_13] : memref<128x64xbf16, #tpu.memory_space<vmem>>, vector<128x64xbf16>
    tpu.vector_store %arg8[%c0_12, %c0_13], %7 {strides = array<i32>} : memref<128x64xbf16, #tpu.memory_space<vmem>>, vector<128x64xbf16>,
    %c0_14 = arith.constant 0 : index
    %c0_15 = arith.constant 0 : index
    %c4 = arith.constant 4 : index
    %c0_16 = arith.constant 0 : index
    %9 = vector.load %arg2[%c0_14, %c0_15, %c4, %c0_16] : memref<1x1x144x64xbf16, #tpu.memory_space<vmem>>, vector<1x1x128x64xbf16>
    %10 = vector.shape_cast %9 : vector<1x1x128x64xbf16> to vector<128x64xbf16>
    %c0_17 = arith.constant 0 : index
    %c0_18 = arith.constant 0 : index
    %11 = vector.load %arg9[%c0_17, %c0_18] : memref<128x64xbf16, #tpu.memory_space<vmem>>, vector<128x64xbf16>
    tpu.vector_store %arg9[%c0_17, %c0_18], %10 {strides = array<i32>} : memref<128x64xbf16, #tpu.memory_space<vmem>>, vector<128x64xbf16>,
    %c0_19 = arith.constant 0 : index
    %c0_20 = arith.constant 0 : index
    %c5 = arith.constant 5 : index
    %c0_21 = arith.constant 0 : index
    %12 = vector.load %arg2[%c0_19, %c0_20, %c5, %c0_21] : memref<1x1x144x64xbf16, #tpu.memory_space<vmem>>, vector<1x1x128x64xbf16>
    %13 = vector.shape_cast %12 : vector<1x1x128x64xbf16> to vector<128x64xbf16>
    %c0_22 = arith.constant 0 : index
    %c0_23 = arith.constant 0 : index
    %14 = vector.load %arg10[%c0_22, %c0_23] : memref<128x64xbf16, #tpu.memory_space<vmem>>, vector<128x64xbf16>
    tpu.vector_store %arg10[%c0_22, %c0_23], %13 {strides = array<i32>} : memref<128x64xbf16, #tpu.memory_space<vmem>>, vector<128x64xbf16>,
    %c0_24 = arith.constant 0 : index
    %c0_25 = arith.constant 0 : index
    %c6 = arith.constant 6 : index
    %c0_26 = arith.constant 0 : index
    %15 = vector.load %arg2[%c0_24, %c0_25, %c6, %c0_26] : memref<1x1x144x64xbf16, #tpu.memory_space<vmem>>, vector<1x1x128x64xbf16>
    %16 = vector.shape_cast %15 : vector<1x1x128x64xbf16> to vector<128x64xbf16>
    %c0_27 = arith.constant 0 : index
    %c0_28 = arith.constant 0 : index
    %17 = vector.load %arg11[%c0_27, %c0_28] : memref<128x64xbf16, #tpu.memory_space<vmem>>, vector<128x64xbf16>
    tpu.vector_store %arg11[%c0_27, %c0_28], %16 {strides = array<i32>} : memref<128x64xbf16, #tpu.memory_space<vmem>>, vector<128x64xbf16>,
    %c0_29 = arith.constant 0 : index
    %c0_30 = arith.constant 0 : index
    %c0_31 = arith.constant 0 : index
    %18 = vector.load %arg4[%c0_29, %c0_30, %c0_31] : memref<1x1x128xf32, #tpu.memory_space<vmem>>, vector<1x1x128xf32>
    %19 = vector.shape_cast %18 : vector<1x1x128xf32> to vector<1x128xf32>
    %c0_i32 = arith.constant 0 : i32
    %c2_i32 = arith.constant 2 : i32
    %20 = arith.addi %c0_i32, %c2_i32 : i32
    %c1_i32 = arith.constant 1 : i32
    scf.for %arg12 = %c0_i32 to %20 step %c1_i32  : i32 {
      %c16_i32 = arith.constant 16 : i32
      %21 = arith.muli %arg12, %c16_i32 : i32
      %22 = tpu.assume_multiple %21, 16 : i32
      %cst = arith.constant 0.000000e+00 : f32
      %23 = vector.broadcast %cst : f32 to vector<16x128xf32>
      %c48_i32 = arith.constant 48 : i32
      %24 = arith.addi %22, %c48_i32 : i32
      %25 = tpu.assume_multiple %24, 16 : i32
      %26 = arith.index_cast %25 : i32 to index
      %c0_33 = arith.constant 0 : index
      %27 = vector.load %arg8[%26, %c0_33] : memref<128x64xbf16, #tpu.memory_space<vmem>>, vector<16x64xbf16>
      %c0_34 = arith.constant 0 : index
      %c0_35 = arith.constant 0 : index
      %c0_36 = arith.constant 0 : index
      %28 = vector.load %arg3[%c0_34, %c0_35, %c0_36] : memref<28x64x128xbf16, #tpu.memory_space<vmem>>, vector<1x64x128xbf16>
      %29 = vector.shape_cast %28 : vector<1x64x128xbf16> to vector<64x128xbf16>
      %cst_37 = arith.constant dense<0.000000e+00> : vector<16x128xf32>
      %30 = tpu.matmul %27, %29, %cst_37 {dimension_numbers = #tpu.dot_dimension_numbers<[1], [0], [0], [1], [0, 0, 1, 1], [], []>} : vector<16x64xbf16>, vector<64x128xbf16>, vector<16x128xf32> -> vector<16x128xf32>
      %31 = arith.addf %23, %30 : vector<16x128xf32>
      %c32_i32 = arith.constant 32 : i32
      %32 = arith.addi %22, %c32_i32 : i32
      %33 = tpu.assume_multiple %32, 16 : i32
      %34 = arith.index_cast %33 : i32 to index
      %c0_38 = arith.constant 0 : index
      %35 = vector.load %arg7[%34, %c0_38] : memref<128x64xbf16, #tpu.memory_space<vmem>>, vector<16x64xbf16>
      %c1_39 = arith.constant 1 : index
      %c0_40 = arith.constant 0 : index
      %c0_41 = arith.constant 0 : index
      %36 = vector.load %arg3[%c1_39, %c0_40, %c0_41] : memref<28x64x128xbf16, #tpu.memory_space<vmem>>, vector<1x64x128xbf16>
      %37 = vector.shape_cast %36 : vector<1x64x128xbf16> to vector<64x128xbf16>
      %cst_42 = arith.constant dense<0.000000e+00> : vector<16x128xf32>
      %38 = tpu.matmul %35, %37, %cst_42 {dimension_numbers = #tpu.dot_dimension_numbers<[1], [0], [0], [1], [0, 0, 1, 1], [], []>} : vector<16x64xbf16>, vector<64x128xbf16>, vector<16x128xf32> -> vector<16x128xf32>
      %39 = arith.addf %31, %38 : vector<16x128xf32>
      %c32_i32_43 = arith.constant 32 : i32
      %40 = arith.addi %22, %c32_i32_43 : i32
      %41 = tpu.assume_multiple %40, 16 : i32
      %42 = arith.index_cast %41 : i32 to index
      %c0_44 = arith.constant 0 : index
      %43 = vector.load %arg8[%42, %c0_44] : memref<128x64xbf16, #tpu.memory_space<vmem>>, vector<16x64xbf16>
      %c2_45 = arith.constant 2 : index
      %c0_46 = arith.constant 0 : index
      %c0_47 = arith.constant 0 : index
      %44 = vector.load %arg3[%c2_45, %c0_46, %c0_47] : memref<28x64x128xbf16, #tpu.memory_space<vmem>>, vector<1x64x128xbf16>
      %45 = vector.shape_cast %44 : vector<1x64x128xbf16> to vector<64x128xbf16>
      %cst_48 = arith.constant dense<0.000000e+00> : vector<16x128xf32>
      %46 = tpu.matmul %43, %45, %cst_48 {dimension_numbers = #tpu.dot_dimension_numbers<[1], [0], [0], [1], [0, 0, 1, 1], [], []>} : vector<16x64xbf16>, vector<64x128xbf16>, vector<16x128xf32> -> vector<16x128xf32>
      %47 = arith.addf %39, %46 : vector<16x128xf32>
      %c32_i32_49 = arith.constant 32 : i32
      %48 = arith.addi %22, %c32_i32_49 : i32
      %49 = tpu.assume_multiple %48, 16 : i32
      %50 = arith.index_cast %49 : i32 to index
      %c0_50 = arith.constant 0 : index
      %51 = vector.load %arg9[%50, %c0_50] : memref<128x64xbf16, #tpu.memory_space<vmem>>, vector<16x64xbf16>
      %c3_51 = arith.constant 3 : index
      %c0_52 = arith.constant 0 : index
      %c0_53 = arith.constant 0 : index
      %52 = vector.load %arg3[%c3_51, %c0_52, %c0_53] : memref<28x64x128xbf16, #tpu.memory_space<vmem>>, vector<1x64x128xbf16>
      %53 = vector.shape_cast %52 : vector<1x64x128xbf16> to vector<64x128xbf16>
      %cst_54 = arith.constant dense<0.000000e+00> : vector<16x128xf32>
      %54 = tpu.matmul %51, %53, %cst_54 {dimension_numbers = #tpu.dot_dimension_numbers<[1], [0], [0], [1], [0, 0, 1, 1], [], []>} : vector<16x64xbf16>, vector<64x128xbf16>, vector<16x128xf32> -> vector<16x128xf32>
      %55 = arith.addf %47, %54 : vector<16x128xf32>
      %c48_i32_55 = arith.constant 48 : i32
      %56 = arith.addi %22, %c48_i32_55 : i32
      %57 = tpu.assume_multiple %56, 16 : i32
      %58 = arith.index_cast %57 : i32 to index
      %c0_56 = arith.constant 0 : index
      %59 = vector.load %arg7[%58, %c0_56] : memref<128x64xbf16, #tpu.memory_space<vmem>>, vector<16x64xbf16>
      %c4_57 = arith.constant 4 : index
      %c0_58 = arith.constant 0 : index
      %c0_59 = arith.constant 0 : index
      %60 = vector.load %arg3[%c4_57, %c0_58, %c0_59] : memref<28x64x128xbf16, #tpu.memory_space<vmem>>, vector<1x64x128xbf16>
      %61 = vector.shape_cast %60 : vector<1x64x128xbf16> to vector<64x128xbf16>
      %cst_60 = arith.constant dense<0.000000e+00> : vector<16x128xf32>
      %62 = tpu.matmul %59, %61, %cst_60 {dimension_numbers = #tpu.dot_dimension_numbers<[1], [0], [0], [1], [0, 0, 1, 1], [], []>} : vector<16x64xbf16>, vector<64x128xbf16>, vector<16x128xf32> -> vector<16x128xf32>
      %63 = arith.addf %55, %62 : vector<16x128xf32>
      %c48_i32_61 = arith.constant 48 : i32
      %64 = arith.addi %22, %c48_i32_61 : i32
      %65 = tpu.assume_multiple %64, 16 : i32
      %66 = arith.index_cast %65 : i32 to index
      %c0_62 = arith.constant 0 : index
      %67 = vector.load %arg8[%66, %c0_62] : memref<128x64xbf16, #tpu.memory_space<vmem>>, vector<16x64xbf16>
      %c5_63 = arith.constant 5 : index
      %c0_64 = arith.constant 0 : index
      %c0_65 = arith.constant 0 : index
      %68 = vector.load %arg3[%c5_63, %c0_64, %c0_65] : memref<28x64x128xbf16, #tpu.memory_space<vmem>>, vector<1x64x128xbf16>
      %69 = vector.shape_cast %68 : vector<1x64x128xbf16> to vector<64x128xbf16>
      %cst_66 = arith.constant dense<0.000000e+00> : vector<16x128xf32>
      %70 = tpu.matmul %67, %69, %cst_66 {dimension_numbers = #tpu.dot_dimension_numbers<[1], [0], [0], [1], [0, 0, 1, 1], [], []>} : vector<16x64xbf16>, vector<64x128xbf16>, vector<16x128xf32> -> vector<16x128xf32>
      %71 = arith.addf %63, %70 : vector<16x128xf32>
      %c48_i32_67 = arith.constant 48 : i32
      %72 = arith.addi %22, %c48_i32_67 : i32
      %73 = tpu.assume_multiple %72, 16 : i32
      %74 = arith.index_cast %73 : i32 to index
      %c0_68 = arith.constant 0 : index
      %75 = vector.load %arg9[%74, %c0_68] : memref<128x64xbf16, #tpu.memory_space<vmem>>, vector<16x64xbf16>
      %c6_69 = arith.constant 6 : index
      %c0_70 = arith.constant 0 : index
      %c0_71 = arith.constant 0 : index
      %76 = vector.load %arg3[%c6_69, %c0_70, %c0_71] : memref<28x64x128xbf16, #tpu.memory_space<vmem>>, vector<1x64x128xbf16>
      %77 = vector.shape_cast %76 : vector<1x64x128xbf16> to vector<64x128xbf16>
      %cst_72 = arith.constant dense<0.000000e+00> : vector<16x128xf32>
      %78 = tpu.matmul %75, %77, %cst_72 {dimension_numbers = #tpu.dot_dimension_numbers<[1], [0], [0], [1], [0, 0, 1, 1], [], []>} : vector<16x64xbf16>, vector<64x128xbf16>, vector<16x128xf32> -> vector<16x128xf32>
      %79 = arith.addf %71, %78 : vector<16x128xf32>
      %c64_i32 = arith.constant 64 : i32
      %80 = arith.addi %22, %c64_i32 : i32
      %81 = tpu.assume_multiple %80, 16 : i32
      %82 = arith.index_cast %81 : i32 to index
      %c0_73 = arith.constant 0 : index
      %83 = vector.load %arg7[%82, %c0_73] : memref<128x64xbf16, #tpu.memory_space<vmem>>, vector<16x64xbf16>
      %c7 = arith.constant 7 : index
      %c0_74 = arith.constant 0 : index
      %c0_75 = arith.constant 0 : index
      %84 = vector.load %arg3[%c7, %c0_74, %c0_75] : memref<28x64x128xbf16, #tpu.memory_space<vmem>>, vector<1x64x128xbf16>
      %85 = vector.shape_cast %84 : vector<1x64x128xbf16> to vector<64x128xbf16>
      %cst_76 = arith.constant dense<0.000000e+00> : vector<16x128xf32>
      %86 = tpu.matmul %83, %85, %cst_76 {dimension_numbers = #tpu.dot_dimension_numbers<[1], [0], [0], [1], [0, 0, 1, 1], [], []>} : vector<16x64xbf16>, vector<64x128xbf16>, vector<16x128xf32> -> vector<16x128xf32>
      %87 = arith.addf %79, %86 : vector<16x128xf32>
      %c64_i32_77 = arith.constant 64 : i32
      %88 = arith.addi %22, %c64_i32_77 : i32
      %89 = tpu.assume_multiple %88, 16 : i32
      %90 = arith.index_cast %89 : i32 to index
      %c0_78 = arith.constant 0 : index
      %91 = vector.load %arg8[%90, %c0_78] : memref<128x64xbf16, #tpu.memory_space<vmem>>, vector<16x64xbf16>
      %c8 = arith.constant 8 : index
      %c0_79 = arith.constant 0 : index
      %c0_80 = arith.constant 0 : index
      %92 = vector.load %arg3[%c8, %c0_79, %c0_80] : memref<28x64x128xbf16, #tpu.memory_space<vmem>>, vector<1x64x128xbf16>
      %93 = vector.shape_cast %92 : vector<1x64x128xbf16> to vector<64x128xbf16>
      %cst_81 = arith.constant dense<0.000000e+00> : vector<16x128xf32>
      %94 = tpu.matmul %91, %93, %cst_81 {dimension_numbers = #tpu.dot_dimension_numbers<[1], [0], [0], [1], [0, 0, 1, 1], [], []>} : vector<16x64xbf16>, vector<64x128xbf16>, vector<16x128xf32> -> vector<16x128xf32>
      %95 = arith.addf %87, %94 : vector<16x128xf32>
      %c64_i32_82 = arith.constant 64 : i32
      %96 = arith.addi %22, %c64_i32_82 : i32
      %97 = tpu.assume_multiple %96, 16 : i32
      %98 = arith.index_cast %97 : i32 to index
      %c0_83 = arith.constant 0 : index
      %99 = vector.load %arg9[%98, %c0_83] : memref<128x64xbf16, #tpu.memory_space<vmem>>, vector<16x64xbf16>
      %c9 = arith.constant 9 : index
      %c0_84 = arith.constant 0 : index
      %c0_85 = arith.constant 0 : index
      %100 = vector.load %arg3[%c9, %c0_84, %c0_85] : memref<28x64x128xbf16, #tpu.memory_space<vmem>>, vector<1x64x128xbf16>
      %101 = vector.shape_cast %100 : vector<1x64x128xbf16> to vector<64x128xbf16>
      %cst_86 = arith.constant dense<0.000000e+00> : vector<16x128xf32>
      %102 = tpu.matmul %99, %101, %cst_86 {dimension_numbers = #tpu.dot_dimension_numbers<[1], [0], [0], [1], [0, 0, 1, 1], [], []>} : vector<16x64xbf16>, vector<64x128xbf16>, vector<16x128xf32> -> vector<16x128xf32>
      %103 = arith.addf %95, %102 : vector<16x128xf32>
      %c16_i32_87 = arith.constant 16 : i32
      %104 = arith.addi %22, %c16_i32_87 : i32
      %105 = tpu.assume_multiple %104, 16 : i32
      %106 = arith.index_cast %105 : i32 to index
      %c0_88 = arith.constant 0 : index
      %107 = vector.load %arg6[%106, %c0_88] : memref<128x64xbf16, #tpu.memory_space<vmem>>, vector<16x64xbf16>
      %c10 = arith.constant 10 : index
      %c0_89 = arith.constant 0 : index
      %c0_90 = arith.constant 0 : index
      %108 = vector.load %arg3[%c10, %c0_89, %c0_90] : memref<28x64x128xbf16, #tpu.memory_space<vmem>>, vector<1x64x128xbf16>
      %109 = vector.shape_cast %108 : vector<1x64x128xbf16> to vector<64x128xbf16>
      %cst_91 = arith.constant dense<0.000000e+00> : vector<16x128xf32>
      %110 = tpu.matmul %107, %109, %cst_91 {dimension_numbers = #tpu.dot_dimension_numbers<[1], [0], [0], [1], [0, 0, 1, 1], [], []>} : vector<16x64xbf16>, vector<64x128xbf16>, vector<16x128xf32> -> vector<16x128xf32>
      %111 = arith.addf %103, %110 : vector<16x128xf32>
      %c16_i32_92 = arith.constant 16 : i32
      %112 = arith.addi %22, %c16_i32_92 : i32
      %113 = tpu.assume_multiple %112, 16 : i32
      %114 = arith.index_cast %113 : i32 to index
      %c0_93 = arith.constant 0 : index
      %115 = vector.load %arg8[%114, %c0_93] : memref<128x64xbf16, #tpu.memory_space<vmem>>, vector<16x64xbf16>
      %c11 = arith.constant 11 : index
      %c0_94 = arith.constant 0 : index
      %c0_95 = arith.constant 0 : index
      %116 = vector.load %arg3[%c11, %c0_94, %c0_95] : memref<28x64x128xbf16, #tpu.memory_space<vmem>>, vector<1x64x128xbf16>
      %117 = vector.shape_cast %116 : vector<1x64x128xbf16> to vector<64x128xbf16>
      %cst_96 = arith.constant dense<0.000000e+00> : vector<16x128xf32>
      %118 = tpu.matmul %115, %117, %cst_96 {dimension_numbers = #tpu.dot_dimension_numbers<[1], [0], [0], [1], [0, 0, 1, 1], [], []>} : vector<16x64xbf16>, vector<64x128xbf16>, vector<16x128xf32> -> vector<16x128xf32>
      %119 = arith.addf %111, %118 : vector<16x128xf32>
      %c16_i32_97 = arith.constant 16 : i32
      %120 = arith.addi %22, %c16_i32_97 : i32
      %121 = tpu.assume_multiple %120, 16 : i32
      %122 = arith.index_cast %121 : i32 to index
      %c0_98 = arith.constant 0 : index
      %123 = vector.load %arg10[%122, %c0_98] : memref<128x64xbf16, #tpu.memory_space<vmem>>, vector<16x64xbf16>
      %c12 = arith.constant 12 : index
      %c0_99 = arith.constant 0 : index
      %c0_100 = arith.constant 0 : index
      %124 = vector.load %arg3[%c12, %c0_99, %c0_100] : memref<28x64x128xbf16, #tpu.memory_space<vmem>>, vector<1x64x128xbf16>
      %125 = vector.shape_cast %124 : vector<1x64x128xbf16> to vector<64x128xbf16>
      %cst_101 = arith.constant dense<0.000000e+00> : vector<16x128xf32>
      %126 = tpu.matmul %123, %125, %cst_101 {dimension_numbers = #tpu.dot_dimension_numbers<[1], [0], [0], [1], [0, 0, 1, 1], [], []>} : vector<16x64xbf16>, vector<64x128xbf16>, vector<16x128xf32> -> vector<16x128xf32>
      %127 = arith.addf %119, %126 : vector<16x128xf32>
      %c48_i32_102 = arith.constant 48 : i32
      %128 = arith.addi %22, %c48_i32_102 : i32
      %129 = tpu.assume_multiple %128, 16 : i32
      %130 = arith.index_cast %129 : i32 to index
      %c0_103 = arith.constant 0 : index
      %131 = vector.load %arg6[%130, %c0_103] : memref<128x64xbf16, #tpu.memory_space<vmem>>, vector<16x64xbf16>
      %c13 = arith.constant 13 : index
      %c0_104 = arith.constant 0 : index
      %c0_105 = arith.constant 0 : index
      %132 = vector.load %arg3[%c13, %c0_104, %c0_105] : memref<28x64x128xbf16, #tpu.memory_space<vmem>>, vector<1x64x128xbf16>
      %133 = vector.shape_cast %132 : vector<1x64x128xbf16> to vector<64x128xbf16>
      %cst_106 = arith.constant dense<0.000000e+00> : vector<16x128xf32>
      %134 = tpu.matmul %131, %133, %cst_106 {dimension_numbers = #tpu.dot_dimension_numbers<[1], [0], [0], [1], [0, 0, 1, 1], [], []>} : vector<16x64xbf16>, vector<64x128xbf16>, vector<16x128xf32> -> vector<16x128xf32>
      %135 = arith.addf %127, %134 : vector<16x128xf32>
      %c48_i32_107 = arith.constant 48 : i32
      %136 = arith.addi %22, %c48_i32_107 : i32
      %137 = tpu.assume_multiple %136, 16 : i32
      %138 = arith.index_cast %137 : i32 to index
      %c0_108 = arith.constant 0 : index
      %139 = vector.load %arg8[%138, %c0_108] : memref<128x64xbf16, #tpu.memory_space<vmem>>, vector<16x64xbf16>
      %c14 = arith.constant 14 : index
      %c0_109 = arith.constant 0 : index
      %c0_110 = arith.constant 0 : index
      %140 = vector.load %arg3[%c14, %c0_109, %c0_110] : memref<28x64x128xbf16, #tpu.memory_space<vmem>>, vector<1x64x128xbf16>
      %141 = vector.shape_cast %140 : vector<1x64x128xbf16> to vector<64x128xbf16>
      %cst_111 = arith.constant dense<0.000000e+00> : vector<16x128xf32>
      %142 = tpu.matmul %139, %141, %cst_111 {dimension_numbers = #tpu.dot_dimension_numbers<[1], [0], [0], [1], [0, 0, 1, 1], [], []>} : vector<16x64xbf16>, vector<64x128xbf16>, vector<16x128xf32> -> vector<16x128xf32>
      %143 = arith.addf %135, %142 : vector<16x128xf32>
      %c48_i32_112 = arith.constant 48 : i32
      %144 = arith.addi %22, %c48_i32_112 : i32
      %145 = tpu.assume_multiple %144, 16 : i32
      %146 = arith.index_cast %145 : i32 to index
      %c0_113 = arith.constant 0 : index
      %147 = vector.load %arg10[%146, %c0_113] : memref<128x64xbf16, #tpu.memory_space<vmem>>, vector<16x64xbf16>
      %c15 = arith.constant 15 : index
      %c0_114 = arith.constant 0 : index
      %c0_115 = arith.constant 0 : index
      %148 = vector.load %arg3[%c15, %c0_114, %c0_115] : memref<28x64x128xbf16, #tpu.memory_space<vmem>>, vector<1x64x128xbf16>
      %149 = vector.shape_cast %148 : vector<1x64x128xbf16> to vector<64x128xbf16>
      %cst_116 = arith.constant dense<0.000000e+00> : vector<16x128xf32>
      %150 = tpu.matmul %147, %149, %cst_116 {dimension_numbers = #tpu.dot_dimension_numbers<[1], [0], [0], [1], [0, 0, 1, 1], [], []>} : vector<16x64xbf16>, vector<64x128xbf16>, vector<16x128xf32> -> vector<16x128xf32>
      %151 = arith.addf %143, %150 : vector<16x128xf32>
      %c80_i32 = arith.constant 80 : i32
      %152 = arith.addi %22, %c80_i32 : i32
      %153 = tpu.assume_multiple %152, 16 : i32
      %154 = arith.index_cast %153 : i32 to index
      %c0_117 = arith.constant 0 : index
      %155 = vector.load %arg6[%154, %c0_117] : memref<128x64xbf16, #tpu.memory_space<vmem>>, vector<16x64xbf16>
      %c16 = arith.constant 16 : index
      %c0_118 = arith.constant 0 : index
      %c0_119 = arith.constant 0 : index
      %156 = vector.load %arg3[%c16, %c0_118, %c0_119] : memref<28x64x128xbf16, #tpu.memory_space<vmem>>, vector<1x64x128xbf16>
      %157 = vector.shape_cast %156 : vector<1x64x128xbf16> to vector<64x128xbf16>
      %cst_120 = arith.constant dense<0.000000e+00> : vector<16x128xf32>
      %158 = tpu.matmul %155, %157, %cst_120 {dimension_numbers = #tpu.dot_dimension_numbers<[1], [0], [0], [1], [0, 0, 1, 1], [], []>} : vector<16x64xbf16>, vector<64x128xbf16>, vector<16x128xf32> -> vector<16x128xf32>
      %159 = arith.addf %151, %158 : vector<16x128xf32>
      %c80_i32_121 = arith.constant 80 : i32
      %160 = arith.addi %22, %c80_i32_121 : i32
      %161 = tpu.assume_multiple %160, 16 : i32
      %162 = arith.index_cast %161 : i32 to index
      %c0_122 = arith.constant 0 : index
      %163 = vector.load %arg8[%162, %c0_122] : memref<128x64xbf16, #tpu.memory_space<vmem>>, vector<16x64xbf16>
      %c17 = arith.constant 17 : index
      %c0_123 = arith.constant 0 : index
      %c0_124 = arith.constant 0 : index
      %164 = vector.load %arg3[%c17, %c0_123, %c0_124] : memref<28x64x128xbf16, #tpu.memory_space<vmem>>, vector<1x64x128xbf16>
      %165 = vector.shape_cast %164 : vector<1x64x128xbf16> to vector<64x128xbf16>
      %cst_125 = arith.constant dense<0.000000e+00> : vector<16x128xf32>
      %166 = tpu.matmul %163, %165, %cst_125 {dimension_numbers = #tpu.dot_dimension_numbers<[1], [0], [0], [1], [0, 0, 1, 1], [], []>} : vector<16x64xbf16>, vector<64x128xbf16>, vector<16x128xf32> -> vector<16x128xf32>
      %167 = arith.addf %159, %166 : vector<16x128xf32>
      %c80_i32_126 = arith.constant 80 : i32
      %168 = arith.addi %22, %c80_i32_126 : i32
      %169 = tpu.assume_multiple %168, 16 : i32
      %170 = arith.index_cast %169 : i32 to index
      %c0_127 = arith.constant 0 : index
      %171 = vector.load %arg10[%170, %c0_127] : memref<128x64xbf16, #tpu.memory_space<vmem>>, vector<16x64xbf16>
      %c18 = arith.constant 18 : index
      %c0_128 = arith.constant 0 : index
      %c0_129 = arith.constant 0 : index
      %172 = vector.load %arg3[%c18, %c0_128, %c0_129] : memref<28x64x128xbf16, #tpu.memory_space<vmem>>, vector<1x64x128xbf16>
      %173 = vector.shape_cast %172 : vector<1x64x128xbf16> to vector<64x128xbf16>
      %cst_130 = arith.constant dense<0.000000e+00> : vector<16x128xf32>
      %174 = tpu.matmul %171, %173, %cst_130 {dimension_numbers = #tpu.dot_dimension_numbers<[1], [0], [0], [1], [0, 0, 1, 1], [], []>} : vector<16x64xbf16>, vector<64x128xbf16>, vector<16x128xf32> -> vector<16x128xf32>
      %175 = arith.addf %167, %174 : vector<16x128xf32>
      %c0_i32_131 = arith.constant 0 : i32
      %176 = arith.addi %22, %c0_i32_131 : i32
      %177 = tpu.assume_multiple %176, 16 : i32
      %c0_132 = arith.constant 0 : index
      %c0_133 = arith.constant 0 : index
      %178 = arith.index_cast %177 : i32 to index
      %c0_134 = arith.constant 0 : index
      %179 = vector.load %arg2[%c0_132, %c0_133, %178, %c0_134] : memref<1x1x144x64xbf16, #tpu.memory_space<vmem>>, vector<1x1x16x64xbf16>
      %180 = vector.shape_cast %179 : vector<1x1x16x64xbf16> to vector<16x64xbf16>
      %c19 = arith.constant 19 : index
      %c0_135 = arith.constant 0 : index
      %c0_136 = arith.constant 0 : index
      %181 = vector.load %arg3[%c19, %c0_135, %c0_136] : memref<28x64x128xbf16, #tpu.memory_space<vmem>>, vector<1x64x128xbf16>
      %182 = vector.shape_cast %181 : vector<1x64x128xbf16> to vector<64x128xbf16>
      %cst_137 = arith.constant dense<0.000000e+00> : vector<16x128xf32>
      %183 = tpu.matmul %180, %182, %cst_137 {dimension_numbers = #tpu.dot_dimension_numbers<[1], [0], [0], [1], [0, 0, 1, 1], [], []>} : vector<16x64xbf16>, vector<64x128xbf16>, vector<16x128xf32> -> vector<16x128xf32>
      %184 = arith.addf %175, %183 : vector<16x128xf32>
      %c0_i32_138 = arith.constant 0 : i32
      %185 = arith.addi %22, %c0_i32_138 : i32
      %186 = tpu.assume_multiple %185, 16 : i32
      %187 = arith.index_cast %186 : i32 to index
      %c0_139 = arith.constant 0 : index
      %188 = vector.load %arg8[%187, %c0_139] : memref<128x64xbf16, #tpu.memory_space<vmem>>, vector<16x64xbf16>
      %c20 = arith.constant 20 : index
      %c0_140 = arith.constant 0 : index
      %c0_141 = arith.constant 0 : index
      %189 = vector.load %arg3[%c20, %c0_140, %c0_141] : memref<28x64x128xbf16, #tpu.memory_space<vmem>>, vector<1x64x128xbf16>
      %190 = vector.shape_cast %189 : vector<1x64x128xbf16> to vector<64x128xbf16>
      %cst_142 = arith.constant dense<0.000000e+00> : vector<16x128xf32>
      %191 = tpu.matmul %188, %190, %cst_142 {dimension_numbers = #tpu.dot_dimension_numbers<[1], [0], [0], [1], [0, 0, 1, 1], [], []>} : vector<16x64xbf16>, vector<64x128xbf16>, vector<16x128xf32> -> vector<16x128xf32>
      %192 = arith.addf %184, %191 : vector<16x128xf32>
      %c0_i32_143 = arith.constant 0 : i32
      %193 = arith.addi %22, %c0_i32_143 : i32
      %194 = tpu.assume_multiple %193, 16 : i32
      %195 = arith.index_cast %194 : i32 to index
      %c0_144 = arith.constant 0 : index
      %196 = vector.load %arg11[%195, %c0_144] : memref<128x64xbf16, #tpu.memory_space<vmem>>, vector<16x64xbf16>
      %c21 = arith.constant 21 : index
      %c0_145 = arith.constant 0 : index
      %c0_146 = arith.constant 0 : index
      %197 = vector.load %arg3[%c21, %c0_145, %c0_146] : memref<28x64x128xbf16, #tpu.memory_space<vmem>>, vector<1x64x128xbf16>
      %198 = vector.shape_cast %197 : vector<1x64x128xbf16> to vector<64x128xbf16>
      %cst_147 = arith.constant dense<0.000000e+00> : vector<16x128xf32>
      %199 = tpu.matmul %196, %198, %cst_147 {dimension_numbers = #tpu.dot_dimension_numbers<[1], [0], [0], [1], [0, 0, 1, 1], [], []>} : vector<16x64xbf16>, vector<64x128xbf16>, vector<16x128xf32> -> vector<16x128xf32>
      %200 = arith.addf %192, %199 : vector<16x128xf32>
      %c48_i32_148 = arith.constant 48 : i32
      %201 = arith.addi %22, %c48_i32_148 : i32
      %202 = tpu.assume_multiple %201, 16 : i32
      %c0_149 = arith.constant 0 : index
      %c0_150 = arith.constant 0 : index
      %203 = arith.index_cast %202 : i32 to index
      %c0_151 = arith.constant 0 : index
      %204 = vector.load %arg2[%c0_149, %c0_150, %203, %c0_151] : memref<1x1x144x64xbf16, #tpu.memory_space<vmem>>, vector<1x1x16x64xbf16>
      %205 = vector.shape_cast %204 : vector<1x1x16x64xbf16> to vector<16x64xbf16>
      %c22 = arith.constant 22 : index
      %c0_152 = arith.constant 0 : index
      %c0_153 = arith.constant 0 : index
      %206 = vector.load %arg3[%c22, %c0_152, %c0_153] : memref<28x64x128xbf16, #tpu.memory_space<vmem>>, vector<1x64x128xbf16>
      %207 = vector.shape_cast %206 : vector<1x64x128xbf16> to vector<64x128xbf16>
      %cst_154 = arith.constant dense<0.000000e+00> : vector<16x128xf32>
      %208 = tpu.matmul %205, %207, %cst_154 {dimension_numbers = #tpu.dot_dimension_numbers<[1], [0], [0], [1], [0, 0, 1, 1], [], []>} : vector<16x64xbf16>, vector<64x128xbf16>, vector<16x128xf32> -> vector<16x128xf32>
      %209 = arith.addf %200, %208 : vector<16x128xf32>
      %c48_i32_155 = arith.constant 48 : i32
      %210 = arith.addi %22, %c48_i32_155 : i32
      %211 = tpu.assume_multiple %210, 16 : i32
      %212 = arith.index_cast %211 : i32 to index
      %c0_156 = arith.constant 0 : index
      %213 = vector.load %arg8[%212, %c0_156] : memref<128x64xbf16, #tpu.memory_space<vmem>>, vector<16x64xbf16>
      %c23 = arith.constant 23 : index
      %c0_157 = arith.constant 0 : index
      %c0_158 = arith.constant 0 : index
      %214 = vector.load %arg3[%c23, %c0_157, %c0_158] : memref<28x64x128xbf16, #tpu.memory_space<vmem>>, vector<1x64x128xbf16>
      %215 = vector.shape_cast %214 : vector<1x64x128xbf16> to vector<64x128xbf16>
      %cst_159 = arith.constant dense<0.000000e+00> : vector<16x128xf32>
      %216 = tpu.matmul %213, %215, %cst_159 {dimension_numbers = #tpu.dot_dimension_numbers<[1], [0], [0], [1], [0, 0, 1, 1], [], []>} : vector<16x64xbf16>, vector<64x128xbf16>, vector<16x128xf32> -> vector<16x128xf32>
      %217 = arith.addf %209, %216 : vector<16x128xf32>
      %c48_i32_160 = arith.constant 48 : i32
      %218 = arith.addi %22, %c48_i32_160 : i32
      %219 = tpu.assume_multiple %218, 16 : i32
      %220 = arith.index_cast %219 : i32 to index
      %c0_161 = arith.constant 0 : index
      %221 = vector.load %arg11[%220, %c0_161] : memref<128x64xbf16, #tpu.memory_space<vmem>>, vector<16x64xbf16>
      %c24 = arith.constant 24 : index
      %c0_162 = arith.constant 0 : index
      %c0_163 = arith.constant 0 : index
      %222 = vector.load %arg3[%c24, %c0_162, %c0_163] : memref<28x64x128xbf16, #tpu.memory_space<vmem>>, vector<1x64x128xbf16>
      %223 = vector.shape_cast %222 : vector<1x64x128xbf16> to vector<64x128xbf16>
      %cst_164 = arith.constant dense<0.000000e+00> : vector<16x128xf32>
      %224 = tpu.matmul %221, %223, %cst_164 {dimension_numbers = #tpu.dot_dimension_numbers<[1], [0], [0], [1], [0, 0, 1, 1], [], []>} : vector<16x64xbf16>, vector<64x128xbf16>, vector<16x128xf32> -> vector<16x128xf32>
      %225 = arith.addf %217, %224 : vector<16x128xf32>
      %c96_i32 = arith.constant 96 : i32
      %226 = arith.addi %22, %c96_i32 : i32
      %227 = tpu.assume_multiple %226, 16 : i32
      %c0_165 = arith.constant 0 : index
      %c0_166 = arith.constant 0 : index
      %228 = arith.index_cast %227 : i32 to index
      %c0_167 = arith.constant 0 : index
      %229 = vector.load %arg2[%c0_165, %c0_166, %228, %c0_167] : memref<1x1x144x64xbf16, #tpu.memory_space<vmem>>, vector<1x1x16x64xbf16>
      %230 = vector.shape_cast %229 : vector<1x1x16x64xbf16> to vector<16x64xbf16>
      %c25 = arith.constant 25 : index
      %c0_168 = arith.constant 0 : index
      %c0_169 = arith.constant 0 : index
      %231 = vector.load %arg3[%c25, %c0_168, %c0_169] : memref<28x64x128xbf16, #tpu.memory_space<vmem>>, vector<1x64x128xbf16>
      %232 = vector.shape_cast %231 : vector<1x64x128xbf16> to vector<64x128xbf16>
      %cst_170 = arith.constant dense<0.000000e+00> : vector<16x128xf32>
      %233 = tpu.matmul %230, %232, %cst_170 {dimension_numbers = #tpu.dot_dimension_numbers<[1], [0], [0], [1], [0, 0, 1, 1], [], []>} : vector<16x64xbf16>, vector<64x128xbf16>, vector<16x128xf32> -> vector<16x128xf32>
      %234 = arith.addf %225, %233 : vector<16x128xf32>
      %c96_i32_171 = arith.constant 96 : i32
      %235 = arith.addi %22, %c96_i32_171 : i32
      %236 = tpu.assume_multiple %235, 16 : i32
      %237 = arith.index_cast %236 : i32 to index
      %c0_172 = arith.constant 0 : index
      %238 = vector.load %arg8[%237, %c0_172] : memref<128x64xbf16, #tpu.memory_space<vmem>>, vector<16x64xbf16>
      %c26 = arith.constant 26 : index
      %c0_173 = arith.constant 0 : index
      %c0_174 = arith.constant 0 : index
      %239 = vector.load %arg3[%c26, %c0_173, %c0_174] : memref<28x64x128xbf16, #tpu.memory_space<vmem>>, vector<1x64x128xbf16>
      %240 = vector.shape_cast %239 : vector<1x64x128xbf16> to vector<64x128xbf16>
      %cst_175 = arith.constant dense<0.000000e+00> : vector<16x128xf32>
      %241 = tpu.matmul %238, %240, %cst_175 {dimension_numbers = #tpu.dot_dimension_numbers<[1], [0], [0], [1], [0, 0, 1, 1], [], []>} : vector<16x64xbf16>, vector<64x128xbf16>, vector<16x128xf32> -> vector<16x128xf32>
      %242 = arith.addf %234, %241 : vector<16x128xf32>
      %c96_i32_176 = arith.constant 96 : i32
      %243 = arith.addi %22, %c96_i32_176 : i32
      %244 = tpu.assume_multiple %243, 16 : i32
      %245 = arith.index_cast %244 : i32 to index
      %c0_177 = arith.constant 0 : index
      %246 = vector.load %arg11[%245, %c0_177] : memref<128x64xbf16, #tpu.memory_space<vmem>>, vector<16x64xbf16>
      %c27 = arith.constant 27 : index
      %c0_178 = arith.constant 0 : index
      %c0_179 = arith.constant 0 : index
      %247 = vector.load %arg3[%c27, %c0_178, %c0_179] : memref<28x64x128xbf16, #tpu.memory_space<vmem>>, vector<1x64x128xbf16>
      %248 = vector.shape_cast %247 : vector<1x64x128xbf16> to vector<64x128xbf16>
      %cst_180 = arith.constant dense<0.000000e+00> : vector<16x128xf32>
      %249 = tpu.matmul %246, %248, %cst_180 {dimension_numbers = #tpu.dot_dimension_numbers<[1], [0], [0], [1], [0, 0, 1, 1], [], []>} : vector<16x64xbf16>, vector<64x128xbf16>, vector<16x128xf32> -> vector<16x128xf32>
      %250 = arith.addf %242, %249 : vector<16x128xf32>
      %251 = vector.broadcast %19 : vector<1x128xf32> to vector<16x128xf32>
      %252 = arith.addf %250, %251 : vector<16x128xf32>
      %cst_181 = arith.constant 0.000000e+00 : f32
      %253 = vector.broadcast %cst_181 : f32 to vector<16x128xf32>
      %254 = arith.maximumf %252, %253 : vector<16x128xf32>
      %255 = arith.truncf %254 : vector<16x128xf32> to vector<16x128xbf16>
      %c0_182 = arith.constant 0 : index
      %c0_183 = arith.constant 0 : index
      %256 = arith.index_cast %22 : i32 to index
      %c0_184 = arith.constant 0 : index
      %257 = vector.load %arg5[%c0_182, %c0_183, %256, %c0_184] : memref<1x1x32x128xbf16, #tpu.memory_space<vmem>>, vector<1x1x16x128xbf16>
      %258 = vector.shape_cast %257 : vector<1x1x16x128xbf16> to vector<16x128xbf16>
      %259 = vector.shape_cast %255 : vector<16x128xbf16> to vector<1x1x16x128xbf16>
      tpu.vector_store %arg5[%c0_182, %c0_183, %256, %c0_184], %259 {strides = array<i32>} : memref<1x1x32x128xbf16, #tpu.memory_space<vmem>>, vector<1x1x16x128xbf16>,
    }
    %c2_i32_32 = arith.constant 2 : i32
    return
  }
  func.func @transform_0(%arg0: i32, %arg1: i32) -> (i32, i32, i32, i32) {
    %c0_i32 = arith.constant 0 : i32
    %c0_i32_0 = arith.constant 0 : i32
    %c0_i32_1 = arith.constant 0 : i32
    return %arg0, %arg1, %c0_i32, %c0_i32_0 : i32, i32, i32, i32
  }
  func.func @transform_1(%arg0: i32, %arg1: i32) -> (i32, i32, i32) {
    %c0_i32 = arith.constant 0 : i32
    %c0_i32_0 = arith.constant 0 : i32
    %c0_i32_1 = arith.constant 0 : i32
    %c0_i32_2 = arith.constant 0 : i32
    return %c0_i32, %c0_i32_0, %c0_i32_1 : i32, i32, i32
  }
  func.func @transform_2(%arg0: i32, %arg1: i32) -> (i32, i32, i32) {
    %c0_i32 = arith.constant 0 : i32
    %c0_i32_0 = arith.constant 0 : i32
    %c0_i32_1 = arith.constant 0 : i32
    return %arg0, %c0_i32, %c0_i32_0 : i32, i32, i32
  }
  func.func @transform_3(%arg0: i32, %arg1: i32) -> (i32, i32, i32, i32) {
    %c0_i32 = arith.constant 0 : i32
    %c0_i32_0 = arith.constant 0 : i32
    %c0_i32_1 = arith.constant 0 : i32
    return %arg0, %arg1, %c0_i32, %c0_i32_0 : i32, i32, i32, i32
  }
}

module attributes {stable_mosaic.version = 11 : i64} {
  func.func @_tap_conv_kernel(%arg0: i32, %arg1: i32, %arg2: memref<1x1x80x32xbf16, #tpu.memory_space<vmem>>, %arg3: memref<9x32x128xbf16, #tpu.memory_space<vmem>>, %arg4: memref<1x1x128xf32, #tpu.memory_space<vmem>>, %arg5: memref<1x1x32x128xbf16, #tpu.memory_space<vmem>>, %arg6: memref<64x32xbf16, #tpu.memory_space<vmem>>, %arg7: memref<64x32xbf16, #tpu.memory_space<vmem>>) attributes {dimension_semantics = [#tpu.dimension_semantics<parallel>, #tpu.dimension_semantics<parallel>], iteration_bounds = array<i64: 2, 1>, scalar_prefetch = 0 : i64, scratch_operands = 2 : i64, tpu.core_type = #tpu.core_type<tc>, window_params = [{transform_indices = @transform_0, window_bounds = array<i64: 1, 1, 80, 32>}, {pipeline_mode = #tpu.pipeline_mode<synchronous>, transform_indices = @transform_1, window_bounds = array<i64: 9, 32, 128>}, {transform_indices = @transform_2, window_bounds = array<i64: 1, 1, 128>}, {transform_indices = @transform_3, window_bounds = array<i64: 1, 1, 32, 128>}]} {
    %c0 = arith.constant 0 : index
    %c0_0 = arith.constant 0 : index
    %c1 = arith.constant 1 : index
    %c0_1 = arith.constant 0 : index
    %0 = vector.load %arg2[%c0, %c0_0, %c1, %c0_1] : memref<1x1x80x32xbf16, #tpu.memory_space<vmem>>, vector<1x1x64x32xbf16>
    %1 = vector.shape_cast %0 : vector<1x1x64x32xbf16> to vector<64x32xbf16>
    %c0_2 = arith.constant 0 : index
    %c0_3 = arith.constant 0 : index
    %2 = vector.load %arg6[%c0_2, %c0_3] : memref<64x32xbf16, #tpu.memory_space<vmem>>, vector<64x32xbf16>
    tpu.vector_store %arg6[%c0_2, %c0_3], %1 {strides = array<i32>} : memref<64x32xbf16, #tpu.memory_space<vmem>>, vector<64x32xbf16>,
    %c0_4 = arith.constant 0 : index
    %c0_5 = arith.constant 0 : index
    %c2 = arith.constant 2 : index
    %c0_6 = arith.constant 0 : index
    %3 = vector.load %arg2[%c0_4, %c0_5, %c2, %c0_6] : memref<1x1x80x32xbf16, #tpu.memory_space<vmem>>, vector<1x1x64x32xbf16>
    %4 = vector.shape_cast %3 : vector<1x1x64x32xbf16> to vector<64x32xbf16>
    %c0_7 = arith.constant 0 : index
    %c0_8 = arith.constant 0 : index
    %5 = vector.load %arg7[%c0_7, %c0_8] : memref<64x32xbf16, #tpu.memory_space<vmem>>, vector<64x32xbf16>
    tpu.vector_store %arg7[%c0_7, %c0_8], %4 {strides = array<i32>} : memref<64x32xbf16, #tpu.memory_space<vmem>>, vector<64x32xbf16>,
    %c0_9 = arith.constant 0 : index
    %c0_10 = arith.constant 0 : index
    %c0_11 = arith.constant 0 : index
    %6 = vector.load %arg4[%c0_9, %c0_10, %c0_11] : memref<1x1x128xf32, #tpu.memory_space<vmem>>, vector<1x1x128xf32>
    %7 = vector.shape_cast %6 : vector<1x1x128xf32> to vector<1x128xf32>
    %c0_i32 = arith.constant 0 : i32
    %c2_i32 = arith.constant 2 : i32
    %8 = arith.addi %c0_i32, %c2_i32 : i32
    %c1_i32 = arith.constant 1 : i32
    scf.for %arg8 = %c0_i32 to %8 step %c1_i32  : i32 {
      %c16_i32 = arith.constant 16 : i32
      %9 = arith.muli %arg8, %c16_i32 : i32
      %10 = tpu.assume_multiple %9, 16 : i32
      %cst = arith.constant 0.000000e+00 : f32
      %11 = vector.broadcast %cst : f32 to vector<16x128xf32>
      %c0_i32_13 = arith.constant 0 : i32
      %12 = arith.addi %10, %c0_i32_13 : i32
      %13 = tpu.assume_multiple %12, 16 : i32
      %c0_14 = arith.constant 0 : index
      %c0_15 = arith.constant 0 : index
      %14 = arith.index_cast %13 : i32 to index
      %c0_16 = arith.constant 0 : index
      %15 = vector.load %arg2[%c0_14, %c0_15, %14, %c0_16] : memref<1x1x80x32xbf16, #tpu.memory_space<vmem>>, vector<1x1x16x32xbf16>
      %16 = vector.shape_cast %15 : vector<1x1x16x32xbf16> to vector<16x32xbf16>
      %c0_17 = arith.constant 0 : index
      %c0_18 = arith.constant 0 : index
      %c0_19 = arith.constant 0 : index
      %17 = vector.load %arg3[%c0_17, %c0_18, %c0_19] : memref<9x32x128xbf16, #tpu.memory_space<vmem>>, vector<1x32x128xbf16>
      %18 = vector.shape_cast %17 : vector<1x32x128xbf16> to vector<32x128xbf16>
      %cst_20 = arith.constant dense<0.000000e+00> : vector<16x128xf32>
      %19 = tpu.matmul %16, %18, %cst_20 {dimension_numbers = #tpu.dot_dimension_numbers<[1], [0], [0], [1], [0, 0, 1, 1], [], []>} : vector<16x32xbf16>, vector<32x128xbf16>, vector<16x128xf32> -> vector<16x128xf32>
      %20 = arith.addf %11, %19 : vector<16x128xf32>
      %c0_i32_21 = arith.constant 0 : i32
      %21 = arith.addi %10, %c0_i32_21 : i32
      %22 = tpu.assume_multiple %21, 16 : i32
      %23 = arith.index_cast %22 : i32 to index
      %c0_22 = arith.constant 0 : index
      %24 = vector.load %arg6[%23, %c0_22] : memref<64x32xbf16, #tpu.memory_space<vmem>>, vector<16x32xbf16>
      %c1_23 = arith.constant 1 : index
      %c0_24 = arith.constant 0 : index
      %c0_25 = arith.constant 0 : index
      %25 = vector.load %arg3[%c1_23, %c0_24, %c0_25] : memref<9x32x128xbf16, #tpu.memory_space<vmem>>, vector<1x32x128xbf16>
      %26 = vector.shape_cast %25 : vector<1x32x128xbf16> to vector<32x128xbf16>
      %cst_26 = arith.constant dense<0.000000e+00> : vector<16x128xf32>
      %27 = tpu.matmul %24, %26, %cst_26 {dimension_numbers = #tpu.dot_dimension_numbers<[1], [0], [0], [1], [0, 0, 1, 1], [], []>} : vector<16x32xbf16>, vector<32x128xbf16>, vector<16x128xf32> -> vector<16x128xf32>
      %28 = arith.addf %20, %27 : vector<16x128xf32>
      %c0_i32_27 = arith.constant 0 : i32
      %29 = arith.addi %10, %c0_i32_27 : i32
      %30 = tpu.assume_multiple %29, 16 : i32
      %31 = arith.index_cast %30 : i32 to index
      %c0_28 = arith.constant 0 : index
      %32 = vector.load %arg7[%31, %c0_28] : memref<64x32xbf16, #tpu.memory_space<vmem>>, vector<16x32xbf16>
      %c2_29 = arith.constant 2 : index
      %c0_30 = arith.constant 0 : index
      %c0_31 = arith.constant 0 : index
      %33 = vector.load %arg3[%c2_29, %c0_30, %c0_31] : memref<9x32x128xbf16, #tpu.memory_space<vmem>>, vector<1x32x128xbf16>
      %34 = vector.shape_cast %33 : vector<1x32x128xbf16> to vector<32x128xbf16>
      %cst_32 = arith.constant dense<0.000000e+00> : vector<16x128xf32>
      %35 = tpu.matmul %32, %34, %cst_32 {dimension_numbers = #tpu.dot_dimension_numbers<[1], [0], [0], [1], [0, 0, 1, 1], [], []>} : vector<16x32xbf16>, vector<32x128xbf16>, vector<16x128xf32> -> vector<16x128xf32>
      %36 = arith.addf %28, %35 : vector<16x128xf32>
      %c16_i32_33 = arith.constant 16 : i32
      %37 = arith.addi %10, %c16_i32_33 : i32
      %38 = tpu.assume_multiple %37, 16 : i32
      %c0_34 = arith.constant 0 : index
      %c0_35 = arith.constant 0 : index
      %39 = arith.index_cast %38 : i32 to index
      %c0_36 = arith.constant 0 : index
      %40 = vector.load %arg2[%c0_34, %c0_35, %39, %c0_36] : memref<1x1x80x32xbf16, #tpu.memory_space<vmem>>, vector<1x1x16x32xbf16>
      %41 = vector.shape_cast %40 : vector<1x1x16x32xbf16> to vector<16x32xbf16>
      %c3 = arith.constant 3 : index
      %c0_37 = arith.constant 0 : index
      %c0_38 = arith.constant 0 : index
      %42 = vector.load %arg3[%c3, %c0_37, %c0_38] : memref<9x32x128xbf16, #tpu.memory_space<vmem>>, vector<1x32x128xbf16>
      %43 = vector.shape_cast %42 : vector<1x32x128xbf16> to vector<32x128xbf16>
      %cst_39 = arith.constant dense<0.000000e+00> : vector<16x128xf32>
      %44 = tpu.matmul %41, %43, %cst_39 {dimension_numbers = #tpu.dot_dimension_numbers<[1], [0], [0], [1], [0, 0, 1, 1], [], []>} : vector<16x32xbf16>, vector<32x128xbf16>, vector<16x128xf32> -> vector<16x128xf32>
      %45 = arith.addf %36, %44 : vector<16x128xf32>
      %c16_i32_40 = arith.constant 16 : i32
      %46 = arith.addi %10, %c16_i32_40 : i32
      %47 = tpu.assume_multiple %46, 16 : i32
      %48 = arith.index_cast %47 : i32 to index
      %c0_41 = arith.constant 0 : index
      %49 = vector.load %arg6[%48, %c0_41] : memref<64x32xbf16, #tpu.memory_space<vmem>>, vector<16x32xbf16>
      %c4 = arith.constant 4 : index
      %c0_42 = arith.constant 0 : index
      %c0_43 = arith.constant 0 : index
      %50 = vector.load %arg3[%c4, %c0_42, %c0_43] : memref<9x32x128xbf16, #tpu.memory_space<vmem>>, vector<1x32x128xbf16>
      %51 = vector.shape_cast %50 : vector<1x32x128xbf16> to vector<32x128xbf16>
      %cst_44 = arith.constant dense<0.000000e+00> : vector<16x128xf32>
      %52 = tpu.matmul %49, %51, %cst_44 {dimension_numbers = #tpu.dot_dimension_numbers<[1], [0], [0], [1], [0, 0, 1, 1], [], []>} : vector<16x32xbf16>, vector<32x128xbf16>, vector<16x128xf32> -> vector<16x128xf32>
      %53 = arith.addf %45, %52 : vector<16x128xf32>
      %c16_i32_45 = arith.constant 16 : i32
      %54 = arith.addi %10, %c16_i32_45 : i32
      %55 = tpu.assume_multiple %54, 16 : i32
      %56 = arith.index_cast %55 : i32 to index
      %c0_46 = arith.constant 0 : index
      %57 = vector.load %arg7[%56, %c0_46] : memref<64x32xbf16, #tpu.memory_space<vmem>>, vector<16x32xbf16>
      %c5 = arith.constant 5 : index
      %c0_47 = arith.constant 0 : index
      %c0_48 = arith.constant 0 : index
      %58 = vector.load %arg3[%c5, %c0_47, %c0_48] : memref<9x32x128xbf16, #tpu.memory_space<vmem>>, vector<1x32x128xbf16>
      %59 = vector.shape_cast %58 : vector<1x32x128xbf16> to vector<32x128xbf16>
      %cst_49 = arith.constant dense<0.000000e+00> : vector<16x128xf32>
      %60 = tpu.matmul %57, %59, %cst_49 {dimension_numbers = #tpu.dot_dimension_numbers<[1], [0], [0], [1], [0, 0, 1, 1], [], []>} : vector<16x32xbf16>, vector<32x128xbf16>, vector<16x128xf32> -> vector<16x128xf32>
      %61 = arith.addf %53, %60 : vector<16x128xf32>
      %c32_i32 = arith.constant 32 : i32
      %62 = arith.addi %10, %c32_i32 : i32
      %63 = tpu.assume_multiple %62, 16 : i32
      %c0_50 = arith.constant 0 : index
      %c0_51 = arith.constant 0 : index
      %64 = arith.index_cast %63 : i32 to index
      %c0_52 = arith.constant 0 : index
      %65 = vector.load %arg2[%c0_50, %c0_51, %64, %c0_52] : memref<1x1x80x32xbf16, #tpu.memory_space<vmem>>, vector<1x1x16x32xbf16>
      %66 = vector.shape_cast %65 : vector<1x1x16x32xbf16> to vector<16x32xbf16>
      %c6 = arith.constant 6 : index
      %c0_53 = arith.constant 0 : index
      %c0_54 = arith.constant 0 : index
      %67 = vector.load %arg3[%c6, %c0_53, %c0_54] : memref<9x32x128xbf16, #tpu.memory_space<vmem>>, vector<1x32x128xbf16>
      %68 = vector.shape_cast %67 : vector<1x32x128xbf16> to vector<32x128xbf16>
      %cst_55 = arith.constant dense<0.000000e+00> : vector<16x128xf32>
      %69 = tpu.matmul %66, %68, %cst_55 {dimension_numbers = #tpu.dot_dimension_numbers<[1], [0], [0], [1], [0, 0, 1, 1], [], []>} : vector<16x32xbf16>, vector<32x128xbf16>, vector<16x128xf32> -> vector<16x128xf32>
      %70 = arith.addf %61, %69 : vector<16x128xf32>
      %c32_i32_56 = arith.constant 32 : i32
      %71 = arith.addi %10, %c32_i32_56 : i32
      %72 = tpu.assume_multiple %71, 16 : i32
      %73 = arith.index_cast %72 : i32 to index
      %c0_57 = arith.constant 0 : index
      %74 = vector.load %arg6[%73, %c0_57] : memref<64x32xbf16, #tpu.memory_space<vmem>>, vector<16x32xbf16>
      %c7 = arith.constant 7 : index
      %c0_58 = arith.constant 0 : index
      %c0_59 = arith.constant 0 : index
      %75 = vector.load %arg3[%c7, %c0_58, %c0_59] : memref<9x32x128xbf16, #tpu.memory_space<vmem>>, vector<1x32x128xbf16>
      %76 = vector.shape_cast %75 : vector<1x32x128xbf16> to vector<32x128xbf16>
      %cst_60 = arith.constant dense<0.000000e+00> : vector<16x128xf32>
      %77 = tpu.matmul %74, %76, %cst_60 {dimension_numbers = #tpu.dot_dimension_numbers<[1], [0], [0], [1], [0, 0, 1, 1], [], []>} : vector<16x32xbf16>, vector<32x128xbf16>, vector<16x128xf32> -> vector<16x128xf32>
      %78 = arith.addf %70, %77 : vector<16x128xf32>
      %c32_i32_61 = arith.constant 32 : i32
      %79 = arith.addi %10, %c32_i32_61 : i32
      %80 = tpu.assume_multiple %79, 16 : i32
      %81 = arith.index_cast %80 : i32 to index
      %c0_62 = arith.constant 0 : index
      %82 = vector.load %arg7[%81, %c0_62] : memref<64x32xbf16, #tpu.memory_space<vmem>>, vector<16x32xbf16>
      %c8 = arith.constant 8 : index
      %c0_63 = arith.constant 0 : index
      %c0_64 = arith.constant 0 : index
      %83 = vector.load %arg3[%c8, %c0_63, %c0_64] : memref<9x32x128xbf16, #tpu.memory_space<vmem>>, vector<1x32x128xbf16>
      %84 = vector.shape_cast %83 : vector<1x32x128xbf16> to vector<32x128xbf16>
      %cst_65 = arith.constant dense<0.000000e+00> : vector<16x128xf32>
      %85 = tpu.matmul %82, %84, %cst_65 {dimension_numbers = #tpu.dot_dimension_numbers<[1], [0], [0], [1], [0, 0, 1, 1], [], []>} : vector<16x32xbf16>, vector<32x128xbf16>, vector<16x128xf32> -> vector<16x128xf32>
      %86 = arith.addf %78, %85 : vector<16x128xf32>
      %87 = vector.broadcast %7 : vector<1x128xf32> to vector<16x128xf32>
      %88 = arith.addf %86, %87 : vector<16x128xf32>
      %cst_66 = arith.constant 0.000000e+00 : f32
      %89 = vector.broadcast %cst_66 : f32 to vector<16x128xf32>
      %90 = arith.maximumf %88, %89 : vector<16x128xf32>
      %91 = arith.truncf %90 : vector<16x128xf32> to vector<16x128xbf16>
      %c0_67 = arith.constant 0 : index
      %c0_68 = arith.constant 0 : index
      %92 = arith.index_cast %10 : i32 to index
      %c0_69 = arith.constant 0 : index
      %93 = vector.load %arg5[%c0_67, %c0_68, %92, %c0_69] : memref<1x1x32x128xbf16, #tpu.memory_space<vmem>>, vector<1x1x16x128xbf16>
      %94 = vector.shape_cast %93 : vector<1x1x16x128xbf16> to vector<16x128xbf16>
      %95 = vector.shape_cast %91 : vector<16x128xbf16> to vector<1x1x16x128xbf16>
      tpu.vector_store %arg5[%c0_67, %c0_68, %92, %c0_69], %95 {strides = array<i32>} : memref<1x1x32x128xbf16, #tpu.memory_space<vmem>>, vector<1x1x16x128xbf16>,
    }
    %c2_i32_12 = arith.constant 2 : i32
    return
  }
  func.func @transform_0(%arg0: i32, %arg1: i32) -> (i32, i32, i32, i32) {
    %c0_i32 = arith.constant 0 : i32
    %c0_i32_0 = arith.constant 0 : i32
    %c0_i32_1 = arith.constant 0 : i32
    return %arg0, %arg1, %c0_i32, %c0_i32_0 : i32, i32, i32, i32
  }
  func.func @transform_1(%arg0: i32, %arg1: i32) -> (i32, i32, i32) {
    %c0_i32 = arith.constant 0 : i32
    %c0_i32_0 = arith.constant 0 : i32
    %c0_i32_1 = arith.constant 0 : i32
    %c0_i32_2 = arith.constant 0 : i32
    return %c0_i32, %c0_i32_0, %c0_i32_1 : i32, i32, i32
  }
  func.func @transform_2(%arg0: i32, %arg1: i32) -> (i32, i32, i32) {
    %c0_i32 = arith.constant 0 : i32
    %c0_i32_0 = arith.constant 0 : i32
    %c0_i32_1 = arith.constant 0 : i32
    return %arg0, %c0_i32, %c0_i32_0 : i32, i32, i32
  }
  func.func @transform_3(%arg0: i32, %arg1: i32) -> (i32, i32, i32, i32) {
    %c0_i32 = arith.constant 0 : i32
    %c0_i32_0 = arith.constant 0 : i32
    %c0_i32_1 = arith.constant 0 : i32
    return %arg0, %arg1, %c0_i32, %c0_i32_0 : i32, i32, i32, i32
  }
}

module attributes {stable_mosaic.version = 11 : i64} {
  func.func @_tap_conv_kernel(%arg0: i32, %arg1: i32, %arg2: memref<1x1x144x24xbf16, #tpu.memory_space<vmem>>, %arg3: memref<1x24x128xbf16, #tpu.memory_space<vmem>>, %arg4: memref<1x1x128xf32, #tpu.memory_space<vmem>>, %arg5: memref<1x1x128x128xbf16, #tpu.memory_space<vmem>>) attributes {dimension_semantics = [#tpu.dimension_semantics<parallel>, #tpu.dimension_semantics<parallel>], iteration_bounds = array<i64: 2, 1>, scalar_prefetch = 0 : i64, scratch_operands = 0 : i64, tpu.core_type = #tpu.core_type<tc>, window_params = [{transform_indices = @transform_0, window_bounds = array<i64: 1, 1, 144, 24>}, {pipeline_mode = #tpu.pipeline_mode<synchronous>, transform_indices = @transform_1, window_bounds = array<i64: 1, 24, 128>}, {transform_indices = @transform_2, window_bounds = array<i64: 1, 1, 128>}, {transform_indices = @transform_3, window_bounds = array<i64: 1, 1, 128, 128>}]} {
    %c0 = arith.constant 0 : index
    %c0_0 = arith.constant 0 : index
    %c0_1 = arith.constant 0 : index
    %0 = vector.load %arg4[%c0, %c0_0, %c0_1] : memref<1x1x128xf32, #tpu.memory_space<vmem>>, vector<1x1x128xf32>
    %1 = vector.shape_cast %0 : vector<1x1x128xf32> to vector<1x128xf32>
    %c0_i32 = arith.constant 0 : i32
    %c8_i32 = arith.constant 8 : i32
    %2 = arith.addi %c0_i32, %c8_i32 : i32
    %c1_i32 = arith.constant 1 : i32
    scf.for %arg6 = %c0_i32 to %2 step %c1_i32  : i32 {
      %c16_i32 = arith.constant 16 : i32
      %3 = arith.muli %arg6, %c16_i32 : i32
      %4 = tpu.assume_multiple %3, 16 : i32
      %cst = arith.constant 0.000000e+00 : f32
      %5 = vector.broadcast %cst : f32 to vector<16x128xf32>
      %c0_i32_3 = arith.constant 0 : i32
      %6 = arith.addi %4, %c0_i32_3 : i32
      %7 = tpu.assume_multiple %6, 16 : i32
      %c0_4 = arith.constant 0 : index
      %c0_5 = arith.constant 0 : index
      %8 = arith.index_cast %7 : i32 to index
      %c0_6 = arith.constant 0 : index
      %9 = vector.load %arg2[%c0_4, %c0_5, %8, %c0_6] : memref<1x1x144x24xbf16, #tpu.memory_space<vmem>>, vector<1x1x16x24xbf16>
      %10 = vector.shape_cast %9 : vector<1x1x16x24xbf16> to vector<16x24xbf16>
      %c0_7 = arith.constant 0 : index
      %c0_8 = arith.constant 0 : index
      %c0_9 = arith.constant 0 : index
      %11 = vector.load %arg3[%c0_7, %c0_8, %c0_9] : memref<1x24x128xbf16, #tpu.memory_space<vmem>>, vector<1x24x128xbf16>
      %12 = vector.shape_cast %11 : vector<1x24x128xbf16> to vector<24x128xbf16>
      %cst_10 = arith.constant dense<0.000000e+00> : vector<16x128xf32>
      %13 = tpu.matmul %10, %12, %cst_10 {dimension_numbers = #tpu.dot_dimension_numbers<[1], [0], [0], [1], [0, 0, 1, 1], [], []>} : vector<16x24xbf16>, vector<24x128xbf16>, vector<16x128xf32> -> vector<16x128xf32>
      %14 = arith.addf %5, %13 : vector<16x128xf32>
      %15 = vector.broadcast %1 : vector<1x128xf32> to vector<16x128xf32>
      %16 = arith.addf %14, %15 : vector<16x128xf32>
      %cst_11 = arith.constant 0.000000e+00 : f32
      %17 = vector.broadcast %cst_11 : f32 to vector<16x128xf32>
      %18 = arith.maximumf %16, %17 : vector<16x128xf32>
      %19 = arith.truncf %18 : vector<16x128xf32> to vector<16x128xbf16>
      %c0_12 = arith.constant 0 : index
      %c0_13 = arith.constant 0 : index
      %20 = arith.index_cast %4 : i32 to index
      %c0_14 = arith.constant 0 : index
      %21 = vector.load %arg5[%c0_12, %c0_13, %20, %c0_14] : memref<1x1x128x128xbf16, #tpu.memory_space<vmem>>, vector<1x1x16x128xbf16>
      %22 = vector.shape_cast %21 : vector<1x1x16x128xbf16> to vector<16x128xbf16>
      %23 = vector.shape_cast %19 : vector<16x128xbf16> to vector<1x1x16x128xbf16>
      tpu.vector_store %arg5[%c0_12, %c0_13, %20, %c0_14], %23 {strides = array<i32>} : memref<1x1x128x128xbf16, #tpu.memory_space<vmem>>, vector<1x1x16x128xbf16>,
    }
    %c8_i32_2 = arith.constant 8 : i32
    return
  }
  func.func @transform_0(%arg0: i32, %arg1: i32) -> (i32, i32, i32, i32) {
    %c0_i32 = arith.constant 0 : i32
    %c0_i32_0 = arith.constant 0 : i32
    %c0_i32_1 = arith.constant 0 : i32
    return %arg0, %arg1, %c0_i32, %c0_i32_0 : i32, i32, i32, i32
  }
  func.func @transform_1(%arg0: i32, %arg1: i32) -> (i32, i32, i32) {
    %c0_i32 = arith.constant 0 : i32
    %c0_i32_0 = arith.constant 0 : i32
    %c0_i32_1 = arith.constant 0 : i32
    %c0_i32_2 = arith.constant 0 : i32
    return %c0_i32, %c0_i32_0, %c0_i32_1 : i32, i32, i32
  }
  func.func @transform_2(%arg0: i32, %arg1: i32) -> (i32, i32, i32) {
    %c0_i32 = arith.constant 0 : i32
    %c0_i32_0 = arith.constant 0 : i32
    %c0_i32_1 = arith.constant 0 : i32
    return %arg0, %c0_i32, %c0_i32_0 : i32, i32, i32
  }
  func.func @transform_3(%arg0: i32, %arg1: i32) -> (i32, i32, i32, i32) {
    %c0_i32 = arith.constant 0 : i32
    %c0_i32_0 = arith.constant 0 : i32
    %c0_i32_1 = arith.constant 0 : i32
    return %arg0, %arg1, %c0_i32, %c0_i32_0 : i32, i32, i32, i32
  }
}

module attributes {stable_mosaic.version = 11 : i64} {
  func.func @_tap_conv_kernel(%arg0: i32, %arg1: i32, %arg2: memref<1x1x176x256xbf16, #tpu.memory_space<vmem>>, %arg3: memref<9x256x128xbf16, #tpu.memory_space<vmem>>, %arg4: memref<1x1x128xf32, #tpu.memory_space<vmem>>, %arg5: memref<1x1x128x128xbf16, #tpu.memory_space<vmem>>, %arg6: memref<160x256xbf16, #tpu.memory_space<vmem>>, %arg7: memref<160x256xbf16, #tpu.memory_space<vmem>>) attributes {dimension_semantics = [#tpu.dimension_semantics<parallel>, #tpu.dimension_semantics<parallel>], iteration_bounds = array<i64: 2, 1>, scalar_prefetch = 0 : i64, scratch_operands = 2 : i64, tpu.core_type = #tpu.core_type<tc>, window_params = [{transform_indices = @transform_0, window_bounds = array<i64: 1, 1, 176, 256>}, {pipeline_mode = #tpu.pipeline_mode<synchronous>, transform_indices = @transform_1, window_bounds = array<i64: 9, 256, 128>}, {transform_indices = @transform_2, window_bounds = array<i64: 1, 1, 128>}, {transform_indices = @transform_3, window_bounds = array<i64: 1, 1, 128, 128>}]} {
    %c0 = arith.constant 0 : index
    %c0_0 = arith.constant 0 : index
    %c1 = arith.constant 1 : index
    %c0_1 = arith.constant 0 : index
    %0 = vector.load %arg2[%c0, %c0_0, %c1, %c0_1] : memref<1x1x176x256xbf16, #tpu.memory_space<vmem>>, vector<1x1x160x256xbf16>
    %1 = vector.shape_cast %0 : vector<1x1x160x256xbf16> to vector<160x256xbf16>
    %c0_2 = arith.constant 0 : index
    %c0_3 = arith.constant 0 : index
    %2 = vector.load %arg6[%c0_2, %c0_3] : memref<160x256xbf16, #tpu.memory_space<vmem>>, vector<160x256xbf16>
    tpu.vector_store %arg6[%c0_2, %c0_3], %1 {strides = array<i32>} : memref<160x256xbf16, #tpu.memory_space<vmem>>, vector<160x256xbf16>,
    %c0_4 = arith.constant 0 : index
    %c0_5 = arith.constant 0 : index
    %c2 = arith.constant 2 : index
    %c0_6 = arith.constant 0 : index
    %3 = vector.load %arg2[%c0_4, %c0_5, %c2, %c0_6] : memref<1x1x176x256xbf16, #tpu.memory_space<vmem>>, vector<1x1x160x256xbf16>
    %4 = vector.shape_cast %3 : vector<1x1x160x256xbf16> to vector<160x256xbf16>
    %c0_7 = arith.constant 0 : index
    %c0_8 = arith.constant 0 : index
    %5 = vector.load %arg7[%c0_7, %c0_8] : memref<160x256xbf16, #tpu.memory_space<vmem>>, vector<160x256xbf16>
    tpu.vector_store %arg7[%c0_7, %c0_8], %4 {strides = array<i32>} : memref<160x256xbf16, #tpu.memory_space<vmem>>, vector<160x256xbf16>,
    %c0_9 = arith.constant 0 : index
    %c0_10 = arith.constant 0 : index
    %c0_11 = arith.constant 0 : index
    %6 = vector.load %arg4[%c0_9, %c0_10, %c0_11] : memref<1x1x128xf32, #tpu.memory_space<vmem>>, vector<1x1x128xf32>
    %7 = vector.shape_cast %6 : vector<1x1x128xf32> to vector<1x128xf32>
    %c0_i32 = arith.constant 0 : i32
    %c8_i32 = arith.constant 8 : i32
    %8 = arith.addi %c0_i32, %c8_i32 : i32
    %c1_i32 = arith.constant 1 : i32
    scf.for %arg8 = %c0_i32 to %8 step %c1_i32  : i32 {
      %c16_i32 = arith.constant 16 : i32
      %9 = arith.muli %arg8, %c16_i32 : i32
      %10 = tpu.assume_multiple %9, 16 : i32
      %cst = arith.constant 0.000000e+00 : f32
      %11 = vector.broadcast %cst : f32 to vector<16x128xf32>
      %c0_i32_13 = arith.constant 0 : i32
      %12 = arith.addi %10, %c0_i32_13 : i32
      %13 = tpu.assume_multiple %12, 16 : i32
      %c0_14 = arith.constant 0 : index
      %c0_15 = arith.constant 0 : index
      %14 = arith.index_cast %13 : i32 to index
      %c0_16 = arith.constant 0 : index
      %15 = vector.load %arg2[%c0_14, %c0_15, %14, %c0_16] : memref<1x1x176x256xbf16, #tpu.memory_space<vmem>>, vector<1x1x16x256xbf16>
      %16 = vector.shape_cast %15 : vector<1x1x16x256xbf16> to vector<16x256xbf16>
      %c0_17 = arith.constant 0 : index
      %c0_18 = arith.constant 0 : index
      %c0_19 = arith.constant 0 : index
      %17 = vector.load %arg3[%c0_17, %c0_18, %c0_19] : memref<9x256x128xbf16, #tpu.memory_space<vmem>>, vector<1x256x128xbf16>
      %18 = vector.shape_cast %17 : vector<1x256x128xbf16> to vector<256x128xbf16>
      %cst_20 = arith.constant dense<0.000000e+00> : vector<16x128xf32>
      %19 = tpu.matmul %16, %18, %cst_20 {dimension_numbers = #tpu.dot_dimension_numbers<[1], [0], [0], [1], [0, 0, 1, 1], [], []>} : vector<16x256xbf16>, vector<256x128xbf16>, vector<16x128xf32> -> vector<16x128xf32>
      %20 = arith.addf %11, %19 : vector<16x128xf32>
      %c0_i32_21 = arith.constant 0 : i32
      %21 = arith.addi %10, %c0_i32_21 : i32
      %22 = tpu.assume_multiple %21, 16 : i32
      %23 = arith.index_cast %22 : i32 to index
      %c0_22 = arith.constant 0 : index
      %24 = vector.load %arg6[%23, %c0_22] : memref<160x256xbf16, #tpu.memory_space<vmem>>, vector<16x256xbf16>
      %c1_23 = arith.constant 1 : index
      %c0_24 = arith.constant 0 : index
      %c0_25 = arith.constant 0 : index
      %25 = vector.load %arg3[%c1_23, %c0_24, %c0_25] : memref<9x256x128xbf16, #tpu.memory_space<vmem>>, vector<1x256x128xbf16>
      %26 = vector.shape_cast %25 : vector<1x256x128xbf16> to vector<256x128xbf16>
      %cst_26 = arith.constant dense<0.000000e+00> : vector<16x128xf32>
      %27 = tpu.matmul %24, %26, %cst_26 {dimension_numbers = #tpu.dot_dimension_numbers<[1], [0], [0], [1], [0, 0, 1, 1], [], []>} : vector<16x256xbf16>, vector<256x128xbf16>, vector<16x128xf32> -> vector<16x128xf32>
      %28 = arith.addf %20, %27 : vector<16x128xf32>
      %c0_i32_27 = arith.constant 0 : i32
      %29 = arith.addi %10, %c0_i32_27 : i32
      %30 = tpu.assume_multiple %29, 16 : i32
      %31 = arith.index_cast %30 : i32 to index
      %c0_28 = arith.constant 0 : index
      %32 = vector.load %arg7[%31, %c0_28] : memref<160x256xbf16, #tpu.memory_space<vmem>>, vector<16x256xbf16>
      %c2_29 = arith.constant 2 : index
      %c0_30 = arith.constant 0 : index
      %c0_31 = arith.constant 0 : index
      %33 = vector.load %arg3[%c2_29, %c0_30, %c0_31] : memref<9x256x128xbf16, #tpu.memory_space<vmem>>, vector<1x256x128xbf16>
      %34 = vector.shape_cast %33 : vector<1x256x128xbf16> to vector<256x128xbf16>
      %cst_32 = arith.constant dense<0.000000e+00> : vector<16x128xf32>
      %35 = tpu.matmul %32, %34, %cst_32 {dimension_numbers = #tpu.dot_dimension_numbers<[1], [0], [0], [1], [0, 0, 1, 1], [], []>} : vector<16x256xbf16>, vector<256x128xbf16>, vector<16x128xf32> -> vector<16x128xf32>
      %36 = arith.addf %28, %35 : vector<16x128xf32>
      %c16_i32_33 = arith.constant 16 : i32
      %37 = arith.addi %10, %c16_i32_33 : i32
      %38 = tpu.assume_multiple %37, 16 : i32
      %c0_34 = arith.constant 0 : index
      %c0_35 = arith.constant 0 : index
      %39 = arith.index_cast %38 : i32 to index
      %c0_36 = arith.constant 0 : index
      %40 = vector.load %arg2[%c0_34, %c0_35, %39, %c0_36] : memref<1x1x176x256xbf16, #tpu.memory_space<vmem>>, vector<1x1x16x256xbf16>
      %41 = vector.shape_cast %40 : vector<1x1x16x256xbf16> to vector<16x256xbf16>
      %c3 = arith.constant 3 : index
      %c0_37 = arith.constant 0 : index
      %c0_38 = arith.constant 0 : index
      %42 = vector.load %arg3[%c3, %c0_37, %c0_38] : memref<9x256x128xbf16, #tpu.memory_space<vmem>>, vector<1x256x128xbf16>
      %43 = vector.shape_cast %42 : vector<1x256x128xbf16> to vector<256x128xbf16>
      %cst_39 = arith.constant dense<0.000000e+00> : vector<16x128xf32>
      %44 = tpu.matmul %41, %43, %cst_39 {dimension_numbers = #tpu.dot_dimension_numbers<[1], [0], [0], [1], [0, 0, 1, 1], [], []>} : vector<16x256xbf16>, vector<256x128xbf16>, vector<16x128xf32> -> vector<16x128xf32>
      %45 = arith.addf %36, %44 : vector<16x128xf32>
      %c16_i32_40 = arith.constant 16 : i32
      %46 = arith.addi %10, %c16_i32_40 : i32
      %47 = tpu.assume_multiple %46, 16 : i32
      %48 = arith.index_cast %47 : i32 to index
      %c0_41 = arith.constant 0 : index
      %49 = vector.load %arg6[%48, %c0_41] : memref<160x256xbf16, #tpu.memory_space<vmem>>, vector<16x256xbf16>
      %c4 = arith.constant 4 : index
      %c0_42 = arith.constant 0 : index
      %c0_43 = arith.constant 0 : index
      %50 = vector.load %arg3[%c4, %c0_42, %c0_43] : memref<9x256x128xbf16, #tpu.memory_space<vmem>>, vector<1x256x128xbf16>
      %51 = vector.shape_cast %50 : vector<1x256x128xbf16> to vector<256x128xbf16>
      %cst_44 = arith.constant dense<0.000000e+00> : vector<16x128xf32>
      %52 = tpu.matmul %49, %51, %cst_44 {dimension_numbers = #tpu.dot_dimension_numbers<[1], [0], [0], [1], [0, 0, 1, 1], [], []>} : vector<16x256xbf16>, vector<256x128xbf16>, vector<16x128xf32> -> vector<16x128xf32>
      %53 = arith.addf %45, %52 : vector<16x128xf32>
      %c16_i32_45 = arith.constant 16 : i32
      %54 = arith.addi %10, %c16_i32_45 : i32
      %55 = tpu.assume_multiple %54, 16 : i32
      %56 = arith.index_cast %55 : i32 to index
      %c0_46 = arith.constant 0 : index
      %57 = vector.load %arg7[%56, %c0_46] : memref<160x256xbf16, #tpu.memory_space<vmem>>, vector<16x256xbf16>
      %c5 = arith.constant 5 : index
      %c0_47 = arith.constant 0 : index
      %c0_48 = arith.constant 0 : index
      %58 = vector.load %arg3[%c5, %c0_47, %c0_48] : memref<9x256x128xbf16, #tpu.memory_space<vmem>>, vector<1x256x128xbf16>
      %59 = vector.shape_cast %58 : vector<1x256x128xbf16> to vector<256x128xbf16>
      %cst_49 = arith.constant dense<0.000000e+00> : vector<16x128xf32>
      %60 = tpu.matmul %57, %59, %cst_49 {dimension_numbers = #tpu.dot_dimension_numbers<[1], [0], [0], [1], [0, 0, 1, 1], [], []>} : vector<16x256xbf16>, vector<256x128xbf16>, vector<16x128xf32> -> vector<16x128xf32>
      %61 = arith.addf %53, %60 : vector<16x128xf32>
      %c32_i32 = arith.constant 32 : i32
      %62 = arith.addi %10, %c32_i32 : i32
      %63 = tpu.assume_multiple %62, 16 : i32
      %c0_50 = arith.constant 0 : index
      %c0_51 = arith.constant 0 : index
      %64 = arith.index_cast %63 : i32 to index
      %c0_52 = arith.constant 0 : index
      %65 = vector.load %arg2[%c0_50, %c0_51, %64, %c0_52] : memref<1x1x176x256xbf16, #tpu.memory_space<vmem>>, vector<1x1x16x256xbf16>
      %66 = vector.shape_cast %65 : vector<1x1x16x256xbf16> to vector<16x256xbf16>
      %c6 = arith.constant 6 : index
      %c0_53 = arith.constant 0 : index
      %c0_54 = arith.constant 0 : index
      %67 = vector.load %arg3[%c6, %c0_53, %c0_54] : memref<9x256x128xbf16, #tpu.memory_space<vmem>>, vector<1x256x128xbf16>
      %68 = vector.shape_cast %67 : vector<1x256x128xbf16> to vector<256x128xbf16>
      %cst_55 = arith.constant dense<0.000000e+00> : vector<16x128xf32>
      %69 = tpu.matmul %66, %68, %cst_55 {dimension_numbers = #tpu.dot_dimension_numbers<[1], [0], [0], [1], [0, 0, 1, 1], [], []>} : vector<16x256xbf16>, vector<256x128xbf16>, vector<16x128xf32> -> vector<16x128xf32>
      %70 = arith.addf %61, %69 : vector<16x128xf32>
      %c32_i32_56 = arith.constant 32 : i32
      %71 = arith.addi %10, %c32_i32_56 : i32
      %72 = tpu.assume_multiple %71, 16 : i32
      %73 = arith.index_cast %72 : i32 to index
      %c0_57 = arith.constant 0 : index
      %74 = vector.load %arg6[%73, %c0_57] : memref<160x256xbf16, #tpu.memory_space<vmem>>, vector<16x256xbf16>
      %c7 = arith.constant 7 : index
      %c0_58 = arith.constant 0 : index
      %c0_59 = arith.constant 0 : index
      %75 = vector.load %arg3[%c7, %c0_58, %c0_59] : memref<9x256x128xbf16, #tpu.memory_space<vmem>>, vector<1x256x128xbf16>
      %76 = vector.shape_cast %75 : vector<1x256x128xbf16> to vector<256x128xbf16>
      %cst_60 = arith.constant dense<0.000000e+00> : vector<16x128xf32>
      %77 = tpu.matmul %74, %76, %cst_60 {dimension_numbers = #tpu.dot_dimension_numbers<[1], [0], [0], [1], [0, 0, 1, 1], [], []>} : vector<16x256xbf16>, vector<256x128xbf16>, vector<16x128xf32> -> vector<16x128xf32>
      %78 = arith.addf %70, %77 : vector<16x128xf32>
      %c32_i32_61 = arith.constant 32 : i32
      %79 = arith.addi %10, %c32_i32_61 : i32
      %80 = tpu.assume_multiple %79, 16 : i32
      %81 = arith.index_cast %80 : i32 to index
      %c0_62 = arith.constant 0 : index
      %82 = vector.load %arg7[%81, %c0_62] : memref<160x256xbf16, #tpu.memory_space<vmem>>, vector<16x256xbf16>
      %c8 = arith.constant 8 : index
      %c0_63 = arith.constant 0 : index
      %c0_64 = arith.constant 0 : index
      %83 = vector.load %arg3[%c8, %c0_63, %c0_64] : memref<9x256x128xbf16, #tpu.memory_space<vmem>>, vector<1x256x128xbf16>
      %84 = vector.shape_cast %83 : vector<1x256x128xbf16> to vector<256x128xbf16>
      %cst_65 = arith.constant dense<0.000000e+00> : vector<16x128xf32>
      %85 = tpu.matmul %82, %84, %cst_65 {dimension_numbers = #tpu.dot_dimension_numbers<[1], [0], [0], [1], [0, 0, 1, 1], [], []>} : vector<16x256xbf16>, vector<256x128xbf16>, vector<16x128xf32> -> vector<16x128xf32>
      %86 = arith.addf %78, %85 : vector<16x128xf32>
      %87 = vector.broadcast %7 : vector<1x128xf32> to vector<16x128xf32>
      %88 = arith.addf %86, %87 : vector<16x128xf32>
      %cst_66 = arith.constant 0.000000e+00 : f32
      %89 = vector.broadcast %cst_66 : f32 to vector<16x128xf32>
      %90 = arith.maximumf %88, %89 : vector<16x128xf32>
      %91 = arith.truncf %90 : vector<16x128xf32> to vector<16x128xbf16>
      %c0_67 = arith.constant 0 : index
      %c0_68 = arith.constant 0 : index
      %92 = arith.index_cast %10 : i32 to index
      %c0_69 = arith.constant 0 : index
      %93 = vector.load %arg5[%c0_67, %c0_68, %92, %c0_69] : memref<1x1x128x128xbf16, #tpu.memory_space<vmem>>, vector<1x1x16x128xbf16>
      %94 = vector.shape_cast %93 : vector<1x1x16x128xbf16> to vector<16x128xbf16>
      %95 = vector.shape_cast %91 : vector<16x128xbf16> to vector<1x1x16x128xbf16>
      tpu.vector_store %arg5[%c0_67, %c0_68, %92, %c0_69], %95 {strides = array<i32>} : memref<1x1x128x128xbf16, #tpu.memory_space<vmem>>, vector<1x1x16x128xbf16>,
    }
    %c8_i32_12 = arith.constant 8 : i32
    return
  }
  func.func @transform_0(%arg0: i32, %arg1: i32) -> (i32, i32, i32, i32) {
    %c0_i32 = arith.constant 0 : i32
    %c0_i32_0 = arith.constant 0 : i32
    %c0_i32_1 = arith.constant 0 : i32
    return %arg0, %arg1, %c0_i32, %c0_i32_0 : i32, i32, i32, i32
  }
  func.func @transform_1(%arg0: i32, %arg1: i32) -> (i32, i32, i32) {
    %c0_i32 = arith.constant 0 : i32
    %c0_i32_0 = arith.constant 0 : i32
    %c0_i32_1 = arith.constant 0 : i32
    %c0_i32_2 = arith.constant 0 : i32
    return %c0_i32, %c0_i32_0, %c0_i32_1 : i32, i32, i32
  }
  func.func @transform_2(%arg0: i32, %arg1: i32) -> (i32, i32, i32) {
    %c0_i32 = arith.constant 0 : i32
    %c0_i32_0 = arith.constant 0 : i32
    %c0_i32_1 = arith.constant 0 : i32
    return %arg0, %c0_i32, %c0_i32_0 : i32, i32, i32
  }
  func.func @transform_3(%arg0: i32, %arg1: i32) -> (i32, i32, i32, i32) {
    %c0_i32 = arith.constant 0 : i32
    %c0_i32_0 = arith.constant 0 : i32
    %c0_i32_1 = arith.constant 0 : i32
    return %arg0, %arg1, %c0_i32, %c0_i32_0 : i32, i32, i32, i32
  }
}

module attributes {stable_mosaic.version = 11 : i64} {
  func.func @_tap_conv_kernel(%arg0: i32, %arg1: i32, %arg2: memref<1x1x176x32xbf16, #tpu.memory_space<vmem>>, %arg3: memref<9x32x128xbf16, #tpu.memory_space<vmem>>, %arg4: memref<1x1x128xf32, #tpu.memory_space<vmem>>, %arg5: memref<1x1x128x128xbf16, #tpu.memory_space<vmem>>, %arg6: memref<160x32xbf16, #tpu.memory_space<vmem>>, %arg7: memref<160x32xbf16, #tpu.memory_space<vmem>>) attributes {dimension_semantics = [#tpu.dimension_semantics<parallel>, #tpu.dimension_semantics<parallel>], iteration_bounds = array<i64: 2, 1>, scalar_prefetch = 0 : i64, scratch_operands = 2 : i64, tpu.core_type = #tpu.core_type<tc>, window_params = [{transform_indices = @transform_0, window_bounds = array<i64: 1, 1, 176, 32>}, {pipeline_mode = #tpu.pipeline_mode<synchronous>, transform_indices = @transform_1, window_bounds = array<i64: 9, 32, 128>}, {transform_indices = @transform_2, window_bounds = array<i64: 1, 1, 128>}, {transform_indices = @transform_3, window_bounds = array<i64: 1, 1, 128, 128>}]} {
    %c0 = arith.constant 0 : index
    %c0_0 = arith.constant 0 : index
    %c1 = arith.constant 1 : index
    %c0_1 = arith.constant 0 : index
    %0 = vector.load %arg2[%c0, %c0_0, %c1, %c0_1] : memref<1x1x176x32xbf16, #tpu.memory_space<vmem>>, vector<1x1x160x32xbf16>
    %1 = vector.shape_cast %0 : vector<1x1x160x32xbf16> to vector<160x32xbf16>
    %c0_2 = arith.constant 0 : index
    %c0_3 = arith.constant 0 : index
    %2 = vector.load %arg6[%c0_2, %c0_3] : memref<160x32xbf16, #tpu.memory_space<vmem>>, vector<160x32xbf16>
    tpu.vector_store %arg6[%c0_2, %c0_3], %1 {strides = array<i32>} : memref<160x32xbf16, #tpu.memory_space<vmem>>, vector<160x32xbf16>,
    %c0_4 = arith.constant 0 : index
    %c0_5 = arith.constant 0 : index
    %c2 = arith.constant 2 : index
    %c0_6 = arith.constant 0 : index
    %3 = vector.load %arg2[%c0_4, %c0_5, %c2, %c0_6] : memref<1x1x176x32xbf16, #tpu.memory_space<vmem>>, vector<1x1x160x32xbf16>
    %4 = vector.shape_cast %3 : vector<1x1x160x32xbf16> to vector<160x32xbf16>
    %c0_7 = arith.constant 0 : index
    %c0_8 = arith.constant 0 : index
    %5 = vector.load %arg7[%c0_7, %c0_8] : memref<160x32xbf16, #tpu.memory_space<vmem>>, vector<160x32xbf16>
    tpu.vector_store %arg7[%c0_7, %c0_8], %4 {strides = array<i32>} : memref<160x32xbf16, #tpu.memory_space<vmem>>, vector<160x32xbf16>,
    %c0_9 = arith.constant 0 : index
    %c0_10 = arith.constant 0 : index
    %c0_11 = arith.constant 0 : index
    %6 = vector.load %arg4[%c0_9, %c0_10, %c0_11] : memref<1x1x128xf32, #tpu.memory_space<vmem>>, vector<1x1x128xf32>
    %7 = vector.shape_cast %6 : vector<1x1x128xf32> to vector<1x128xf32>
    %c0_i32 = arith.constant 0 : i32
    %c8_i32 = arith.constant 8 : i32
    %8 = arith.addi %c0_i32, %c8_i32 : i32
    %c1_i32 = arith.constant 1 : i32
    scf.for %arg8 = %c0_i32 to %8 step %c1_i32  : i32 {
      %c16_i32 = arith.constant 16 : i32
      %9 = arith.muli %arg8, %c16_i32 : i32
      %10 = tpu.assume_multiple %9, 16 : i32
      %cst = arith.constant 0.000000e+00 : f32
      %11 = vector.broadcast %cst : f32 to vector<16x128xf32>
      %c0_i32_13 = arith.constant 0 : i32
      %12 = arith.addi %10, %c0_i32_13 : i32
      %13 = tpu.assume_multiple %12, 16 : i32
      %c0_14 = arith.constant 0 : index
      %c0_15 = arith.constant 0 : index
      %14 = arith.index_cast %13 : i32 to index
      %c0_16 = arith.constant 0 : index
      %15 = vector.load %arg2[%c0_14, %c0_15, %14, %c0_16] : memref<1x1x176x32xbf16, #tpu.memory_space<vmem>>, vector<1x1x16x32xbf16>
      %16 = vector.shape_cast %15 : vector<1x1x16x32xbf16> to vector<16x32xbf16>
      %c0_17 = arith.constant 0 : index
      %c0_18 = arith.constant 0 : index
      %c0_19 = arith.constant 0 : index
      %17 = vector.load %arg3[%c0_17, %c0_18, %c0_19] : memref<9x32x128xbf16, #tpu.memory_space<vmem>>, vector<1x32x128xbf16>
      %18 = vector.shape_cast %17 : vector<1x32x128xbf16> to vector<32x128xbf16>
      %cst_20 = arith.constant dense<0.000000e+00> : vector<16x128xf32>
      %19 = tpu.matmul %16, %18, %cst_20 {dimension_numbers = #tpu.dot_dimension_numbers<[1], [0], [0], [1], [0, 0, 1, 1], [], []>} : vector<16x32xbf16>, vector<32x128xbf16>, vector<16x128xf32> -> vector<16x128xf32>
      %20 = arith.addf %11, %19 : vector<16x128xf32>
      %c0_i32_21 = arith.constant 0 : i32
      %21 = arith.addi %10, %c0_i32_21 : i32
      %22 = tpu.assume_multiple %21, 16 : i32
      %23 = arith.index_cast %22 : i32 to index
      %c0_22 = arith.constant 0 : index
      %24 = vector.load %arg6[%23, %c0_22] : memref<160x32xbf16, #tpu.memory_space<vmem>>, vector<16x32xbf16>
      %c1_23 = arith.constant 1 : index
      %c0_24 = arith.constant 0 : index
      %c0_25 = arith.constant 0 : index
      %25 = vector.load %arg3[%c1_23, %c0_24, %c0_25] : memref<9x32x128xbf16, #tpu.memory_space<vmem>>, vector<1x32x128xbf16>
      %26 = vector.shape_cast %25 : vector<1x32x128xbf16> to vector<32x128xbf16>
      %cst_26 = arith.constant dense<0.000000e+00> : vector<16x128xf32>
      %27 = tpu.matmul %24, %26, %cst_26 {dimension_numbers = #tpu.dot_dimension_numbers<[1], [0], [0], [1], [0, 0, 1, 1], [], []>} : vector<16x32xbf16>, vector<32x128xbf16>, vector<16x128xf32> -> vector<16x128xf32>
      %28 = arith.addf %20, %27 : vector<16x128xf32>
      %c0_i32_27 = arith.constant 0 : i32
      %29 = arith.addi %10, %c0_i32_27 : i32
      %30 = tpu.assume_multiple %29, 16 : i32
      %31 = arith.index_cast %30 : i32 to index
      %c0_28 = arith.constant 0 : index
      %32 = vector.load %arg7[%31, %c0_28] : memref<160x32xbf16, #tpu.memory_space<vmem>>, vector<16x32xbf16>
      %c2_29 = arith.constant 2 : index
      %c0_30 = arith.constant 0 : index
      %c0_31 = arith.constant 0 : index
      %33 = vector.load %arg3[%c2_29, %c0_30, %c0_31] : memref<9x32x128xbf16, #tpu.memory_space<vmem>>, vector<1x32x128xbf16>
      %34 = vector.shape_cast %33 : vector<1x32x128xbf16> to vector<32x128xbf16>
      %cst_32 = arith.constant dense<0.000000e+00> : vector<16x128xf32>
      %35 = tpu.matmul %32, %34, %cst_32 {dimension_numbers = #tpu.dot_dimension_numbers<[1], [0], [0], [1], [0, 0, 1, 1], [], []>} : vector<16x32xbf16>, vector<32x128xbf16>, vector<16x128xf32> -> vector<16x128xf32>
      %36 = arith.addf %28, %35 : vector<16x128xf32>
      %c16_i32_33 = arith.constant 16 : i32
      %37 = arith.addi %10, %c16_i32_33 : i32
      %38 = tpu.assume_multiple %37, 16 : i32
      %c0_34 = arith.constant 0 : index
      %c0_35 = arith.constant 0 : index
      %39 = arith.index_cast %38 : i32 to index
      %c0_36 = arith.constant 0 : index
      %40 = vector.load %arg2[%c0_34, %c0_35, %39, %c0_36] : memref<1x1x176x32xbf16, #tpu.memory_space<vmem>>, vector<1x1x16x32xbf16>
      %41 = vector.shape_cast %40 : vector<1x1x16x32xbf16> to vector<16x32xbf16>
      %c3 = arith.constant 3 : index
      %c0_37 = arith.constant 0 : index
      %c0_38 = arith.constant 0 : index
      %42 = vector.load %arg3[%c3, %c0_37, %c0_38] : memref<9x32x128xbf16, #tpu.memory_space<vmem>>, vector<1x32x128xbf16>
      %43 = vector.shape_cast %42 : vector<1x32x128xbf16> to vector<32x128xbf16>
      %cst_39 = arith.constant dense<0.000000e+00> : vector<16x128xf32>
      %44 = tpu.matmul %41, %43, %cst_39 {dimension_numbers = #tpu.dot_dimension_numbers<[1], [0], [0], [1], [0, 0, 1, 1], [], []>} : vector<16x32xbf16>, vector<32x128xbf16>, vector<16x128xf32> -> vector<16x128xf32>
      %45 = arith.addf %36, %44 : vector<16x128xf32>
      %c16_i32_40 = arith.constant 16 : i32
      %46 = arith.addi %10, %c16_i32_40 : i32
      %47 = tpu.assume_multiple %46, 16 : i32
      %48 = arith.index_cast %47 : i32 to index
      %c0_41 = arith.constant 0 : index
      %49 = vector.load %arg6[%48, %c0_41] : memref<160x32xbf16, #tpu.memory_space<vmem>>, vector<16x32xbf16>
      %c4 = arith.constant 4 : index
      %c0_42 = arith.constant 0 : index
      %c0_43 = arith.constant 0 : index
      %50 = vector.load %arg3[%c4, %c0_42, %c0_43] : memref<9x32x128xbf16, #tpu.memory_space<vmem>>, vector<1x32x128xbf16>
      %51 = vector.shape_cast %50 : vector<1x32x128xbf16> to vector<32x128xbf16>
      %cst_44 = arith.constant dense<0.000000e+00> : vector<16x128xf32>
      %52 = tpu.matmul %49, %51, %cst_44 {dimension_numbers = #tpu.dot_dimension_numbers<[1], [0], [0], [1], [0, 0, 1, 1], [], []>} : vector<16x32xbf16>, vector<32x128xbf16>, vector<16x128xf32> -> vector<16x128xf32>
      %53 = arith.addf %45, %52 : vector<16x128xf32>
      %c16_i32_45 = arith.constant 16 : i32
      %54 = arith.addi %10, %c16_i32_45 : i32
      %55 = tpu.assume_multiple %54, 16 : i32
      %56 = arith.index_cast %55 : i32 to index
      %c0_46 = arith.constant 0 : index
      %57 = vector.load %arg7[%56, %c0_46] : memref<160x32xbf16, #tpu.memory_space<vmem>>, vector<16x32xbf16>
      %c5 = arith.constant 5 : index
      %c0_47 = arith.constant 0 : index
      %c0_48 = arith.constant 0 : index
      %58 = vector.load %arg3[%c5, %c0_47, %c0_48] : memref<9x32x128xbf16, #tpu.memory_space<vmem>>, vector<1x32x128xbf16>
      %59 = vector.shape_cast %58 : vector<1x32x128xbf16> to vector<32x128xbf16>
      %cst_49 = arith.constant dense<0.000000e+00> : vector<16x128xf32>
      %60 = tpu.matmul %57, %59, %cst_49 {dimension_numbers = #tpu.dot_dimension_numbers<[1], [0], [0], [1], [0, 0, 1, 1], [], []>} : vector<16x32xbf16>, vector<32x128xbf16>, vector<16x128xf32> -> vector<16x128xf32>
      %61 = arith.addf %53, %60 : vector<16x128xf32>
      %c32_i32 = arith.constant 32 : i32
      %62 = arith.addi %10, %c32_i32 : i32
      %63 = tpu.assume_multiple %62, 16 : i32
      %c0_50 = arith.constant 0 : index
      %c0_51 = arith.constant 0 : index
      %64 = arith.index_cast %63 : i32 to index
      %c0_52 = arith.constant 0 : index
      %65 = vector.load %arg2[%c0_50, %c0_51, %64, %c0_52] : memref<1x1x176x32xbf16, #tpu.memory_space<vmem>>, vector<1x1x16x32xbf16>
      %66 = vector.shape_cast %65 : vector<1x1x16x32xbf16> to vector<16x32xbf16>
      %c6 = arith.constant 6 : index
      %c0_53 = arith.constant 0 : index
      %c0_54 = arith.constant 0 : index
      %67 = vector.load %arg3[%c6, %c0_53, %c0_54] : memref<9x32x128xbf16, #tpu.memory_space<vmem>>, vector<1x32x128xbf16>
      %68 = vector.shape_cast %67 : vector<1x32x128xbf16> to vector<32x128xbf16>
      %cst_55 = arith.constant dense<0.000000e+00> : vector<16x128xf32>
      %69 = tpu.matmul %66, %68, %cst_55 {dimension_numbers = #tpu.dot_dimension_numbers<[1], [0], [0], [1], [0, 0, 1, 1], [], []>} : vector<16x32xbf16>, vector<32x128xbf16>, vector<16x128xf32> -> vector<16x128xf32>
      %70 = arith.addf %61, %69 : vector<16x128xf32>
      %c32_i32_56 = arith.constant 32 : i32
      %71 = arith.addi %10, %c32_i32_56 : i32
      %72 = tpu.assume_multiple %71, 16 : i32
      %73 = arith.index_cast %72 : i32 to index
      %c0_57 = arith.constant 0 : index
      %74 = vector.load %arg6[%73, %c0_57] : memref<160x32xbf16, #tpu.memory_space<vmem>>, vector<16x32xbf16>
      %c7 = arith.constant 7 : index
      %c0_58 = arith.constant 0 : index
      %c0_59 = arith.constant 0 : index
      %75 = vector.load %arg3[%c7, %c0_58, %c0_59] : memref<9x32x128xbf16, #tpu.memory_space<vmem>>, vector<1x32x128xbf16>
      %76 = vector.shape_cast %75 : vector<1x32x128xbf16> to vector<32x128xbf16>
      %cst_60 = arith.constant dense<0.000000e+00> : vector<16x128xf32>
      %77 = tpu.matmul %74, %76, %cst_60 {dimension_numbers = #tpu.dot_dimension_numbers<[1], [0], [0], [1], [0, 0, 1, 1], [], []>} : vector<16x32xbf16>, vector<32x128xbf16>, vector<16x128xf32> -> vector<16x128xf32>
      %78 = arith.addf %70, %77 : vector<16x128xf32>
      %c32_i32_61 = arith.constant 32 : i32
      %79 = arith.addi %10, %c32_i32_61 : i32
      %80 = tpu.assume_multiple %79, 16 : i32
      %81 = arith.index_cast %80 : i32 to index
      %c0_62 = arith.constant 0 : index
      %82 = vector.load %arg7[%81, %c0_62] : memref<160x32xbf16, #tpu.memory_space<vmem>>, vector<16x32xbf16>
      %c8 = arith.constant 8 : index
      %c0_63 = arith.constant 0 : index
      %c0_64 = arith.constant 0 : index
      %83 = vector.load %arg3[%c8, %c0_63, %c0_64] : memref<9x32x128xbf16, #tpu.memory_space<vmem>>, vector<1x32x128xbf16>
      %84 = vector.shape_cast %83 : vector<1x32x128xbf16> to vector<32x128xbf16>
      %cst_65 = arith.constant dense<0.000000e+00> : vector<16x128xf32>
      %85 = tpu.matmul %82, %84, %cst_65 {dimension_numbers = #tpu.dot_dimension_numbers<[1], [0], [0], [1], [0, 0, 1, 1], [], []>} : vector<16x32xbf16>, vector<32x128xbf16>, vector<16x128xf32> -> vector<16x128xf32>
      %86 = arith.addf %78, %85 : vector<16x128xf32>
      %87 = vector.broadcast %7 : vector<1x128xf32> to vector<16x128xf32>
      %88 = arith.addf %86, %87 : vector<16x128xf32>
      %cst_66 = arith.constant 0.000000e+00 : f32
      %89 = vector.broadcast %cst_66 : f32 to vector<16x128xf32>
      %90 = arith.maximumf %88, %89 : vector<16x128xf32>
      %91 = arith.truncf %90 : vector<16x128xf32> to vector<16x128xbf16>
      %c0_67 = arith.constant 0 : index
      %c0_68 = arith.constant 0 : index
      %92 = arith.index_cast %10 : i32 to index
      %c0_69 = arith.constant 0 : index
      %93 = vector.load %arg5[%c0_67, %c0_68, %92, %c0_69] : memref<1x1x128x128xbf16, #tpu.memory_space<vmem>>, vector<1x1x16x128xbf16>
      %94 = vector.shape_cast %93 : vector<1x1x16x128xbf16> to vector<16x128xbf16>
      %95 = vector.shape_cast %91 : vector<16x128xbf16> to vector<1x1x16x128xbf16>
      tpu.vector_store %arg5[%c0_67, %c0_68, %92, %c0_69], %95 {strides = array<i32>} : memref<1x1x128x128xbf16, #tpu.memory_space<vmem>>, vector<1x1x16x128xbf16>,
    }
    %c8_i32_12 = arith.constant 8 : i32
    return
  }
  func.func @transform_0(%arg0: i32, %arg1: i32) -> (i32, i32, i32, i32) {
    %c0_i32 = arith.constant 0 : i32
    %c0_i32_0 = arith.constant 0 : i32
    %c0_i32_1 = arith.constant 0 : i32
    return %arg0, %arg1, %c0_i32, %c0_i32_0 : i32, i32, i32, i32
  }
  func.func @transform_1(%arg0: i32, %arg1: i32) -> (i32, i32, i32) {
    %c0_i32 = arith.constant 0 : i32
    %c0_i32_0 = arith.constant 0 : i32
    %c0_i32_1 = arith.constant 0 : i32
    %c0_i32_2 = arith.constant 0 : i32
    return %c0_i32, %c0_i32_0, %c0_i32_1 : i32, i32, i32
  }
  func.func @transform_2(%arg0: i32, %arg1: i32) -> (i32, i32, i32) {
    %c0_i32 = arith.constant 0 : i32
    %c0_i32_0 = arith.constant 0 : i32
    %c0_i32_1 = arith.constant 0 : i32
    return %arg0, %c0_i32, %c0_i32_0 : i32, i32, i32
  }
  func.func @transform_3(%arg0: i32, %arg1: i32) -> (i32, i32, i32, i32) {
    %c0_i32 = arith.constant 0 : i32
    %c0_i32_0 = arith.constant 0 : i32
    %c0_i32_1 = arith.constant 0 : i32
    return %arg0, %arg1, %c0_i32, %c0_i32_0 : i32, i32, i32, i32
  }
}

module attributes {stable_mosaic.version = 11 : i64} {
  func.func @_tap_conv_kernel(%arg0: i32, %arg1: i32, %arg2: memref<1x1x176x32xbf16, #tpu.memory_space<vmem>>, %arg3: memref<9x32x128xbf16, #tpu.memory_space<vmem>>, %arg4: memref<1x1x128xf32, #tpu.memory_space<vmem>>, %arg5: memref<1x1x128x128xbf16, #tpu.memory_space<vmem>>, %arg6: memref<160x32xbf16, #tpu.memory_space<vmem>>, %arg7: memref<160x32xbf16, #tpu.memory_space<vmem>>) attributes {dimension_semantics = [#tpu.dimension_semantics<parallel>, #tpu.dimension_semantics<parallel>], iteration_bounds = array<i64: 2, 1>, scalar_prefetch = 0 : i64, scratch_operands = 2 : i64, tpu.core_type = #tpu.core_type<tc>, window_params = [{transform_indices = @transform_0, window_bounds = array<i64: 1, 1, 176, 32>}, {pipeline_mode = #tpu.pipeline_mode<synchronous>, transform_indices = @transform_1, window_bounds = array<i64: 9, 32, 128>}, {transform_indices = @transform_2, window_bounds = array<i64: 1, 1, 128>}, {transform_indices = @transform_3, window_bounds = array<i64: 1, 1, 128, 128>}]} {
    %c0 = arith.constant 0 : index
    %c0_0 = arith.constant 0 : index
    %c1 = arith.constant 1 : index
    %c0_1 = arith.constant 0 : index
    %0 = vector.load %arg2[%c0, %c0_0, %c1, %c0_1] : memref<1x1x176x32xbf16, #tpu.memory_space<vmem>>, vector<1x1x160x32xbf16>
    %1 = vector.shape_cast %0 : vector<1x1x160x32xbf16> to vector<160x32xbf16>
    %c0_2 = arith.constant 0 : index
    %c0_3 = arith.constant 0 : index
    %2 = vector.load %arg6[%c0_2, %c0_3] : memref<160x32xbf16, #tpu.memory_space<vmem>>, vector<160x32xbf16>
    tpu.vector_store %arg6[%c0_2, %c0_3], %1 {strides = array<i32>} : memref<160x32xbf16, #tpu.memory_space<vmem>>, vector<160x32xbf16>,
    %c0_4 = arith.constant 0 : index
    %c0_5 = arith.constant 0 : index
    %c2 = arith.constant 2 : index
    %c0_6 = arith.constant 0 : index
    %3 = vector.load %arg2[%c0_4, %c0_5, %c2, %c0_6] : memref<1x1x176x32xbf16, #tpu.memory_space<vmem>>, vector<1x1x160x32xbf16>
    %4 = vector.shape_cast %3 : vector<1x1x160x32xbf16> to vector<160x32xbf16>
    %c0_7 = arith.constant 0 : index
    %c0_8 = arith.constant 0 : index
    %5 = vector.load %arg7[%c0_7, %c0_8] : memref<160x32xbf16, #tpu.memory_space<vmem>>, vector<160x32xbf16>
    tpu.vector_store %arg7[%c0_7, %c0_8], %4 {strides = array<i32>} : memref<160x32xbf16, #tpu.memory_space<vmem>>, vector<160x32xbf16>,
    %c0_9 = arith.constant 0 : index
    %c0_10 = arith.constant 0 : index
    %c0_11 = arith.constant 0 : index
    %6 = vector.load %arg4[%c0_9, %c0_10, %c0_11] : memref<1x1x128xf32, #tpu.memory_space<vmem>>, vector<1x1x128xf32>
    %7 = vector.shape_cast %6 : vector<1x1x128xf32> to vector<1x128xf32>
    %c0_i32 = arith.constant 0 : i32
    %c8_i32 = arith.constant 8 : i32
    %8 = arith.addi %c0_i32, %c8_i32 : i32
    %c1_i32 = arith.constant 1 : i32
    scf.for %arg8 = %c0_i32 to %8 step %c1_i32  : i32 {
      %c16_i32 = arith.constant 16 : i32
      %9 = arith.muli %arg8, %c16_i32 : i32
      %10 = tpu.assume_multiple %9, 16 : i32
      %cst = arith.constant 0.000000e+00 : f32
      %11 = vector.broadcast %cst : f32 to vector<16x128xf32>
      %c0_i32_13 = arith.constant 0 : i32
      %12 = arith.addi %10, %c0_i32_13 : i32
      %13 = tpu.assume_multiple %12, 16 : i32
      %c0_14 = arith.constant 0 : index
      %c0_15 = arith.constant 0 : index
      %14 = arith.index_cast %13 : i32 to index
      %c0_16 = arith.constant 0 : index
      %15 = vector.load %arg2[%c0_14, %c0_15, %14, %c0_16] : memref<1x1x176x32xbf16, #tpu.memory_space<vmem>>, vector<1x1x16x32xbf16>
      %16 = vector.shape_cast %15 : vector<1x1x16x32xbf16> to vector<16x32xbf16>
      %c0_17 = arith.constant 0 : index
      %c0_18 = arith.constant 0 : index
      %c0_19 = arith.constant 0 : index
      %17 = vector.load %arg3[%c0_17, %c0_18, %c0_19] : memref<9x32x128xbf16, #tpu.memory_space<vmem>>, vector<1x32x128xbf16>
      %18 = vector.shape_cast %17 : vector<1x32x128xbf16> to vector<32x128xbf16>
      %cst_20 = arith.constant dense<0.000000e+00> : vector<16x128xf32>
      %19 = tpu.matmul %16, %18, %cst_20 {dimension_numbers = #tpu.dot_dimension_numbers<[1], [0], [0], [1], [0, 0, 1, 1], [], []>} : vector<16x32xbf16>, vector<32x128xbf16>, vector<16x128xf32> -> vector<16x128xf32>
      %20 = arith.addf %11, %19 : vector<16x128xf32>
      %c0_i32_21 = arith.constant 0 : i32
      %21 = arith.addi %10, %c0_i32_21 : i32
      %22 = tpu.assume_multiple %21, 16 : i32
      %23 = arith.index_cast %22 : i32 to index
      %c0_22 = arith.constant 0 : index
      %24 = vector.load %arg6[%23, %c0_22] : memref<160x32xbf16, #tpu.memory_space<vmem>>, vector<16x32xbf16>
      %c1_23 = arith.constant 1 : index
      %c0_24 = arith.constant 0 : index
      %c0_25 = arith.constant 0 : index
      %25 = vector.load %arg3[%c1_23, %c0_24, %c0_25] : memref<9x32x128xbf16, #tpu.memory_space<vmem>>, vector<1x32x128xbf16>
      %26 = vector.shape_cast %25 : vector<1x32x128xbf16> to vector<32x128xbf16>
      %cst_26 = arith.constant dense<0.000000e+00> : vector<16x128xf32>
      %27 = tpu.matmul %24, %26, %cst_26 {dimension_numbers = #tpu.dot_dimension_numbers<[1], [0], [0], [1], [0, 0, 1, 1], [], []>} : vector<16x32xbf16>, vector<32x128xbf16>, vector<16x128xf32> -> vector<16x128xf32>
      %28 = arith.addf %20, %27 : vector<16x128xf32>
      %c0_i32_27 = arith.constant 0 : i32
      %29 = arith.addi %10, %c0_i32_27 : i32
      %30 = tpu.assume_multiple %29, 16 : i32
      %31 = arith.index_cast %30 : i32 to index
      %c0_28 = arith.constant 0 : index
      %32 = vector.load %arg7[%31, %c0_28] : memref<160x32xbf16, #tpu.memory_space<vmem>>, vector<16x32xbf16>
      %c2_29 = arith.constant 2 : index
      %c0_30 = arith.constant 0 : index
      %c0_31 = arith.constant 0 : index
      %33 = vector.load %arg3[%c2_29, %c0_30, %c0_31] : memref<9x32x128xbf16, #tpu.memory_space<vmem>>, vector<1x32x128xbf16>
      %34 = vector.shape_cast %33 : vector<1x32x128xbf16> to vector<32x128xbf16>
      %cst_32 = arith.constant dense<0.000000e+00> : vector<16x128xf32>
      %35 = tpu.matmul %32, %34, %cst_32 {dimension_numbers = #tpu.dot_dimension_numbers<[1], [0], [0], [1], [0, 0, 1, 1], [], []>} : vector<16x32xbf16>, vector<32x128xbf16>, vector<16x128xf32> -> vector<16x128xf32>
      %36 = arith.addf %28, %35 : vector<16x128xf32>
      %c16_i32_33 = arith.constant 16 : i32
      %37 = arith.addi %10, %c16_i32_33 : i32
      %38 = tpu.assume_multiple %37, 16 : i32
      %c0_34 = arith.constant 0 : index
      %c0_35 = arith.constant 0 : index
      %39 = arith.index_cast %38 : i32 to index
      %c0_36 = arith.constant 0 : index
      %40 = vector.load %arg2[%c0_34, %c0_35, %39, %c0_36] : memref<1x1x176x32xbf16, #tpu.memory_space<vmem>>, vector<1x1x16x32xbf16>
      %41 = vector.shape_cast %40 : vector<1x1x16x32xbf16> to vector<16x32xbf16>
      %c3 = arith.constant 3 : index
      %c0_37 = arith.constant 0 : index
      %c0_38 = arith.constant 0 : index
      %42 = vector.load %arg3[%c3, %c0_37, %c0_38] : memref<9x32x128xbf16, #tpu.memory_space<vmem>>, vector<1x32x128xbf16>
      %43 = vector.shape_cast %42 : vector<1x32x128xbf16> to vector<32x128xbf16>
      %cst_39 = arith.constant dense<0.000000e+00> : vector<16x128xf32>
      %44 = tpu.matmul %41, %43, %cst_39 {dimension_numbers = #tpu.dot_dimension_numbers<[1], [0], [0], [1], [0, 0, 1, 1], [], []>} : vector<16x32xbf16>, vector<32x128xbf16>, vector<16x128xf32> -> vector<16x128xf32>
      %45 = arith.addf %36, %44 : vector<16x128xf32>
      %c16_i32_40 = arith.constant 16 : i32
      %46 = arith.addi %10, %c16_i32_40 : i32
      %47 = tpu.assume_multiple %46, 16 : i32
      %48 = arith.index_cast %47 : i32 to index
      %c0_41 = arith.constant 0 : index
      %49 = vector.load %arg6[%48, %c0_41] : memref<160x32xbf16, #tpu.memory_space<vmem>>, vector<16x32xbf16>
      %c4 = arith.constant 4 : index
      %c0_42 = arith.constant 0 : index
      %c0_43 = arith.constant 0 : index
      %50 = vector.load %arg3[%c4, %c0_42, %c0_43] : memref<9x32x128xbf16, #tpu.memory_space<vmem>>, vector<1x32x128xbf16>
      %51 = vector.shape_cast %50 : vector<1x32x128xbf16> to vector<32x128xbf16>
      %cst_44 = arith.constant dense<0.000000e+00> : vector<16x128xf32>
      %52 = tpu.matmul %49, %51, %cst_44 {dimension_numbers = #tpu.dot_dimension_numbers<[1], [0], [0], [1], [0, 0, 1, 1], [], []>} : vector<16x32xbf16>, vector<32x128xbf16>, vector<16x128xf32> -> vector<16x128xf32>
      %53 = arith.addf %45, %52 : vector<16x128xf32>
      %c16_i32_45 = arith.constant 16 : i32
      %54 = arith.addi %10, %c16_i32_45 : i32
      %55 = tpu.assume_multiple %54, 16 : i32
      %56 = arith.index_cast %55 : i32 to index
      %c0_46 = arith.constant 0 : index
      %57 = vector.load %arg7[%56, %c0_46] : memref<160x32xbf16, #tpu.memory_space<vmem>>, vector<16x32xbf16>
      %c5 = arith.constant 5 : index
      %c0_47 = arith.constant 0 : index
      %c0_48 = arith.constant 0 : index
      %58 = vector.load %arg3[%c5, %c0_47, %c0_48] : memref<9x32x128xbf16, #tpu.memory_space<vmem>>, vector<1x32x128xbf16>
      %59 = vector.shape_cast %58 : vector<1x32x128xbf16> to vector<32x128xbf16>
      %cst_49 = arith.constant dense<0.000000e+00> : vector<16x128xf32>
      %60 = tpu.matmul %57, %59, %cst_49 {dimension_numbers = #tpu.dot_dimension_numbers<[1], [0], [0], [1], [0, 0, 1, 1], [], []>} : vector<16x32xbf16>, vector<32x128xbf16>, vector<16x128xf32> -> vector<16x128xf32>
      %61 = arith.addf %53, %60 : vector<16x128xf32>
      %c32_i32 = arith.constant 32 : i32
      %62 = arith.addi %10, %c32_i32 : i32
      %63 = tpu.assume_multiple %62, 16 : i32
      %c0_50 = arith.constant 0 : index
      %c0_51 = arith.constant 0 : index
      %64 = arith.index_cast %63 : i32 to index
      %c0_52 = arith.constant 0 : index
      %65 = vector.load %arg2[%c0_50, %c0_51, %64, %c0_52] : memref<1x1x176x32xbf16, #tpu.memory_space<vmem>>, vector<1x1x16x32xbf16>
      %66 = vector.shape_cast %65 : vector<1x1x16x32xbf16> to vector<16x32xbf16>
      %c6 = arith.constant 6 : index
      %c0_53 = arith.constant 0 : index
      %c0_54 = arith.constant 0 : index
      %67 = vector.load %arg3[%c6, %c0_53, %c0_54] : memref<9x32x128xbf16, #tpu.memory_space<vmem>>, vector<1x32x128xbf16>
      %68 = vector.shape_cast %67 : vector<1x32x128xbf16> to vector<32x128xbf16>
      %cst_55 = arith.constant dense<0.000000e+00> : vector<16x128xf32>
      %69 = tpu.matmul %66, %68, %cst_55 {dimension_numbers = #tpu.dot_dimension_numbers<[1], [0], [0], [1], [0, 0, 1, 1], [], []>} : vector<16x32xbf16>, vector<32x128xbf16>, vector<16x128xf32> -> vector<16x128xf32>
      %70 = arith.addf %61, %69 : vector<16x128xf32>
      %c32_i32_56 = arith.constant 32 : i32
      %71 = arith.addi %10, %c32_i32_56 : i32
      %72 = tpu.assume_multiple %71, 16 : i32
      %73 = arith.index_cast %72 : i32 to index
      %c0_57 = arith.constant 0 : index
      %74 = vector.load %arg6[%73, %c0_57] : memref<160x32xbf16, #tpu.memory_space<vmem>>, vector<16x32xbf16>
      %c7 = arith.constant 7 : index
      %c0_58 = arith.constant 0 : index
      %c0_59 = arith.constant 0 : index
      %75 = vector.load %arg3[%c7, %c0_58, %c0_59] : memref<9x32x128xbf16, #tpu.memory_space<vmem>>, vector<1x32x128xbf16>
      %76 = vector.shape_cast %75 : vector<1x32x128xbf16> to vector<32x128xbf16>
      %cst_60 = arith.constant dense<0.000000e+00> : vector<16x128xf32>
      %77 = tpu.matmul %74, %76, %cst_60 {dimension_numbers = #tpu.dot_dimension_numbers<[1], [0], [0], [1], [0, 0, 1, 1], [], []>} : vector<16x32xbf16>, vector<32x128xbf16>, vector<16x128xf32> -> vector<16x128xf32>
      %78 = arith.addf %70, %77 : vector<16x128xf32>
      %c32_i32_61 = arith.constant 32 : i32
      %79 = arith.addi %10, %c32_i32_61 : i32
      %80 = tpu.assume_multiple %79, 16 : i32
      %81 = arith.index_cast %80 : i32 to index
      %c0_62 = arith.constant 0 : index
      %82 = vector.load %arg7[%81, %c0_62] : memref<160x32xbf16, #tpu.memory_space<vmem>>, vector<16x32xbf16>
      %c8 = arith.constant 8 : index
      %c0_63 = arith.constant 0 : index
      %c0_64 = arith.constant 0 : index
      %83 = vector.load %arg3[%c8, %c0_63, %c0_64] : memref<9x32x128xbf16, #tpu.memory_space<vmem>>, vector<1x32x128xbf16>
      %84 = vector.shape_cast %83 : vector<1x32x128xbf16> to vector<32x128xbf16>
      %cst_65 = arith.constant dense<0.000000e+00> : vector<16x128xf32>
      %85 = tpu.matmul %82, %84, %cst_65 {dimension_numbers = #tpu.dot_dimension_numbers<[1], [0], [0], [1], [0, 0, 1, 1], [], []>} : vector<16x32xbf16>, vector<32x128xbf16>, vector<16x128xf32> -> vector<16x128xf32>
      %86 = arith.addf %78, %85 : vector<16x128xf32>
      %87 = vector.broadcast %7 : vector<1x128xf32> to vector<16x128xf32>
      %88 = arith.addf %86, %87 : vector<16x128xf32>
      %89 = arith.truncf %88 : vector<16x128xf32> to vector<16x128xbf16>
      %c0_66 = arith.constant 0 : index
      %c0_67 = arith.constant 0 : index
      %90 = arith.index_cast %10 : i32 to index
      %c0_68 = arith.constant 0 : index
      %91 = vector.load %arg5[%c0_66, %c0_67, %90, %c0_68] : memref<1x1x128x128xbf16, #tpu.memory_space<vmem>>, vector<1x1x16x128xbf16>
      %92 = vector.shape_cast %91 : vector<1x1x16x128xbf16> to vector<16x128xbf16>
      %93 = vector.shape_cast %89 : vector<16x128xbf16> to vector<1x1x16x128xbf16>
      tpu.vector_store %arg5[%c0_66, %c0_67, %90, %c0_68], %93 {strides = array<i32>} : memref<1x1x128x128xbf16, #tpu.memory_space<vmem>>, vector<1x1x16x128xbf16>,
    }
    %c8_i32_12 = arith.constant 8 : i32
    return
  }
  func.func @transform_0(%arg0: i32, %arg1: i32) -> (i32, i32, i32, i32) {
    %c0_i32 = arith.constant 0 : i32
    %c0_i32_0 = arith.constant 0 : i32
    %c0_i32_1 = arith.constant 0 : i32
    return %arg0, %arg1, %c0_i32, %c0_i32_0 : i32, i32, i32, i32
  }
  func.func @transform_1(%arg0: i32, %arg1: i32) -> (i32, i32, i32) {
    %c0_i32 = arith.constant 0 : i32
    %c0_i32_0 = arith.constant 0 : i32
    %c0_i32_1 = arith.constant 0 : i32
    %c0_i32_2 = arith.constant 0 : i32
    return %c0_i32, %c0_i32_0, %c0_i32_1 : i32, i32, i32
  }
  func.func @transform_2(%arg0: i32, %arg1: i32) -> (i32, i32, i32) {
    %c0_i32 = arith.constant 0 : i32
    %c0_i32_0 = arith.constant 0 : i32
    %c0_i32_1 = arith.constant 0 : i32
    return %arg0, %c0_i32, %c0_i32_0 : i32, i32, i32
  }
  func.func @transform_3(%arg0: i32, %arg1: i32) -> (i32, i32, i32, i32) {
    %c0_i32 = arith.constant 0 : i32
    %c0_i32_0 = arith.constant 0 : i32
    %c0_i32_1 = arith.constant 0 : i32
    return %arg0, %arg1, %c0_i32, %c0_i32_0 : i32, i32, i32, i32
  }
}

</mosaic_0001>

<bundles_post_ra>
// kernel: _lambda_.11
= control target key start
LH: loop header
LB: loop body
LE: loop exit
PB: predicated region body
PF: predicated region fallthrough
CT: control target
= control target key end

     0   :  { %s1819_s12 = smov 0   ;;  %s1821_s13 = smov 0   ;;  %s2189_s0 = inlined_call_operand.vmem [shape: bf16[2,1,576,12], index: 0, kind: input, shape index: {}]   ;;  %s2190_s1 = inlined_call_operand.vmem [shape: bf16[4,12,128], index: 1, kind: input, shape index: {}]   ;;  %s2191_s2 = inlined_call_operand.vmem [shape: f32[2,1,128], index: 2, kind: input, shape index: {}]   ;;  %s2192_s3 = inlined_call_operand.vmem [shape: bf16[2,1,512,128], index: 3, kind: output, shape index: {}]  }
   0x1   :  { %s1823_s14 = smov 0  }
   0x2 LB: > { %s25_s15 = sadd.s32 1, %s1789_s13  ;;  %p1623_p0 = scmp.ge.s32.totalorder %s1793_s14, 1  ;;  %s1793_s14 = sphi %s1823_s14, %s13_s14   ;;  %s1789_s13 = sphi %s1821_s13, %s2196_s13   ;;  %s1785_s12 = sphi %s1819_s12, %s2195_s12  }
   0x3   : > { %p27_p1 = scmp.ge.s32.totalorder %s25_s15, 2  ;;  %p165_p2 = scmp.lt.s32.totalorder %s1793_s14, 3 }
   0x5   : > { %s2198_s15 = smov (%p27_p1, %s25_s15), 0  ;;  %p166_p3 = pnand %p1623_p0, %p165_p2 }
   0x6   : > { %p200_p4 = scmp.lt.s32.totalorder (!%p166_p3), %s1785_s12, 1  ;;  %s2131_s27 = smov (!%p166_p3), 0  }
   0x7   : > { %169 = sbr.rel (%p166_p3) target bundleno = 368 (0x170), region = 32 }
   0xc   : > { %s2200_s12 = smov (!%p200_p4, %s1785_s12), 1  ;;  %vm291_vm0 = vsmask.f32 3328  ;;  %vm292_vm1 = vsmask.f32 7440  ;;  %vm1046_vm2 = vcmask 93184  }
   0xd   : > { %s1722_s16 = smul.u32 288, %s2200_s12  ;;  %s211_s19 = scalar_lea.vmem %s2191_s2, %s2200_s12  ;;  %vm1860_vm3 = vmor %vm291_vm0, %vm292_vm1 }
   0xe   : > { %s1666_s20 = sshll.u32 %s2200_s12, 8  ;;  %v1840_v0 = vld [vmem:[%s211_s19] ss:$0 sm:$0xff] }
   0xf   : > { %s1845_s23 = scalar_lea.vmem %s2189_s0, %s1722_s16  ;;  %s1850_s26 = scalar_lea.vmem %s2192_s3, %s1666_s20 }
  0x10   : > { %v222_v1 = vld [vmem:[%s1845_s23] sm:$0xf]  ;;  %v223_v2 = vld [vmem:[%s1845_s23 + $0x4] sm:$0xf]  ;;  %v224_v3 = vld [vmem:[%s1845_s23 + $0x8] sm:$0xf] }
  0x11   : > { %v295_v4 = vshrl.u32 %v222_v1, 16  ;;  %v298_v5 = vshll.u32 %v222_v1, 16  ;;  %v304_v6 = vshll.u32 %v223_v2, 16  ;;  %v308_v7 = vshrl.u32 %v223_v2, 16  ;;  %v225_v8 = vld [vmem:[%s1845_s23 + $0xc] sm:$0xf] }
  0x12   : > { %v314_v9 = vshll.u32 %v224_v3, 16  ;;  %v318_v10 = vshrl.u32 %v224_v3, 16  ;;  %v324_v11 = vshll.u32 %v225_v8, 16  ;;  %v328_v12 = vshrl.u32 %v225_v8, 16  ;;  %v226_v13 = vld [vmem:[%s1845_s23 + $0x10] sm:$0xf] }
  0x13   : > { %v297_v14 = vrot.slane %v295_v4, 4  ;;  %v300_v15 = vrot.slane %v298_v5, 5  ;;  %v306_v16 = vrot.slane %v304_v6, 5  ;;  %v310_v17 = vrot.slane %v308_v7, 4  ;;  %v227_v18 = vld [vmem:[%s1845_s23 + $0x14] sm:$0xf] }
  0x14   : > { %v316_v19 = vrot.slane %v314_v9, 5  ;;  %v320_v20 = vrot.slane %v318_v10, 4  ;;  %v326_v21 = vrot.slane %v324_v11, 5  ;;  %v330_v22 = vrot.slane %v328_v12, 4  ;;  %v228_v32 = vld [vmem:[%s1845_s23 + $0x18] sm:$0xf] }
  0x15   : > { %v301_v23 = vor.u32 %v300_v15, %v297_v14  ;;  %v311_v24 = vor.u32 %v310_v17, %v306_v16  ;;  %v334_v25 = vshll.u32 %v226_v13, 16  ;;  %v338_v26 = vshrl.u32 %v226_v13, 16  ;;  %v229_v41 = vld [vmem:[%s1845_s23 + $0x1c] sm:$0xf]  ;;  %v230_v46 = vld [vmem:[%s1845_s23 + $0x20] sm:$0xf] }
  0x16   : > { %v321_v28 = vor.u32 %v320_v20, %v316_v19  ;;  %v331_v29 = vor.u32 %v330_v22, %v326_v21  ;;  %v344_v30 = vshll.u32 %v227_v18, 16  ;;  %v348_v31 = vshrl.u32 %v227_v18, 16  ;;  %v231_v51 = vld [vmem:[%s1845_s23 + $0x24] sm:$0xf]  ;;  %v232_v60 = vld [vmem:[%s1845_s23 + $0x28] sm:$0xf] }
  0x17   : > { %v302_v33 = vrot.slane %v301_v23, 4  ;;  %v312_v34 = vrot.slane %v311_v24, 4  ;;  %v336_v35 = vrot.slane %v334_v25, 5  ;;  %v340_v36 = vrot.slane %v338_v26, 4  ;;  %v233_v2 = vld [vmem:[%s1845_s23 + $0x2c] sm:$0xf] }
  0x18   : > { %v322_v37 = vrot.slane %v321_v28, 4  ;;  %v332_v38 = vrot.slane %v331_v29, 4  ;;  %v346_v39 = vrot.slane %v344_v30, 5  ;;  %v350_v40 = vrot.slane %v348_v31, 4  ;;  %v234_v15 = vld [vmem:[%s1845_s23 + $0x30] sm:$0xf] }
  0x19   : > { %v307_v42 = vsel %vm1860_vm3, %v302_v33, %v306_v16  ;;  %v317_v43 = vsel %vm1860_vm3, %v312_v34, %v316_v19  ;;  %v341_v44 = vor.u32 %v340_v36, %v336_v35  ;;  %v354_v45 = vshll.u32 %v228_v32, 16  ;;  %v235_v20 = vld [vmem:[%s1845_s23 + $0x34] sm:$0xf]  ;;  %v236_v30 = vld [vmem:[%s1845_s23 + $0x38] sm:$0xf] }
  0x1a   : > { %1047 = vst.msk [vmem:[#allocation2] sm:$0xf] %vm1046_vm2, %v307_v42  ;;  %1048 = vst.msk [vmem:[#allocation2 + $0x4] sm:$0xf] %vm1046_vm2, %v317_v43  ;;  %v327_v47 = vsel %vm1860_vm3, %v322_v37, %v326_v21  ;;  %v337_v48 = vsel %vm1860_vm3, %v332_v38, %v336_v35  ;;  %v351_v49 = vor.u32 %v350_v40, %v346_v39  ;;  %v358_v50 = vshrl.u32 %v228_v32, 16 }
  0x1b   : > { %1049 = vst.msk [vmem:[#allocation2 + $0x8] sm:$0xf] %vm1046_vm2, %v327_v47  ;;  %1050 = vst.msk [vmem:[#allocation2 + $0xc] sm:$0xf] %vm1046_vm2, %v337_v48  ;;  %v342_v52 = vrot.slane %v341_v44, 4  ;;  %v356_v53 = vrot.slane %v354_v45, 5 }
  0x1c   : > { %v364_v54 = vshll.u32 %v229_v41, 16  ;;  %v368_v55 = vshrl.u32 %v229_v41, 16  ;;  %v352_v56 = vrot.slane %v351_v49, 4  ;;  %v360_v57 = vrot.slane %v358_v50, 4  ;;  %v238_v48 = vld [vmem:[%s1845_s23 + $0x40] sm:$0xf] }
  0x1d   : > { %v374_v58 = vshll.u32 %v230_v46, 16  ;;  %v378_v59 = vshrl.u32 %v230_v46, 16  ;;  %v347_v61 = vsel %vm1860_vm3, %v342_v52, %v346_v39  ;;  %v384_v1 = vshll.u32 %v231_v51, 16  ;;  %v237_v39 = vld [vmem:[%s1845_s23 + $0x3c] sm:$0xf] }
  0x1e   : > { %v366_v62 = vrot.slane %v364_v54, 5  ;;  %v370_v63 = vrot.slane %v368_v55, 4  ;;  %1051 = vst.msk [vmem:[#allocation2 + $0x10] sm:$0xf] %vm1046_vm2, %v347_v61  ;;  %v357_v3 = vsel %vm1860_vm3, %v352_v56, %v356_v53  ;;  %v361_v4 = vor.u32 %v360_v57, %v356_v53  ;;  %v239_v53 = vld [vmem:[%s1845_s23 + $0x44] sm:$0xf] }
  0x1f   : > { %v376_v5 = vrot.slane %v374_v58, 5  ;;  %v380_v6 = vrot.slane %v378_v59, 4  ;;  %1052 = vst.msk [vmem:[#allocation2 + $0x14] sm:$0xf] %vm1046_vm2, %v357_v3  ;;  %v386_v8 = vrot.slane %v384_v1, 5  ;;  %v388_v9 = vshrl.u32 %v231_v51, 16 }
  0x20   : > { %v371_v7 = vor.u32 %v370_v63, %v366_v62  ;;  %v394_v10 = vshll.u32 %v232_v60, 16  ;;  %v362_v11 = vrot.slane %v361_v4, 4  ;;  %v398_v13 = vshrl.u32 %v232_v60, 16  ;;  %v240_v3 = vld [vmem:[%s1845_s23 + $0x48] sm:$0xf] }
  0x21   : > { %v381_v12 = vor.u32 %v380_v6, %v376_v5  ;;  %v404_v14 = vshll.u32 %v233_v2, 16  ;;  %v390_v17 = vrot.slane %v388_v9, 4  ;;  %v408_v19 = vshrl.u32 %v233_v2, 16 }
  0x22   : > { %v372_v16 = vrot.slane %v371_v7, 4  ;;  %v396_v18 = vrot.slane %v394_v10, 5  ;;  %v367_v21 = vsel %vm1860_vm3, %v362_v11, %v366_v62  ;;  %v400_v23 = vrot.slane %v398_v13, 4 }
  0x23   : > { %v382_v22 = vrot.slane %v381_v12, 4  ;;  %v406_v24 = vrot.slane %v404_v14, 5  ;;  %1053 = vst.msk [vmem:[#allocation2 + $0x18] sm:$0xf] %vm1046_vm2, %v367_v21  ;;  %v391_v26 = vor.u32 %v390_v17, %v386_v8  ;;  %v410_v28 = vrot.slane %v408_v19, 4 }
  0x24   : > { %v377_v25 = vsel %vm1860_vm3, %v372_v16, %v376_v5  ;;  %v414_v29 = vshll.u32 %v234_v15, 16  ;;  %v401_v32 = vor.u32 %v400_v23, %v396_v18  ;;  %v418_v33 = vshrl.u32 %v234_v15, 16  ;;  %v242_v17 = vld [vmem:[%s1845_s23 + $0x50] sm:$0xf] }
  0x25   : > { %1054 = vst.msk [vmem:[#allocation2 + $0x1c] sm:$0xf] %vm1046_vm2, %v377_v25  ;;  %v387_v31 = vsel %vm1860_vm3, %v382_v22, %v386_v8  ;;  %v424_v34 = vshll.u32 %v235_v20, 16  ;;  %v392_v35 = vrot.slane %v391_v26, 4  ;;  %v411_v36 = vor.u32 %v410_v28, %v406_v24  ;;  %v241_v8 = vld [vmem:[%s1845_s23 + $0x4c] sm:$0xf] }
  0x26   : > { %1055 = vst.msk [vmem:[#allocation2 + $0x20] sm:$0xf] %vm1046_vm2, %v387_v31  ;;  %v416_v37 = vrot.slane %v414_v29, 5  ;;  %v428_v38 = vshrl.u32 %v235_v20, 16  ;;  %v402_v40 = vrot.slane %v401_v32, 4  ;;  %v420_v41 = vrot.slane %v418_v33, 4 }
  0x27   : > { %v426_v42 = vrot.slane %v424_v34, 5  ;;  %v434_v43 = vshll.u32 %v236_v30, 16  ;;  %v397_v44 = vsel %vm1860_vm3, %v392_v35, %v396_v18  ;;  %v412_v45 = vrot.slane %v411_v36, 4  ;;  %v243_v26 = vld [vmem:[%s1845_s23 + $0x54] sm:$0xf] }
  0x28   : > { %v430_v46 = vrot.slane %v428_v38, 4  ;;  %v438_v47 = vshrl.u32 %v236_v30, 16  ;;  %1056 = vst.msk [vmem:[#allocation2 + $0x24] sm:$0xf] %vm1046_vm2, %v397_v44  ;;  %v407_v49 = vsel %vm1860_vm3, %v402_v40, %v406_v24  ;;  %v421_v50 = vor.u32 %v420_v41, %v416_v37  ;;  %v244_v32 = vld [vmem:[%s1845_s23 + $0x58] sm:$0xf] }
  0x29   : > { %v436_v51 = vrot.slane %v434_v43, 5  ;;  %v444_v52 = vshll.u32 %v237_v39, 16  ;;  %1057 = vst.msk [vmem:[#allocation2 + $0x28] sm:$0xf] %vm1046_vm2, %v407_v49  ;;  %v417_v54 = vsel %vm1860_vm3, %v412_v45, %v416_v37  ;;  %v448_v57 = vshrl.u32 %v237_v39, 16 }
  0x2a   : > { %v431_v55 = vor.u32 %v430_v46, %v426_v42  ;;  %v440_v56 = vrot.slane %v438_v47, 4  ;;  %1058 = vst.msk [vmem:[#allocation2 + $0x2c] sm:$0xf] %vm1046_vm2, %v417_v54  ;;  %v422_v58 = vrot.slane %v421_v50, 4  ;;  %v454_v60 = vshll.u32 %v238_v48, 16 }
  0x2b   : > { %v446_v59 = vrot.slane %v444_v52, 5  ;;  %v458_v61 = vshrl.u32 %v238_v48, 16  ;;  %v450_v1 = vrot.slane %v448_v57, 4  ;;  %v464_v2 = vshll.u32 %v239_v53, 16  ;;  %v245_v41 = vld [vmem:[%s1845_s23 + $0x5c] sm:$0xf] }
  0x2c   : > { %v432_v62 = vrot.slane %v431_v55, 4  ;;  %v441_v63 = vor.u32 %v440_v56, %v436_v51  ;;  %v427_v4 = vsel %vm1860_vm3, %v422_v58, %v426_v42  ;;  %v456_v5 = vrot.slane %v454_v60, 5  ;;  %v246_v50 = vld [vmem:[%s1845_s23 + $0x60] sm:$0xf]  ;;  %v247_v55 = vld [vmem:[%s1845_s23 + $0x64] sm:$0xf] }
  0x2d   : > { %v460_v6 = vrot.slane %v458_v61, 4  ;;  %v468_v7 = vshrl.u32 %v239_v53, 16  ;;  %1059 = vst.msk [vmem:[#allocation2 + $0x30] sm:$0xf] %vm1046_vm2, %v427_v4  ;;  %v451_v11 = vor.u32 %v450_v1, %v446_v59  ;;  %v466_v12 = vrot.slane %v464_v2, 5 }
  0x2e   : > { %v437_v9 = vsel %vm1860_vm3, %v432_v62, %v436_v51  ;;  %v442_v10 = vrot.slane %v441_v63, 4  ;;  %v474_v15 = vshll.u32 %v240_v3, 16  ;;  %v478_v16 = vshrl.u32 %v240_v3, 16 }
  0x2f   : > { %1060 = vst.msk [vmem:[#allocation2 + $0x34] sm:$0xf] %vm1046_vm2, %v437_v9  ;;  %v461_v13 = vor.u32 %v460_v6, %v456_v5  ;;  %v470_v14 = vrot.slane %v468_v7, 4  ;;  %v452_v19 = vrot.slane %v451_v11, 4  ;;  %v484_v20 = vshll.u32 %v241_v8, 16 }
  0x30   : > { %v447_v18 = vsel %vm1860_vm3, %v442_v10, %v446_v59  ;;  %v488_v21 = vshrl.u32 %v241_v8, 16  ;;  %v476_v24 = vrot.slane %v474_v15, 5  ;;  %v480_v25 = vrot.slane %v478_v16, 4  ;;  %v249_v10 = vld [vmem:[%s1845_s23 + $0x6c] sm:$0xf] }
  0x31   : > { %1061 = vst.msk [vmem:[#allocation2 + $0x38] sm:$0xf] %vm1046_vm2, %v447_v18  ;;  %v462_v22 = vrot.slane %v461_v13, 4  ;;  %v471_v23 = vor.u32 %v470_v14, %v466_v12  ;;  %v457_v28 = vsel %vm1860_vm3, %v452_v19, %v456_v5  ;;  %v486_v29 = vrot.slane %v484_v20, 5  ;;  %v248_v5 = vld [vmem:[%s1845_s23 + $0x68] sm:$0xf] }
  0x32   : > { %v490_v30 = vrot.slane %v488_v21, 4  ;;  %v494_v31 = vshll.u32 %v242_v17, 16  ;;  %1062 = vst.msk [vmem:[#allocation2 + $0x3c] sm:$0xf] %vm1046_vm2, %v457_v28  ;;  %v481_v35 = vor.u32 %v480_v25, %v476_v24  ;;  %v498_v36 = vshrl.u32 %v242_v17, 16 }
  0x33   : > { %v467_v33 = vsel %vm1860_vm3, %v462_v22, %v466_v12  ;;  %v472_v34 = vrot.slane %v471_v23, 4  ;;  %v504_v39 = vshll.u32 %v243_v26, 16  ;;  %v508_v40 = vshrl.u32 %v243_v26, 16  ;;  %v250_v19 = vld [vmem:[%s1845_s23 + $0x70] sm:$0xf] }
  0x34   : > { %1063 = vst.msk [vmem:[#allocation2 + $0x40] sm:$0xf] %vm1046_vm2, %v467_v33  ;;  %v491_v37 = vor.u32 %v490_v30, %v486_v29  ;;  %v496_v38 = vrot.slane %v494_v31, 5  ;;  %v482_v43 = vrot.slane %v481_v35, 4  ;;  %v500_v44 = vrot.slane %v498_v36, 4 }
  0x35   : > { %v477_v42 = vsel %vm1860_vm3, %v472_v34, %v476_v24  ;;  %v514_v45 = vshll.u32 %v244_v32, 16  ;;  %v506_v47 = vrot.slane %v504_v39, 5  ;;  %v510_v48 = vrot.slane %v508_v40, 4  ;;  %v252_v34 = vld [vmem:[%s1845_s23 + $0x78] sm:$0xf] }
  0x36   : > { %1064 = vst.msk [vmem:[#allocation2 + $0x44] sm:$0xf] %vm1046_vm2, %v477_v42  ;;  %v492_v46 = vrot.slane %v491_v37, 4  ;;  %v518_v49 = vshrl.u32 %v244_v32, 16  ;;  %v487_v51 = vsel %vm1860_vm3, %v482_v43, %v486_v29  ;;  %v501_v52 = vor.u32 %v500_v44, %v496_v38  ;;  %v251_v29 = vld [vmem:[%s1845_s23 + $0x74] sm:$0xf] }
  0x37   : > { %v516_v53 = vrot.slane %v514_v45, 5  ;;  %v524_v54 = vshll.u32 %v245_v41, 16  ;;  %1065 = vst.msk [vmem:[#allocation2 + $0x48] sm:$0xf] %vm1046_vm2, %v487_v51  ;;  %v511_v57 = vor.u32 %v510_v48, %v506_v47  ;;  %v528_v59 = vshrl.u32 %v245_v41, 16 }
  0x38   : > { %v497_v56 = vsel %vm1860_vm3, %v492_v46, %v496_v38  ;;  %v520_v58 = vrot.slane %v518_v49, 4  ;;  %v502_v60 = vrot.slane %v501_v52, 4  ;;  %v534_v62 = vshll.u32 %v246_v50, 16  ;;  %v253_v43 = vld [vmem:[%s1845_s23 + $0x7c] sm:$0xf] }
  0x39   : > { %1066 = vst.msk [vmem:[#allocation2 + $0x4c] sm:$0xf] %vm1046_vm2, %v497_v56  ;;  %v526_v61 = vrot.slane %v524_v54, 5  ;;  %v538_v63 = vshrl.u32 %v246_v50, 16  ;;  %v512_v1 = vrot.slane %v511_v57, 4  ;;  %v530_v3 = vrot.slane %v528_v59, 4 }
  0x3a   : > { %v521_v2 = vor.u32 %v520_v58, %v516_v53  ;;  %v544_v4 = vshll.u32 %v247_v55, 16  ;;  %v507_v6 = vsel %vm1860_vm3, %v502_v60, %v506_v47  ;;  %v536_v7 = vrot.slane %v534_v62, 5  ;;  %v254_v52 = vld [vmem:[%s1845_s23 + $0x80] sm:$0xf]  ;;  %v255_v57 = vld [vmem:[%s1845_s23 + $0x84] sm:$0xf] }
  0x3b   : > { %v540_v8 = vrot.slane %v538_v63, 4  ;;  %v548_v9 = vshrl.u32 %v247_v55, 16  ;;  %1067 = vst.msk [vmem:[#allocation2 + $0x50] sm:$0xf] %vm1046_vm2, %v507_v6  ;;  %v517_v11 = vsel %vm1860_vm3, %v512_v1, %v516_v53  ;;  %v531_v13 = vor.u32 %v530_v3, %v526_v61 }
  0x3c   : > { %v522_v12 = vrot.slane %v521_v2, 4  ;;  %v546_v14 = vrot.slane %v544_v4, 5  ;;  %1068 = vst.msk [vmem:[#allocation2 + $0x54] sm:$0xf] %vm1046_vm2, %v517_v11  ;;  %v554_v17 = vshll.u32 %v248_v5, 16  ;;  %v558_v18 = vshrl.u32 %v248_v5, 16 }
  0x3d   : > { %v541_v15 = vor.u32 %v540_v8, %v536_v7  ;;  %v550_v16 = vrot.slane %v548_v9, 4  ;;  %v532_v21 = vrot.slane %v531_v13, 4  ;;  %v564_v22 = vshll.u32 %v249_v10, 16 }
  0x3e   : > { %v527_v20 = vsel %vm1860_vm3, %v522_v12, %v526_v61  ;;  %v568_v23 = vshrl.u32 %v249_v10, 16  ;;  %v556_v26 = vrot.slane %v554_v17, 5  ;;  %v560_v28 = vrot.slane %v558_v18, 4  ;;  %v257_v12 = vld [vmem:[%s1845_s23 + $0x8c] sm:$0xf] }
  0x3f   : > { %1069 = vst.msk [vmem:[#allocation2 + $0x58] sm:$0xf] %vm1046_vm2, %v527_v20  ;;  %v542_v24 = vrot.slane %v541_v15, 4  ;;  %v551_v25 = vor.u32 %v550_v16, %v546_v14  ;;  %v537_v30 = vsel %vm1860_vm3, %v532_v21, %v536_v7  ;;  %v566_v31 = vrot.slane %v564_v22, 5  ;;  %v256_v7 = vld [vmem:[%s1845_s23 + $0x88] sm:$0xf] }
  0x40   : > { %v570_v32 = vrot.slane %v568_v23, 4  ;;  %v574_v33 = vshll.u32 %v250_v19, 16  ;;  %1070 = vst.msk [vmem:[#allocation2 + $0x5c] sm:$0xf] %vm1046_vm2, %v537_v30  ;;  %v561_v37 = vor.u32 %v560_v28, %v556_v26  ;;  %v578_v38 = vshrl.u32 %v250_v19, 16 }
  0x41   : > { %v547_v35 = vsel %vm1860_vm3, %v542_v24, %v546_v14  ;;  %v552_v36 = vrot.slane %v551_v25, 4  ;;  %v584_v41 = vshll.u32 %v251_v29, 16  ;;  %v588_v42 = vshrl.u32 %v251_v29, 16  ;;  %v258_v21 = vld [vmem:[%s1845_s23 + $0x90] sm:$0xf] }
  0x42   : > { %1071 = vst.msk [vmem:[#allocation2 + $0x60] sm:$0xf] %vm1046_vm2, %v547_v35  ;;  %v571_v39 = vor.u32 %v570_v32, %v566_v31  ;;  %v576_v40 = vrot.slane %v574_v33, 5  ;;  %v562_v45 = vrot.slane %v561_v37, 4  ;;  %v580_v46 = vrot.slane %v578_v38, 4 }
  0x43   : > { %v557_v44 = vsel %vm1860_vm3, %v552_v36, %v556_v26  ;;  %v594_v47 = vshll.u32 %v252_v34, 16  ;;  %v586_v49 = vrot.slane %v584_v41, 5  ;;  %v590_v50 = vrot.slane %v588_v42, 4  ;;  %v260_v36 = vld [vmem:[%s1845_s23 + $0x98] sm:$0xf] }
  0x44   : > { %1072 = vst.msk [vmem:[#allocation2 + $0x64] sm:$0xf] %vm1046_vm2, %v557_v44  ;;  %v572_v48 = vrot.slane %v571_v39, 4  ;;  %v598_v51 = vshrl.u32 %v252_v34, 16  ;;  %v567_v53 = vsel %vm1860_vm3, %v562_v45, %v566_v31  ;;  %v581_v54 = vor.u32 %v580_v46, %v576_v40  ;;  %v259_v31 = vld [vmem:[%s1845_s23 + $0x94] sm:$0xf] }
  0x45   : > { %v596_v55 = vrot.slane %v594_v47, 5  ;;  %v604_v56 = vshll.u32 %v253_v43, 16  ;;  %1073 = vst.msk [vmem:[#allocation2 + $0x68] sm:$0xf] %vm1046_vm2, %v567_v53  ;;  %v591_v59 = vor.u32 %v590_v50, %v586_v49  ;;  %v608_v61 = vshrl.u32 %v253_v43, 16 }
  0x46   : > { %v577_v58 = vsel %vm1860_vm3, %v572_v48, %v576_v40  ;;  %v600_v60 = vrot.slane %v598_v51, 4  ;;  %v582_v62 = vrot.slane %v581_v54, 4  ;;  %v614_v1 = vshll.u32 %v254_v52, 16  ;;  %v261_v45 = vld [vmem:[%s1845_s23 + $0x9c] sm:$0xf] }
  0x47   : > { %1074 = vst.msk [vmem:[#allocation2 + $0x6c] sm:$0xf] %vm1046_vm2, %v577_v58  ;;  %v606_v63 = vrot.slane %v604_v56, 5  ;;  %v618_v2 = vshrl.u32 %v254_v52, 16  ;;  %v592_v3 = vrot.slane %v591_v59, 4  ;;  %v610_v5 = vrot.slane %v608_v61, 4 }
  0x48   : > { %v601_v4 = vor.u32 %v600_v60, %v596_v55  ;;  %v624_v6 = vshll.u32 %v255_v57, 16  ;;  %v587_v8 = vsel %vm1860_vm3, %v582_v62, %v586_v49  ;;  %v616_v9 = vrot.slane %v614_v1, 5  ;;  %v262_v54 = vld [vmem:[%s1845_s23 + $0xa0] sm:$0xf]  ;;  %v263_v59 = vld [vmem:[%s1845_s23 + $0xa4] sm:$0xf] }
  0x49   : > { %v620_v10 = vrot.slane %v618_v2, 4  ;;  %v628_v11 = vshrl.u32 %v255_v57, 16  ;;  %1075 = vst.msk [vmem:[#allocation2 + $0x70] sm:$0xf] %vm1046_vm2, %v587_v8  ;;  %v597_v13 = vsel %vm1860_vm3, %v592_v3, %v596_v55  ;;  %v611_v15 = vor.u32 %v610_v5, %v606_v63 }
  0x4a   : > { %v602_v14 = vrot.slane %v601_v4, 4  ;;  %v626_v16 = vrot.slane %v624_v6, 5  ;;  %1076 = vst.msk [vmem:[#allocation2 + $0x74] sm:$0xf] %vm1046_vm2, %v597_v13  ;;  %v634_v19 = vshll.u32 %v256_v7, 16  ;;  %v638_v20 = vshrl.u32 %v256_v7, 16 }
  0x4b   : > { %v621_v17 = vor.u32 %v620_v10, %v616_v9  ;;  %v630_v18 = vrot.slane %v628_v11, 4  ;;  %v612_v23 = vrot.slane %v611_v15, 4  ;;  %v644_v24 = vshll.u32 %v257_v12, 16 }
  0x4c   : > { %v607_v22 = vsel %vm1860_vm3, %v602_v14, %v606_v63  ;;  %v648_v25 = vshrl.u32 %v257_v12, 16  ;;  %v636_v29 = vrot.slane %v634_v19, 5  ;;  %v640_v30 = vrot.slane %v638_v20, 4  ;;  %v265_v14 = vld [vmem:[%s1845_s23 + $0xac] sm:$0xf] }
  0x4d   : > { %1077 = vst.msk [vmem:[#allocation2 + $0x78] sm:$0xf] %vm1046_vm2, %v607_v22  ;;  %v622_v26 = vrot.slane %v621_v17, 4  ;;  %v631_v28 = vor.u32 %v630_v18, %v626_v16  ;;  %v617_v32 = vsel %vm1860_vm3, %v612_v23, %v616_v9  ;;  %v646_v33 = vrot.slane %v644_v24, 5  ;;  %v264_v9 = vld [vmem:[%s1845_s23 + $0xa8] sm:$0xf] }
  0x4e   : > { %v650_v34 = vrot.slane %v648_v25, 4  ;;  %v654_v35 = vshll.u32 %v258_v21, 16  ;;  %1078 = vst.msk [vmem:[#allocation2 + $0x7c] sm:$0xf] %vm1046_vm2, %v617_v32  ;;  %v641_v39 = vor.u32 %v640_v30, %v636_v29  ;;  %v658_v40 = vshrl.u32 %v258_v21, 16 }
  0x4f   : > { %v627_v37 = vsel %vm1860_vm3, %v622_v26, %v626_v16  ;;  %v632_v38 = vrot.slane %v631_v28, 4  ;;  %v664_v43 = vshll.u32 %v259_v31, 16  ;;  %v668_v44 = vshrl.u32 %v259_v31, 16  ;;  %v266_v23 = vld [vmem:[%s1845_s23 + $0xb0] sm:$0xf] }
  0x50   : > { %1079 = vst.msk [vmem:[#allocation2 + $0x80] sm:$0xf] %vm1046_vm2, %v627_v37  ;;  %v651_v41 = vor.u32 %v650_v34, %v646_v33  ;;  %v656_v42 = vrot.slane %v654_v35, 5  ;;  %v642_v47 = vrot.slane %v641_v39, 4  ;;  %v660_v48 = vrot.slane %v658_v40, 4 }
  0x51   : > { %v637_v46 = vsel %vm1860_vm3, %v632_v38, %v636_v29  ;;  %v674_v49 = vshll.u32 %v260_v36, 16  ;;  %v666_v51 = vrot.slane %v664_v43, 5  ;;  %v670_v52 = vrot.slane %v668_v44, 4  ;;  %v268_v38 = vld [vmem:[%s1845_s23 + $0xb8] sm:$0xf] }
  0x52   : > { %1080 = vst.msk [vmem:[#allocation2 + $0x84] sm:$0xf] %vm1046_vm2, %v637_v46  ;;  %v652_v50 = vrot.slane %v651_v41, 4  ;;  %v678_v53 = vshrl.u32 %v260_v36, 16  ;;  %v647_v55 = vsel %vm1860_vm3, %v642_v47, %v646_v33  ;;  %v661_v56 = vor.u32 %v660_v48, %v656_v42  ;;  %v267_v33 = vld [vmem:[%s1845_s23 + $0xb4] sm:$0xf] }
  0x53   : > { %v676_v57 = vrot.slane %v674_v49, 5  ;;  %v684_v58 = vshll.u32 %v261_v45, 16  ;;  %1081 = vst.msk [vmem:[#allocation2 + $0x88] sm:$0xf] %vm1046_vm2, %v647_v55  ;;  %v671_v61 = vor.u32 %v670_v52, %v666_v51  ;;  %v688_v63 = vshrl.u32 %v261_v45, 16 }
  0x54   : > { %v657_v60 = vsel %vm1860_vm3, %v652_v50, %v656_v42  ;;  %v680_v62 = vrot.slane %v678_v53, 4  ;;  %v662_v1 = vrot.slane %v661_v56, 4  ;;  %v694_v3 = vshll.u32 %v262_v54, 16  ;;  %v269_v47 = vld [vmem:[%s1845_s23 + $0xbc] sm:$0xf] }
  0x55   : > { %1082 = vst.msk [vmem:[#allocation2 + $0x8c] sm:$0xf] %vm1046_vm2, %v657_v60  ;;  %v686_v2 = vrot.slane %v684_v58, 5  ;;  %v698_v4 = vshrl.u32 %v262_v54, 16  ;;  %v672_v5 = vrot.slane %v671_v61, 4  ;;  %v690_v7 = vrot.slane %v688_v63, 4 }
  0x56   : > { %v681_v6 = vor.u32 %v680_v62, %v676_v57  ;;  %v704_v8 = vshll.u32 %v263_v59, 16  ;;  %v667_v10 = vsel %vm1860_vm3, %v662_v1, %v666_v51  ;;  %v696_v11 = vrot.slane %v694_v3, 5  ;;  %v270_v56 = vld [vmem:[%s1845_s23 + $0xc0] sm:$0xf]  ;;  %v271_v61 = vld [vmem:[%s1845_s23 + $0xc4] sm:$0xf] }
  0x57   : > { %v700_v12 = vrot.slane %v698_v4, 4  ;;  %v708_v13 = vshrl.u32 %v263_v59, 16  ;;  %1083 = vst.msk [vmem:[#allocation2 + $0x90] sm:$0xf] %vm1046_vm2, %v667_v10  ;;  %v677_v15 = vsel %vm1860_vm3, %v672_v5, %v676_v57  ;;  %v691_v17 = vor.u32 %v690_v7, %v686_v2 }
  0x58   : > { %v682_v16 = vrot.slane %v681_v6, 4  ;;  %v706_v18 = vrot.slane %v704_v8, 5  ;;  %1084 = vst.msk [vmem:[#allocation2 + $0x94] sm:$0xf] %vm1046_vm2, %v677_v15  ;;  %v714_v21 = vshll.u32 %v264_v9, 16  ;;  %v718_v22 = vshrl.u32 %v264_v9, 16 }
  0x59   : > { %v701_v19 = vor.u32 %v700_v12, %v696_v11  ;;  %v710_v20 = vrot.slane %v708_v13, 4  ;;  %v692_v25 = vrot.slane %v691_v17, 4  ;;  %v724_v26 = vshll.u32 %v265_v14, 16 }
  0x5a   : > { %v687_v24 = vsel %vm1860_vm3, %v682_v16, %v686_v2  ;;  %v728_v28 = vshrl.u32 %v265_v14, 16  ;;  %v716_v31 = vrot.slane %v714_v21, 5  ;;  %v720_v32 = vrot.slane %v718_v22, 4  ;;  %v273_v16 = vld [vmem:[%s1845_s23 + $0xcc] sm:$0xf] }
  0x5b   : > { %1085 = vst.msk [vmem:[#allocation2 + $0x98] sm:$0xf] %vm1046_vm2, %v687_v24  ;;  %v702_v29 = vrot.slane %v701_v19, 4  ;;  %v711_v30 = vor.u32 %v710_v20, %v706_v18  ;;  %v697_v34 = vsel %vm1860_vm3, %v692_v25, %v696_v11  ;;  %v726_v35 = vrot.slane %v724_v26, 5  ;;  %v272_v11 = vld [vmem:[%s1845_s23 + $0xc8] sm:$0xf] }
  0x5c   : > { %v730_v36 = vrot.slane %v728_v28, 4  ;;  %v734_v37 = vshll.u32 %v266_v23, 16  ;;  %1086 = vst.msk [vmem:[#allocation2 + $0x9c] sm:$0xf] %vm1046_vm2, %v697_v34  ;;  %v721_v41 = vor.u32 %v720_v32, %v716_v31  ;;  %v738_v42 = vshrl.u32 %v266_v23, 16 }
  0x5d   : > { %v707_v39 = vsel %vm1860_vm3, %v702_v29, %v706_v18  ;;  %v712_v40 = vrot.slane %v711_v30, 4  ;;  %v744_v45 = vshll.u32 %v267_v33, 16  ;;  %v748_v46 = vshrl.u32 %v267_v33, 16  ;;  %v274_v25 = vld [vmem:[%s1845_s23 + $0xd0] sm:$0xf] }
  0x5e   : > { %1087 = vst.msk [vmem:[#allocation2 + $0xa0] sm:$0xf] %vm1046_vm2, %v707_v39  ;;  %v731_v43 = vor.u32 %v730_v36, %v726_v35  ;;  %v736_v44 = vrot.slane %v734_v37, 5  ;;  %v722_v49 = vrot.slane %v721_v41, 4  ;;  %v740_v50 = vrot.slane %v738_v42, 4 }
  0x5f   : > { %v717_v48 = vsel %vm1860_vm3, %v712_v40, %v716_v31  ;;  %v754_v51 = vshll.u32 %v268_v38, 16  ;;  %v746_v53 = vrot.slane %v744_v45, 5  ;;  %v750_v54 = vrot.slane %v748_v46, 4  ;;  %v276_v40 = vld [vmem:[%s1845_s23 + $0xd8] sm:$0xf] }
  0x60   : > { %1088 = vst.msk [vmem:[#allocation2 + $0xa4] sm:$0xf] %vm1046_vm2, %v717_v48  ;;  %v732_v52 = vrot.slane %v731_v43, 4  ;;  %v758_v55 = vshrl.u32 %v268_v38, 16  ;;  %v727_v57 = vsel %vm1860_vm3, %v722_v49, %v726_v35  ;;  %v741_v58 = vor.u32 %v740_v50, %v736_v44  ;;  %v275_v35 = vld [vmem:[%s1845_s23 + $0xd4] sm:$0xf] }
  0x61   : > { %v756_v59 = vrot.slane %v754_v51, 5  ;;  %v764_v60 = vshll.u32 %v269_v47, 16  ;;  %1089 = vst.msk [vmem:[#allocation2 + $0xa8] sm:$0xf] %vm1046_vm2, %v727_v57  ;;  %v751_v63 = vor.u32 %v750_v54, %v746_v53  ;;  %v768_v2 = vshrl.u32 %v269_v47, 16 }
  0x62   : > { %v737_v62 = vsel %vm1860_vm3, %v732_v52, %v736_v44  ;;  %v760_v1 = vrot.slane %v758_v55, 4  ;;  %v742_v3 = vrot.slane %v741_v58, 4  ;;  %v774_v5 = vshll.u32 %v270_v56, 16  ;;  %v277_v49 = vld [vmem:[%s1845_s23 + $0xdc] sm:$0xf] }
  0x63   : > { %1090 = vst.msk [vmem:[#allocation2 + $0xac] sm:$0xf] %vm1046_vm2, %v737_v62  ;;  %v766_v4 = vrot.slane %v764_v60, 5  ;;  %v778_v6 = vshrl.u32 %v270_v56, 16  ;;  %v752_v7 = vrot.slane %v751_v63, 4  ;;  %v770_v9 = vrot.slane %v768_v2, 4 }
  0x64   : > { %v761_v8 = vor.u32 %v760_v1, %v756_v59  ;;  %v784_v10 = vshll.u32 %v271_v61, 16  ;;  %v747_v12 = vsel %vm1860_vm3, %v742_v3, %v746_v53  ;;  %v776_v13 = vrot.slane %v774_v5, 5  ;;  %v278_v58 = vld [vmem:[%s1845_s23 + $0xe0] sm:$0xf]  ;;  %v279_v63 = vld [vmem:[%s1845_s23 + $0xe4] sm:$0xf] }
  0x65   : > { %v780_v14 = vrot.slane %v778_v6, 4  ;;  %v788_v15 = vshrl.u32 %v271_v61, 16  ;;  %1091 = vst.msk [vmem:[#allocation2 + $0xb0] sm:$0xf] %vm1046_vm2, %v747_v12  ;;  %v757_v17 = vsel %vm1860_vm3, %v752_v7, %v756_v59  ;;  %v771_v19 = vor.u32 %v770_v9, %v766_v4 }
  0x66   : > { %v762_v18 = vrot.slane %v761_v8, 4  ;;  %v786_v20 = vrot.slane %v784_v10, 5  ;;  %1092 = vst.msk [vmem:[#allocation2 + $0xb4] sm:$0xf] %vm1046_vm2, %v757_v17  ;;  %v794_v23 = vshll.u32 %v272_v11, 16  ;;  %v798_v24 = vshrl.u32 %v272_v11, 16 }
  0x67   : > { %v781_v21 = vor.u32 %v780_v14, %v776_v13  ;;  %v790_v22 = vrot.slane %v788_v15, 4  ;;  %v772_v28 = vrot.slane %v771_v19, 4  ;;  %v804_v29 = vshll.u32 %v273_v16, 16 }
  0x68   : > { %v767_v26 = vsel %vm1860_vm3, %v762_v18, %v766_v4  ;;  %v808_v30 = vshrl.u32 %v273_v16, 16  ;;  %v796_v33 = vrot.slane %v794_v23, 5  ;;  %v800_v34 = vrot.slane %v798_v24, 4  ;;  %v281_v18 = vld [vmem:[%s1845_s23 + $0xec] sm:$0xf] }
  0x69   : > { %1093 = vst.msk [vmem:[#allocation2 + $0xb8] sm:$0xf] %vm1046_vm2, %v767_v26  ;;  %v782_v31 = vrot.slane %v781_v21, 4  ;;  %v791_v32 = vor.u32 %v790_v22, %v786_v20  ;;  %v777_v36 = vsel %vm1860_vm3, %v772_v28, %v776_v13  ;;  %v806_v37 = vrot.slane %v804_v29, 5  ;;  %v280_v13 = vld [vmem:[%s1845_s23 + $0xe8] sm:$0xf] }
  0x6a   : > { %v810_v38 = vrot.slane %v808_v30, 4  ;;  %v814_v39 = vshll.u32 %v274_v25, 16  ;;  %1094 = vst.msk [vmem:[#allocation2 + $0xbc] sm:$0xf] %vm1046_vm2, %v777_v36  ;;  %v801_v43 = vor.u32 %v800_v34, %v796_v33  ;;  %v818_v44 = vshrl.u32 %v274_v25, 16 }
  0x6b   : > { %v787_v41 = vsel %vm1860_vm3, %v782_v31, %v786_v20  ;;  %v792_v42 = vrot.slane %v791_v32, 4  ;;  %v824_v47 = vshll.u32 %v275_v35, 16  ;;  %v828_v48 = vshrl.u32 %v275_v35, 16  ;;  %v282_v28 = vld [vmem:[%s1845_s23 + $0xf0] sm:$0xf] }
  0x6c   : > { %1095 = vst.msk [vmem:[#allocation2 + $0xc0] sm:$0xf] %vm1046_vm2, %v787_v41  ;;  %v811_v45 = vor.u32 %v810_v38, %v806_v37  ;;  %v816_v46 = vrot.slane %v814_v39, 5  ;;  %v802_v51 = vrot.slane %v801_v43, 4  ;;  %v820_v52 = vrot.slane %v818_v44, 4 }
  0x6d   : > { %v797_v50 = vsel %vm1860_vm3, %v792_v42, %v796_v33  ;;  %v834_v53 = vshll.u32 %v276_v40, 16  ;;  %v826_v55 = vrot.slane %v824_v47, 5  ;;  %v830_v56 = vrot.slane %v828_v48, 4  ;;  %v284_v42 = vld [vmem:[%s1845_s23 + $0xf8] sm:$0xf] }
  0x6e   : > { %1096 = vst.msk [vmem:[#allocation2 + $0xc4] sm:$0xf] %vm1046_vm2, %v797_v50  ;;  %v812_v54 = vrot.slane %v811_v45, 4  ;;  %v838_v57 = vshrl.u32 %v276_v40, 16  ;;  %v807_v59 = vsel %vm1860_vm3, %v802_v51, %v806_v37  ;;  %v821_v60 = vor.u32 %v820_v52, %v816_v46  ;;  %v283_v37 = vld [vmem:[%s1845_s23 + $0xf4] sm:$0xf] }
  0x6f   : > { %v836_v61 = vrot.slane %v834_v53, 5  ;;  %v844_v62 = vshll.u32 %v277_v49, 16  ;;  %1097 = vst.msk [vmem:[#allocation2 + $0xc8] sm:$0xf] %vm1046_vm2, %v807_v59  ;;  %v831_v2 = vor.u32 %v830_v56, %v826_v55  ;;  %v848_v4 = vshrl.u32 %v277_v49, 16 }
  0x70   : > { %v817_v1 = vsel %vm1860_vm3, %v812_v54, %v816_v46  ;;  %v840_v3 = vrot.slane %v838_v57, 4  ;;  %v822_v5 = vrot.slane %v821_v60, 4  ;;  %v854_v7 = vshll.u32 %v278_v58, 16  ;;  %v285_v51 = vld [vmem:[%s1845_s23 + $0xfc] sm:$0xf] }
  0x71   : > { %1098 = vst.msk [vmem:[#allocation2 + $0xcc] sm:$0xf] %vm1046_vm2, %v817_v1  ;;  %v846_v6 = vrot.slane %v844_v62, 5  ;;  %v858_v8 = vshrl.u32 %v278_v58, 16  ;;  %v832_v9 = vrot.slane %v831_v2, 4  ;;  %v850_v11 = vrot.slane %v848_v4, 4 }
  0x72   : > { %v841_v10 = vor.u32 %v840_v3, %v836_v61  ;;  %v864_v12 = vshll.u32 %v279_v63, 16  ;;  %v827_v14 = vsel %vm1860_vm3, %v822_v5, %v826_v55  ;;  %v856_v15 = vrot.slane %v854_v7, 5  ;;  %v286_v60 = vld [vmem:[%s1845_s23 + $0x100] sm:$0xf]  ;;  %v287_v2 = vld [vmem:[%s1845_s23 + $0x104] sm:$0xf] }
  0x73   : > { %v860_v16 = vrot.slane %v858_v8, 4  ;;  %v868_v17 = vshrl.u32 %v279_v63, 16  ;;  %1099 = vst.msk [vmem:[#allocation2 + $0xd0] sm:$0xf] %vm1046_vm2, %v827_v14  ;;  %v837_v19 = vsel %vm1860_vm3, %v832_v9, %v836_v61  ;;  %v851_v21 = vor.u32 %v850_v11, %v846_v6 }
  0x74   : > { %v842_v20 = vrot.slane %v841_v10, 4  ;;  %v866_v22 = vrot.slane %v864_v12, 5  ;;  %1100 = vst.msk [vmem:[#allocation2 + $0xd4] sm:$0xf] %vm1046_vm2, %v837_v19  ;;  %v874_v25 = vshll.u32 %v280_v13, 16  ;;  %v878_v26 = vshrl.u32 %v280_v13, 16 }
  0x75   : > { %v861_v23 = vor.u32 %v860_v16, %v856_v15  ;;  %v870_v24 = vrot.slane %v868_v17, 4  ;;  %v852_v30 = vrot.slane %v851_v21, 4  ;;  %v884_v31 = vshll.u32 %v281_v18, 16 }
  0x76   : > { %v847_v29 = vsel %vm1860_vm3, %v842_v20, %v846_v6  ;;  %v888_v32 = vshrl.u32 %v281_v18, 16  ;;  %v876_v35 = vrot.slane %v874_v25, 5  ;;  %v880_v36 = vrot.slane %v878_v26, 4  ;;  %v289_v20 = vld [vmem:[%s1845_s23 + $0x10c] sm:$0xf] }
  0x77   : > { %1101 = vst.msk [vmem:[#allocation2 + $0xd8] sm:$0xf] %vm1046_vm2, %v847_v29  ;;  %v862_v33 = vrot.slane %v861_v23, 4  ;;  %v871_v34 = vor.u32 %v870_v24, %v866_v22  ;;  %v857_v38 = vsel %vm1860_vm3, %v852_v30, %v856_v15  ;;  %v886_v39 = vrot.slane %v884_v31, 5  ;;  %v288_v15 = vld [vmem:[%s1845_s23 + $0x108] sm:$0xf] }
  0x78   : > { %v890_v40 = vrot.slane %v888_v32, 4  ;;  %v894_v41 = vshll.u32 %v282_v28, 16  ;;  %1102 = vst.msk [vmem:[#allocation2 + $0xdc] sm:$0xf] %vm1046_vm2, %v857_v38  ;;  %v881_v45 = vor.u32 %v880_v36, %v876_v35  ;;  %v898_v46 = vshrl.u32 %v282_v28, 16 }
  0x79   : > { %v867_v43 = vsel %vm1860_vm3, %v862_v33, %v866_v22  ;;  %v872_v44 = vrot.slane %v871_v34, 4  ;;  %v904_v49 = vshll.u32 %v283_v37, 16  ;;  %v908_v50 = vshrl.u32 %v283_v37, 16  ;;  %v290_v30 = vld [vmem:[%s1845_s23 + $0x110] sm:$0x1] }
  0x7a   : > { %1103 = vst.msk [vmem:[#allocation2 + $0xe0] sm:$0xf] %vm1046_vm2, %v867_v43  ;;  %v891_v47 = vor.u32 %v890_v40, %v886_v39  ;;  %v896_v48 = vrot.slane %v894_v41, 5  ;;  %v882_v53 = vrot.slane %v881_v45, 4  ;;  %v900_v54 = vrot.slane %v898_v46, 4 }
  0x7b   : > { %v877_v52 = vsel %vm1860_vm3, %v872_v44, %v876_v35  ;;  %v914_v55 = vshll.u32 %v284_v42, 16  ;;  %v906_v57 = vrot.slane %v904_v49, 5  ;;  %v910_v58 = vrot.slane %v908_v50, 4 }
  0x7c   : > { %1104 = vst.msk [vmem:[#allocation2 + $0xe4] sm:$0xf] %vm1046_vm2, %v877_v52  ;;  %v892_v56 = vrot.slane %v891_v47, 4  ;;  %v918_v59 = vshrl.u32 %v284_v42, 16  ;;  %v887_v61 = vsel %vm1860_vm3, %v882_v53, %v886_v39  ;;  %v901_v62 = vor.u32 %v900_v54, %v896_v48 }
  0x7d   : > { %v916_v63 = vrot.slane %v914_v55, 5  ;;  %v924_v1 = vshll.u32 %v285_v51, 16  ;;  %1105 = vst.msk [vmem:[#allocation2 + $0xe8] sm:$0xf] %vm1046_vm2, %v887_v61  ;;  %v911_v4 = vor.u32 %v910_v58, %v906_v57  ;;  %v928_v6 = vshrl.u32 %v285_v51, 16 }
  0x7e   : > { %v897_v3 = vsel %vm1860_vm3, %v892_v56, %v896_v48  ;;  %v920_v5 = vrot.slane %v918_v59, 4  ;;  %v902_v7 = vrot.slane %v901_v62, 4  ;;  %v934_v9 = vshll.u32 %v286_v60, 16 }
  0x7f   : > { %1106 = vst.msk [vmem:[#allocation2 + $0xec] sm:$0xf] %vm1046_vm2, %v897_v3  ;;  %v926_v8 = vrot.slane %v924_v1, 5  ;;  %v938_v10 = vshrl.u32 %v286_v60, 16  ;;  %v912_v11 = vrot.slane %v911_v4, 4  ;;  %v930_v13 = vrot.slane %v928_v6, 4 }
  0x80   : > { %v921_v12 = vor.u32 %v920_v5, %v916_v63  ;;  %v944_v14 = vshll.u32 %v287_v2, 16  ;;  %v907_v16 = vsel %vm1860_vm3, %v902_v7, %v906_v57  ;;  %v936_v17 = vrot.slane %v934_v9, 5 }
  0x81   : > { %v940_v18 = vrot.slane %v938_v10, 4  ;;  %v948_v19 = vshrl.u32 %v287_v2, 16  ;;  %1107 = vst.msk [vmem:[#allocation2 + $0xf0] sm:$0xf] %vm1046_vm2, %v907_v16  ;;  %v917_v21 = vsel %vm1860_vm3, %v912_v11, %v916_v63  ;;  %v931_v23 = vor.u32 %v930_v13, %v926_v8 }
  0x82   : > { %v922_v22 = vrot.slane %v921_v12, 4  ;;  %v946_v24 = vrot.slane %v944_v14, 5  ;;  %1108 = vst.msk [vmem:[#allocation2 + $0xf4] sm:$0xf] %vm1046_vm2, %v917_v21  ;;  %v954_v28 = vshll.u32 %v288_v15, 16  ;;  %v958_v29 = vshrl.u32 %v288_v15, 16 }
  0x83   : > { %v941_v25 = vor.u32 %v940_v18, %v936_v17  ;;  %v950_v26 = vrot.slane %v948_v19, 4  ;;  %v932_v32 = vrot.slane %v931_v23, 4  ;;  %v964_v33 = vshll.u32 %v289_v20, 16 }
  0x84   : > { %v927_v31 = vsel %vm1860_vm3, %v922_v22, %v926_v8  ;;  %v968_v34 = vshrl.u32 %v289_v20, 16  ;;  %v956_v37 = vrot.slane %v954_v28, 5  ;;  %v960_v38 = vrot.slane %v958_v29, 4 }
  0x85   : > { %1109 = vst.msk [vmem:[#allocation2 + $0xf8] sm:$0xf] %vm1046_vm2, %v927_v31  ;;  %v942_v35 = vrot.slane %v941_v25, 4  ;;  %v951_v36 = vor.u32 %v950_v26, %v946_v24  ;;  %v937_v39 = vsel %vm1860_vm3, %v932_v32, %v936_v17  ;;  %v966_v40 = vrot.slane %v964_v33, 5 }
  0x86   : > { %v970_v41 = vrot.slane %v968_v34, 4  ;;  %v974_v42 = vshll.u32 %v290_v30, 16  ;;  %1110 = vst.msk [vmem:[#allocation2 + $0xfc] sm:$0xf] %vm1046_vm2, %v937_v39  ;;  %v961_v45 = vor.u32 %v960_v38, %v956_v37 }
  0x87   : > { %v947_v43 = vsel %vm1860_vm3, %v942_v35, %v946_v24  ;;  %v952_v44 = vrot.slane %v951_v36, 4 }
  0x88   : > { %1111 = vst.msk [vmem:[#allocation2 + $0x100] sm:$0xf] %vm1046_vm2, %v947_v43  ;;  %v971_v46 = vor.u32 %v970_v41, %v966_v40  ;;  %v976_v47 = vrot.slane %v974_v42, 5  ;;  %v962_v49 = vrot.slane %v961_v45, 4 }
  0x89   : > { %v957_v48 = vsel %vm1860_vm3, %v952_v44, %v956_v37 }
  0x8a   : > { %1112 = vst.msk [vmem:[#allocation2 + $0x104] sm:$0xf] %vm1046_vm2, %v957_v48  ;;  %v972_v50 = vrot.slane %v971_v46, 4  ;;  %v967_v51 = vsel %vm1860_vm3, %v962_v49, %v966_v40 }
  0x8b   : > { %1113 = vst.msk [vmem:[#allocation2 + $0x108] sm:$0xf] %vm1046_vm2, %v967_v51 }
  0x8c   : > { %v977_v52 = vsel %vm1860_vm3, %v972_v50, %v976_v47 }
  0x8d   : > { %1114 = vst.msk [vmem:[#allocation2 + $0x10c] sm:$0xf] %vm1046_vm2, %v977_v52 }
  0x8e LB: >> { %v1755_v53 = vld [vmem:[%s2190_s1 + $0x8] sm:$0x3f]   ;;  %vm1164_vm4 = vcmask 1045504   ;;  %v1756_v54 = vld [vmem:[%s2190_s1] sm:$0x3f]   ;;  %s1627_s5 = sshll.u32 %s1797_s27, 5  ;;  %s1797_s27 = sphi %s2131_s27, %s1121_s27  }
  0x8f   : >> { %1718 = vmatprep.subr.msk.bf16.mxu0 %vm1164_vm4, %v1755_v53  ;;  %v1166_v27 = vsel %vm1164_vm4, %v1755_v53, 0  ;;  %s1123_s6 = sshra.s32 %s1627_s5, 3  ;;  %s1290_s7 = sadd.s32 32, %s1627_s5  ;;  %v1759_v55 = vld [vmem:[%s2190_s1 + $0x10] sm:$0x3f]   ;;  %1719 = vmatprep.subr.msk.bf16.mxu1 %vm1164_vm4, %v1756_v54  ;;  %v1239_v56 = vsel %vm1164_vm4, %v1756_v54, 0 }
  0x90   : >> { %1695 = vmatpush3.bf16.msra.mxu0 %v1166_v27  ;;  %s2150_s10 = sshll.u32 %s1123_s6, 2  ;;  %s1291_s11 = sshra.s32 %s1290_s7, 3  ;;  %1701 = vmatpush3.bf16.msra.mxu1 %v1239_v56  ;;  %vm1157_vm5 = vcmask 97280   ;;  %v1324_v60 = vsel %vm1164_vm4, %v1759_v55, 0  ;;  %v1762_v62 = vld [vmem:[%s2190_s1 + $0x18] sm:$0x3f]  }
  0x91   : >> { %s1642_s12 = sshll.u32 %s1291_s11, 2  ;;  %1720 = vmatprep.subr.msk.bf16.mxu0 %vm1164_vm4, %v1759_v55  ;;  %s1134_s16 = scalar_lea.vmem [#allocation2], %s2150_s10  ;;  %1721 = vmatprep.subr.msk.bf16.mxu1 %vm1164_vm4, %v1762_v62  ;;  %v1410_v1 = vsel %vm1164_vm4, %v1762_v62, 0 }
  0x92   : >> { %s1126_s17 = scalar_lea.vmem %s1845_s23, %s2150_s10  ;;  %s1294_s18 = scalar_lea.vmem %s1845_s23, %s1642_s12 }
  0x93   : >> { %v1758_v58 = vld [vmem:[%s1126_s17] sm:$0xff]   ;;  %v1761_v61 = vld [vmem:[%s1126_s17 + $0x8] sm:$0xff]   ;;  %s1380_s21 = scalar_lea.vmem [#allocation2], %s1642_s12  ;;  %s1498_s22 = scalar_lea.vmem %s1850_s26, %s2150_s10 }
  0x94   : >> { %v1757_v57 = vld [vmem:[%s1134_s16] sm:$0xff]   ;;  %v1760_v59 = vld [vmem:[%s1134_s16 + $0x8] sm:$0xff]   ;;  %1702 = vmatprep.mubr.msk.bf16.mxu1 %vm1157_vm5, %v1758_v58  ;;  %s1121_s27 = sadd.s32 1, %s1797_s27  }
  0x95   : >> { %1696 = vmatprep.mubr.msk.bf16.mxu0 %vm1157_vm5, %v1757_v57  ;;  %1703 = vmatmul.mubr.msk.bf16.vlgmr.msra.gmra.mxu1 %vm1157_vm5, %v1761_v61  ;;  %v1763_v63 = vld [vmem:[%s1294_s18] sm:$0xff]   ;;  %v1765_v3 = vld [vmem:[%s1294_s18 + $0x8] sm:$0xff]   ;;  %p1118_p5 = scmp.ge.s32.totalorder %s1121_s27, 16  }
  0x96   : >> { %1697 = vmatmul.mubr.msk.bf16.vlgmr.msra.gmra.mxu0 %vm1157_vm5, %v1760_v59  ;;  %v1764_v2 = vld [vmem:[%s1380_s21] sm:$0xff]   ;;  %1713 = vmatpush3.bf16.msra.mxu1 %v1410_v1  ;;  %v1766_v4 = vld [vmem:[%s1380_s21 + $0x8] sm:$0xff]  }
  0x97   : >> { %1707 = vmatpush3.bf16.msra.mxu0 %v1324_v60  ;;  %1708 = vmatprep.mubr.msk.bf16.mxu0 %vm1157_vm5, %v1763_v63 }
  0x98   : >> { %1714 = vmatprep.mubr.msk.bf16.mxu1 %vm1157_vm5, %v1764_v2 }
  0x9d   : >> { %1715 = vmatmul.mubr.msk.bf16.vlgmr.msra.gmra.mxu1 %vm1157_vm5, %v1766_v4 }
  0x9e   : >> { %1709 = vmatmul.mubr.msk.bf16.vlgmr.msra.gmra.mxu0 %vm1157_vm5, %v1765_v3 }
 0x155   : >> { %v1704_v6 = vpop.f32.mrf.mxu1 }
 0x156   : >> { %v1698_v5 = vpop.f32.mrf.mxu0 }
 0x157   : >> { %v1275_v8 = vpop.f32.mrf.mxu1  ;;  %v1284_v12 = vadd.f32 %v1704_v6, %v1698_v5 }
 0x158   : >> { %v1202_v7 = vpop.f32.mrf.mxu0 }
 0x159   : >> { %v1705_v10 = vpop.f32.mrf.mxu1  ;;  %v1276_v15 = vadd.f32 %v1275_v8, %v1202_v7 }
 0x15a   : >> { %v1699_v9 = vpop.f32.mrf.mxu0 }
 0x15b   : >> { %v1278_v13 = vpop.f32.mrf.mxu1  ;;  %v1287_v19 = vadd.f32 %v1705_v10, %v1699_v9 }
 0x15c   : >> { %v1205_v11 = vpop.f32.mrf.mxu0 }
 0x15d   : >> { %v1716_v17 = vpop.f32.mrf.mxu1  ;;  %v1279_v24 = vadd.f32 %v1278_v13, %v1205_v11 }
 0x15e   : >> { %v1710_v14 = vpop.f32.mrf.mxu0 }
 0x15f   : >> { %v1377_v16 = vadd.f32 %v1710_v14, %v1284_v12  ;;  %v1446_v22 = vpop.f32.mrf.mxu1 }
 0x160   : >> { %v1360_v18 = vpop.f32.mrf.mxu0 }
 0x161   : >> { %v1463_v20 = vadd.f32 %v1716_v17, %v1377_v16  ;;  %v1375_v21 = vadd.f32 %v1360_v18, %v1276_v15  ;;  %v1717_v28 = vpop.f32.mrf.mxu1 }
 0x162   : >> { %v1711_v23 = vpop.f32.mrf.mxu0 }
 0x163   : >> { %v1461_v25 = vadd.f32 %v1446_v22, %v1375_v21  ;;  %v1378_v26 = vadd.f32 %v1711_v23, %v1287_v19  ;;  %v1473_v30 = vadd.f32 %v1840_v0, %v1463_v20  ;;  %v1449_v33 = vpop.f32.mrf.mxu1 }
 0x164   : >> { %v1363_v29 = vpop.f32.mrf.mxu0 }
 0x165   : >> { %v1464_v31 = vadd.f32 %v1717_v28, %v1378_v26  ;;  %v1376_v32 = vadd.f32 %v1363_v29, %v1279_v24  ;;  %v1471_v34 = vadd.f32 %v1840_v0, %v1461_v25  ;;  %v1477_v37 = vmax.f32 %v1473_v30, 0.0 }
 0x167   : >> { %v1474_v35 = vadd.f32 %v1840_v0, %v1464_v31  ;;  %v1462_v36 = vadd.f32 %v1449_v33, %v1376_v32  ;;  %v1475_v40 = vmax.f32 %v1471_v34, 0.0 }
 0x169   : >> { %v1478_v38 = vmax.f32 %v1474_v35, 0.0  ;;  %v1472_v39 = vadd.f32 %v1840_v0, %v1462_v36 }
 0x16b   : >> { %v1679_v41 = vpack.c.bf16 %v1478_v38, %v1477_v37  ;;  %v1476_v42 = vmax.f32 %v1472_v39, 0.0  ;;  %1120 = sbr.rel (!%p1118_p5) target bundleno = 142 (0x8e), region = 80 }
 0x16d   : >> { %1681 = vst [vmem:[%s1498_s22 + $0x8] sm:$0xff] %v1679_v41   ;;  %v1674_v43 = vpack.c.bf16 %v1476_v42, %v1475_v40 }
 0x16f   : >> { %1675 = vst [vmem:[%s1498_s22] sm:$0xff] %v1674_v43  }
 0x170 PF: > { %s13_s14 = sadd.s32 1, %s1793_s14   ;;  %s2195_s12 = smov %s1789_s13 }
 0x171   : > { %p10_p6 = scmp.ge.s32.totalorder %s13_s14, 4   ;;  %s2196_s13 = smov %s2198_s15 }
 0x173   :  { %12 = sbr.rel (!%p10_p6) target bundleno = 2 (0x2), region = 91 }

// kernel: _lambda_.12
= control target key start
LH: loop header
LB: loop body
LE: loop exit
PB: predicated region body
PF: predicated region fallthrough
CT: control target
= control target key end

     0   :  { %s1436_s12 = smov 0   ;;  %s1438_s13 = smov 0   ;;  %s1707_s0 = inlined_call_operand.vmem [shape: bf16[2,1,160,128], index: 0, kind: input, shape index: {}]   ;;  %s1708_s1 = inlined_call_operand.vmem [shape: bf16[4,128,128], index: 1, kind: input, shape index: {}]   ;;  %s1709_s2 = inlined_call_operand.vmem [shape: f32[2,1,128], index: 2, kind: input, shape index: {}]   ;;  %s1710_s3 = inlined_call_operand.vmem [shape: bf16[2,1,128,128], index: 3, kind: output, shape index: {}]  }
   0x1   :  { %s1440_s14 = smov 0  }
   0x2 LB: > { %s25_s15 = sadd.s32 1, %s1404_s13  ;;  %p1088_p0 = scmp.ge.s32.totalorder %s1408_s14, 1  ;;  %s1408_s14 = sphi %s1440_s14, %s13_s14   ;;  %s1404_s13 = sphi %s1438_s13, %s1714_s13   ;;  %s1400_s12 = sphi %s1436_s12, %s1713_s12  }
   0x3   : > { %p27_p1 = scmp.ge.s32.totalorder %s25_s15, 2  ;;  %p165_p2 = scmp.lt.s32.totalorder %s1408_s14, 3 }
   0x5   : > { %s1716_s15 = smov (%p27_p1, %s25_s15), 0  ;;  %p166_p3 = pnand %p1088_p0, %p165_p2 }
   0x6   : > { %p200_p4 = scmp.lt.s32.totalorder (!%p166_p3), %s1400_s12, 1  ;;  %s1530_s27 = smov (!%p166_p3), 0  }
   0x7   : > { %169 = sbr.rel (%p166_p3) target bundleno = 328 (0x148), region = 32 }
   0xc   : > { %s1718_s12 = smov (!%p200_p4, %s1400_s12), 1  ;;  %vm241_vm0 = vsmask.f32 3328  ;;  %vm242_vm1 = vsmask.f32 7440 }
   0xd   : > { %s1311_s16 = smul.u32 80, %s1718_s12  ;;  %s211_s19 = scalar_lea.vmem %s1709_s2, %s1718_s12  ;;  %vm1477_vm2 = vmor %vm241_vm0, %vm242_vm1 }
   0xe   : > { %s1187_s20 = sshll.u32 %s1718_s12, 6  ;;  %v1457_v0 = vld [vmem:[%s211_s19] ss:$0 sm:$0xff] }
   0xf   : > { %s1462_s23 = scalar_lea.vmem %s1707_s0, %s1311_s16  ;;  %s1467_s26 = scalar_lea.vmem %s1710_s3, %s1187_s20 }
  0x10   : > { %v222_v1 = vld [vmem:[%s1462_s23] sm:$0xf]  ;;  %v223_v2 = vld [vmem:[%s1462_s23 + $0x4] sm:$0xf]  ;;  %v224_v3 = vld [vmem:[%s1462_s23 + $0x8] sm:$0xf] }
  0x11   : > { %v245_v4 = vshrl.u32 %v222_v1, 16  ;;  %v248_v5 = vshll.u32 %v222_v1, 16  ;;  %v254_v6 = vshll.u32 %v223_v2, 16  ;;  %v258_v7 = vshrl.u32 %v223_v2, 16  ;;  %v225_v8 = vld [vmem:[%s1462_s23 + $0xc] sm:$0xf] }
  0x12   : > { %v264_v9 = vshll.u32 %v224_v3, 16  ;;  %v268_v10 = vshrl.u32 %v224_v3, 16  ;;  %v274_v11 = vshll.u32 %v225_v8, 16  ;;  %v278_v12 = vshrl.u32 %v225_v8, 16  ;;  %v226_v13 = vld [vmem:[%s1462_s23 + $0x10] sm:$0xf] }
  0x13   : > { %v247_v14 = vrot.slane %v245_v4, 4  ;;  %v250_v15 = vrot.slane %v248_v5, 5  ;;  %v256_v16 = vrot.slane %v254_v6, 5  ;;  %v260_v17 = vrot.slane %v258_v7, 4  ;;  %v227_v18 = vld [vmem:[%s1462_s23 + $0x14] sm:$0xf] }
  0x14   : > { %v266_v19 = vrot.slane %v264_v9, 5  ;;  %v270_v20 = vrot.slane %v268_v10, 4  ;;  %v276_v21 = vrot.slane %v274_v11, 5  ;;  %v280_v22 = vrot.slane %v278_v12, 4  ;;  %v228_v32 = vld [vmem:[%s1462_s23 + $0x18] sm:$0xf] }
  0x15   : > { %v251_v23 = vor.u32 %v250_v15, %v247_v14  ;;  %v261_v24 = vor.u32 %v260_v17, %v256_v16  ;;  %v284_v25 = vshll.u32 %v226_v13, 16  ;;  %v288_v26 = vshrl.u32 %v226_v13, 16  ;;  %v229_v41 = vld [vmem:[%s1462_s23 + $0x1c] sm:$0xf]  ;;  %v230_v46 = vld [vmem:[%s1462_s23 + $0x20] sm:$0xf] }
  0x16   : > { %v271_v28 = vor.u32 %v270_v20, %v266_v19  ;;  %v281_v29 = vor.u32 %v280_v22, %v276_v21  ;;  %v294_v30 = vshll.u32 %v227_v18, 16  ;;  %v298_v31 = vshrl.u32 %v227_v18, 16  ;;  %v231_v51 = vld [vmem:[%s1462_s23 + $0x24] sm:$0xf]  ;;  %v232_v60 = vld [vmem:[%s1462_s23 + $0x28] sm:$0xf] }
  0x17   : > { %v252_v33 = vrot.slane %v251_v23, 4  ;;  %v262_v34 = vrot.slane %v261_v24, 4  ;;  %v286_v35 = vrot.slane %v284_v25, 5  ;;  %v290_v36 = vrot.slane %v288_v26, 4  ;;  %v233_v2 = vld [vmem:[%s1462_s23 + $0x2c] sm:$0xf] }
  0x18   : > { %v272_v37 = vrot.slane %v271_v28, 4  ;;  %v282_v38 = vrot.slane %v281_v29, 4  ;;  %v296_v39 = vrot.slane %v294_v30, 5  ;;  %v300_v40 = vrot.slane %v298_v31, 4  ;;  %v234_v15 = vld [vmem:[%s1462_s23 + $0x30] sm:$0xf] }
  0x19   : > { %v257_v42 = vsel %vm1477_vm2, %v252_v33, %v256_v16  ;;  %v267_v43 = vsel %vm1477_vm2, %v262_v34, %v266_v19  ;;  %v291_v44 = vor.u32 %v290_v36, %v286_v35  ;;  %v304_v45 = vshll.u32 %v228_v32, 16  ;;  %v235_v20 = vld [vmem:[%s1462_s23 + $0x34] sm:$0xf]  ;;  %v236_v30 = vld [vmem:[%s1462_s23 + $0x38] sm:$0xf] }
  0x1a   : > { %446 = vst [vmem:[#allocation2] sm:$0xf] %v257_v42  ;;  %447 = vst [vmem:[#allocation2 + $0x4] sm:$0xf] %v267_v43  ;;  %v277_v47 = vsel %vm1477_vm2, %v272_v37, %v276_v21  ;;  %v287_v48 = vsel %vm1477_vm2, %v282_v38, %v286_v35  ;;  %v301_v49 = vor.u32 %v300_v40, %v296_v39  ;;  %v308_v50 = vshrl.u32 %v228_v32, 16 }
  0x1b   : > { %448 = vst [vmem:[#allocation2 + $0x8] sm:$0xf] %v277_v47  ;;  %449 = vst [vmem:[#allocation2 + $0xc] sm:$0xf] %v287_v48  ;;  %v292_v52 = vrot.slane %v291_v44, 4  ;;  %v306_v53 = vrot.slane %v304_v45, 5 }
  0x1c   : > { %v314_v54 = vshll.u32 %v229_v41, 16  ;;  %v318_v55 = vshrl.u32 %v229_v41, 16  ;;  %v302_v56 = vrot.slane %v301_v49, 4  ;;  %v310_v57 = vrot.slane %v308_v50, 4  ;;  %v238_v48 = vld [vmem:[%s1462_s23 + $0x40] sm:$0xf] }
  0x1d   : > { %v324_v58 = vshll.u32 %v230_v46, 16  ;;  %v328_v59 = vshrl.u32 %v230_v46, 16  ;;  %v297_v61 = vsel %vm1477_vm2, %v292_v52, %v296_v39  ;;  %v334_v1 = vshll.u32 %v231_v51, 16  ;;  %v237_v39 = vld [vmem:[%s1462_s23 + $0x3c] sm:$0xf] }
  0x1e   : > { %v316_v62 = vrot.slane %v314_v54, 5  ;;  %v320_v63 = vrot.slane %v318_v55, 4  ;;  %450 = vst [vmem:[#allocation2 + $0x10] sm:$0xf] %v297_v61  ;;  %v307_v3 = vsel %vm1477_vm2, %v302_v56, %v306_v53  ;;  %v311_v4 = vor.u32 %v310_v57, %v306_v53  ;;  %v239_v53 = vld [vmem:[%s1462_s23 + $0x44] sm:$0xf] }
  0x1f   : > { %v326_v5 = vrot.slane %v324_v58, 5  ;;  %v330_v6 = vrot.slane %v328_v59, 4  ;;  %451 = vst [vmem:[#allocation2 + $0x14] sm:$0xf] %v307_v3  ;;  %v336_v8 = vrot.slane %v334_v1, 5  ;;  %v338_v9 = vshrl.u32 %v231_v51, 16 }
  0x20   : > { %v321_v7 = vor.u32 %v320_v63, %v316_v62  ;;  %v344_v10 = vshll.u32 %v232_v60, 16  ;;  %v312_v11 = vrot.slane %v311_v4, 4  ;;  %v348_v13 = vshrl.u32 %v232_v60, 16  ;;  %v240_v3 = vld [vmem:[%s1462_s23 + $0x48] sm:$0x1] }
  0x21   : > { %v331_v12 = vor.u32 %v330_v6, %v326_v5  ;;  %v354_v14 = vshll.u32 %v233_v2, 16  ;;  %v340_v17 = vrot.slane %v338_v9, 4  ;;  %v358_v19 = vshrl.u32 %v233_v2, 16 }
  0x22   : > { %v322_v16 = vrot.slane %v321_v7, 4  ;;  %v346_v18 = vrot.slane %v344_v10, 5  ;;  %v317_v21 = vsel %vm1477_vm2, %v312_v11, %v316_v62  ;;  %v350_v23 = vrot.slane %v348_v13, 4 }
  0x23   : > { %v332_v22 = vrot.slane %v331_v12, 4  ;;  %v356_v24 = vrot.slane %v354_v14, 5  ;;  %452 = vst [vmem:[#allocation2 + $0x18] sm:$0xf] %v317_v21  ;;  %v341_v26 = vor.u32 %v340_v17, %v336_v8  ;;  %v360_v28 = vrot.slane %v358_v19, 4 }
  0x24   : > { %v327_v25 = vsel %vm1477_vm2, %v322_v16, %v326_v5  ;;  %v364_v29 = vshll.u32 %v234_v15, 16  ;;  %v351_v32 = vor.u32 %v350_v23, %v346_v18  ;;  %v368_v33 = vshrl.u32 %v234_v15, 16 }
  0x25   : > { %453 = vst [vmem:[#allocation2 + $0x1c] sm:$0xf] %v327_v25  ;;  %v337_v31 = vsel %vm1477_vm2, %v332_v22, %v336_v8  ;;  %v374_v34 = vshll.u32 %v235_v20, 16  ;;  %v342_v35 = vrot.slane %v341_v26, 4  ;;  %v361_v36 = vor.u32 %v360_v28, %v356_v24 }
  0x26   : > { %454 = vst [vmem:[#allocation2 + $0x20] sm:$0xf] %v337_v31  ;;  %v366_v37 = vrot.slane %v364_v29, 5  ;;  %v378_v38 = vshrl.u32 %v235_v20, 16  ;;  %v352_v40 = vrot.slane %v351_v32, 4  ;;  %v370_v41 = vrot.slane %v368_v33, 4 }
  0x27   : > { %v376_v42 = vrot.slane %v374_v34, 5  ;;  %v384_v43 = vshll.u32 %v236_v30, 16  ;;  %v347_v44 = vsel %vm1477_vm2, %v342_v35, %v346_v18  ;;  %v362_v45 = vrot.slane %v361_v36, 4 }
  0x28   : > { %v380_v46 = vrot.slane %v378_v38, 4  ;;  %v388_v47 = vshrl.u32 %v236_v30, 16  ;;  %455 = vst [vmem:[#allocation2 + $0x24] sm:$0xf] %v347_v44  ;;  %v357_v49 = vsel %vm1477_vm2, %v352_v40, %v356_v24  ;;  %v371_v50 = vor.u32 %v370_v41, %v366_v37 }
  0x29   : > { %v386_v51 = vrot.slane %v384_v43, 5  ;;  %v394_v52 = vshll.u32 %v237_v39, 16  ;;  %456 = vst [vmem:[#allocation2 + $0x28] sm:$0xf] %v357_v49  ;;  %v367_v54 = vsel %vm1477_vm2, %v362_v45, %v366_v37  ;;  %v398_v57 = vshrl.u32 %v237_v39, 16 }
  0x2a   : > { %v381_v55 = vor.u32 %v380_v46, %v376_v42  ;;  %v390_v56 = vrot.slane %v388_v47, 4  ;;  %457 = vst [vmem:[#allocation2 + $0x2c] sm:$0xf] %v367_v54  ;;  %v372_v58 = vrot.slane %v371_v50, 4  ;;  %v404_v60 = vshll.u32 %v238_v48, 16 }
  0x2b   : > { %v396_v59 = vrot.slane %v394_v52, 5  ;;  %v408_v61 = vshrl.u32 %v238_v48, 16  ;;  %v400_v1 = vrot.slane %v398_v57, 4  ;;  %v414_v2 = vshll.u32 %v239_v53, 16 }
  0x2c   : > { %v382_v62 = vrot.slane %v381_v55, 4  ;;  %v391_v63 = vor.u32 %v390_v56, %v386_v51  ;;  %v377_v4 = vsel %vm1477_vm2, %v372_v58, %v376_v42  ;;  %v406_v5 = vrot.slane %v404_v60, 5 }
  0x2d   : > { %v410_v6 = vrot.slane %v408_v61, 4  ;;  %v418_v7 = vshrl.u32 %v239_v53, 16  ;;  %458 = vst [vmem:[#allocation2 + $0x30] sm:$0xf] %v377_v4  ;;  %v401_v10 = vor.u32 %v400_v1, %v396_v59  ;;  %v416_v11 = vrot.slane %v414_v2, 5 }
  0x2e   : > { %v387_v8 = vsel %vm1477_vm2, %v382_v62, %v386_v51  ;;  %v392_v9 = vrot.slane %v391_v63, 4  ;;  %v424_v14 = vshll.u32 %v240_v3, 16 }
  0x2f   : > { %459 = vst [vmem:[#allocation2 + $0x34] sm:$0xf] %v387_v8  ;;  %v411_v12 = vor.u32 %v410_v6, %v406_v5  ;;  %v420_v13 = vrot.slane %v418_v7, 4  ;;  %v402_v16 = vrot.slane %v401_v10, 4 }
  0x30   : > { %v397_v15 = vsel %vm1477_vm2, %v392_v9, %v396_v59  ;;  %v426_v19 = vrot.slane %v424_v14, 5 }
  0x31   : > { %460 = vst [vmem:[#allocation2 + $0x38] sm:$0xf] %v397_v15  ;;  %v412_v17 = vrot.slane %v411_v12, 4  ;;  %v421_v18 = vor.u32 %v420_v13, %v416_v11  ;;  %v407_v20 = vsel %vm1477_vm2, %v402_v16, %v406_v5 }
  0x32   : > { %461 = vst [vmem:[#allocation2 + $0x3c] sm:$0xf] %v407_v20 }
  0x33   : > { %v417_v21 = vsel %vm1477_vm2, %v412_v17, %v416_v11  ;;  %v422_v22 = vrot.slane %v421_v18, 4 }
  0x34   : > { %462 = vst [vmem:[#allocation2 + $0x40] sm:$0xf] %v417_v21 }
  0x35   : > { %v427_v23 = vsel %vm1477_vm2, %v422_v22, %v426_v19 }
  0x36   : > { %463 = vst [vmem:[#allocation2 + $0x44] sm:$0xf] %v427_v23 }
  0x37 LB: >> { %v1346_v24 = vld [vmem:[%s1708_s1 + $0x78] sm:$0xff]   ;;  %v1414_v25 = vmov 0.0   ;;  %v1348_v26 = vld [vmem:[%s1708_s1 + $0x70] sm:$0xff]   ;;  %vm1415_vm3 = vmmov 0   ;;  %v1350_v29 = vld [vmem:[%s1708_s1 + $0x68] sm:$0xff]   ;;  %s1092_s11 = sshll.u32 %s1412_s27, 4  ;;  %s1412_s27 = sphi %s1530_s27, %s470_s27  }
  0x38   : >> { %1231 = vmatprep.subr.bf16.mxu0 %v1414_v25  ;;  %1251 = vmatprep.subr.bf16.mxu1 %v1414_v25  ;;  %v1347_v27 = vld [vmem:[%s1708_s1 + $0x38] sm:$0xff]   ;;  %v1349_v28 = vld [vmem:[%s1708_s1 + $0x30] sm:$0xff]   ;;  %v1351_v30 = vld [vmem:[%s1708_s1 + $0x28] sm:$0xff]   ;;  %s472_s17 = sshra.s32 %s1092_s11, 3  ;;  %s470_s27 = sadd.s32 1, %s1412_s27  }
  0x39   : >> { %1232 = vmatpush3.bf16.msra.mxu0 %v1346_v24  ;;  %1247 = vmatprep.mubr.msk.bf16.mxu0 %vm1415_vm3, %v1414_v25  ;;  %v1352_v31 = vld [vmem:[%s1708_s1 + $0x60] sm:$0xff]   ;;  %s1574_s22 = sshll.u32 %s472_s17, 2  ;;  %v1354_v33 = vld [vmem:[%s1708_s1 + $0x58] sm:$0xff]   ;;  %v1356_v35 = vld [vmem:[%s1708_s1 + $0x50] sm:$0xff]   ;;  %s705_s17 = sadd.s32 16, %s1092_s11 }
  0x3a   : >> { %1252 = vmatpush3.bf16.msra.mxu1 %v1347_v27  ;;  %1233 = vmatprep.subr.bf16.mxu0 %v1414_v25  ;;  %v1353_v32 = vld [vmem:[%s1708_s1 + $0x20] sm:$0xff]   ;;  %v1355_v34 = vld [vmem:[%s1708_s1 + $0x18] sm:$0xff]   ;;  %s495_s30 = scalar_lea.vmem [#allocation2], %s1574_s22  ;;  %s475_s4 = scalar_lea.vmem %s1462_s23, %s1574_s22  ;;  %v1357_v36 = vld [vmem:[%s1708_s1 + $0x10] sm:$0xff]  }
  0x3b   : >> { %1253 = vmatprep.subr.bf16.mxu1 %v1414_v25  ;;  %1267 = vmatprep.mubr.msk.bf16.mxu1 %vm1415_vm3, %v1414_v25  ;;  %v1358_v37 = vld [vmem:[%s1708_s1 + $0x48] sm:$0xff]   ;;  %v1360_v39 = vld [vmem:[%s1708_s1 + $0x40] sm:$0xff]   ;;  %s706_s24 = sshra.s32 %s705_s17, 3  ;;  %v1364_v43 = vld [vmem:[%s1708_s1 + $0xb8] sm:$0xff]   ;;  %p467_p5 = scmp.ge.s32.totalorder %s470_s27, 8  }
  0x3c   : >> { %v1359_v38 = vld [vmem:[%s1708_s1 + $0x8] sm:$0xff]   ;;  %v1361_v40 = vld [vmem:[%s1708_s1] sm:$0xff]   ;;  %s1616_s28 = sshll.u32 %s706_s24, 2  ;;  %v1365_v44 = vld [vmem:[%s1708_s1 + $0xf8] sm:$0xff]  }
  0x3d   : >> { %1234 = vmatpush3.bf16.msra.mxu0 %v1348_v26  ;;  %v1362_v41 = vld [vmem:[%s495_s30] sm:$0xff]   ;;  %s709_s30 = scalar_lea.vmem %s1462_s23, %s1616_s28  ;;  %v1366_v45 = vld [vmem:[%s1708_s1 + $0xb0] sm:$0xff]   ;;  %s827_s9 = scalar_lea.vmem [#allocation2], %s1616_s28  ;;  %v1368_v47 = vld [vmem:[%s1708_s1 + $0xa8] sm:$0xff]  }
  0x3e   : >> { %1254 = vmatpush3.bf16.msra.mxu1 %v1349_v28  ;;  %1235 = vmatprep.subr.bf16.mxu0 %v1414_v25  ;;  %v1363_v42 = vld [vmem:[%s475_s4] sm:$0xff]   ;;  %v1367_v46 = vld [vmem:[%s1708_s1 + $0xf0] sm:$0xff]   ;;  %v1369_v48 = vld [vmem:[%s1708_s1 + $0xe8] sm:$0xff]   ;;  %s965_s28 = scalar_lea.vmem %s1467_s26, %s1574_s22 }
  0x3f   : >> { %1255 = vmatprep.subr.bf16.mxu1 %v1414_v25  ;;  %v1370_v49 = vld [vmem:[%s1708_s1 + $0xa0] sm:$0xff]   ;;  %v1372_v51 = vld [vmem:[%s1708_s1 + $0x98] sm:$0xff]   ;;  %v1374_v53 = vld [vmem:[%s1708_s1 + $0x90] sm:$0xff]  }
  0x40   : >> { %v1371_v50 = vld [vmem:[%s1708_s1 + $0xe0] sm:$0xff]   ;;  %v1373_v52 = vld [vmem:[%s1708_s1 + $0xd8] sm:$0xff]   ;;  %v1375_v54 = vld [vmem:[%s1708_s1 + $0xd0] sm:$0xff]  }
  0x41   : >> { %1236 = vmatpush3.bf16.msra.mxu0 %v1350_v29  ;;  %v1376_v55 = vld [vmem:[%s1708_s1 + $0x88] sm:$0xff]   ;;  %v1378_v57 = vld [vmem:[%s1708_s1 + $0x80] sm:$0xff]  }
  0x42   : >> { %1256 = vmatpush3.bf16.msra.mxu1 %v1351_v30  ;;  %1237 = vmatprep.subr.bf16.mxu0 %v1414_v25  ;;  %v1377_v56 = vld [vmem:[%s1708_s1 + $0xc8] sm:$0xff]   ;;  %v1379_v58 = vld [vmem:[%s1708_s1 + $0xc0] sm:$0xff]  }
  0x43   : >> { %1257 = vmatprep.subr.bf16.mxu1 %v1414_v25  ;;  %v1380_v59 = vld [vmem:[%s709_s30] sm:$0xff]  }
  0x44   : >> { %v1381_v60 = vld [vmem:[%s827_s9] sm:$0xff]  }
  0x45   : >> { %1238 = vmatpush3.bf16.msra.mxu0 %v1352_v31 }
  0x46   : >> { %1258 = vmatpush3.bf16.msra.mxu1 %v1353_v32  ;;  %1239 = vmatprep.subr.bf16.mxu0 %v1414_v25 }
  0x47   : >> { %1259 = vmatprep.subr.bf16.mxu1 %v1414_v25 }
  0x49   : >> { %1240 = vmatpush3.bf16.msra.mxu0 %v1354_v33 }
  0x4a   : >> { %1260 = vmatpush3.bf16.msra.mxu1 %v1355_v34  ;;  %1241 = vmatprep.subr.bf16.mxu0 %v1414_v25 }
  0x4b   : >> { %1261 = vmatprep.subr.bf16.mxu1 %v1414_v25 }
  0x4d   : >> { %1242 = vmatpush3.bf16.msra.mxu0 %v1356_v35 }
  0x4e   : >> { %1262 = vmatpush3.bf16.msra.mxu1 %v1357_v36  ;;  %1243 = vmatprep.subr.bf16.mxu0 %v1414_v25 }
  0x4f   : >> { %1263 = vmatprep.subr.bf16.mxu1 %v1414_v25 }
  0x51   : >> { %1244 = vmatpush3.bf16.msra.mxu0 %v1358_v37 }
  0x52   : >> { %1264 = vmatpush3.bf16.msra.mxu1 %v1359_v38  ;;  %1245 = vmatprep.subr.bf16.mxu0 %v1414_v25 }
  0x53   : >> { %1265 = vmatprep.subr.bf16.mxu1 %v1414_v25 }
  0x55   : >> { %1246 = vmatpush3.bf16.msra.mxu0 %v1360_v39 }
  0x56   : >> { %1266 = vmatpush3.bf16.msra.mxu1 %v1361_v40  ;;  %1271 = vmatprep.subr.bf16.mxu0 %v1414_v25 }
  0x57   : >> { %1291 = vmatprep.subr.bf16.mxu1 %v1414_v25 }
  0x58   : >> { %1248 = vmatmul.mubr.bf16.vlgmr.msra.gmra.mxu0 %v1362_v41 }
  0x59   : >> { %1268 = vmatmul.mubr.bf16.vlgmr.msra.gmra.mxu1 %v1363_v42  ;;  %1272 = vmatpush3.bf16.msra.mxu0 %v1364_v43 }
  0x5a   : >> { %1292 = vmatpush3.bf16.msra.mxu1 %v1365_v44  ;;  %1273 = vmatprep.subr.bf16.mxu0 %v1414_v25 }
  0x5b   : >> { %1293 = vmatprep.subr.bf16.mxu1 %v1414_v25  ;;  %1287 = vmatprep.mubr.msk.bf16.mxu0 %vm1415_vm3, %v1414_v25 }
  0x5c   : >> { %1307 = vmatprep.mubr.msk.bf16.mxu1 %vm1415_vm3, %v1414_v25 }
  0x5d   : >> { %1274 = vmatpush3.bf16.msra.mxu0 %v1366_v45 }
  0x5e   : >> { %1294 = vmatpush3.bf16.msra.mxu1 %v1367_v46  ;;  %1275 = vmatprep.subr.bf16.mxu0 %v1414_v25 }
  0x5f   : >> { %1295 = vmatprep.subr.bf16.mxu1 %v1414_v25 }
  0x61   : >> { %1276 = vmatpush3.bf16.msra.mxu0 %v1368_v47 }
  0x62   : >> { %1296 = vmatpush3.bf16.msra.mxu1 %v1369_v48  ;;  %1277 = vmatprep.subr.bf16.mxu0 %v1414_v25 }
  0x63   : >> { %1297 = vmatprep.subr.bf16.mxu1 %v1414_v25 }
  0x65   : >> { %1278 = vmatpush3.bf16.msra.mxu0 %v1370_v49 }
  0x66   : >> { %1298 = vmatpush3.bf16.msra.mxu1 %v1371_v50  ;;  %1279 = vmatprep.subr.bf16.mxu0 %v1414_v25 }
  0x67   : >> { %1299 = vmatprep.subr.bf16.mxu1 %v1414_v25 }
  0x69   : >> { %1280 = vmatpush3.bf16.msra.mxu0 %v1372_v51 }
  0x6a   : >> { %1300 = vmatpush3.bf16.msra.mxu1 %v1373_v52  ;;  %1281 = vmatprep.subr.bf16.mxu0 %v1414_v25 }
  0x6b   : >> { %1301 = vmatprep.subr.bf16.mxu1 %v1414_v25 }
  0x6d   : >> { %1282 = vmatpush3.bf16.msra.mxu0 %v1374_v53 }
  0x6e   : >> { %1302 = vmatpush3.bf16.msra.mxu1 %v1375_v54  ;;  %1283 = vmatprep.subr.bf16.mxu0 %v1414_v25 }
  0x6f   : >> { %1303 = vmatprep.subr.bf16.mxu1 %v1414_v25 }
  0x71   : >> { %1284 = vmatpush3.bf16.msra.mxu0 %v1376_v55 }
  0x72   : >> { %1304 = vmatpush3.bf16.msra.mxu1 %v1377_v56  ;;  %1285 = vmatprep.subr.bf16.mxu0 %v1414_v25 }
  0x73   : >> { %1305 = vmatprep.subr.bf16.mxu1 %v1414_v25 }
  0x75   : >> { %1286 = vmatpush3.bf16.msra.mxu0 %v1378_v57 }
  0x76   : >> { %1306 = vmatpush3.bf16.msra.mxu1 %v1379_v58 }
  0x78   : >> { %1288 = vmatmul.mubr.bf16.vlgmr.msra.gmra.mxu0 %v1380_v59 }
  0x79   : >> { %1308 = vmatmul.mubr.bf16.vlgmr.msra.gmra.mxu1 %v1381_v60 }
 0x118   : >> { %v603_v61 = vpop.f32.mrf.mxu0 }
 0x119   : >> { %v698_v62 = vpop.f32.mrf.mxu1 }
 0x11a   : >> { %v1249_v63 = vpop.f32.mrf.mxu0  ;;  %v699_v6 = vadd.f32 %v698_v62, %v603_v61 }
 0x11b   : >> { %v1269_v1 = vpop.f32.mrf.mxu1 }
 0x11c   : >> { %v606_v2 = vpop.f32.mrf.mxu0 }
 0x11d   : >> { %v701_v3 = vpop.f32.mrf.mxu1 }
 0x11e   : >> { %v1250_v4 = vpop.f32.mrf.mxu0  ;;  %v702_v11 = vadd.f32 %v701_v3, %v606_v2 }
 0x11f   : >> { %v1270_v5 = vpop.f32.mrf.mxu1 }
 0x138   : >> { %v817_v7 = vpop.f32.mrf.mxu0 }
 0x139   : >> { %v824_v8 = vadd.f32 %v817_v7, %v699_v6  ;;  %v935_v9 = vpop.f32.mrf.mxu1 }
 0x13a   : >> { %v1289_v10 = vpop.f32.mrf.mxu0 }
 0x13b   : >> { %v942_v12 = vadd.f32 %v935_v9, %v824_v8  ;;  %v1309_v13 = vpop.f32.mrf.mxu1 }
 0x13c   : >> { %v820_v14 = vpop.f32.mrf.mxu0 }
 0x13d   : >> { %v825_v15 = vadd.f32 %v820_v14, %v702_v11  ;;  %v938_v16 = vpop.f32.mrf.mxu1  ;;  %v950_v18 = vadd.f32 %v1457_v0, %v942_v12 }
 0x13e   : >> { %v1290_v17 = vpop.f32.mrf.mxu0 }
 0x13f   : >> { %v943_v19 = vadd.f32 %v938_v16, %v825_v15  ;;  %v1310_v20 = vpop.f32.mrf.mxu1  ;;  %v952_v22 = vmax.f32 %v950_v18, 0.0 }
 0x141   : >> { %v951_v21 = vadd.f32 %v1457_v0, %v943_v19 }
 0x143   : >> { %v953_v23 = vmax.f32 %v951_v21, 0.0  ;;  %469 = sbr.rel (!%p467_p5) target bundleno = 55 (0x37), region = 80 }
 0x145   : >> { %v1193_v24 = vpack.c.bf16 %v953_v23, %v952_v22 }
 0x147   : >> { %1194 = vst [vmem:[%s965_s28] sm:$0xff] %v1193_v24  }
 0x148 PF: > { %s13_s14 = sadd.s32 1, %s1408_s14   ;;  %s1713_s12 = smov %s1404_s13 }
 0x149   : > { %p10_p6 = scmp.ge.s32.totalorder %s13_s14, 4   ;;  %s1714_s13 = smov %s1716_s15 }
 0x14b   :  { %12 = sbr.rel (!%p10_p6) target bundleno = 2 (0x2), region = 91 }

// kernel: _lambda_.13
= control target key start
LH: loop header
LB: loop body
LE: loop exit
PB: predicated region body
PF: predicated region fallthrough
CT: control target
= control target key end

     0   :  { %s1332_s12 = smov 0   ;;  %s1334_s13 = smov 0   ;;  %s1579_s0 = inlined_call_operand.vmem [shape: bf16[2,1,96,128], index: 0, kind: input, shape index: {}]   ;;  %s1580_s1 = inlined_call_operand.vmem [shape: bf16[4,128,128], index: 1, kind: input, shape index: {}]   ;;  %s1581_s2 = inlined_call_operand.vmem [shape: f32[2,1,128], index: 2, kind: input, shape index: {}]   ;;  %s1582_s3 = inlined_call_operand.vmem [shape: bf16[2,1,64,128], index: 3, kind: output, shape index: {}]  }
   0x1   :  { %s1336_s14 = smov 0  }
   0x2 LB: > { %s25_s15 = sadd.s32 1, %s1300_s13  ;;  %p984_p0 = scmp.ge.s32.totalorder %s1304_s14, 1  ;;  %s1304_s14 = sphi %s1336_s14, %s13_s14   ;;  %s1300_s13 = sphi %s1334_s13, %s1586_s13   ;;  %s1296_s12 = sphi %s1332_s12, %s1585_s12  }
   0x3   : > { %p27_p1 = scmp.ge.s32.totalorder %s25_s15, 2  ;;  %p165_p2 = scmp.lt.s32.totalorder %s1304_s14, 3 }
   0x5   : > { %s1588_s15 = smov (%p27_p1, %s25_s15), 0  ;;  %p166_p3 = pnand %p984_p0, %p165_p2 }
   0x6   : > { %p200_p4 = scmp.lt.s32.totalorder (!%p166_p3), %s1296_s12, 1  ;;  %s1402_s27 = smov (!%p166_p3), 0  }
   0x7   : > { %169 = sbr.rel (%p166_p3) target bundleno = 314 (0x13a), region = 32 }
   0xc   : > { %s1590_s12 = smov (!%p200_p4, %s1296_s12), 1  ;;  %vm233_vm0 = vsmask.f32 3328  ;;  %vm234_vm1 = vsmask.f32 7440 }
   0xd   : > { %s1207_s16 = smul.u32 48, %s1590_s12  ;;  %s211_s19 = scalar_lea.vmem %s1581_s2, %s1590_s12  ;;  %vm1373_vm2 = vmor %vm233_vm0, %vm234_vm1 }
   0xe   : > { %s1083_s20 = sshll.u32 %s1590_s12, 5  ;;  %v1353_v0 = vld [vmem:[%s211_s19] ss:$0 sm:$0xff] }
   0xf   : > { %s1358_s23 = scalar_lea.vmem %s1579_s0, %s1207_s16  ;;  %s1363_s26 = scalar_lea.vmem %s1582_s3, %s1083_s20 }
  0x10   : > { %v222_v1 = vld [vmem:[%s1358_s23] sm:$0xf]  ;;  %v223_v2 = vld [vmem:[%s1358_s23 + $0x4] sm:$0xf]  ;;  %v224_v3 = vld [vmem:[%s1358_s23 + $0x8] sm:$0xf] }
  0x11   : > { %v237_v4 = vshrl.u32 %v222_v1, 16  ;;  %v240_v5 = vshll.u32 %v222_v1, 16  ;;  %v246_v6 = vshll.u32 %v223_v2, 16  ;;  %v250_v7 = vshrl.u32 %v223_v2, 16  ;;  %v225_v8 = vld [vmem:[%s1358_s23 + $0xc] sm:$0xf] }
  0x12   : > { %v256_v9 = vshll.u32 %v224_v3, 16  ;;  %v260_v10 = vshrl.u32 %v224_v3, 16  ;;  %v266_v11 = vshll.u32 %v225_v8, 16  ;;  %v270_v12 = vshrl.u32 %v225_v8, 16  ;;  %v226_v13 = vld [vmem:[%s1358_s23 + $0x10] sm:$0xf] }
  0x13   : > { %v239_v14 = vrot.slane %v237_v4, 4  ;;  %v242_v15 = vrot.slane %v240_v5, 5  ;;  %v248_v16 = vrot.slane %v246_v6, 5  ;;  %v252_v17 = vrot.slane %v250_v7, 4  ;;  %v227_v18 = vld [vmem:[%s1358_s23 + $0x14] sm:$0xf] }
  0x14   : > { %v258_v19 = vrot.slane %v256_v9, 5  ;;  %v262_v20 = vrot.slane %v260_v10, 4  ;;  %v268_v21 = vrot.slane %v266_v11, 5  ;;  %v272_v22 = vrot.slane %v270_v12, 4  ;;  %v228_v32 = vld [vmem:[%s1358_s23 + $0x18] sm:$0xf] }
  0x15   : > { %v243_v23 = vor.u32 %v242_v15, %v239_v14  ;;  %v253_v24 = vor.u32 %v252_v17, %v248_v16  ;;  %v276_v25 = vshll.u32 %v226_v13, 16  ;;  %v280_v26 = vshrl.u32 %v226_v13, 16  ;;  %v229_v41 = vld [vmem:[%s1358_s23 + $0x1c] sm:$0xf]  ;;  %v230_v46 = vld [vmem:[%s1358_s23 + $0x20] sm:$0xf] }
  0x16   : > { %v263_v28 = vor.u32 %v262_v20, %v258_v19  ;;  %v273_v29 = vor.u32 %v272_v22, %v268_v21  ;;  %v286_v30 = vshll.u32 %v227_v18, 16  ;;  %v290_v31 = vshrl.u32 %v227_v18, 16  ;;  %v231_v51 = vld [vmem:[%s1358_s23 + $0x24] sm:$0xf]  ;;  %v232_v60 = vld [vmem:[%s1358_s23 + $0x28] sm:$0x1] }
  0x17   : > { %v244_v33 = vrot.slane %v243_v23, 4  ;;  %v254_v34 = vrot.slane %v253_v24, 4  ;;  %v278_v35 = vrot.slane %v276_v25, 5  ;;  %v282_v36 = vrot.slane %v280_v26, 4 }
  0x18   : > { %v264_v37 = vrot.slane %v263_v28, 4  ;;  %v274_v38 = vrot.slane %v273_v29, 4  ;;  %v288_v39 = vrot.slane %v286_v30, 5  ;;  %v292_v40 = vrot.slane %v290_v31, 4 }
  0x19   : > { %v249_v42 = vsel %vm1373_vm2, %v244_v33, %v248_v16  ;;  %v259_v43 = vsel %vm1373_vm2, %v254_v34, %v258_v19  ;;  %v283_v44 = vor.u32 %v282_v36, %v278_v35  ;;  %v296_v45 = vshll.u32 %v228_v32, 16 }
  0x1a   : > { %350 = vst [vmem:[#allocation2] sm:$0xf] %v249_v42  ;;  %351 = vst [vmem:[#allocation2 + $0x4] sm:$0xf] %v259_v43  ;;  %v269_v47 = vsel %vm1373_vm2, %v264_v37, %v268_v21  ;;  %v279_v48 = vsel %vm1373_vm2, %v274_v38, %v278_v35  ;;  %v293_v49 = vor.u32 %v292_v40, %v288_v39  ;;  %v300_v50 = vshrl.u32 %v228_v32, 16 }
  0x1b   : > { %352 = vst [vmem:[#allocation2 + $0x8] sm:$0xf] %v269_v47  ;;  %353 = vst [vmem:[#allocation2 + $0xc] sm:$0xf] %v279_v48  ;;  %v284_v52 = vrot.slane %v283_v44, 4  ;;  %v298_v53 = vrot.slane %v296_v45, 5 }
  0x1c   : > { %v306_v54 = vshll.u32 %v229_v41, 16  ;;  %v310_v55 = vshrl.u32 %v229_v41, 16  ;;  %v294_v56 = vrot.slane %v293_v49, 4  ;;  %v302_v57 = vrot.slane %v300_v50, 4 }
  0x1d   : > { %v316_v58 = vshll.u32 %v230_v46, 16  ;;  %v320_v59 = vshrl.u32 %v230_v46, 16  ;;  %v289_v61 = vsel %vm1373_vm2, %v284_v52, %v288_v39  ;;  %v326_v1 = vshll.u32 %v231_v51, 16 }
  0x1e   : > { %v308_v62 = vrot.slane %v306_v54, 5  ;;  %v312_v63 = vrot.slane %v310_v55, 4  ;;  %354 = vst [vmem:[#allocation2 + $0x10] sm:$0xf] %v289_v61  ;;  %v299_v2 = vsel %vm1373_vm2, %v294_v56, %v298_v53  ;;  %v303_v3 = vor.u32 %v302_v57, %v298_v53 }
  0x1f   : > { %v318_v4 = vrot.slane %v316_v58, 5  ;;  %v322_v5 = vrot.slane %v320_v59, 4  ;;  %355 = vst [vmem:[#allocation2 + $0x14] sm:$0xf] %v299_v2  ;;  %v328_v7 = vrot.slane %v326_v1, 5  ;;  %v330_v8 = vshrl.u32 %v231_v51, 16 }
  0x20   : > { %v313_v6 = vor.u32 %v312_v63, %v308_v62  ;;  %v336_v9 = vshll.u32 %v232_v60, 16  ;;  %v304_v10 = vrot.slane %v303_v3, 4 }
  0x21   : > { %v323_v11 = vor.u32 %v322_v5, %v318_v4  ;;  %v332_v13 = vrot.slane %v330_v8, 4 }
  0x22   : > { %v314_v12 = vrot.slane %v313_v6, 4  ;;  %v309_v14 = vsel %vm1373_vm2, %v304_v10, %v308_v62  ;;  %v338_v18 = vrot.slane %v336_v9, 5 }
  0x23   : > { %v324_v15 = vrot.slane %v323_v11, 4  ;;  %356 = vst [vmem:[#allocation2 + $0x18] sm:$0xf] %v309_v14  ;;  %v333_v17 = vor.u32 %v332_v13, %v328_v7 }
  0x24   : > { %v319_v16 = vsel %vm1373_vm2, %v314_v12, %v318_v4 }
  0x25   : > { %357 = vst [vmem:[#allocation2 + $0x1c] sm:$0xf] %v319_v16  ;;  %v329_v19 = vsel %vm1373_vm2, %v324_v15, %v328_v7  ;;  %v334_v20 = vrot.slane %v333_v17, 4 }
  0x26   : > { %358 = vst [vmem:[#allocation2 + $0x20] sm:$0xf] %v329_v19 }
  0x27   : > { %v339_v21 = vsel %vm1373_vm2, %v334_v20, %v338_v18 }
  0x28   : > { %359 = vst [vmem:[#allocation2 + $0x24] sm:$0xf] %v339_v21 }
  0x29 LB: >> { %v1242_v22 = vld [vmem:[%s1580_s1 + $0x78] sm:$0xff]   ;;  %v1310_v23 = vmov 0.0   ;;  %v1244_v25 = vld [vmem:[%s1580_s1 + $0x70] sm:$0xff]   ;;  %vm1311_vm3 = vmmov 0   ;;  %v1246_v27 = vld [vmem:[%s1580_s1 + $0x68] sm:$0xff]   ;;  %s988_s11 = sshll.u32 %s1308_s27, 4  ;;  %s1308_s27 = sphi %s1402_s27, %s366_s27  }
  0x2a   : >> { %1127 = vmatprep.subr.bf16.mxu0 %v1310_v23  ;;  %1147 = vmatprep.subr.bf16.mxu1 %v1310_v23  ;;  %v1243_v24 = vld [vmem:[%s1580_s1 + $0x38] sm:$0xff]   ;;  %v1245_v26 = vld [vmem:[%s1580_s1 + $0x30] sm:$0xff]   ;;  %v1247_v28 = vld [vmem:[%s1580_s1 + $0x28] sm:$0xff]   ;;  %s368_s17 = sshra.s32 %s988_s11, 3  ;;  %s366_s27 = sadd.s32 1, %s1308_s27  }
  0x2b   : >> { %1128 = vmatpush3.bf16.msra.mxu0 %v1242_v22  ;;  %1143 = vmatprep.mubr.msk.bf16.mxu0 %vm1311_vm3, %v1310_v23  ;;  %v1248_v29 = vld [vmem:[%s1580_s1 + $0x60] sm:$0xff]   ;;  %s1446_s22 = sshll.u32 %s368_s17, 2  ;;  %v1250_v31 = vld [vmem:[%s1580_s1 + $0x58] sm:$0xff]   ;;  %v1252_v33 = vld [vmem:[%s1580_s1 + $0x50] sm:$0xff]   ;;  %s601_s17 = sadd.s32 16, %s988_s11 }
  0x2c   : >> { %1148 = vmatpush3.bf16.msra.mxu1 %v1243_v24  ;;  %1129 = vmatprep.subr.bf16.mxu0 %v1310_v23  ;;  %v1249_v30 = vld [vmem:[%s1580_s1 + $0x20] sm:$0xff]   ;;  %v1251_v32 = vld [vmem:[%s1580_s1 + $0x18] sm:$0xff]   ;;  %s391_s30 = scalar_lea.vmem [#allocation2], %s1446_s22  ;;  %s371_s4 = scalar_lea.vmem %s1358_s23, %s1446_s22  ;;  %v1253_v34 = vld [vmem:[%s1580_s1 + $0x10] sm:$0xff]  }
  0x2d   : >> { %1149 = vmatprep.subr.bf16.mxu1 %v1310_v23  ;;  %1163 = vmatprep.mubr.msk.bf16.mxu1 %vm1311_vm3, %v1310_v23  ;;  %v1254_v35 = vld [vmem:[%s1580_s1 + $0x48] sm:$0xff]   ;;  %v1256_v37 = vld [vmem:[%s1580_s1 + $0x40] sm:$0xff]   ;;  %s602_s24 = sshra.s32 %s601_s17, 3  ;;  %v1260_v41 = vld [vmem:[%s1580_s1 + $0xb8] sm:$0xff]   ;;  %p363_p5 = scmp.ge.s32.totalorder %s366_s27, 4  }
  0x2e   : >> { %v1255_v36 = vld [vmem:[%s1580_s1 + $0x8] sm:$0xff]   ;;  %v1257_v38 = vld [vmem:[%s1580_s1] sm:$0xff]   ;;  %s1488_s28 = sshll.u32 %s602_s24, 2  ;;  %v1261_v42 = vld [vmem:[%s1580_s1 + $0xf8] sm:$0xff]  }
  0x2f   : >> { %1130 = vmatpush3.bf16.msra.mxu0 %v1244_v25  ;;  %v1258_v39 = vld [vmem:[%s391_s30] sm:$0xff]   ;;  %s605_s30 = scalar_lea.vmem %s1358_s23, %s1488_s28  ;;  %v1262_v43 = vld [vmem:[%s1580_s1 + $0xb0] sm:$0xff]   ;;  %s723_s9 = scalar_lea.vmem [#allocation2], %s1488_s28  ;;  %v1264_v45 = vld [vmem:[%s1580_s1 + $0xa8] sm:$0xff]  }
  0x30   : >> { %1150 = vmatpush3.bf16.msra.mxu1 %v1245_v26  ;;  %1131 = vmatprep.subr.bf16.mxu0 %v1310_v23  ;;  %v1259_v40 = vld [vmem:[%s371_s4] sm:$0xff]   ;;  %v1263_v44 = vld [vmem:[%s1580_s1 + $0xf0] sm:$0xff]   ;;  %v1265_v46 = vld [vmem:[%s1580_s1 + $0xe8] sm:$0xff]   ;;  %s861_s28 = scalar_lea.vmem %s1363_s26, %s1446_s22 }
  0x31   : >> { %1151 = vmatprep.subr.bf16.mxu1 %v1310_v23  ;;  %v1266_v47 = vld [vmem:[%s1580_s1 + $0xa0] sm:$0xff]   ;;  %v1268_v49 = vld [vmem:[%s1580_s1 + $0x98] sm:$0xff]   ;;  %v1270_v51 = vld [vmem:[%s1580_s1 + $0x90] sm:$0xff]  }
  0x32   : >> { %v1267_v48 = vld [vmem:[%s1580_s1 + $0xe0] sm:$0xff]   ;;  %v1269_v50 = vld [vmem:[%s1580_s1 + $0xd8] sm:$0xff]   ;;  %v1271_v52 = vld [vmem:[%s1580_s1 + $0xd0] sm:$0xff]  }
  0x33   : >> { %1132 = vmatpush3.bf16.msra.mxu0 %v1246_v27  ;;  %v1272_v53 = vld [vmem:[%s1580_s1 + $0x88] sm:$0xff]   ;;  %v1274_v55 = vld [vmem:[%s1580_s1 + $0x80] sm:$0xff]  }
  0x34   : >> { %1152 = vmatpush3.bf16.msra.mxu1 %v1247_v28  ;;  %1133 = vmatprep.subr.bf16.mxu0 %v1310_v23  ;;  %v1273_v54 = vld [vmem:[%s1580_s1 + $0xc8] sm:$0xff]   ;;  %v1275_v56 = vld [vmem:[%s1580_s1 + $0xc0] sm:$0xff]  }
  0x35   : >> { %1153 = vmatprep.subr.bf16.mxu1 %v1310_v23  ;;  %v1276_v57 = vld [vmem:[%s605_s30] sm:$0xff]  }
  0x36   : >> { %v1277_v58 = vld [vmem:[%s723_s9] sm:$0xff]  }
  0x37   : >> { %1134 = vmatpush3.bf16.msra.mxu0 %v1248_v29 }
  0x38   : >> { %1154 = vmatpush3.bf16.msra.mxu1 %v1249_v30  ;;  %1135 = vmatprep.subr.bf16.mxu0 %v1310_v23 }
  0x39   : >> { %1155 = vmatprep.subr.bf16.mxu1 %v1310_v23 }
  0x3b   : >> { %1136 = vmatpush3.bf16.msra.mxu0 %v1250_v31 }
  0x3c   : >> { %1156 = vmatpush3.bf16.msra.mxu1 %v1251_v32  ;;  %1137 = vmatprep.subr.bf16.mxu0 %v1310_v23 }
  0x3d   : >> { %1157 = vmatprep.subr.bf16.mxu1 %v1310_v23 }
  0x3f   : >> { %1138 = vmatpush3.bf16.msra.mxu0 %v1252_v33 }
  0x40   : >> { %1158 = vmatpush3.bf16.msra.mxu1 %v1253_v34  ;;  %1139 = vmatprep.subr.bf16.mxu0 %v1310_v23 }
  0x41   : >> { %1159 = vmatprep.subr.bf16.mxu1 %v1310_v23 }
  0x43   : >> { %1140 = vmatpush3.bf16.msra.mxu0 %v1254_v35 }
  0x44   : >> { %1160 = vmatpush3.bf16.msra.mxu1 %v1255_v36  ;;  %1141 = vmatprep.subr.bf16.mxu0 %v1310_v23 }
  0x45   : >> { %1161 = vmatprep.subr.bf16.mxu1 %v1310_v23 }
  0x47   : >> { %1142 = vmatpush3.bf16.msra.mxu0 %v1256_v37 }
  0x48   : >> { %1162 = vmatpush3.bf16.msra.mxu1 %v1257_v38  ;;  %1167 = vmatprep.subr.bf16.mxu0 %v1310_v23 }
  0x49   : >> { %1187 = vmatprep.subr.bf16.mxu1 %v1310_v23 }
  0x4a   : >> { %1144 = vmatmul.mubr.bf16.vlgmr.msra.gmra.mxu0 %v1258_v39 }
  0x4b   : >> { %1164 = vmatmul.mubr.bf16.vlgmr.msra.gmra.mxu1 %v1259_v40  ;;  %1168 = vmatpush3.bf16.msra.mxu0 %v1260_v41 }
  0x4c   : >> { %1188 = vmatpush3.bf16.msra.mxu1 %v1261_v42  ;;  %1169 = vmatprep.subr.bf16.mxu0 %v1310_v23 }
  0x4d   : >> { %1189 = vmatprep.subr.bf16.mxu1 %v1310_v23  ;;  %1183 = vmatprep.mubr.msk.bf16.mxu0 %vm1311_vm3, %v1310_v23 }
  0x4e   : >> { %1203 = vmatprep.mubr.msk.bf16.mxu1 %vm1311_vm3, %v1310_v23 }
  0x4f   : >> { %1170 = vmatpush3.bf16.msra.mxu0 %v1262_v43 }
  0x50   : >> { %1190 = vmatpush3.bf16.msra.mxu1 %v1263_v44  ;;  %1171 = vmatprep.subr.bf16.mxu0 %v1310_v23 }
  0x51   : >> { %1191 = vmatprep.subr.bf16.mxu1 %v1310_v23 }
  0x53   : >> { %1172 = vmatpush3.bf16.msra.mxu0 %v1264_v45 }
  0x54   : >> { %1192 = vmatpush3.bf16.msra.mxu1 %v1265_v46  ;;  %1173 = vmatprep.subr.bf16.mxu0 %v1310_v23 }
  0x55   : >> { %1193 = vmatprep.subr.bf16.mxu1 %v1310_v23 }
  0x57   : >> { %1174 = vmatpush3.bf16.msra.mxu0 %v1266_v47 }
  0x58   : >> { %1194 = vmatpush3.bf16.msra.mxu1 %v1267_v48  ;;  %1175 = vmatprep.subr.bf16.mxu0 %v1310_v23 }
  0x59   : >> { %1195 = vmatprep.subr.bf16.mxu1 %v1310_v23 }
  0x5b   : >> { %1176 = vmatpush3.bf16.msra.mxu0 %v1268_v49 }
  0x5c   : >> { %1196 = vmatpush3.bf16.msra.mxu1 %v1269_v50  ;;  %1177 = vmatprep.subr.bf16.mxu0 %v1310_v23 }
  0x5d   : >> { %1197 = vmatprep.subr.bf16.mxu1 %v1310_v23 }
  0x5f   : >> { %1178 = vmatpush3.bf16.msra.mxu0 %v1270_v51 }
  0x60   : >> { %1198 = vmatpush3.bf16.msra.mxu1 %v1271_v52  ;;  %1179 = vmatprep.subr.bf16.mxu0 %v1310_v23 }
  0x61   : >> { %1199 = vmatprep.subr.bf16.mxu1 %v1310_v23 }
  0x63   : >> { %1180 = vmatpush3.bf16.msra.mxu0 %v1272_v53 }
  0x64   : >> { %1200 = vmatpush3.bf16.msra.mxu1 %v1273_v54  ;;  %1181 = vmatprep.subr.bf16.mxu0 %v1310_v23 }
  0x65   : >> { %1201 = vmatprep.subr.bf16.mxu1 %v1310_v23 }
  0x67   : >> { %1182 = vmatpush3.bf16.msra.mxu0 %v1274_v55 }
  0x68   : >> { %1202 = vmatpush3.bf16.msra.mxu1 %v1275_v56 }
  0x6a   : >> { %1184 = vmatmul.mubr.bf16.vlgmr.msra.gmra.mxu0 %v1276_v57 }
  0x6b   : >> { %1204 = vmatmul.mubr.bf16.vlgmr.msra.gmra.mxu1 %v1277_v58 }
 0x10a   : >> { %v499_v59 = vpop.f32.mrf.mxu0 }
 0x10b   : >> { %v594_v60 = vpop.f32.mrf.mxu1 }
 0x10c   : >> { %v1145_v61 = vpop.f32.mrf.mxu0  ;;  %v595_v4 = vadd.f32 %v594_v60, %v499_v59 }
 0x10d   : >> { %v1165_v62 = vpop.f32.mrf.mxu1 }
 0x10e   : >> { %v502_v63 = vpop.f32.mrf.mxu0 }
 0x10f   : >> { %v597_v1 = vpop.f32.mrf.mxu1 }
 0x110   : >> { %v1146_v2 = vpop.f32.mrf.mxu0  ;;  %v598_v9 = vadd.f32 %v597_v1, %v502_v63 }
 0x111   : >> { %v1166_v3 = vpop.f32.mrf.mxu1 }
 0x12a   : >> { %v713_v5 = vpop.f32.mrf.mxu0 }
 0x12b   : >> { %v720_v6 = vadd.f32 %v713_v5, %v595_v4  ;;  %v831_v7 = vpop.f32.mrf.mxu1 }
 0x12c   : >> { %v1185_v8 = vpop.f32.mrf.mxu0 }
 0x12d   : >> { %v838_v10 = vadd.f32 %v831_v7, %v720_v6  ;;  %v1205_v11 = vpop.f32.mrf.mxu1 }
 0x12e   : >> { %v716_v12 = vpop.f32.mrf.mxu0 }
 0x12f   : >> { %v721_v13 = vadd.f32 %v716_v12, %v598_v9  ;;  %v834_v14 = vpop.f32.mrf.mxu1  ;;  %v846_v16 = vadd.f32 %v1353_v0, %v838_v10 }
 0x130   : >> { %v1186_v15 = vpop.f32.mrf.mxu0 }
 0x131   : >> { %v839_v17 = vadd.f32 %v834_v14, %v721_v13  ;;  %v1206_v18 = vpop.f32.mrf.mxu1  ;;  %v848_v20 = vmax.f32 %v846_v16, 0.0 }
 0x133   : >> { %v847_v19 = vadd.f32 %v1353_v0, %v839_v17 }
 0x135   : >> { %v849_v21 = vmax.f32 %v847_v19, 0.0  ;;  %365 = sbr.rel (!%p363_p5) target bundleno = 41 (0x29), region = 80 }
 0x137   : >> { %v1089_v22 = vpack.c.bf16 %v849_v21, %v848_v20 }
 0x139   : >> { %1090 = vst [vmem:[%s861_s28] sm:$0xff] %v1089_v22  }
 0x13a PF: > { %s13_s14 = sadd.s32 1, %s1304_s14   ;;  %s1585_s12 = smov %s1300_s13 }
 0x13b   : > { %p10_p6 = scmp.ge.s32.totalorder %s13_s14, 4   ;;  %s1586_s13 = smov %s1588_s15 }
 0x13d   :  { %12 = sbr.rel (!%p10_p6) target bundleno = 2 (0x2), region = 91 }

// kernel: _lambda_.16
= control target key start
LH: loop header
LB: loop body
LE: loop exit
PB: predicated region body
PF: predicated region fallthrough
CT: control target
= control target key end

     0   :  { %s639_s12 = smov 0   ;;  %s641_s13 = smov 0   ;;  %s721_s0 = inlined_call_operand.vmem [shape: bf16[2,1,48,128], index: 0, kind: input, shape index: {}]   ;;  %s722_s1 = inlined_call_operand.vmem [shape: bf16[1,128,128], index: 1, kind: input, shape index: {}]   ;;  %s723_s2 = inlined_call_operand.vmem [shape: f32[2,1,128], index: 2, kind: input, shape index: {}]   ;;  %s724_s3 = inlined_call_operand.vmem [shape: bf16[2,1,32,128], index: 3, kind: output, shape index: {}]  }
   0x1   :  { %s643_s14 = smov 0  }
   0x2 LB: > { %s25_s15 = sadd.s32 1, %s607_s13  ;;  %p483_p0 = scmp.ge.s32.totalorder %s611_s14, 1  ;;  %s611_s14 = sphi %s643_s14, %s13_s14   ;;  %s607_s13 = sphi %s641_s13, %s726_s13   ;;  %s603_s12 = sphi %s639_s12, %s725_s12  }
   0x3   : > { %p27_p1 = scmp.ge.s32.totalorder %s25_s15, 2  ;;  %p165_p2 = scmp.lt.s32.totalorder %s611_s14, 3 }
   0x5   : > { %s728_s15 = smov (%p27_p1, %s25_s15), 0  ;;  %p166_p3 = pnand %p483_p0, %p165_p2 }
   0x6   : > { %p200_p4 = scmp.lt.s32.totalorder (!%p166_p3), %s603_s12, 1  ;;  %s670_s27 = smov (!%p166_p3), 0  }
   0x7   : > { %169 = sbr.rel (%p166_p3) target bundleno = 253 (0xfd), region = 32 }
   0xc   : > { %s730_s12 = smov (!%p200_p4, %s603_s12), 1 }
   0xd   : > { %s541_s16 = smul.u32 24, %s730_s12  ;;  %s211_s19 = scalar_lea.vmem %s723_s2, %s730_s12 }
   0xe   : > { %s504_s20 = sshll.u32 %s730_s12, 4  ;;  %v489_v0 = vld [vmem:[%s211_s19] ss:$0 sm:$0xff] }
   0xf   : > { %s663_s23 = scalar_lea.vmem %s721_s0, %s541_s16  ;;  %s668_s26 = scalar_lea.vmem %s724_s3, %s504_s20 }
  0x10 LB: >> { %v576_v1 = vld [vmem:[%s722_s1 + $0x38] sm:$0xff]   ;;  %v617_v2 = vmov 0.0   ;;  %v577_v3 = vld [vmem:[%s722_s1 + $0x30] sm:$0xff]   ;;  %vm618_vm0 = vmmov 0   ;;  %s487_s5 = sshll.u32 %s615_s27, 4  ;;  %v578_v4 = vld [vmem:[%s722_s1 + $0x28] sm:$0xff]   ;;  %s615_s27 = sphi %s670_s27, %s228_s27  }
  0x11   : >> { %521 = vmatprep.subr.bf16.mxu0 %v617_v2  ;;  %537 = vmatprep.mubr.msk.bf16.mxu0 %vm618_vm0, %v617_v2  ;;  %s682_s6 = sshra.s32 %s487_s5, 3  ;;  %v579_v5 = vld [vmem:[%s722_s1 + $0x20] sm:$0xff]   ;;  %v580_v6 = vld [vmem:[%s722_s1 + $0x18] sm:$0xff]   ;;  %v581_v7 = vld [vmem:[%s722_s1 + $0x10] sm:$0xff]   ;;  %s228_s27 = sadd.s32 1, %s615_s27  }
  0x12   : >> { %522 = vmatpush3.bf16.msra.mxu0 %v576_v1  ;;  %s488_s7 = sshll.u32 %s682_s6, 2  ;;  %v582_v8 = vld [vmem:[%s722_s1 + $0x8] sm:$0xff]   ;;  %v583_v9 = vld [vmem:[%s722_s1] sm:$0xff]   ;;  %p225_p5 = scmp.ge.s32.totalorder %s228_s27, 2  }
  0x13   : >> { %523 = vmatprep.subr.bf16.mxu0 %v617_v2  ;;  %s233_s10 = scalar_lea.vmem %s663_s23, %s488_s7  ;;  %s366_s25 = scalar_lea.vmem %s668_s26, %s488_s7 }
  0x14   : >> { %v584_v10 = vld [vmem:[%s233_s10] sm:$0xff]  }
  0x16   : >> { %524 = vmatpush3.bf16.msra.mxu0 %v577_v3 }
  0x17   : >> { %525 = vmatprep.subr.bf16.mxu0 %v617_v2 }
  0x1a   : >> { %526 = vmatpush3.bf16.msra.mxu0 %v578_v4 }
  0x1b   : >> { %527 = vmatprep.subr.bf16.mxu0 %v617_v2 }
  0x1e   : >> { %528 = vmatpush3.bf16.msra.mxu0 %v579_v5 }
  0x1f   : >> { %529 = vmatprep.subr.bf16.mxu0 %v617_v2 }
  0x22   : >> { %530 = vmatpush3.bf16.msra.mxu0 %v580_v6 }
  0x23   : >> { %531 = vmatprep.subr.bf16.mxu0 %v617_v2 }
  0x26   : >> { %532 = vmatpush3.bf16.msra.mxu0 %v581_v7 }
  0x27   : >> { %533 = vmatprep.subr.bf16.mxu0 %v617_v2 }
  0x2a   : >> { %534 = vmatpush3.bf16.msra.mxu0 %v582_v8 }
  0x2b   : >> { %535 = vmatprep.subr.bf16.mxu0 %v617_v2 }
  0x2e   : >> { %536 = vmatpush3.bf16.msra.mxu0 %v583_v9 }
  0x31   : >> { %538 = vmatmul.mubr.bf16.vlgmr.msra.gmra.mxu0 %v584_v10 }
  0xf1   : >> { %v346_v11 = vpop.f32.mrf.mxu0 }
  0xf2   : >> { %v347_v13 = vadd.f32 %v489_v0, %v346_v11 }
  0xf3   : >> { %v539_v12 = vpop.f32.mrf.mxu0 }
  0xf4   : >> { %v353_v17 = vmax.f32 %v347_v13, 0.0 }
  0xf5   : >> { %v349_v14 = vpop.f32.mrf.mxu0 }
  0xf6   : >> { %v350_v15 = vadd.f32 %v489_v0, %v349_v14 }
  0xf7   : >> { %v540_v16 = vpop.f32.mrf.mxu0 }
  0xf8   : >> { %v354_v18 = vmax.f32 %v350_v15, 0.0  ;;  %227 = sbr.rel (!%p225_p5) target bundleno = 16 (0x10), region = 74 }
  0xfa   : >> { %v510_v19 = vpack.c.bf16 %v354_v18, %v353_v17 }
  0xfc   : >> { %511 = vst [vmem:[%s366_s25] sm:$0xff] %v510_v19  }
  0xfd PF: > { %s13_s14 = sadd.s32 1, %s611_s14   ;;  %s725_s12 = smov %s607_s13 }
  0xfe   : > { %p10_p6 = scmp.ge.s32.totalorder %s13_s14, 4   ;;  %s726_s13 = smov %s728_s15 }
 0x100   :  { %12 = sbr.rel (!%p10_p6) target bundleno = 2 (0x2), region = 85 }

// kernel: _lambda_.14
= control target key start
LH: loop header
LB: loop body
LE: loop exit
PB: predicated region body
PF: predicated region fallthrough
CT: control target
= control target key end

     0   :  { %s1653_s12 = smov 0   ;;  %s1655_s13 = smov 0   ;;  %s1932_s0 = inlined_call_operand.vmem [shape: bf16[2,1,64,256], index: 0, kind: input, shape index: {}]   ;;  %s1933_s1 = inlined_call_operand.vmem [shape: bf16[4,256,128], index: 1, kind: input, shape index: {}]   ;;  %s1934_s2 = inlined_call_operand.vmem [shape: f32[2,1,128], index: 2, kind: input, shape index: {}]   ;;  %s1935_s3 = inlined_call_operand.vmem [shape: bf16[2,1,32,128], index: 3, kind: output, shape index: {}]  }
   0x1   :  { %s1657_s14 = smov 0  }
   0x2 LB: > { %s25_s15 = sadd.s32 1, %s1623_s13  ;;  %p1206_p0 = scmp.ge.s32.totalorder %s1627_s14, 1  ;;  %s1627_s14 = sphi %s1657_s14, %s13_s14   ;;  %s1623_s13 = sphi %s1655_s13, %s1939_s13   ;;  %s1619_s12 = sphi %s1653_s12, %s1938_s12  }
   0x3   : > { %p27_p1 = scmp.ge.s32.totalorder %s25_s15, 2  ;;  %p165_p2 = scmp.lt.s32.totalorder %s1627_s14, 3 }
   0x5   : > { %s1941_s15 = smov (%p27_p1, %s25_s15), 0  ;;  %p166_p3 = pnand %p1206_p0, %p165_p2 }
   0x6   : > { %p200_p4 = scmp.lt.s32.totalorder (!%p166_p3), %s1619_s12, 1  ;;  %s1711_s27 = smov (!%p166_p3), 0  }
   0x7   : > { %169 = sbr.rel (%p166_p3) target bundleno = 309 (0x135), region = 32 }
   0xc   : > { %s1943_s12 = smov (!%p200_p4, %s1619_s12), 1  ;;  %vm229_vm0 = vsmask.f32 3328  ;;  %vm230_vm1 = vsmask.f32 7440 }
   0xd   : > { %s1392_s16 = sshll.u32 %s1943_s12, 6  ;;  %s211_s19 = scalar_lea.vmem %s1934_s2, %s1943_s12  ;;  %vm1694_vm2 = vmor %vm229_vm0, %vm230_vm1 }
   0xe   : > { %s1677_s22 = scalar_lea.vmem %s1932_s0, %s1392_s16  ;;  %s1393_s23 = sshll.u32 %s1943_s12, 4  ;;  %v1679_v0 = vld [vmem:[%s211_s19] ss:$0 sm:$0xff] }
   0xf   : > { %s1684_s26 = scalar_lea.vmem %s1935_s3, %s1393_s23  ;;  %v222_v1 = vld [vmem:[%s1677_s22] sm:$0xff]  ;;  %v223_v2 = vld [vmem:[%s1677_s22 + $0x8] sm:$0xff]  ;;  %v224_v3 = vld [vmem:[%s1677_s22 + $0x10] sm:$0xff] }
  0x10   : > { %v233_v4 = vshrl.u32 %v222_v1, 16  ;;  %v236_v5 = vshll.u32 %v222_v1, 16  ;;  %v242_v6 = vshll.u32 %v223_v2, 16  ;;  %v246_v7 = vshrl.u32 %v223_v2, 16  ;;  %v225_v8 = vld [vmem:[%s1677_s22 + $0x18] sm:$0xff]  ;;  %v226_v13 = vld [vmem:[%s1677_s22 + $0x20] sm:$0xff] }
  0x11   : > { %v252_v9 = vshll.u32 %v224_v3, 16  ;;  %v256_v10 = vshrl.u32 %v224_v3, 16  ;;  %v262_v11 = vshll.u32 %v225_v8, 16  ;;  %v266_v12 = vshrl.u32 %v225_v8, 16  ;;  %v227_v18 = vld [vmem:[%s1677_s22 + $0x28] sm:$0xff] }
  0x12   : > { %v235_v14 = vrot.slane %v233_v4, 4  ;;  %v238_v15 = vrot.slane %v236_v5, 5  ;;  %v244_v16 = vrot.slane %v242_v6, 5  ;;  %v248_v17 = vrot.slane %v246_v7, 4  ;;  %v228_v32 = vld [vmem:[%s1677_s22 + $0x30] sm:$0x11] }
  0x13   : > { %v254_v19 = vrot.slane %v252_v9, 5  ;;  %v258_v20 = vrot.slane %v256_v10, 4  ;;  %v264_v21 = vrot.slane %v262_v11, 5  ;;  %v268_v22 = vrot.slane %v266_v12, 4 }
  0x14   : > { %v239_v23 = vor.u32 %v238_v15, %v235_v14  ;;  %v249_v24 = vor.u32 %v248_v17, %v244_v16  ;;  %v272_v25 = vshll.u32 %v226_v13, 16  ;;  %v276_v26 = vshrl.u32 %v226_v13, 16 }
  0x15   : > { %v259_v28 = vor.u32 %v258_v20, %v254_v19  ;;  %v269_v29 = vor.u32 %v268_v22, %v264_v21  ;;  %v282_v30 = vshll.u32 %v227_v18, 16  ;;  %v286_v31 = vshrl.u32 %v227_v18, 16 }
  0x16   : > { %v240_v33 = vrot.slane %v239_v23, 4  ;;  %v250_v34 = vrot.slane %v249_v24, 4  ;;  %v274_v35 = vrot.slane %v272_v25, 5  ;;  %v278_v36 = vrot.slane %v276_v26, 4 }
  0x17   : > { %v260_v37 = vrot.slane %v259_v28, 4  ;;  %v270_v38 = vrot.slane %v269_v29, 4  ;;  %v284_v39 = vrot.slane %v282_v30, 5  ;;  %v288_v40 = vrot.slane %v286_v31, 4 }
  0x18   : > { %v245_v41 = vsel %vm1694_vm2, %v240_v33, %v244_v16  ;;  %v255_v42 = vsel %vm1694_vm2, %v250_v34, %v254_v19  ;;  %v279_v43 = vor.u32 %v278_v36, %v274_v35  ;;  %v292_v44 = vshll.u32 %v228_v32, 16 }
  0x19   : > { %302 = vst [vmem:[#allocation2] sm:$0xff] %v245_v41  ;;  %303 = vst [vmem:[#allocation2 + $0x8] sm:$0xff] %v255_v42  ;;  %v265_v45 = vsel %vm1694_vm2, %v260_v37, %v264_v21  ;;  %v275_v46 = vsel %vm1694_vm2, %v270_v38, %v274_v35  ;;  %v289_v47 = vor.u32 %v288_v40, %v284_v39 }
  0x1a   : > { %304 = vst [vmem:[#allocation2 + $0x10] sm:$0xff] %v265_v45  ;;  %305 = vst [vmem:[#allocation2 + $0x18] sm:$0xff] %v275_v46  ;;  %v280_v48 = vrot.slane %v279_v43, 4  ;;  %v294_v49 = vrot.slane %v292_v44, 5 }
  0x1b   : > { %v290_v50 = vrot.slane %v289_v47, 4 }
  0x1c   : > { %v285_v51 = vsel %vm1694_vm2, %v280_v48, %v284_v39 }
  0x1d   : > { %306 = vst [vmem:[#allocation2 + $0x20] sm:$0xff] %v285_v51  ;;  %v295_v52 = vsel %vm1694_vm2, %v290_v50, %v294_v49 }
  0x1e   : > { %307 = vst [vmem:[#allocation2 + $0x28] sm:$0xff] %v295_v52 }
  0x1f LB: >> { %v1525_v53 = vld [vmem:[%s1933_s1 + $0xf8] sm:$0xff]   ;;  %v1529_v57 = vld [vmem:[%s1933_s1 + $0xf0] sm:$0xff]   ;;  %v1533_v61 = vld [vmem:[%s1933_s1 + $0xe8] sm:$0xff]   ;;  %s1798_s16 = sshll.u32 %s1631_s27, 4  ;;  %s314_s27 = sadd.s32 1, %s1631_s27   ;;  %s1631_s27 = sphi %s1711_s27, %s314_s27  }
  0x20   : >> { %v1526_v54 = vld [vmem:[%s1933_s1 + $0x78] sm:$0xff]   ;;  %1405 = vmatprep.subr.bf16.mxu0 %v1525_v53  ;;  %v1530_v58 = vld [vmem:[%s1933_s1 + $0x70] sm:$0xff]   ;;  %v1534_v62 = vld [vmem:[%s1933_s1 + $0x68] sm:$0xff]   ;;  %s320_s30 = scalar_lea.vmem %s1677_s22, %s1798_s16  ;;  %s356_s4 = scalar_lea.vmem [#allocation2], %s1798_s16 }
  0x21   : >> { %v1527_v55 = vld [vmem:[%s1933_s1 + $0xb8] sm:$0xff]   ;;  %1427 = vmatprep.subr.bf16.mxu1 %v1526_v54  ;;  %v1531_v59 = vld [vmem:[%s1933_s1 + $0xb0] sm:$0xff]   ;;  %v1535_v63 = vld [vmem:[%s1933_s1 + $0xa8] sm:$0xff]   ;;  %s686_s7 = sadd.s32 16, %s1798_s16  ;;  %p311_p5 = scmp.ge.s32.totalorder %s314_s27, 2  }
  0x22   : >> { %v1528_v56 = vld [vmem:[%s1933_s1 + $0x38] sm:$0xff]   ;;  %1406 = vmatpush3.bf16.msra.mxu0 %v1527_v55  ;;  %v1532_v60 = vld [vmem:[%s1933_s1 + $0x30] sm:$0xff]   ;;  %v1536_v1 = vld [vmem:[%s1933_s1 + $0x28] sm:$0xff]   ;;  %s687_s18 = sshra.s32 %s686_s7, 3 }
  0x23   : >> { %1428 = vmatpush3.bf16.msra.mxu1 %v1528_v56  ;;  %1407 = vmatprep.subr.bf16.mxu0 %v1529_v57  ;;  %v1537_v2 = vld [vmem:[%s1933_s1 + $0xe0] sm:$0xff]   ;;  %v1541_v6 = vld [vmem:[%s1933_s1 + $0xd8] sm:$0xff]   ;;  %v1545_v10 = vld [vmem:[%s1933_s1 + $0xd0] sm:$0xff]   ;;  %s1396_s28 = sshll.u32 %s687_s18, 3  ;;  %s1080_s18 = sshra.s32 %s1798_s16, 3 }
  0x24   : >> { %1429 = vmatprep.subr.bf16.mxu1 %v1530_v58  ;;  %v1538_v3 = vld [vmem:[%s1933_s1 + $0x60] sm:$0xff]   ;;  %v1542_v7 = vld [vmem:[%s1933_s1 + $0x58] sm:$0xff]   ;;  %v1546_v11 = vld [vmem:[%s1933_s1 + $0x50] sm:$0xff]   ;;  %s691_s8 = scalar_lea.vmem %s1677_s22, %s1396_s28  ;;  %s877_s17 = scalar_lea.vmem [#allocation2], %s1396_s28 }
  0x25   : >> { %v1539_v4 = vld [vmem:[%s1933_s1 + $0xa0] sm:$0xff]   ;;  %v1543_v8 = vld [vmem:[%s1933_s1 + $0x98] sm:$0xff]   ;;  %v1547_v12 = vld [vmem:[%s1933_s1 + $0x90] sm:$0xff]   ;;  %s1389_s19 = sshll.u32 %s1080_s18, 2 }
  0x26   : >> { %1408 = vmatpush3.bf16.msra.mxu0 %v1531_v59  ;;  %v1540_v5 = vld [vmem:[%s1933_s1 + $0x20] sm:$0xff]   ;;  %v1544_v9 = vld [vmem:[%s1933_s1 + $0x18] sm:$0xff]   ;;  %v1548_v13 = vld [vmem:[%s1933_s1 + $0x10] sm:$0xff]   ;;  %s1083_s20 = scalar_lea.vmem %s1684_s26, %s1389_s19 }
  0x27   : >> { %1430 = vmatpush3.bf16.msra.mxu1 %v1532_v60  ;;  %1409 = vmatprep.subr.bf16.mxu0 %v1533_v61  ;;  %v1549_v14 = vld [vmem:[%s1933_s1 + $0xc8] sm:$0xff]   ;;  %v1553_v18 = vld [vmem:[%s1933_s1 + $0xc0] sm:$0xff]   ;;  %v1563_v26 = vld [vmem:[%s1933_s1 + $0x178] sm:$0xff]  }
  0x28   : >> { %1431 = vmatprep.subr.bf16.mxu1 %v1534_v62  ;;  %v1550_v15 = vld [vmem:[%s1933_s1 + $0x48] sm:$0xff]   ;;  %v1554_v19 = vld [vmem:[%s1933_s1 + $0x40] sm:$0xff]   ;;  %v1564_v27 = vld [vmem:[%s1933_s1 + $0x1f8] sm:$0xff]  }
  0x29   : >> { %v1551_v16 = vld [vmem:[%s1933_s1 + $0x88] sm:$0xff]   ;;  %v1555_v20 = vld [vmem:[%s1933_s1 + $0x80] sm:$0xff]   ;;  %v1565_v28 = vld [vmem:[%s1933_s1 + $0x138] sm:$0xff]  }
  0x2a   : >> { %1410 = vmatpush3.bf16.msra.mxu0 %v1535_v63  ;;  %v1552_v17 = vld [vmem:[%s1933_s1 + $0x8] sm:$0xff]   ;;  %v1556_v21 = vld [vmem:[%s1933_s1] sm:$0xff]   ;;  %v1566_v29 = vld [vmem:[%s1933_s1 + $0x1b8] sm:$0xff]  }
  0x2b   : >> { %1432 = vmatpush3.bf16.msra.mxu1 %v1536_v1  ;;  %1411 = vmatprep.subr.bf16.mxu0 %v1537_v2  ;;  %v1557_v22 = vld [vmem:[%s356_s4] ss:$8 sps:$4 sm:$0xff]   ;;  %v1559_v23 = vld [vmem:[%s356_s4 + $0x4] ss:$8 sps:$4 sm:$0xff]   ;;  %v1567_v30 = vld [vmem:[%s1933_s1 + $0x170] sm:$0xff]  }
  0x2c   : >> { %1433 = vmatprep.subr.bf16.mxu1 %v1538_v3  ;;  %v1560_v24 = vld [vmem:[%s320_s30] ss:$8 sps:$4 sm:$0xff]   ;;  %v1562_v25 = vld [vmem:[%s320_s30 + $0x4] ss:$8 sps:$4 sm:$0xff]   ;;  %530 = vmatprep.mubr.bf16.mxu0 %v1559_v23  ;;  %v1568_v31 = vld [vmem:[%s1933_s1 + $0x1f0] sm:$0xff]  }
  0x2d   : >> { %677 = vmatprep.mubr.bf16.mxu1 %v1562_v25  ;;  %v1569_v32 = vld [vmem:[%s1933_s1 + $0x130] sm:$0xff]   ;;  %v1571_v34 = vld [vmem:[%s1933_s1 + $0x168] sm:$0xff]   ;;  %v1575_v38 = vld [vmem:[%s1933_s1 + $0x160] sm:$0xff]  }
  0x2e   : >> { %1412 = vmatpush3.bf16.msra.mxu0 %v1539_v4  ;;  %v1570_v33 = vld [vmem:[%s1933_s1 + $0x1b0] sm:$0xff]   ;;  %v1572_v35 = vld [vmem:[%s1933_s1 + $0x1e8] sm:$0xff]   ;;  %v1576_v39 = vld [vmem:[%s1933_s1 + $0x1e0] sm:$0xff]  }
  0x2f   : >> { %1434 = vmatpush3.bf16.msra.mxu1 %v1540_v5  ;;  %1413 = vmatprep.subr.bf16.mxu0 %v1541_v6  ;;  %v1573_v36 = vld [vmem:[%s1933_s1 + $0x128] sm:$0xff]   ;;  %v1577_v40 = vld [vmem:[%s1933_s1 + $0x120] sm:$0xff]   ;;  %v1579_v42 = vld [vmem:[%s1933_s1 + $0x158] sm:$0xff]  }
  0x30   : >> { %1435 = vmatprep.subr.bf16.mxu1 %v1542_v7  ;;  %v1574_v37 = vld [vmem:[%s1933_s1 + $0x1a8] sm:$0xff]   ;;  %v1578_v41 = vld [vmem:[%s1933_s1 + $0x1a0] sm:$0xff]   ;;  %v1580_v43 = vld [vmem:[%s1933_s1 + $0x1d8] sm:$0xff]  }
  0x31   : >> { %v1581_v44 = vld [vmem:[%s1933_s1 + $0x118] sm:$0xff]   ;;  %v1583_v46 = vld [vmem:[%s1933_s1 + $0x150] sm:$0xff]   ;;  %v1587_v50 = vld [vmem:[%s1933_s1 + $0x148] sm:$0xff]  }
  0x32   : >> { %1414 = vmatpush3.bf16.msra.mxu0 %v1543_v8  ;;  %v1582_v45 = vld [vmem:[%s1933_s1 + $0x198] sm:$0xff]   ;;  %v1584_v47 = vld [vmem:[%s1933_s1 + $0x1d0] sm:$0xff]   ;;  %v1588_v51 = vld [vmem:[%s1933_s1 + $0x1c8] sm:$0xff]  }
  0x33   : >> { %1436 = vmatpush3.bf16.msra.mxu1 %v1544_v9  ;;  %1415 = vmatprep.subr.bf16.mxu0 %v1545_v10  ;;  %v1585_v48 = vld [vmem:[%s1933_s1 + $0x110] sm:$0xff]   ;;  %v1589_v52 = vld [vmem:[%s1933_s1 + $0x108] sm:$0xff]   ;;  %v1591_v54 = vld [vmem:[%s1933_s1 + $0x140] sm:$0xff]  }
  0x34   : >> { %1437 = vmatprep.subr.bf16.mxu1 %v1546_v11  ;;  %v1586_v49 = vld [vmem:[%s1933_s1 + $0x190] sm:$0xff]   ;;  %v1590_v53 = vld [vmem:[%s1933_s1 + $0x188] sm:$0xff]   ;;  %v1592_v55 = vld [vmem:[%s1933_s1 + $0x1c0] sm:$0xff]  }
  0x35   : >> { %v1593_v56 = vld [vmem:[%s1933_s1 + $0x100] sm:$0xff]  }
  0x36   : >> { %1416 = vmatpush3.bf16.msra.mxu0 %v1547_v12  ;;  %v1594_v57 = vld [vmem:[%s1933_s1 + $0x180] sm:$0xff]  }
  0x37   : >> { %1438 = vmatpush3.bf16.msra.mxu1 %v1548_v13  ;;  %1417 = vmatprep.subr.bf16.mxu0 %v1549_v14  ;;  %v1595_v58 = vld [vmem:[%s691_s8] ss:$8 sps:$4 sm:$0xff]   ;;  %v1597_v59 = vld [vmem:[%s691_s8 + $0x4] ss:$8 sps:$4 sm:$0xff]  }
  0x38   : >> { %1439 = vmatprep.subr.bf16.mxu1 %v1550_v15  ;;  %v1598_v60 = vld [vmem:[%s877_s17] ss:$8 sps:$4 sm:$0xff]   ;;  %v1600_v61 = vld [vmem:[%s877_s17 + $0x4] ss:$8 sps:$4 sm:$0xff]  }
  0x3a   : >> { %1418 = vmatpush3.bf16.msra.mxu0 %v1551_v16 }
  0x3b   : >> { %1440 = vmatpush3.bf16.msra.mxu1 %v1552_v17  ;;  %1419 = vmatprep.subr.bf16.mxu0 %v1553_v18 }
  0x3c   : >> { %1441 = vmatprep.subr.bf16.mxu1 %v1554_v19 }
  0x3e   : >> { %1420 = vmatpush3.bf16.msra.mxu0 %v1555_v20 }
  0x3f   : >> { %1442 = vmatpush3.bf16.msra.mxu1 %v1556_v21  ;;  %1449 = vmatprep.subr.bf16.mxu0 %v1563_v26 }
  0x40   : >> { %1471 = vmatprep.subr.bf16.mxu1 %v1564_v27 }
  0x41   : >> { %531 = vmatmul.mubr.bf16.vlgmr.msra.gmra.mxu0 %v1557_v22 }
  0x42   : >> { %678 = vmatmul.mubr.bf16.vlgmr.msra.gmra.mxu1 %v1560_v24  ;;  %1450 = vmatpush3.bf16.msra.mxu0 %v1565_v28 }
  0x43   : >> { %1472 = vmatpush3.bf16.msra.mxu1 %v1566_v29  ;;  %1451 = vmatprep.subr.bf16.mxu0 %v1567_v30 }
  0x44   : >> { %1473 = vmatprep.subr.bf16.mxu1 %v1568_v31  ;;  %865 = vmatprep.mubr.bf16.mxu0 %v1597_v59 }
  0x45   : >> { %1051 = vmatprep.mubr.bf16.mxu1 %v1600_v61 }
  0x46   : >> { %1452 = vmatpush3.bf16.msra.mxu0 %v1569_v32 }
  0x47   : >> { %1474 = vmatpush3.bf16.msra.mxu1 %v1570_v33  ;;  %1453 = vmatprep.subr.bf16.mxu0 %v1571_v34 }
  0x48   : >> { %1475 = vmatprep.subr.bf16.mxu1 %v1572_v35 }
  0x4a   : >> { %1454 = vmatpush3.bf16.msra.mxu0 %v1573_v36 }
  0x4b   : >> { %1476 = vmatpush3.bf16.msra.mxu1 %v1574_v37  ;;  %1455 = vmatprep.subr.bf16.mxu0 %v1575_v38 }
  0x4c   : >> { %1477 = vmatprep.subr.bf16.mxu1 %v1576_v39 }
  0x4e   : >> { %1456 = vmatpush3.bf16.msra.mxu0 %v1577_v40 }
  0x4f   : >> { %1478 = vmatpush3.bf16.msra.mxu1 %v1578_v41  ;;  %1457 = vmatprep.subr.bf16.mxu0 %v1579_v42 }
  0x50   : >> { %1479 = vmatprep.subr.bf16.mxu1 %v1580_v43 }
  0x52   : >> { %1458 = vmatpush3.bf16.msra.mxu0 %v1581_v44 }
  0x53   : >> { %1480 = vmatpush3.bf16.msra.mxu1 %v1582_v45  ;;  %1459 = vmatprep.subr.bf16.mxu0 %v1583_v46 }
  0x54   : >> { %1481 = vmatprep.subr.bf16.mxu1 %v1584_v47 }
  0x56   : >> { %1460 = vmatpush3.bf16.msra.mxu0 %v1585_v48 }
  0x57   : >> { %1482 = vmatpush3.bf16.msra.mxu1 %v1586_v49  ;;  %1461 = vmatprep.subr.bf16.mxu0 %v1587_v50 }
  0x58   : >> { %1483 = vmatprep.subr.bf16.mxu1 %v1588_v51 }
  0x5a   : >> { %1462 = vmatpush3.bf16.msra.mxu0 %v1589_v52 }
  0x5b   : >> { %1484 = vmatpush3.bf16.msra.mxu1 %v1590_v53  ;;  %1463 = vmatprep.subr.bf16.mxu0 %v1591_v54 }
  0x5c   : >> { %1485 = vmatprep.subr.bf16.mxu1 %v1592_v55 }
  0x5e   : >> { %1464 = vmatpush3.bf16.msra.mxu0 %v1593_v56 }
  0x5f   : >> { %1486 = vmatpush3.bf16.msra.mxu1 %v1594_v57 }
  0x61   : >> { %866 = vmatmul.mubr.bf16.vlgmr.msra.gmra.mxu0 %v1595_v58 }
  0x62   : >> { %1052 = vmatmul.mubr.bf16.vlgmr.msra.gmra.mxu1 %v1598_v60 }
 0x101   : >> { %v1421_v62 = vpop.f32.mrf.mxu0 }
 0x102   : >> { %v1443_v63 = vpop.f32.mrf.mxu1 }
 0x103   : >> { %v1422_v1 = vpop.f32.mrf.mxu0 }
 0x104   : >> { %v1444_v2 = vpop.f32.mrf.mxu1  ;;  %v1423_v6 = vadd.f32 %v1422_v1, %v1421_v62 }
 0x105   : >> { %v1424_v3 = vpop.f32.mrf.mxu0  ;;  %v1445_v7 = vadd.f32 %v1444_v2, %v1443_v63 }
 0x106   : >> { %v1446_v4 = vpop.f32.mrf.mxu1 }
 0x107   : >> { %v1425_v5 = vpop.f32.mrf.mxu0  ;;  %v680_v12 = vadd.f32 %v1445_v7, %v1423_v6 }
 0x108   : >> { %v1447_v8 = vpop.f32.mrf.mxu1  ;;  %v1426_v13 = vadd.f32 %v1425_v5, %v1424_v3 }
 0x109   : >> { %v1448_v14 = vadd.f32 %v1447_v8, %v1446_v4 }
 0x10b   : >> { %v683_v22 = vadd.f32 %v1448_v14, %v1426_v13 }
 0x121   : >> { %v1465_v9 = vpop.f32.mrf.mxu0 }
 0x122   : >> { %v1487_v10 = vpop.f32.mrf.mxu1 }
 0x123   : >> { %v1466_v11 = vpop.f32.mrf.mxu0 }
 0x124   : >> { %v1467_v15 = vadd.f32 %v1466_v11, %v1465_v9  ;;  %v1488_v16 = vpop.f32.mrf.mxu1 }
 0x125   : >> { %v1468_v17 = vpop.f32.mrf.mxu0  ;;  %v1489_v19 = vadd.f32 %v1488_v16, %v1487_v10 }
 0x126   : >> { %v874_v18 = vadd.f32 %v1467_v15, %v680_v12  ;;  %v1490_v20 = vpop.f32.mrf.mxu1 }
 0x127   : >> { %v1469_v21 = vpop.f32.mrf.mxu0 }
 0x128   : >> { %v1060_v23 = vadd.f32 %v1489_v19, %v874_v18  ;;  %v1470_v24 = vadd.f32 %v1469_v21, %v1468_v17  ;;  %v1491_v25 = vpop.f32.mrf.mxu1 }
 0x129   : >> { %v1492_v27 = vadd.f32 %v1491_v25, %v1490_v20 }
 0x12a   : >> { %v875_v26 = vadd.f32 %v1470_v24, %v683_v22  ;;  %v1068_v28 = vadd.f32 %v1679_v0, %v1060_v23 }
 0x12c   : >> { %v1061_v29 = vadd.f32 %v1492_v27, %v875_v26  ;;  %v1070_v31 = vmax.f32 %v1068_v28, 0.0 }
 0x12e   : >> { %v1069_v30 = vadd.f32 %v1679_v0, %v1061_v29 }
 0x130   : >> { %v1071_v32 = vmax.f32 %v1069_v30, 0.0  ;;  %313 = sbr.rel (!%p311_p5) target bundleno = 31 (0x1f), region = 80 }
 0x132   : >> { %v1403_v33 = vpack.c.bf16 %v1071_v32, %v1070_v31 }
 0x134   : >> { %1404 = vst [vmem:[%s1083_s20] sm:$0xff] %v1403_v33  }
 0x135 PF: > { %s13_s14 = sadd.s32 1, %s1627_s14   ;;  %s1938_s12 = smov %s1623_s13 }
 0x136   : > { %p10_p6 = scmp.ge.s32.totalorder %s13_s14, 4   ;;  %s1939_s13 = smov %s1941_s15 }
 0x138   :  { %12 = sbr.rel (!%p10_p6) target bundleno = 2 (0x2), region = 91 }

// kernel: _lambda_.17
= control target key start
LH: loop header
LB: loop body
LE: loop exit
PB: predicated region body
PF: predicated region fallthrough
CT: control target
= control target key end

     0   :  { %s1523_s12 = smov 0   ;;  %s1525_s13 = smov 0   ;;  %s1778_s0 = inlined_call_operand.vmem [shape: bf16[2,1,80,32], index: 0, kind: input, shape index: {}]   ;;  %s1779_s1 = inlined_call_operand.vmem [shape: bf16[9,32,128], index: 1, kind: input, shape index: {}]   ;;  %s1780_s2 = inlined_call_operand.vmem [shape: f32[2,1,128], index: 2, kind: input, shape index: {}]   ;;  %s1781_s3 = inlined_call_operand.vmem [shape: bf16[2,1,32,128], index: 3, kind: output, shape index: {}]  }
   0x1   :  { %s1527_s14 = smov 0  }
   0x2 LB: > { %s25_s15 = sadd.s32 1, %s1491_s13  ;;  %p1211_p0 = scmp.ge.s32.totalorder %s1495_s14, 1  ;;  %s1495_s14 = sphi %s1527_s14, %s13_s14   ;;  %s1491_s13 = sphi %s1525_s13, %s1787_s13   ;;  %s1487_s12 = sphi %s1523_s12, %s1786_s12  }
   0x3   : > { %p27_p1 = scmp.ge.s32.totalorder %s25_s15, 2  ;;  %p165_p2 = scmp.lt.s32.totalorder %s1495_s14, 3 }
   0x5   : > { %s1789_s15 = smov (%p27_p1, %s25_s15), 0  ;;  %p166_p3 = pnand %p1211_p0, %p165_p2 }
   0x6   : > { %p200_p4 = scmp.lt.s32.totalorder (!%p166_p3), %s1487_s12, 1  ;;  %s1634_s27 = smov (!%p166_p3), 0  }
   0x7   : > { %169 = sbr.rel (%p166_p3) target bundleno = 288 (0x120), region = 32 }
   0xc   : > { %s1791_s12 = smov (!%p200_p4, %s1487_s12), 1  ;;  %vm231_vm0 = vsmask.f32 3328  ;;  %vm232_vm1 = vsmask.f32 7440  ;;  %vm326_vm2 = vcmask 257024  }
   0xd   : > { %s1407_s16 = smul.u32 40, %s1791_s12  ;;  %s211_s19 = scalar_lea.vmem %s1780_s2, %s1791_s12  ;;  %vm353_vm3 = vcmask 1042432   ;;  %vm354_vm4 = vcmask 1046532   ;;  %vm1564_vm5 = vmor %vm231_vm0, %vm232_vm1 }
   0xe   : > { %s1300_s20 = sshll.u32 %s1791_s12, 4  ;;  %v1544_v0 = vld [vmem:[%s211_s19] ss:$0 sm:$0xff]  ;;  %vm1589_vm6 = vmor %vm353_vm3, %vm354_vm4 }
   0xf   : > { %s1549_s23 = scalar_lea.vmem %s1778_s0, %s1407_s16  ;;  %s1554_s26 = scalar_lea.vmem %s1781_s3, %s1300_s20 }
  0x10   : > { %v222_v1 = vld [vmem:[%s1549_s23] sm:$0xf]  ;;  %v223_v2 = vld [vmem:[%s1549_s23 + $0x4] sm:$0xf]  ;;  %v224_v3 = vld [vmem:[%s1549_s23 + $0x8] sm:$0xf] }
  0x11   : > { %v235_v4 = vshrl.u32 %v222_v1, 16  ;;  %v238_v5 = vshll.u32 %v222_v1, 16  ;;  %v244_v6 = vshll.u32 %v223_v2, 16  ;;  %v248_v7 = vshrl.u32 %v223_v2, 16  ;;  %v225_v8 = vld [vmem:[%s1549_s23 + $0xc] sm:$0xf] }
  0x12   : > { %v254_v9 = vshll.u32 %v224_v3, 16  ;;  %v258_v10 = vshrl.u32 %v224_v3, 16  ;;  %v264_v11 = vshll.u32 %v225_v8, 16  ;;  %v268_v12 = vshrl.u32 %v225_v8, 16  ;;  %v226_v13 = vld [vmem:[%s1549_s23 + $0x10] sm:$0xf] }
  0x13   : > { %v237_v14 = vrot.slane %v235_v4, 4  ;;  %v240_v15 = vrot.slane %v238_v5, 5  ;;  %v246_v16 = vrot.slane %v244_v6, 5  ;;  %v250_v17 = vrot.slane %v248_v7, 4  ;;  %v227_v18 = vld [vmem:[%s1549_s23 + $0x14] sm:$0xf] }
  0x14   : > { %v256_v19 = vrot.slane %v254_v9, 5  ;;  %v260_v20 = vrot.slane %v258_v10, 4  ;;  %v266_v21 = vrot.slane %v264_v11, 5  ;;  %v270_v22 = vrot.slane %v268_v12, 4  ;;  %v228_v32 = vld [vmem:[%s1549_s23 + $0x18] sm:$0xf] }
  0x15   : > { %v241_v23 = vor.u32 %v240_v15, %v237_v14  ;;  %v251_v24 = vor.u32 %v250_v17, %v246_v16  ;;  %v274_v25 = vshll.u32 %v226_v13, 16  ;;  %v278_v26 = vshrl.u32 %v226_v13, 16  ;;  %v229_v41 = vld [vmem:[%s1549_s23 + $0x1c] sm:$0xf]  ;;  %v230_v46 = vld [vmem:[%s1549_s23 + $0x20] sm:$0x1] }
  0x16   : > { %v261_v28 = vor.u32 %v260_v20, %v256_v19  ;;  %v271_v29 = vor.u32 %v270_v22, %v266_v21  ;;  %v284_v30 = vshll.u32 %v227_v18, 16  ;;  %v288_v31 = vshrl.u32 %v227_v18, 16  ;;  %v335_v47 = vld [vmem:[%s1549_s23] sm:$0xe]  ;;  %v336_v52 = vld [vmem:[%s1549_s23 + $0x4] sm:$0xf] }
  0x17   : > { %v242_v33 = vrot.slane %v241_v23, 4  ;;  %v252_v34 = vrot.slane %v251_v24, 4  ;;  %v276_v35 = vrot.slane %v274_v25, 5  ;;  %v280_v36 = vrot.slane %v278_v26, 4  ;;  %v337_v53 = vld [vmem:[%s1549_s23 + $0x8] sm:$0xf] }
  0x18   : > { %v262_v37 = vrot.slane %v261_v28, 4  ;;  %v272_v38 = vrot.slane %v271_v29, 4  ;;  %v286_v39 = vrot.slane %v284_v30, 5  ;;  %v290_v40 = vrot.slane %v288_v31, 4  ;;  %v338_v58 = vld [vmem:[%s1549_s23 + $0xc] sm:$0xf] }
  0x19   : > { %v247_v42 = vsel %vm1564_vm5, %v242_v33, %v246_v16  ;;  %v257_v43 = vsel %vm1564_vm5, %v252_v34, %v256_v19  ;;  %v281_v44 = vor.u32 %v280_v36, %v276_v35  ;;  %v294_v45 = vshll.u32 %v228_v32, 16  ;;  %v339_v1 = vld [vmem:[%s1549_s23 + $0x10] sm:$0xf]  ;;  %v340_v6 = vld [vmem:[%s1549_s23 + $0x14] sm:$0xf] }
  0x1a   : > { %327 = vst.msk [vmem:[#allocation2] sm:$0xf] %vm326_vm2, %v247_v42  ;;  %328 = vst.msk [vmem:[#allocation2 + $0x4] sm:$0xf] %vm326_vm2, %v257_v43  ;;  %v267_v48 = vsel %vm1564_vm5, %v262_v37, %v266_v21  ;;  %v277_v49 = vsel %vm1564_vm5, %v272_v38, %v276_v35  ;;  %v291_v50 = vor.u32 %v290_v40, %v286_v39  ;;  %v298_v51 = vshrl.u32 %v228_v32, 16 }
  0x1b   : > { %329 = vst.msk [vmem:[#allocation2 + $0x8] sm:$0xf] %vm326_vm2, %v267_v48  ;;  %330 = vst.msk [vmem:[#allocation2 + $0xc] sm:$0xf] %vm326_vm2, %v277_v49  ;;  %v282_v54 = vrot.slane %v281_v44, 4  ;;  %v296_v55 = vrot.slane %v294_v45, 5 }
  0x1c   : > { %v304_v56 = vshll.u32 %v229_v41, 16  ;;  %v308_v57 = vshrl.u32 %v229_v41, 16  ;;  %v292_v59 = vrot.slane %v291_v50, 4  ;;  %v300_v60 = vrot.slane %v298_v51, 4  ;;  %v341_v11 = vld [vmem:[%s1549_s23 + $0x18] sm:$0xf] }
  0x1d   : > { %v314_v61 = vshll.u32 %v230_v46, 16  ;;  %v1215_v63 = vrot.slane %v335_v47, 9  ;;  %v287_v2 = vsel %vm1564_vm5, %v282_v54, %v286_v39  ;;  %v358_v5 = vrot.slane %v336_v52, 5  ;;  %v342_v20 = vld [vmem:[%s1549_s23 + $0x1c] sm:$0xf] }
  0x1e   : > { %v306_v3 = vrot.slane %v304_v56, 5  ;;  %v310_v4 = vrot.slane %v308_v57, 4  ;;  %331 = vst.msk [vmem:[#allocation2 + $0x10] sm:$0xf] %vm326_vm2, %v287_v2  ;;  %v297_v7 = vsel %vm1564_vm5, %v292_v59, %v296_v55  ;;  %v301_v8 = vor.u32 %v300_v60, %v296_v55  ;;  %v343_v25 = vld [vmem:[%s1549_s23 + $0x20] sm:$0x1] }
  0x1f   : > { %v316_v9 = vrot.slane %v314_v61, 5  ;;  %v361_v10 = vrot.slane %v337_v53, 5  ;;  %332 = vst.msk [vmem:[#allocation2 + $0x14] sm:$0xf] %vm326_vm2, %v297_v7  ;;  %v359_v13 = vsel %vm1589_vm6, %v1215_v63, %v358_v5  ;;  %v360_v14 = vrot.slane %v358_v5, 4 }
  0x20   : > { %v311_v12 = vor.u32 %v310_v4, %v306_v3  ;;  %v364_v15 = vrot.slane %v338_v58, 5  ;;  %v302_v16 = vrot.slane %v301_v8, 4  ;;  %389 = vst.msk [vmem:[#allocation3] sm:$0xf] %vm326_vm2, %v359_v13  ;;  %v367_v18 = vrot.slane %v339_v1, 5 }
  0x21   : > { %v363_v17 = vrot.slane %v361_v10, 4  ;;  %v370_v19 = vrot.slane %v340_v6, 5  ;;  %v362_v22 = vsel %vm1589_vm6, %v360_v14, %v361_v10  ;;  %v373_v24 = vrot.slane %v341_v11, 5 }
  0x22   : > { %v312_v21 = vrot.slane %v311_v12, 4  ;;  %v366_v23 = vrot.slane %v364_v15, 4  ;;  %v307_v26 = vsel %vm1564_vm5, %v302_v16, %v306_v3  ;;  %390 = vst.msk [vmem:[#allocation3 + $0x4] sm:$0xf] %vm326_vm2, %v362_v22  ;;  %v369_v29 = vrot.slane %v367_v18, 4 }
  0x23   : > { %v365_v28 = vsel %vm1589_vm6, %v363_v17, %v364_v15  ;;  %v372_v30 = vrot.slane %v370_v19, 4  ;;  %333 = vst.msk [vmem:[#allocation2 + $0x18] sm:$0xf] %vm326_vm2, %v307_v26  ;;  %v375_v33 = vrot.slane %v373_v24, 4  ;;  %v376_v34 = vrot.slane %v342_v20, 5 }
  0x24   : > { %v317_v31 = vsel %vm1564_vm5, %v312_v21, %v316_v9  ;;  %391 = vst.msk [vmem:[#allocation3 + $0x8] sm:$0xf] %vm326_vm2, %v365_v28  ;;  %v368_v32 = vsel %vm1589_vm6, %v366_v23, %v367_v18  ;;  %v371_v35 = vsel %vm1589_vm6, %v369_v29, %v370_v19  ;;  %v379_v37 = vrot.slane %v343_v25, 5 }
  0x25   : > { %334 = vst.msk [vmem:[#allocation2 + $0x1c] sm:$0xf] %vm326_vm2, %v317_v31  ;;  %392 = vst.msk [vmem:[#allocation3 + $0xc] sm:$0xf] %vm326_vm2, %v368_v32  ;;  %v374_v36 = vsel %vm1589_vm6, %v372_v30, %v373_v24  ;;  %v377_v27 = vsel %vm1589_vm6, %v375_v33, %v376_v34  ;;  %v378_v38 = vrot.slane %v376_v34, 4 }
  0x26   : > { %393 = vst.msk [vmem:[#allocation3 + $0x10] sm:$0xf] %vm326_vm2, %v371_v35  ;;  %394 = vst.msk [vmem:[#allocation3 + $0x14] sm:$0xf] %vm326_vm2, %v374_v36 }
  0x27   : > { %395 = vst.msk [vmem:[#allocation3 + $0x18] sm:$0xf] %vm326_vm2, %v377_v27  ;;  %v380_v39 = vsel %vm1589_vm6, %v378_v38, %v379_v37 }
  0x28   : > { %396 = vst.msk [vmem:[#allocation3 + $0x1c] sm:$0xf] %vm326_vm2, %v380_v39 }
  0x29 LB: >> { %v1442_v40 = vld [vmem:[%s1779_s1 + $0x18] sm:$0xff]   ;;  %v1501_v41 = vmov 0.0   ;;  %v1443_v42 = vld [vmem:[%s1779_s1 + $0x8] sm:$0xff]   ;;  %v1444_v43 = vld [vmem:[%s1779_s1 + $0x10] sm:$0xff]   ;;  %vm1502_vm7 = vmmov 0   ;;  %s1653_s7 = sshll.u32 %s1499_s27, 4  ;;  %s1499_s27 = sphi %s1634_s27, %s403_s27  }
  0x2a   : >> { %1335 = vmatprep.subr.bf16.mxu0 %v1501_v41  ;;  %1343 = vmatprep.subr.bf16.mxu1 %v1501_v41  ;;  %v1445_v44 = vld [vmem:[%s1779_s1] sm:$0xff]   ;;  %s405_s10 = sshra.s32 %s1653_s7, 3  ;;  %v1448_v45 = vld [vmem:[%s1779_s1 + $0x28] sm:$0xff]   ;;  %vm441_vm8 = vcmask 261120   ;;  %s619_s19 = sadd.s32 16, %s1653_s7  ;;  %v1449_v48 = vld [vmem:[%s1779_s1 + $0x38] sm:$0xff]  }
  0x2b   : >> { %1336 = vmatpush3.bf16.msra.mxu0 %v1442_v40  ;;  %1339 = vmatprep.mubr.msk.bf16.mxu0 %vm1502_vm7, %v1501_v41  ;;  %s1663_s11 = sshll.u32 %s405_s10, 2  ;;  %s620_s22 = sshra.s32 %s619_s19, 3  ;;  %v1450_v49 = vld [vmem:[%s1779_s1 + $0x20] sm:$0xff]   ;;  %v1451_v50 = vld [vmem:[%s1779_s1 + $0x30] sm:$0xff]   ;;  %v1454_v53 = vld [vmem:[%s1779_s1 + $0x48] sm:$0xff]  }
  0x2c   : >> { %1344 = vmatpush3.bf16.msra.mxu1 %v1443_v42  ;;  %1337 = vmatprep.subr.bf16.mxu0 %v1501_v41  ;;  %s408_s12 = scalar_lea.vmem %s1549_s23, %s1663_s11  ;;  %s416_s18 = scalar_lea.vmem [#allocation2], %s1663_s11  ;;  %v1455_v54 = vld [vmem:[%s1779_s1 + $0x58] sm:$0xff]   ;;  %v1456_v55 = vld [vmem:[%s1779_s1 + $0x40] sm:$0xff]   ;;  %v1457_v56 = vld [vmem:[%s1779_s1 + $0x50] sm:$0xff]  }
  0x2d   : >> { %1345 = vmatprep.subr.bf16.mxu1 %v1501_v41  ;;  %1347 = vmatprep.mubr.msk.bf16.mxu1 %vm1502_vm7, %v1501_v41  ;;  %v1446_v46 = vld [vmem:[%s416_s18] sm:$0xff]   ;;  %s1678_s24 = sshll.u32 %s620_s22, 2  ;;  %s548_s29 = scalar_lea.vmem [#allocation3], %s1663_s11  ;;  %v1460_v59 = vld [vmem:[%s1779_s1 + $0x68] sm:$0xff]   ;;  %v1461_v60 = vld [vmem:[%s1779_s1 + $0x78] sm:$0xff]  }
  0x2e   : >> { %v1447_v47 = vld [vmem:[%s408_s12] sm:$0xff]   ;;  %s623_s30 = scalar_lea.vmem %s1549_s23, %s1678_s24  ;;  %s838_s6 = sadd.s32 32, %s1653_s7  ;;  %v1463_v62 = vld [vmem:[%s1779_s1 + $0x70] sm:$0xff]   ;;  %v1466_v2 = vld [vmem:[%s1779_s1 + $0x88] sm:$0xff]  }
  0x2f   : >> { %1338 = vmatpush3.bf16.msra.mxu0 %v1444_v43  ;;  %v1452_v51 = vld [vmem:[%s548_s29] sm:$0xff]   ;;  %s839_s16 = sshra.s32 %s838_s6, 3  ;;  %s695_s7 = scalar_lea.vmem [#allocation2], %s1678_s24 }
  0x30   : >> { %1346 = vmatpush3.bf16.msra.mxu1 %v1445_v44  ;;  %1351 = vmatprep.subr.bf16.mxu0 %v1501_v41  ;;  %v1453_v52 = vld [vmem:[%s623_s30] sm:$0xff]   ;;  %s767_s17 = scalar_lea.vmem [#allocation3], %s1678_s24  ;;  %s1712_s20 = sshll.u32 %s839_s16, 2 }
  0x31   : >> { %1359 = vmatprep.subr.bf16.mxu1 %v1501_v41  ;;  %v1458_v57 = vld [vmem:[%s695_s7] sm:$0xff]   ;;  %s842_s24 = scalar_lea.vmem %s1549_s23, %s1712_s20  ;;  %s914_s4 = scalar_lea.vmem [#allocation2], %s1712_s20 }
  0x32   : >> { %1340 = vmatmul.mubr.msk.bf16.vlgmr.msra.gmra.mxu0 %vm441_vm8, %v1446_v46  ;;  %v1459_v58 = vld [vmem:[%s767_s17] sm:$0xff]   ;;  %s986_s8 = scalar_lea.vmem [#allocation3], %s1712_s20  ;;  %s1078_s18 = scalar_lea.vmem %s1554_s26, %s1663_s11 }
  0x33   : >> { %1348 = vmatmul.mubr.msk.bf16.vlgmr.msra.gmra.mxu1 %vm441_vm8, %v1447_v47  ;;  %1352 = vmatpush3.bf16.msra.mxu0 %v1448_v45  ;;  %v1462_v61 = vld [vmem:[%s1779_s1 + $0x60] sm:$0xff]   ;;  %s403_s27 = sadd.s32 1, %s1499_s27  }
  0x34   : >> { %1360 = vmatpush3.bf16.msra.mxu1 %v1449_v48  ;;  %1353 = vmatprep.subr.bf16.mxu0 %v1501_v41  ;;  %v1464_v63 = vld [vmem:[%s842_s24] sm:$0xff]   ;;  %p400_p5 = scmp.ge.s32.totalorder %s403_s27, 2  }
  0x35   : >> { %1361 = vmatprep.subr.bf16.mxu1 %v1501_v41  ;;  %1355 = vmatprep.mubr.msk.bf16.mxu0 %vm1502_vm7, %v1501_v41  ;;  %v1465_v1 = vld [vmem:[%s914_s4] sm:$0xff]  }
  0x36   : >> { %1363 = vmatprep.mubr.msk.bf16.mxu1 %vm1502_vm7, %v1501_v41  ;;  %v1467_v3 = vld [vmem:[%s1779_s1 + $0x80] sm:$0xff]  }
  0x37   : >> { %1354 = vmatpush3.bf16.msra.mxu0 %v1450_v49  ;;  %v1468_v4 = vld [vmem:[%s986_s8] sm:$0xff]  }
  0x38   : >> { %1362 = vmatpush3.bf16.msra.mxu1 %v1451_v50  ;;  %1367 = vmatprep.subr.bf16.mxu0 %v1501_v41 }
  0x39   : >> { %1375 = vmatprep.subr.bf16.mxu1 %v1501_v41 }
  0x3a   : >> { %1356 = vmatmul.mubr.msk.bf16.vlgmr.msra.gmra.mxu0 %vm441_vm8, %v1452_v51 }
  0x3b   : >> { %1364 = vmatmul.mubr.msk.bf16.vlgmr.msra.gmra.mxu1 %vm441_vm8, %v1453_v52  ;;  %1368 = vmatpush3.bf16.msra.mxu0 %v1454_v53 }
  0x3c   : >> { %1376 = vmatpush3.bf16.msra.mxu1 %v1455_v54  ;;  %1369 = vmatprep.subr.bf16.mxu0 %v1501_v41 }
  0x3d   : >> { %1377 = vmatprep.subr.bf16.mxu1 %v1501_v41  ;;  %1371 = vmatprep.mubr.msk.bf16.mxu0 %vm1502_vm7, %v1501_v41 }
  0x3e   : >> { %1379 = vmatprep.mubr.msk.bf16.mxu1 %vm1502_vm7, %v1501_v41 }
  0x3f   : >> { %1370 = vmatpush3.bf16.msra.mxu0 %v1456_v55 }
  0x40   : >> { %1378 = vmatpush3.bf16.msra.mxu1 %v1457_v56  ;;  %1383 = vmatprep.subr.bf16.mxu0 %v1501_v41 }
  0x41   : >> { %1391 = vmatprep.subr.bf16.mxu1 %v1501_v41 }
  0x42   : >> { %1372 = vmatmul.mubr.msk.bf16.vlgmr.msra.gmra.mxu0 %vm441_vm8, %v1458_v57 }
  0x43   : >> { %1380 = vmatmul.mubr.msk.bf16.vlgmr.msra.gmra.mxu1 %vm441_vm8, %v1459_v58  ;;  %1384 = vmatpush3.bf16.msra.mxu0 %v1460_v59 }
  0x44   : >> { %1392 = vmatpush3.bf16.msra.mxu1 %v1461_v60  ;;  %1385 = vmatprep.subr.bf16.mxu0 %v1501_v41 }
  0x45   : >> { %1393 = vmatprep.subr.bf16.mxu1 %v1501_v41  ;;  %1387 = vmatprep.mubr.msk.bf16.mxu0 %vm1502_vm7, %v1501_v41 }
  0x46   : >> { %1395 = vmatprep.mubr.msk.bf16.mxu1 %vm1502_vm7, %v1501_v41 }
  0x47   : >> { %1386 = vmatpush3.bf16.msra.mxu0 %v1462_v61 }
  0x48   : >> { %1394 = vmatpush3.bf16.msra.mxu1 %v1463_v62  ;;  %1399 = vmatprep.subr.bf16.mxu0 %v1501_v41 }
  0x4a   : >> { %1388 = vmatmul.mubr.msk.bf16.vlgmr.msra.gmra.mxu0 %vm441_vm8, %v1464_v63 }
  0x4b   : >> { %1396 = vmatmul.mubr.msk.bf16.vlgmr.msra.gmra.mxu1 %vm441_vm8, %v1465_v1  ;;  %1400 = vmatpush3.bf16.msra.mxu0 %v1466_v2 }
  0x4c   : >> { %1401 = vmatprep.subr.bf16.mxu0 %v1501_v41  ;;  %1403 = vmatprep.mubr.msk.bf16.mxu0 %vm1502_vm7, %v1501_v41 }
  0x4f   : >> { %1402 = vmatpush3.bf16.msra.mxu0 %v1467_v3 }
  0x52   : >> { %1404 = vmatmul.mubr.msk.bf16.vlgmr.msra.gmra.mxu0 %vm441_vm8, %v1468_v4 }
  0xf2   : >> { %v479_v5 = vpop.f32.mrf.mxu0 }
  0xf3   : >> { %v540_v6 = vpop.f32.mrf.mxu1 }
  0xf4   : >> { %v1341_v7 = vpop.f32.mrf.mxu0  ;;  %v541_v18 = vadd.f32 %v540_v6, %v479_v5 }
  0xf5   : >> { %v1349_v8 = vpop.f32.mrf.mxu1 }
  0xf6   : >> { %v482_v9 = vpop.f32.mrf.mxu0 }
  0xf7   : >> { %v543_v10 = vpop.f32.mrf.mxu1 }
  0xf8   : >> { %v1342_v11 = vpop.f32.mrf.mxu0  ;;  %v544_v24 = vadd.f32 %v543_v10, %v482_v9 }
  0xf9   : >> { %v1350_v12 = vpop.f32.mrf.mxu1 }
  0xfa   : >> { %v610_v13 = vpop.f32.mrf.mxu0 }
  0xfb   : >> { %v685_v14 = vpop.f32.mrf.mxu1  ;;  %v617_v21 = vadd.f32 %v610_v13, %v541_v18 }
  0xfc   : >> { %v1357_v15 = vpop.f32.mrf.mxu0 }
  0xfd   : >> { %v1365_v16 = vpop.f32.mrf.mxu1  ;;  %v692_v28 = vadd.f32 %v685_v14, %v617_v21 }
  0xfe   : >> { %v613_v17 = vpop.f32.mrf.mxu0 }
  0xff   : >> { %v688_v19 = vpop.f32.mrf.mxu1  ;;  %v618_v29 = vadd.f32 %v613_v17, %v544_v24 }
 0x100   : >> { %v1358_v20 = vpop.f32.mrf.mxu0 }
 0x101   : >> { %v1366_v22 = vpop.f32.mrf.mxu1  ;;  %v693_v35 = vadd.f32 %v688_v19, %v618_v29 }
 0x102   : >> { %v757_v23 = vpop.f32.mrf.mxu0 }
 0x103   : >> { %v829_v25 = vpop.f32.mrf.mxu1  ;;  %v764_v32 = vadd.f32 %v757_v23, %v692_v28 }
 0x104   : >> { %v1373_v26 = vpop.f32.mrf.mxu0 }
 0x105   : >> { %v1381_v30 = vpop.f32.mrf.mxu1  ;;  %v836_v27 = vadd.f32 %v829_v25, %v764_v32 }
 0x106   : >> { %v760_v31 = vpop.f32.mrf.mxu0 }
 0x107   : >> { %v832_v33 = vpop.f32.mrf.mxu1  ;;  %v765_v38 = vadd.f32 %v760_v31, %v693_v35 }
 0x108   : >> { %v1374_v34 = vpop.f32.mrf.mxu0 }
 0x109   : >> { %v1382_v36 = vpop.f32.mrf.mxu1  ;;  %v837_v44 = vadd.f32 %v832_v33, %v765_v38 }
 0x10a   : >> { %v904_v37 = vpop.f32.mrf.mxu0 }
 0x10b   : >> { %v976_v39 = vpop.f32.mrf.mxu1  ;;  %v911_v41 = vadd.f32 %v904_v37, %v836_v27 }
 0x10c   : >> { %v1389_v40 = vpop.f32.mrf.mxu0 }
 0x10d   : >> { %v1397_v42 = vpop.f32.mrf.mxu1  ;;  %v983_v47 = vadd.f32 %v976_v39, %v911_v41 }
 0x10e   : >> { %v907_v43 = vpop.f32.mrf.mxu0 }
 0x10f   : >> { %v979_v45 = vpop.f32.mrf.mxu1  ;;  %v912_v48 = vadd.f32 %v907_v43, %v837_v44 }
 0x110   : >> { %v1390_v46 = vpop.f32.mrf.mxu0 }
 0x111   : >> { %v1398_v49 = vpop.f32.mrf.mxu1  ;;  %v984_v53 = vadd.f32 %v979_v45, %v912_v48 }
 0x112   : >> { %v1048_v50 = vpop.f32.mrf.mxu0 }
 0x113   : >> { %v1055_v51 = vadd.f32 %v1048_v50, %v983_v47 }
 0x114   : >> { %v1405_v52 = vpop.f32.mrf.mxu0 }
 0x115   : >> { %v1063_v55 = vadd.f32 %v1544_v0, %v1055_v51 }
 0x116   : >> { %v1051_v54 = vpop.f32.mrf.mxu0 }
 0x117   : >> { %v1056_v56 = vadd.f32 %v1051_v54, %v984_v53  ;;  %v1065_v59 = vmax.f32 %v1063_v55, 0.0 }
 0x118   : >> { %v1406_v57 = vpop.f32.mrf.mxu0 }
 0x119   : >> { %v1064_v58 = vadd.f32 %v1544_v0, %v1056_v56 }
 0x11b   : >> { %v1066_v60 = vmax.f32 %v1064_v58, 0.0  ;;  %402 = sbr.rel (!%p400_p5) target bundleno = 41 (0x29), region = 90 }
 0x11d   : >> { %v1306_v61 = vpack.c.bf16 %v1066_v60, %v1065_v59 }
 0x11f   : >> { %1307 = vst [vmem:[%s1078_s18] sm:$0xff] %v1306_v61  }
 0x120 PF: > { %s13_s14 = sadd.s32 1, %s1495_s14   ;;  %s1786_s12 = smov %s1491_s13 }
 0x121   : > { %p10_p6 = scmp.ge.s32.totalorder %s13_s14, 4   ;;  %s1787_s13 = smov %s1789_s15 }
 0x123   :  { %12 = sbr.rel (!%p10_p6) target bundleno = 2 (0x2), region = 101 }

// kernel: _lambda_.18
= control target key start
LH: loop header
LB: loop body
LE: loop exit
PB: predicated region body
PF: predicated region fallthrough
CT: control target
= control target key end

     0   :  { %s565_s12 = smov 0   ;;  %s567_s13 = smov 0   ;;  %s622_s0 = inlined_call_operand.vmem [shape: bf16[2,1,144,24], index: 0, kind: input, shape index: {}]   ;;  %s623_s1 = inlined_call_operand.vmem [shape: bf16[1,24,128], index: 1, kind: input, shape index: {}]   ;;  %s624_s2 = inlined_call_operand.vmem [shape: f32[2,1,128], index: 2, kind: input, shape index: {}]   ;;  %s625_s3 = inlined_call_operand.vmem [shape: bf16[2,1,128,128], index: 3, kind: output, shape index: {}]  }
   0x1   :  { %s569_s14 = smov 0  }
   0x2 LB: > { %s25_s15 = sadd.s32 1, %s533_s13  ;;  %p438_p0 = scmp.ge.s32.totalorder %s537_s14, 1  ;;  %s537_s14 = sphi %s569_s14, %s13_s14   ;;  %s533_s13 = sphi %s567_s13, %s627_s13   ;;  %s529_s12 = sphi %s565_s12, %s626_s12  }
   0x3   : > { %p27_p1 = scmp.ge.s32.totalorder %s25_s15, 2  ;;  %p165_p2 = scmp.lt.s32.totalorder %s537_s14, 3 }
   0x5   : > { %s629_s15 = smov (%p27_p1, %s25_s15), 0  ;;  %p166_p3 = pnand %p438_p0, %p165_p2 }
   0x6   : > { %p200_p4 = scmp.lt.s32.totalorder (!%p166_p3), %s529_s12, 1  ;;  %s596_s27 = smov (!%p166_p3), 0  }
   0x7   : > { %169 = sbr.rel (%p166_p3) target bundleno = 229 (0xe5), region = 32 }
   0xc   : > { %s631_s12 = smov (!%p200_p4, %s529_s12), 1 }
   0xd   : > { %s473_s16 = smul.u32 72, %s631_s12  ;;  %s211_s19 = scalar_lea.vmem %s624_s2, %s631_s12 }
   0xe   : > { %s454_s20 = sshll.u32 %s631_s12, 6  ;;  %v444_v0 = vld [vmem:[%s211_s19] ss:$0 sm:$0xff] }
   0xf   : > { %s589_s23 = scalar_lea.vmem %s622_s0, %s473_s16  ;;  %s594_s26 = scalar_lea.vmem %s625_s3, %s454_s20 }
  0x10 LB: >> { %v508_v1 = vld [vmem:[%s623_s1 + $0x8] ss:$0 sps:$4 sm:$0xff]   ;;  %vm263_vm0 = vcmask 1043456   ;;  %v543_v2 = vmov 0.0   ;;  %vm544_vm1 = vmmov 0   ;;  %s442_s30 = sshll.u32 %s541_s27, 4  ;;  %s541_s27 = sphi %s596_s27, %s228_s27  }
  0x11   : >> { %465 = vmatprep.subr.bf16.mxu0 %v543_v2  ;;  %v265_v3 = vsel %vm263_vm0, %v508_v1, 0  ;;  %469 = vmatprep.mubr.msk.bf16.mxu0 %vm544_vm1, %v543_v2  ;;  %v509_v4 = vld [vmem:[%s623_s1] sm:$0xff]   ;;  %s230_s6 = sshra.s32 %s442_s30, 3  ;;  %vm259_vm2 = vcmask 195584   ;;  %s228_s27 = sadd.s32 1, %s541_s27  }
  0x12   : >> { %466 = vmatpush3.bf16.msra.mxu0 %v265_v3  ;;  %s443_s7 = sshll.u32 %s230_s6, 2  ;;  %p225_p5 = scmp.ge.s32.totalorder %s228_s27, 8  }
  0x13   : >> { %467 = vmatprep.subr.bf16.mxu0 %v543_v2  ;;  %s233_s8 = scalar_lea.vmem %s589_s23, %s443_s7  ;;  %s321_s9 = scalar_lea.vmem %s594_s26, %s443_s7 }
  0x14   : >> { %v510_v5 = vld [vmem:[%s233_s8] sm:$0xff]  }
  0x16   : >> { %468 = vmatpush3.bf16.msra.mxu0 %v509_v4 }
  0x19   : >> { %470 = vmatmul.mubr.msk.bf16.vlgmr.msra.gmra.mxu0 %vm259_vm2, %v510_v5 }
  0xd9   : >> { %v301_v6 = vpop.f32.mrf.mxu0 }
  0xda   : >> { %v302_v8 = vadd.f32 %v444_v0, %v301_v6 }
  0xdb   : >> { %v471_v7 = vpop.f32.mrf.mxu0 }
  0xdc   : >> { %v308_v12 = vmax.f32 %v302_v8, 0.0 }
  0xdd   : >> { %v304_v9 = vpop.f32.mrf.mxu0 }
  0xde   : >> { %v305_v10 = vadd.f32 %v444_v0, %v304_v9 }
  0xdf   : >> { %v472_v11 = vpop.f32.mrf.mxu0 }
  0xe0   : >> { %v309_v13 = vmax.f32 %v305_v10, 0.0  ;;  %227 = sbr.rel (!%p225_p5) target bundleno = 16 (0x10), region = 74 }
  0xe2   : >> { %v460_v14 = vpack.c.bf16 %v309_v13, %v308_v12 }
  0xe4   : >> { %461 = vst [vmem:[%s321_s9] sm:$0xff] %v460_v14  }
  0xe5 PF: > { %s13_s14 = sadd.s32 1, %s537_s14   ;;  %s626_s12 = smov %s533_s13 }
  0xe6   : > { %p10_p6 = scmp.ge.s32.totalorder %s13_s14, 4   ;;  %s627_s13 = smov %s629_s15 }
  0xe8   :  { %12 = sbr.rel (!%p10_p6) target bundleno = 2 (0x2), region = 85 }

// kernel: _lambda_.15
= control target key start
LH: loop header
LB: loop body
LE: loop exit
PB: predicated region body
PF: predicated region fallthrough
CT: control target
= control target key end

     0   :  { %s5002_s12 = smov 0   ;;  %s5004_s13 = smov 0   ;;  %s6120_s0 = inlined_call_operand.vmem [shape: bf16[2,1,144,64], index: 0, kind: input, shape index: {}]   ;;  %s6121_s1 = inlined_call_operand.vmem [shape: bf16[28,64,128], index: 1, kind: input, shape index: {}]   ;;  %s6122_s2 = inlined_call_operand.vmem [shape: f32[2,1,128], index: 2, kind: input, shape index: {}]   ;;  %s6123_s3 = inlined_call_operand.vmem [shape: bf16[2,1,32,128], index: 3, kind: output, shape index: {}]  }
   0x1   :  { %s5006_s14 = smov 0  }
   0x2 LB: > { %s25_s15 = sadd.s32 1, %s4970_s13  ;;  %p3871_p0 = scmp.ge.s32.totalorder %s4974_s14, 1  ;;  %s4974_s14 = sphi %s5006_s14, %s13_s14   ;;  %s4970_s13 = sphi %s5004_s13, %s6138_s13   ;;  %s4966_s12 = sphi %s5002_s12, %s6137_s12  }
   0x3   : > { %p27_p1 = scmp.ge.s32.totalorder %s25_s15, 2  ;;  %p165_p2 = scmp.lt.s32.totalorder %s4974_s14, 3 }
   0x5   : > { %s6140_s15 = smov (%p27_p1, %s25_s15), 0  ;;  %p166_p3 = pnand %p3871_p0, %p165_p2 }
   0x6   : > { %p200_p4 = scmp.lt.s32.totalorder (!%p166_p3), %s4966_s12, 1  ;;  %s5461_s27 = smov (!%p166_p3), 0  }
   0x7   : > { %169 = sbr.rel (%p166_p3) target bundleno = 584 (0x248), region = 32 }
   0xc   : > { %s6142_s12 = smov (!%p200_p4, %s4966_s12), 1  ;;  %vm239_vm0 = vsmask.f32 3328  ;;  %vm240_vm1 = vsmask.f32 7440  ;;  %vm422_vm2 = vcmask 519168  }
   0xd   : > { %s4775_s16 = smul.u32 72, %s6142_s12  ;;  %s211_s19 = scalar_lea.vmem %s6122_s2, %s6142_s12  ;;  %vm5043_vm3 = vmor %vm239_vm0, %vm240_vm1  ;;  %vm473_vm4 = vcmask 1042432   ;;  %vm474_vm5 = vcmask 1046532   ;;  %vm574_vm7 = vsmask.f32 2304  ;;  %vm811_vm10 = vcmask 1041408  }
   0xe   : > { %s4291_s20 = sshll.u32 %s6142_s12, 4  ;;  %v5023_v0 = vld [vmem:[%s211_s19] ss:$0 sm:$0xff]  ;;  %vm5100_vm6 = vmor %vm473_vm4, %vm474_vm5  ;;  %vm575_vm8 = vsmask.f32 6416  ;;  %vm812_vm11 = vcmask 1045508  }
   0xf   : > { %s5028_s23 = scalar_lea.vmem %s6120_s0, %s4775_s16  ;;  %s5033_s26 = scalar_lea.vmem %s6123_s3, %s4291_s20  ;;  %vm5185_vm9 = vmor %vm574_vm7, %vm575_vm8  ;;  %vm912_vm13 = vsmask.f32 1280  ;;  %vm913_vm14 = vsmask.f32 5392  ;;  %vm1149_vm0 = vcmask 1040384   ;;  %vm1150_vm1 = vcmask 1044484  }
  0x10   : > { %v222_v1 = vld [vmem:[%s5028_s23] sm:$0xf]  ;;  %v223_v2 = vld [vmem:[%s5028_s23 + $0x4] sm:$0xf]  ;;  %v224_v3 = vld [vmem:[%s5028_s23 + $0x8] sm:$0xf] }
  0x11   : > { %v243_v4 = vshrl.u32 %v222_v1, 16  ;;  %v246_v5 = vshll.u32 %v222_v1, 16  ;;  %v252_v6 = vshll.u32 %v223_v2, 16  ;;  %v256_v7 = vshrl.u32 %v223_v2, 16  ;;  %v225_v8 = vld [vmem:[%s5028_s23 + $0xc] sm:$0xf]  ;;  %vm5241_vm12 = vmor %vm811_vm10, %vm812_vm11 }
  0x12   : > { %v262_v9 = vshll.u32 %v224_v3, 16  ;;  %v266_v10 = vshrl.u32 %v224_v3, 16  ;;  %v272_v11 = vshll.u32 %v225_v8, 16  ;;  %v276_v12 = vshrl.u32 %v225_v8, 16  ;;  %v226_v13 = vld [vmem:[%s5028_s23 + $0x10] sm:$0xf]  ;;  %vm5327_vm15 = vmor %vm912_vm13, %vm913_vm14 }
  0x13   : > { %v245_v14 = vrot.slane %v243_v4, 4  ;;  %v248_v15 = vrot.slane %v246_v5, 5  ;;  %v254_v16 = vrot.slane %v252_v6, 5  ;;  %v258_v17 = vrot.slane %v256_v7, 4  ;;  %v227_v18 = vld [vmem:[%s5028_s23 + $0x14] sm:$0xf] }
  0x14   : > { %v264_v19 = vrot.slane %v262_v9, 5  ;;  %v268_v20 = vrot.slane %v266_v10, 4  ;;  %v274_v21 = vrot.slane %v272_v11, 5  ;;  %v278_v22 = vrot.slane %v276_v12, 4  ;;  %v228_v32 = vld [vmem:[%s5028_s23 + $0x18] sm:$0xf] }
  0x15   : > { %v249_v23 = vor.u32 %v248_v15, %v245_v14  ;;  %v259_v24 = vor.u32 %v258_v17, %v254_v16  ;;  %v282_v25 = vshll.u32 %v226_v13, 16  ;;  %v286_v26 = vshrl.u32 %v226_v13, 16  ;;  %v229_v41 = vld [vmem:[%s5028_s23 + $0x1c] sm:$0xf]  ;;  %v230_v46 = vld [vmem:[%s5028_s23 + $0x20] sm:$0xf] }
  0x16   : > { %v269_v28 = vor.u32 %v268_v20, %v264_v19  ;;  %v279_v29 = vor.u32 %v278_v22, %v274_v21  ;;  %v292_v30 = vshll.u32 %v227_v18, 16  ;;  %v296_v31 = vshrl.u32 %v227_v18, 16  ;;  %v231_v51 = vld [vmem:[%s5028_s23 + $0x24] sm:$0xf]  ;;  %v232_v60 = vld [vmem:[%s5028_s23 + $0x28] sm:$0xf] }
  0x17   : > { %v250_v33 = vrot.slane %v249_v23, 4  ;;  %v260_v34 = vrot.slane %v259_v24, 4  ;;  %v284_v35 = vrot.slane %v282_v25, 5  ;;  %v288_v36 = vrot.slane %v286_v26, 4  ;;  %v233_v2 = vld [vmem:[%s5028_s23 + $0x2c] sm:$0xf] }
  0x18   : > { %v270_v37 = vrot.slane %v269_v28, 4  ;;  %v280_v38 = vrot.slane %v279_v29, 4  ;;  %v294_v39 = vrot.slane %v292_v30, 5  ;;  %v298_v40 = vrot.slane %v296_v31, 4  ;;  %v234_v15 = vld [vmem:[%s5028_s23 + $0x30] sm:$0xf] }
  0x19   : > { %v255_v42 = vsel %vm5043_vm3, %v250_v33, %v254_v16  ;;  %v265_v43 = vsel %vm5043_vm3, %v260_v34, %v264_v19  ;;  %v289_v44 = vor.u32 %v288_v36, %v284_v35  ;;  %v302_v45 = vshll.u32 %v228_v32, 16  ;;  %v235_v20 = vld [vmem:[%s5028_s23 + $0x34] sm:$0xf]  ;;  %v236_v30 = vld [vmem:[%s5028_s23 + $0x38] sm:$0xf] }
  0x1a   : > { %423 = vst.msk [vmem:[#allocation2] sm:$0xf] %vm422_vm2, %v255_v42  ;;  %424 = vst.msk [vmem:[#allocation2 + $0x4] sm:$0xf] %vm422_vm2, %v265_v43  ;;  %v275_v47 = vsel %vm5043_vm3, %v270_v37, %v274_v21  ;;  %v285_v48 = vsel %vm5043_vm3, %v280_v38, %v284_v35  ;;  %v299_v49 = vor.u32 %v298_v40, %v294_v39  ;;  %v306_v50 = vshrl.u32 %v228_v32, 16 }
  0x1b   : > { %425 = vst.msk [vmem:[#allocation2 + $0x8] sm:$0xf] %vm422_vm2, %v275_v47  ;;  %426 = vst.msk [vmem:[#allocation2 + $0xc] sm:$0xf] %vm422_vm2, %v285_v48  ;;  %v290_v52 = vrot.slane %v289_v44, 4  ;;  %v304_v53 = vrot.slane %v302_v45, 5 }
  0x1c   : > { %v312_v54 = vshll.u32 %v229_v41, 16  ;;  %v316_v55 = vshrl.u32 %v229_v41, 16  ;;  %v300_v56 = vrot.slane %v299_v49, 4  ;;  %v308_v57 = vrot.slane %v306_v50, 4  ;;  %v238_v44 = vld [vmem:[%s5028_s23 + $0x40] sm:$0x1] }
  0x1d   : > { %v322_v58 = vshll.u32 %v230_v46, 16  ;;  %v326_v59 = vshrl.u32 %v230_v46, 16  ;;  %v295_v61 = vsel %vm5043_vm3, %v290_v52, %v294_v39  ;;  %v332_v1 = vshll.u32 %v231_v51, 16  ;;  %v237_v39 = vld [vmem:[%s5028_s23 + $0x3c] sm:$0xf] }
  0x1e   : > { %v314_v62 = vrot.slane %v312_v54, 5  ;;  %v318_v63 = vrot.slane %v316_v55, 4  ;;  %427 = vst.msk [vmem:[#allocation2 + $0x10] sm:$0xf] %vm422_vm2, %v295_v61  ;;  %v305_v3 = vsel %vm5043_vm3, %v300_v56, %v304_v53  ;;  %v309_v4 = vor.u32 %v308_v57, %v304_v53  ;;  %v439_v49 = vld [vmem:[%s5028_s23] sm:$0xe] }
  0x1f   : > { %v324_v5 = vrot.slane %v322_v58, 5  ;;  %v328_v6 = vrot.slane %v326_v59, 4  ;;  %428 = vst.msk [vmem:[#allocation2 + $0x14] sm:$0xf] %vm422_vm2, %v305_v3  ;;  %v334_v8 = vrot.slane %v332_v1, 5  ;;  %v336_v9 = vshrl.u32 %v231_v51, 16 }
  0x20   : > { %v319_v7 = vor.u32 %v318_v63, %v314_v62  ;;  %v342_v10 = vshll.u32 %v232_v60, 16  ;;  %v310_v11 = vrot.slane %v309_v4, 4  ;;  %v346_v13 = vshrl.u32 %v232_v60, 16  ;;  %v440_v54 = vld [vmem:[%s5028_s23 + $0x4] sm:$0xf] }
  0x21   : > { %v329_v12 = vor.u32 %v328_v6, %v324_v5  ;;  %v352_v14 = vshll.u32 %v233_v2, 16  ;;  %v338_v17 = vrot.slane %v336_v9, 4  ;;  %v356_v19 = vshrl.u32 %v233_v2, 16  ;;  %v441_v59 = vld [vmem:[%s5028_s23 + $0x8] sm:$0xf] }
  0x22   : > { %v320_v16 = vrot.slane %v319_v7, 4  ;;  %v344_v18 = vrot.slane %v342_v10, 5  ;;  %v315_v21 = vsel %vm5043_vm3, %v310_v11, %v314_v62  ;;  %v348_v23 = vrot.slane %v346_v13, 4  ;;  %v442_v60 = vld [vmem:[%s5028_s23 + $0xc] sm:$0xf] }
  0x23   : > { %v330_v22 = vrot.slane %v329_v12, 4  ;;  %v354_v24 = vrot.slane %v352_v14, 5  ;;  %429 = vst.msk [vmem:[#allocation2 + $0x18] sm:$0xf] %vm422_vm2, %v315_v21  ;;  %v339_v26 = vor.u32 %v338_v17, %v334_v8  ;;  %v358_v28 = vrot.slane %v356_v19, 4 }
  0x24   : > { %v325_v25 = vsel %vm5043_vm3, %v320_v16, %v324_v5  ;;  %v362_v29 = vshll.u32 %v234_v15, 16  ;;  %v349_v32 = vor.u32 %v348_v23, %v344_v18  ;;  %v366_v33 = vshrl.u32 %v234_v15, 16  ;;  %v443_v3 = vld [vmem:[%s5028_s23 + $0x10] sm:$0xf]  ;;  %v445_v13 = vld [vmem:[%s5028_s23 + $0x18] sm:$0xf] }
  0x25   : > { %430 = vst.msk [vmem:[#allocation2 + $0x1c] sm:$0xf] %vm422_vm2, %v325_v25  ;;  %v335_v31 = vsel %vm5043_vm3, %v330_v22, %v334_v8  ;;  %v372_v34 = vshll.u32 %v235_v20, 16  ;;  %v340_v35 = vrot.slane %v339_v26, 4  ;;  %v359_v36 = vor.u32 %v358_v28, %v354_v24  ;;  %v444_v8 = vld [vmem:[%s5028_s23 + $0x14] sm:$0xf] }
  0x26   : > { %431 = vst.msk [vmem:[#allocation2 + $0x20] sm:$0xf] %vm422_vm2, %v335_v31  ;;  %v364_v37 = vrot.slane %v362_v29, 5  ;;  %v376_v38 = vshrl.u32 %v235_v20, 16  ;;  %v350_v40 = vrot.slane %v349_v32, 4  ;;  %v368_v41 = vrot.slane %v366_v33, 4 }
  0x27   : > { %v374_v42 = vrot.slane %v372_v34, 5  ;;  %v382_v43 = vshll.u32 %v236_v30, 16  ;;  %v345_v45 = vsel %vm5043_vm3, %v340_v35, %v344_v18  ;;  %v360_v46 = vrot.slane %v359_v36, 4  ;;  %v446_v18 = vld [vmem:[%s5028_s23 + $0x1c] sm:$0xf] }
  0x28   : > { %v378_v47 = vrot.slane %v376_v38, 4  ;;  %v386_v48 = vshrl.u32 %v236_v30, 16  ;;  %432 = vst.msk [vmem:[#allocation2 + $0x24] sm:$0xf] %vm422_vm2, %v345_v45  ;;  %v355_v50 = vsel %vm5043_vm3, %v350_v40, %v354_v24  ;;  %v369_v51 = vor.u32 %v368_v41, %v364_v37  ;;  %v447_v19 = vld [vmem:[%s5028_s23 + $0x20] sm:$0xf] }
  0x29   : > { %v384_v52 = vrot.slane %v382_v43, 5  ;;  %v392_v53 = vshll.u32 %v237_v39, 16  ;;  %433 = vst.msk [vmem:[#allocation2 + $0x28] sm:$0xf] %vm422_vm2, %v355_v50  ;;  %v365_v55 = vsel %vm5043_vm3, %v360_v46, %v364_v37  ;;  %v396_v58 = vshrl.u32 %v237_v39, 16 }
  0x2a   : > { %v379_v56 = vor.u32 %v378_v47, %v374_v42  ;;  %v388_v57 = vrot.slane %v386_v48, 4  ;;  %434 = vst.msk [vmem:[#allocation2 + $0x2c] sm:$0xf] %vm422_vm2, %v365_v55  ;;  %v370_v61 = vrot.slane %v369_v51, 4  ;;  %v402_v63 = vshll.u32 %v238_v44, 16 }
  0x2b   : > { %v394_v62 = vrot.slane %v392_v53, 5  ;;  %v3875_v2 = vrot.slane %v439_v49, 9  ;;  %v398_v6 = vrot.slane %v396_v58, 4  ;;  %v478_v7 = vrot.slane %v440_v54, 5  ;;  %v448_v24 = vld [vmem:[%s5028_s23 + $0x24] sm:$0xf] }
  0x2c   : > { %v380_v4 = vrot.slane %v379_v56, 4  ;;  %v389_v5 = vor.u32 %v388_v57, %v384_v52  ;;  %v375_v9 = vsel %vm5043_vm3, %v370_v61, %v374_v42  ;;  %v404_v10 = vrot.slane %v402_v63, 5  ;;  %v449_v30 = vld [vmem:[%s5028_s23 + $0x28] sm:$0xf]  ;;  %v450_v35 = vld [vmem:[%s5028_s23 + $0x2c] sm:$0xf] }
  0x2d   : > { %v481_v11 = vrot.slane %v441_v59, 5  ;;  %v484_v12 = vrot.slane %v442_v60, 5  ;;  %435 = vst.msk [vmem:[#allocation2 + $0x30] sm:$0xf] %vm422_vm2, %v375_v9  ;;  %v399_v16 = vor.u32 %v398_v6, %v394_v62  ;;  %v479_v17 = vsel %vm5100_vm6, %v3875_v2, %v478_v7  ;;  %v451_v36 = vld [vmem:[%s5028_s23 + $0x30] sm:$0xf] }
  0x2e   : > { %v385_v14 = vsel %vm5043_vm3, %v380_v4, %v384_v52  ;;  %v390_v15 = vrot.slane %v389_v5, 4  ;;  %541 = vst.msk [vmem:[#allocation3] sm:$0xf] %vm422_vm2, %v479_v17  ;;  %v480_v20 = vrot.slane %v478_v7, 4  ;;  %v487_v23 = vrot.slane %v443_v3, 5 }
  0x2f   : > { %436 = vst.msk [vmem:[#allocation2 + $0x34] sm:$0xf] %vm422_vm2, %v385_v14  ;;  %v483_v21 = vrot.slane %v481_v11, 4  ;;  %v486_v22 = vrot.slane %v484_v12, 4  ;;  %v400_v26 = vrot.slane %v399_v16, 4  ;;  %v490_v28 = vrot.slane %v444_v8, 5 }
  0x30   : > { %v395_v25 = vsel %vm5043_vm3, %v390_v15, %v394_v62  ;;  %v493_v29 = vrot.slane %v445_v13, 5  ;;  %v482_v31 = vsel %vm5100_vm6, %v480_v20, %v481_v11  ;;  %v489_v34 = vrot.slane %v487_v23, 4  ;;  %v452_v41 = vld [vmem:[%s5028_s23 + $0x34] sm:$0xf]  ;;  %v453_v45 = vld [vmem:[%s5028_s23 + $0x38] sm:$0xf] }
  0x31   : > { %437 = vst.msk [vmem:[#allocation2 + $0x38] sm:$0xf] %vm422_vm2, %v395_v25  ;;  %v485_v32 = vsel %vm5100_vm6, %v483_v21, %v484_v12  ;;  %v488_v33 = vsel %vm5100_vm6, %v486_v22, %v487_v23  ;;  %v405_v37 = vsel %vm5043_vm3, %v400_v26, %v404_v10  ;;  %542 = vst.msk [vmem:[#allocation3 + $0x4] sm:$0xf] %vm422_vm2, %v482_v31  ;;  %v492_v38 = vrot.slane %v490_v28, 4 }
  0x32   : > { %543 = vst.msk [vmem:[#allocation3 + $0x8] sm:$0xf] %vm422_vm2, %v485_v32  ;;  %544 = vst.msk [vmem:[#allocation3 + $0xc] sm:$0xf] %vm422_vm2, %v488_v33  ;;  %v495_v39 = vrot.slane %v493_v29, 4  ;;  %v496_v40 = vrot.slane %v446_v18, 5  ;;  %v491_v42 = vsel %vm5100_vm6, %v489_v34, %v490_v28 }
  0x33   : > { %438 = vst.msk [vmem:[#allocation2 + $0x3c] sm:$0xf] %vm422_vm2, %v405_v37  ;;  %v499_v43 = vrot.slane %v447_v19, 5  ;;  %v502_v44 = vrot.slane %v448_v24, 5  ;;  %v505_v27 = vrot.slane %v449_v30, 5  ;;  %v494_v46 = vsel %vm5100_vm6, %v492_v38, %v493_v29  ;;  %vm5386_vm3 = vmor %vm1149_vm0, %vm1150_vm1 }
  0x34   : > { %545 = vst.msk [vmem:[#allocation3 + $0x10] sm:$0xf] %vm422_vm2, %v491_v42  ;;  %v497_v47 = vsel %vm5100_vm6, %v495_v39, %v496_v40  ;;  %v498_v48 = vrot.slane %v496_v40, 4  ;;  %v508_v49 = vrot.slane %v450_v35, 5  ;;  %v454_v50 = vld [vmem:[%s5028_s23 + $0x3c] sm:$0xf] }
  0x35   : > { %546 = vst.msk [vmem:[#allocation3 + $0x14] sm:$0xf] %vm422_vm2, %v494_v46  ;;  %547 = vst.msk [vmem:[#allocation3 + $0x18] sm:$0xf] %vm422_vm2, %v497_v47  ;;  %v501_v51 = vrot.slane %v499_v43, 4  ;;  %v504_v52 = vrot.slane %v502_v44, 4 }
  0x36   : > { %v507_v53 = vrot.slane %v505_v27, 4  ;;  %v511_v54 = vrot.slane %v451_v36, 5  ;;  %v455_v55 = vld [vmem:[%s5028_s23 + $0x40] sm:$0x1]  ;;  %v500_v56 = vsel %vm5100_vm6, %v498_v48, %v499_v43  ;;  %v510_v57 = vrot.slane %v508_v49, 4 }
  0x37   : > { %v514_v58 = vrot.slane %v452_v41, 5  ;;  %v517_v59 = vrot.slane %v453_v45, 5  ;;  %v557_v60 = vld [vmem:[%s5028_s23] sm:$0xe]  ;;  %548 = vst.msk [vmem:[#allocation3 + $0x1c] sm:$0xf] %vm422_vm2, %v500_v56  ;;  %v503_v61 = vsel %vm5100_vm6, %v501_v51, %v502_v44  ;;  %v506_v62 = vsel %vm5100_vm6, %v504_v52, %v505_v27 }
  0x38   : > { %v509_v63 = vsel %vm5100_vm6, %v507_v53, %v508_v49  ;;  %v513_v2 = vrot.slane %v511_v54, 4  ;;  %v558_v3 = vld [vmem:[%s5028_s23 + $0x4] sm:$0xf]  ;;  %549 = vst.msk [vmem:[#allocation3 + $0x20] sm:$0xf] %vm422_vm2, %v503_v61  ;;  %v512_v4 = vsel %vm5100_vm6, %v510_v57, %v511_v54  ;;  %v520_v7 = vrot.slane %v454_v50, 5 }
  0x39   : > { %550 = vst.msk [vmem:[#allocation3 + $0x24] sm:$0xf] %vm422_vm2, %v506_v62  ;;  %551 = vst.msk [vmem:[#allocation3 + $0x28] sm:$0xf] %vm422_vm2, %v509_v63  ;;  %v516_v5 = vrot.slane %v514_v58, 4  ;;  %v519_v6 = vrot.slane %v517_v59, 4 }
  0x3a   : > { %v559_v8 = vld [vmem:[%s5028_s23 + $0x8] sm:$0xf]  ;;  %552 = vst.msk [vmem:[#allocation3 + $0x2c] sm:$0xf] %vm422_vm2, %v512_v4  ;;  %v515_v9 = vsel %vm5100_vm6, %v513_v2, %v514_v58  ;;  %v523_v10 = vrot.slane %v455_v55, 5  ;;  %v578_v11 = vshrl.u32 %v557_v60, 16 }
  0x3b   : > { %v581_v12 = vshll.u32 %v557_v60, 16  ;;  %v560_v13 = vld [vmem:[%s5028_s23 + $0xc] sm:$0xf]  ;;  %553 = vst.msk [vmem:[#allocation3 + $0x30] sm:$0xf] %vm422_vm2, %v515_v9  ;;  %v518_v14 = vsel %vm5100_vm6, %v516_v5, %v517_v59  ;;  %v521_v15 = vsel %vm5100_vm6, %v519_v6, %v520_v7  ;;  %v522_v16 = vrot.slane %v520_v7, 4 }
  0x3c   : > { %v587_v17 = vshrl.u32 %v558_v3, 16  ;;  %554 = vst.msk [vmem:[#allocation3 + $0x34] sm:$0xf] %vm422_vm2, %v518_v14  ;;  %555 = vst.msk [vmem:[#allocation3 + $0x38] sm:$0xf] %vm422_vm2, %v521_v15  ;;  %v580_v18 = vrot.slane %v578_v11, 5 }
  0x3d   : > { %v583_v19 = vrot.slane %v581_v12, 6  ;;  %v590_v20 = vshll.u32 %v558_v3, 16  ;;  %v597_v21 = vshrl.u32 %v559_v8, 16  ;;  %v561_v22 = vld [vmem:[%s5028_s23 + $0x10] sm:$0xf]  ;;  %v524_v23 = vsel %vm5100_vm6, %v522_v16, %v523_v10 }
  0x3e   : > { %v589_v24 = vrot.slane %v587_v17, 5  ;;  %v600_v25 = vshll.u32 %v559_v8, 16  ;;  %v607_v26 = vshrl.u32 %v560_v13, 16  ;;  %v562_v28 = vld [vmem:[%s5028_s23 + $0x14] sm:$0xf]  ;;  %v610_v32 = vshll.u32 %v560_v13, 16 }
  0x3f   : > { %556 = vst.msk [vmem:[#allocation3 + $0x3c] sm:$0xf] %vm422_vm2, %v524_v23  ;;  %v584_v29 = vor.u32 %v583_v19, %v580_v18  ;;  %v592_v30 = vrot.slane %v590_v20, 6  ;;  %v599_v31 = vrot.slane %v597_v21, 5  ;;  %v617_v35 = vshrl.u32 %v561_v22, 16 }
  0x40   : > { %v602_v1 = vrot.slane %v600_v25, 6  ;;  %v609_v34 = vrot.slane %v607_v26, 5  ;;  %v620_v36 = vshll.u32 %v561_v22, 16  ;;  %v612_v39 = vrot.slane %v610_v32, 6  ;;  %v563_v41 = vld [vmem:[%s5028_s23 + $0x18] sm:$0xf] }
  0x41   : > { %v585_v37 = vrot.slane %v584_v29, 4  ;;  %v593_v38 = vor.u32 %v592_v30, %v589_v24  ;;  %v627_v40 = vshrl.u32 %v562_v28, 16  ;;  %v619_v43 = vrot.slane %v617_v35, 5  ;;  %v564_v45 = vld [vmem:[%s5028_s23 + $0x1c] sm:$0xf] }
  0x42   : > { %v603_v42 = vor.u32 %v602_v1, %v599_v31  ;;  %v622_v44 = vrot.slane %v620_v36, 6  ;;  %v630_v27 = vshll.u32 %v562_v28, 16  ;;  %v613_v48 = vor.u32 %v612_v39, %v609_v34  ;;  %v565_v58 = vld [vmem:[%s5028_s23 + $0x20] sm:$0xf]  ;;  %v566_v63 = vld [vmem:[%s5028_s23 + $0x24] sm:$0xf] }
  0x43   : > { %v594_v46 = vsel %vm5185_vm9, %v585_v37, %v593_v38  ;;  %v595_v47 = vrot.slane %v593_v38, 4  ;;  %v629_v49 = vrot.slane %v627_v40, 5  ;;  %v637_v53 = vshrl.u32 %v563_v41, 16  ;;  %v567_v6 = vld [vmem:[%s5028_s23 + $0x28] sm:$0xf] }
  0x44   : > { %761 = vst.msk [vmem:[#allocation4] sm:$0xf] %vm422_vm2, %v594_v46  ;;  %v605_v50 = vrot.slane %v603_v42, 4  ;;  %v623_v51 = vor.u32 %v622_v44, %v619_v43  ;;  %v632_v52 = vrot.slane %v630_v27, 6  ;;  %v615_v55 = vrot.slane %v613_v48, 4 }
  0x45   : > { %v604_v54 = vsel %vm5185_vm9, %v595_v47, %v603_v42  ;;  %v640_v56 = vshll.u32 %v563_v41, 16  ;;  %v647_v57 = vshrl.u32 %v564_v45, 16  ;;  %v639_v62 = vrot.slane %v637_v53, 5  ;;  %v568_v19 = vld [vmem:[%s5028_s23 + $0x2c] sm:$0xf] }
  0x46   : > { %762 = vst.msk [vmem:[#allocation4 + $0x4] sm:$0xf] %vm422_vm2, %v604_v54  ;;  %v614_v59 = vsel %vm5185_vm9, %v605_v50, %v613_v48  ;;  %v625_v60 = vrot.slane %v623_v51, 4  ;;  %v633_v61 = vor.u32 %v632_v52, %v629_v49  ;;  %v624_v2 = vsel %vm5185_vm9, %v615_v55, %v623_v51  ;;  %v569_v24 = vld [vmem:[%s5028_s23 + $0x30] sm:$0xf] }
  0x47   : > { %763 = vst.msk [vmem:[#allocation4 + $0x8] sm:$0xf] %vm422_vm2, %v614_v59  ;;  %v642_v3 = vrot.slane %v640_v56, 6  ;;  %v649_v4 = vrot.slane %v647_v57, 5  ;;  %v650_v5 = vshll.u32 %v564_v45, 16  ;;  %v657_v9 = vshrl.u32 %v565_v58, 16 }
  0x48   : > { %764 = vst.msk [vmem:[#allocation4 + $0xc] sm:$0xf] %vm422_vm2, %v624_v2  ;;  %v634_v7 = vsel %vm5185_vm9, %v625_v60, %v633_v61  ;;  %v635_v8 = vrot.slane %v633_v61, 4  ;;  %v660_v10 = vshll.u32 %v565_v58, 16  ;;  %v667_v13 = vshrl.u32 %v566_v63, 16 }
  0x49   : > { %765 = vst.msk [vmem:[#allocation4 + $0x10] sm:$0xf] %vm422_vm2, %v634_v7  ;;  %v643_v11 = vor.u32 %v642_v3, %v639_v62  ;;  %v652_v12 = vrot.slane %v650_v5, 6  ;;  %v670_v14 = vshll.u32 %v566_v63, 16  ;;  %v659_v15 = vrot.slane %v657_v9, 5 }
  0x4a   : > { %v662_v16 = vrot.slane %v660_v10, 6  ;;  %v677_v17 = vshrl.u32 %v567_v6, 16  ;;  %v680_v18 = vshll.u32 %v567_v6, 16  ;;  %v669_v23 = vrot.slane %v667_v13, 5  ;;  %v570_v38 = vld [vmem:[%s5028_s23 + $0x34] sm:$0xf] }
  0x4b   : > { %v644_v20 = vsel %vm5185_vm9, %v635_v8, %v643_v11  ;;  %v645_v21 = vrot.slane %v643_v11, 4  ;;  %v653_v22 = vor.u32 %v652_v12, %v649_v4  ;;  %v672_v26 = vrot.slane %v670_v14, 6  ;;  %v571_v39 = vld [vmem:[%s5028_s23 + $0x38] sm:$0xf]  ;;  %v572_v44 = vld [vmem:[%s5028_s23 + $0x3c] sm:$0xf] }
  0x4c   : > { %766 = vst.msk [vmem:[#allocation4 + $0x14] sm:$0xf] %vm422_vm2, %v644_v20  ;;  %v663_v25 = vor.u32 %v662_v16, %v659_v15  ;;  %v679_v28 = vrot.slane %v677_v17, 5  ;;  %v682_v29 = vrot.slane %v680_v18, 6  ;;  %v687_v32 = vshrl.u32 %v568_v19, 16 }
  0x4d   : > { %v654_v30 = vsel %vm5185_vm9, %v645_v21, %v653_v22  ;;  %v655_v31 = vrot.slane %v653_v22, 4  ;;  %v690_v1 = vshll.u32 %v568_v19, 16  ;;  %v673_v35 = vor.u32 %v672_v26, %v669_v23  ;;  %v573_v56 = vld [vmem:[%s5028_s23 + $0x40] sm:$0x3]  ;;  %v777_v61 = vld [vmem:[%s5028_s23] sm:$0xc] }
  0x4e   : > { %767 = vst.msk [vmem:[#allocation4 + $0x18] sm:$0xf] %vm422_vm2, %v654_v30  ;;  %v665_v34 = vrot.slane %v663_v25, 4  ;;  %v683_v36 = vor.u32 %v682_v29, %v679_v28  ;;  %v697_v37 = vshrl.u32 %v569_v24, 16  ;;  %v689_v41 = vrot.slane %v687_v32, 5 }
  0x4f   : > { %v664_v40 = vsel %vm5185_vm9, %v655_v31, %v663_v25  ;;  %v692_v42 = vrot.slane %v690_v1, 6  ;;  %v700_v43 = vshll.u32 %v569_v24, 16  ;;  %v675_v45 = vrot.slane %v673_v35, 4  ;;  %v778_v62 = vld [vmem:[%s5028_s23 + $0x4] sm:$0xf] }
  0x50   : > { %768 = vst.msk [vmem:[#allocation4 + $0x1c] sm:$0xf] %vm422_vm2, %v664_v40  ;;  %v674_v27 = vsel %vm5185_vm9, %v665_v34, %v673_v35  ;;  %v685_v46 = vrot.slane %v683_v36, 4  ;;  %v699_v47 = vrot.slane %v697_v37, 5  ;;  %v707_v50 = vshrl.u32 %v570_v38, 16 }
  0x51   : > { %769 = vst.msk [vmem:[#allocation4 + $0x20] sm:$0xf] %vm422_vm2, %v674_v27  ;;  %v693_v48 = vor.u32 %v692_v42, %v689_v41  ;;  %v702_v49 = vrot.slane %v700_v43, 6  ;;  %v710_v51 = vshll.u32 %v570_v38, 16  ;;  %v684_v52 = vsel %vm5185_vm9, %v675_v45, %v683_v36  ;;  %v779_v5 = vld [vmem:[%s5028_s23 + $0x8] sm:$0xf] }
  0x52   : > { %v717_v53 = vshrl.u32 %v571_v39, 16  ;;  %v720_v54 = vshll.u32 %v571_v39, 16  ;;  %v727_v55 = vshrl.u32 %v572_v44, 16  ;;  %770 = vst.msk [vmem:[#allocation4 + $0x24] sm:$0xf] %vm422_vm2, %v684_v52  ;;  %v709_v60 = vrot.slane %v707_v50, 5 }
  0x53   : > { %v694_v57 = vsel %vm5185_vm9, %v685_v46, %v693_v48  ;;  %v695_v58 = vrot.slane %v693_v48, 4  ;;  %v703_v59 = vor.u32 %v702_v49, %v699_v47  ;;  %v712_v63 = vrot.slane %v710_v51, 6  ;;  %v780_v15 = vld [vmem:[%s5028_s23 + $0xc] sm:$0xf]  ;;  %v781_v20 = vld [vmem:[%s5028_s23 + $0x10] sm:$0xf] }
  0x54   : > { %771 = vst.msk [vmem:[#allocation4 + $0x28] sm:$0xf] %vm422_vm2, %v694_v57  ;;  %v719_v2 = vrot.slane %v717_v53, 5  ;;  %v722_v3 = vrot.slane %v720_v54, 6  ;;  %v729_v4 = vrot.slane %v727_v55, 5  ;;  %v730_v8 = vshll.u32 %v572_v44, 16 }
  0x55   : > { %v704_v6 = vsel %vm5185_vm9, %v695_v58, %v703_v59  ;;  %v705_v7 = vrot.slane %v703_v59, 4  ;;  %v737_v9 = vshrl.u32 %v573_v56, 16  ;;  %v713_v10 = vor.u32 %v712_v63, %v709_v60  ;;  %v782_v25 = vld [vmem:[%s5028_s23 + $0x14] sm:$0xf]  ;;  %v783_v31 = vld [vmem:[%s5028_s23 + $0x18] sm:$0xf] }
  0x56   : > { %772 = vst.msk [vmem:[#allocation4 + $0x2c] sm:$0xf] %vm422_vm2, %v704_v6  ;;  %v723_v11 = vor.u32 %v722_v3, %v719_v2  ;;  %v740_v12 = vshll.u32 %v573_v56, 16  ;;  %v3876_v14 = vrot.slane %v777_v61, 10  ;;  %v732_v16 = vrot.slane %v730_v8, 6 }
  0x57   : > { %v739_v17 = vrot.slane %v737_v9, 5  ;;  %v816_v18 = vrot.slane %v778_v62, 6  ;;  %v819_v19 = vrot.slane %v779_v5, 6  ;;  %v714_v21 = vsel %vm5185_vm9, %v705_v7, %v713_v10  ;;  %v784_v36 = vld [vmem:[%s5028_s23 + $0x1c] sm:$0xf] }
  0x58   : > { %v715_v22 = vrot.slane %v713_v10, 4  ;;  %v725_v23 = vrot.slane %v723_v11, 4  ;;  %v742_v24 = vrot.slane %v740_v12, 6  ;;  %773 = vst.msk [vmem:[#allocation4 + $0x30] sm:$0xf] %vm422_vm2, %v714_v21  ;;  %v733_v26 = vor.u32 %v732_v16, %v729_v4 }
  0x59   : > { %v817_v28 = vsel %vm5241_vm12, %v3876_v14, %v816_v18  ;;  %v818_v29 = vrot.slane %v816_v18, 4  ;;  %v821_v30 = vrot.slane %v819_v19, 4  ;;  %v822_v34 = vrot.slane %v780_v15, 6  ;;  %v785_v37 = vld [vmem:[%s5028_s23 + $0x20] sm:$0xf] }
  0x5a   : > { %v724_v32 = vsel %vm5185_vm9, %v715_v22, %v723_v11  ;;  %v743_v1 = vor.u32 %v742_v24, %v739_v17  ;;  %879 = vst.msk [vmem:[#allocation5] sm:$0xf] %vm422_vm2, %v817_v28  ;;  %v825_v35 = vrot.slane %v781_v20, 6  ;;  %v734_v38 = vsel %vm5185_vm9, %v725_v23, %v733_v26  ;;  %v786_v42 = vld [vmem:[%s5028_s23 + $0x24] sm:$0xf] }
  0x5b   : > { %774 = vst.msk [vmem:[#allocation4 + $0x34] sm:$0xf] %vm422_vm2, %v724_v32  ;;  %v735_v39 = vrot.slane %v733_v26, 4  ;;  %v820_v40 = vsel %vm5241_vm12, %v818_v29, %v819_v19  ;;  %v828_v41 = vrot.slane %v782_v25, 6  ;;  %v787_v43 = vld [vmem:[%s5028_s23 + $0x28] sm:$0xf]  ;;  %v823_v44 = vsel %vm5241_vm12, %v821_v30, %v822_v34 }
  0x5c   : > { %775 = vst.msk [vmem:[#allocation4 + $0x38] sm:$0xf] %vm422_vm2, %v734_v38  ;;  %880 = vst.msk [vmem:[#allocation5 + $0x4] sm:$0xf] %vm422_vm2, %v820_v40  ;;  %v824_v27 = vrot.slane %v822_v34, 4  ;;  %v827_v45 = vrot.slane %v825_v35, 4 }
  0x5d   : > { %v831_v46 = vrot.slane %v783_v31, 6  ;;  %v788_v47 = vld [vmem:[%s5028_s23 + $0x2c] sm:$0xf]  ;;  %v744_v48 = vsel %vm5185_vm9, %v735_v39, %v743_v1  ;;  %881 = vst.msk [vmem:[#allocation5 + $0x8] sm:$0xf] %vm422_vm2, %v823_v44  ;;  %v830_v49 = vrot.slane %v828_v41, 4 }
  0x5e   : > { %v834_v50 = vrot.slane %v784_v36, 6  ;;  %v837_v51 = vrot.slane %v785_v37, 6  ;;  %v789_v52 = vld [vmem:[%s5028_s23 + $0x30] sm:$0xf]  ;;  %776 = vst.msk [vmem:[#allocation4 + $0x3c] sm:$0xf] %vm422_vm2, %v744_v48  ;;  %v826_v53 = vsel %vm5241_vm12, %v824_v27, %v825_v35  ;;  %v829_v54 = vsel %vm5241_vm12, %v827_v45, %v828_v41 }
  0x5f   : > { %v833_v55 = vrot.slane %v831_v46, 4  ;;  %v840_v56 = vrot.slane %v786_v42, 6  ;;  %v790_v57 = vld [vmem:[%s5028_s23 + $0x34] sm:$0xf]  ;;  %v791_v33 = vld [vmem:[%s5028_s23 + $0x38] sm:$0xf]  ;;  %v832_v58 = vsel %vm5241_vm12, %v830_v49, %v831_v46 }
  0x60   : > { %882 = vst.msk [vmem:[#allocation5 + $0xc] sm:$0xf] %vm422_vm2, %v826_v53  ;;  %883 = vst.msk [vmem:[#allocation5 + $0x10] sm:$0xf] %vm422_vm2, %v829_v54  ;;  %v836_v59 = vrot.slane %v834_v50, 4  ;;  %v839_v60 = vrot.slane %v837_v51, 4 }
  0x61   : > { %v843_v61 = vrot.slane %v787_v43, 6  ;;  %v792_v62 = vld [vmem:[%s5028_s23 + $0x3c] sm:$0xf]  ;;  %884 = vst.msk [vmem:[#allocation5 + $0x14] sm:$0xf] %vm422_vm2, %v832_v58  ;;  %v835_v63 = vsel %vm5241_vm12, %v833_v55, %v834_v50  ;;  %v842_v2 = vrot.slane %v840_v56, 4 }
  0x62   : > { %v846_v3 = vrot.slane %v788_v47, 6  ;;  %v849_v4 = vrot.slane %v789_v52, 6  ;;  %v793_v5 = vld [vmem:[%s5028_s23 + $0x40] sm:$0x3]  ;;  %885 = vst.msk [vmem:[#allocation5 + $0x18] sm:$0xf] %vm422_vm2, %v835_v63  ;;  %v838_v6 = vsel %vm5241_vm12, %v836_v59, %v837_v51  ;;  %v841_v7 = vsel %vm5241_vm12, %v839_v60, %v840_v56 }
  0x63   : > { %v845_v8 = vrot.slane %v843_v61, 4  ;;  %v852_v9 = vrot.slane %v790_v57, 6  ;;  %v895_v10 = vld [vmem:[%s5028_s23] sm:$0xc]  ;;  %886 = vst.msk [vmem:[#allocation5 + $0x1c] sm:$0xf] %vm422_vm2, %v838_v6  ;;  %v844_v11 = vsel %vm5241_vm12, %v842_v2, %v843_v61 }
  0x64   : > { %887 = vst.msk [vmem:[#allocation5 + $0x20] sm:$0xf] %vm422_vm2, %v841_v7  ;;  %v848_v12 = vrot.slane %v846_v3, 4  ;;  %v851_v14 = vrot.slane %v849_v4, 4  ;;  %v855_v15 = vrot.slane %v791_v33, 6  ;;  %v858_v19 = vrot.slane %v792_v62, 6 }
  0x65   : > { %v896_v16 = vld [vmem:[%s5028_s23 + $0x4] sm:$0xf]  ;;  %888 = vst.msk [vmem:[#allocation5 + $0x24] sm:$0xf] %vm422_vm2, %v844_v11  ;;  %v847_v17 = vsel %vm5241_vm12, %v845_v8, %v846_v3  ;;  %v854_v18 = vrot.slane %v852_v9, 4  ;;  %v861_v20 = vrot.slane %v793_v5, 6 }
  0x66   : > { %v897_v21 = vld [vmem:[%s5028_s23 + $0x8] sm:$0xf]  ;;  %889 = vst.msk [vmem:[#allocation5 + $0x28] sm:$0xf] %vm422_vm2, %v847_v17  ;;  %v850_v22 = vsel %vm5241_vm12, %v848_v12, %v849_v4  ;;  %v853_v23 = vsel %vm5241_vm12, %v851_v14, %v852_v9  ;;  %v857_v24 = vrot.slane %v855_v15, 4  ;;  %v916_v25 = vshrl.u32 %v895_v10, 16 }
  0x67   : > { %890 = vst.msk [vmem:[#allocation5 + $0x2c] sm:$0xf] %vm422_vm2, %v850_v22  ;;  %891 = vst.msk [vmem:[#allocation5 + $0x30] sm:$0xf] %vm422_vm2, %v853_v23  ;;  %v856_v26 = vsel %vm5241_vm12, %v854_v18, %v855_v15  ;;  %v860_v28 = vrot.slane %v858_v19, 4  ;;  %v919_v29 = vshll.u32 %v895_v10, 16 }
  0x68   : > { %v925_v30 = vshrl.u32 %v896_v16, 16  ;;  %v898_v31 = vld [vmem:[%s5028_s23 + $0xc] sm:$0xf]  ;;  %892 = vst.msk [vmem:[#allocation5 + $0x34] sm:$0xf] %vm422_vm2, %v856_v26  ;;  %v859_v32 = vsel %vm5241_vm12, %v857_v24, %v858_v19  ;;  %v918_v1 = vrot.slane %v916_v25, 6 }
  0x69   : > { %v928_v34 = vshll.u32 %v896_v16, 16  ;;  %v935_v35 = vshrl.u32 %v897_v21, 16  ;;  %v899_v36 = vld [vmem:[%s5028_s23 + $0x10] sm:$0xf]  ;;  %893 = vst.msk [vmem:[#allocation5 + $0x38] sm:$0xf] %vm422_vm2, %v859_v32  ;;  %v862_v37 = vsel %vm5241_vm12, %v860_v28, %v861_v20 }
  0x6a   : > { %v921_v38 = vrot.slane %v919_v29, 7  ;;  %v927_v39 = vrot.slane %v925_v30, 6  ;;  %v938_v40 = vshll.u32 %v897_v21, 16  ;;  %v900_v41 = vld [vmem:[%s5028_s23 + $0x14] sm:$0xf]  ;;  %v945_v44 = vshrl.u32 %v898_v31, 16 }
  0x6b   : > { %894 = vst.msk [vmem:[#allocation5 + $0x3c] sm:$0xf] %vm422_vm2, %v862_v37  ;;  %v930_v42 = vrot.slane %v928_v34, 7  ;;  %v937_v43 = vrot.slane %v935_v35, 6  ;;  %v948_v27 = vshll.u32 %v898_v31, 16  ;;  %v955_v47 = vshrl.u32 %v899_v36, 16 }
  0x6c   : > { %v922_v45 = vor.u32 %v921_v38, %v918_v1  ;;  %v940_v46 = vrot.slane %v938_v40, 7  ;;  %v958_v48 = vshll.u32 %v899_v36, 16  ;;  %v947_v50 = vrot.slane %v945_v44, 6  ;;  %v901_v53 = vld [vmem:[%s5028_s23 + $0x18] sm:$0xf] }
  0x6d   : > { %v931_v49 = vor.u32 %v930_v42, %v927_v39  ;;  %v950_v51 = vrot.slane %v948_v27, 7  ;;  %v965_v52 = vshrl.u32 %v900_v41, 16  ;;  %v957_v56 = vrot.slane %v955_v47, 6  ;;  %v902_v61 = vld [vmem:[%s5028_s23 + $0x1c] sm:$0xf] }
  0x6e   : > { %v923_v54 = vrot.slane %v922_v45, 4  ;;  %v941_v55 = vor.u32 %v940_v46, %v937_v43  ;;  %v960_v57 = vrot.slane %v958_v48, 7  ;;  %v968_v60 = vshll.u32 %v900_v41, 16  ;;  %v903_v4 = vld [vmem:[%s5028_s23 + $0x20] sm:$0xf] }
  0x6f   : > { %v933_v33 = vrot.slane %v931_v49, 4  ;;  %v951_v58 = vor.u32 %v950_v51, %v947_v50  ;;  %v967_v59 = vrot.slane %v965_v52, 6  ;;  %v975_v3 = vshrl.u32 %v901_v53, 16  ;;  %v904_v9 = vld [vmem:[%s5028_s23 + $0x24] sm:$0xf] }
  0x70   : > { %v932_v62 = vsel %vm5327_vm15, %v923_v54, %v931_v49  ;;  %v943_v63 = vrot.slane %v941_v55, 4  ;;  %v961_v2 = vor.u32 %v960_v57, %v957_v56  ;;  %v970_v7 = vrot.slane %v968_v60, 7  ;;  %v905_v23 = vld [vmem:[%s5028_s23 + $0x28] sm:$0xf]  ;;  %v906_v29 = vld [vmem:[%s5028_s23 + $0x2c] sm:$0xf] }
  0x71   : > { %1099 = vst.msk [vmem:[#allocation6] sm:$0xf] %vm422_vm2, %v932_v62  ;;  %v942_v5 = vsel %vm5327_vm15, %v933_v33, %v941_v55  ;;  %v953_v6 = vrot.slane %v951_v58, 4  ;;  %v978_v8 = vshll.u32 %v901_v53, 16  ;;  %v977_v12 = vrot.slane %v975_v3, 6 }
  0x72   : > { %1100 = vst.msk [vmem:[#allocation6 + $0x4] sm:$0xf] %vm422_vm2, %v942_v5  ;;  %v952_v10 = vsel %vm5327_vm15, %v943_v63, %v951_v58  ;;  %v963_v11 = vrot.slane %v961_v2, 4  ;;  %v985_v14 = vshrl.u32 %v902_v61, 16  ;;  %v971_v16 = vor.u32 %v970_v7, %v967_v59  ;;  %v907_v42 = vld [vmem:[%s5028_s23 + $0x30] sm:$0xf] }
  0x73   : > { %1101 = vst.msk [vmem:[#allocation6 + $0x8] sm:$0xf] %vm422_vm2, %v952_v10  ;;  %v962_v15 = vsel %vm5327_vm15, %v953_v6, %v961_v2  ;;  %v980_v17 = vrot.slane %v978_v8, 7  ;;  %v988_v18 = vshll.u32 %v902_v61, 16  ;;  %v995_v20 = vshrl.u32 %v903_v4, 16 }
  0x74   : > { %1102 = vst.msk [vmem:[#allocation6 + $0xc] sm:$0xf] %vm422_vm2, %v962_v15  ;;  %v987_v19 = vrot.slane %v985_v14, 6  ;;  %v998_v21 = vshll.u32 %v903_v4, 16  ;;  %v1005_v22 = vshrl.u32 %v904_v9, 16  ;;  %v972_v24 = vsel %vm5327_vm15, %v963_v11, %v971_v16 }
  0x75   : > { %v973_v25 = vrot.slane %v971_v16, 4  ;;  %v981_v26 = vor.u32 %v980_v17, %v977_v12  ;;  %v990_v28 = vrot.slane %v988_v18, 7  ;;  %1103 = vst.msk [vmem:[#allocation6 + $0x10] sm:$0xf] %vm422_vm2, %v972_v24  ;;  %v997_v30 = vrot.slane %v995_v20, 6 }
  0x76   : > { %v1000_v31 = vrot.slane %v998_v21, 7  ;;  %v1007_v32 = vrot.slane %v1005_v22, 6  ;;  %v1008_v1 = vshll.u32 %v904_v9, 16  ;;  %v1015_v37 = vshrl.u32 %v905_v23, 16  ;;  %v908_v46 = vld [vmem:[%s5028_s23 + $0x34] sm:$0xf] }
  0x77   : > { %v982_v34 = vsel %vm5327_vm15, %v973_v25, %v981_v26  ;;  %v983_v35 = vrot.slane %v981_v26, 4  ;;  %v991_v36 = vor.u32 %v990_v28, %v987_v19  ;;  %v1018_v40 = vshll.u32 %v905_v23, 16  ;;  %v909_v55 = vld [vmem:[%s5028_s23 + $0x38] sm:$0xf]  ;;  %v910_v63 = vld [vmem:[%s5028_s23 + $0x3c] sm:$0xf] }
  0x78   : > { %1104 = vst.msk [vmem:[#allocation6 + $0x14] sm:$0xf] %vm422_vm2, %v982_v34  ;;  %v1001_v38 = vor.u32 %v1000_v31, %v997_v30  ;;  %v1010_v39 = vrot.slane %v1008_v1, 7  ;;  %v1025_v41 = vshrl.u32 %v906_v29, 16  ;;  %v1017_v27 = vrot.slane %v1015_v37, 6 }
  0x79   : > { %v992_v43 = vsel %vm5327_vm15, %v983_v35, %v991_v36  ;;  %v993_v44 = vrot.slane %v991_v36, 4  ;;  %v1028_v45 = vshll.u32 %v906_v29, 16  ;;  %v1020_v49 = vrot.slane %v1018_v40, 7  ;;  %v911_v10 = vld [vmem:[%s5028_s23 + $0x40] sm:$0x7] }
  0x7a   : > { %1105 = vst.msk [vmem:[#allocation6 + $0x18] sm:$0xf] %vm422_vm2, %v992_v43  ;;  %v1003_v47 = vrot.slane %v1001_v38, 4  ;;  %v1011_v48 = vor.u32 %v1010_v39, %v1007_v32  ;;  %v1027_v50 = vrot.slane %v1025_v41, 6  ;;  %v1035_v53 = vshrl.u32 %v907_v42, 16 }
  0x7b   : > { %v1002_v51 = vsel %vm5327_vm15, %v993_v44, %v1001_v38  ;;  %v1030_v52 = vrot.slane %v1028_v45, 7  ;;  %v1038_v54 = vshll.u32 %v907_v42, 16  ;;  %v1021_v33 = vor.u32 %v1020_v49, %v1017_v27  ;;  %v1115_v16 = vld [vmem:[%s5028_s23] sm:$0x8]  ;;  %v1116_v21 = vld [vmem:[%s5028_s23 + $0x4] sm:$0xf] }
  0x7c   : > { %1106 = vst.msk [vmem:[#allocation6 + $0x1c] sm:$0xf] %vm422_vm2, %v1002_v51  ;;  %v1012_v56 = vsel %vm5327_vm15, %v1003_v47, %v1011_v48  ;;  %v1013_v57 = vrot.slane %v1011_v48, 4  ;;  %v1045_v58 = vshrl.u32 %v908_v46, 16  ;;  %v1037_v60 = vrot.slane %v1035_v53, 6 }
  0x7d   : > { %1107 = vst.msk [vmem:[#allocation6 + $0x20] sm:$0xf] %vm422_vm2, %v1012_v56  ;;  %v1031_v59 = vor.u32 %v1030_v52, %v1027_v50  ;;  %v1040_v61 = vrot.slane %v1038_v54, 7  ;;  %v1048_v62 = vshll.u32 %v908_v46, 16  ;;  %v1023_v3 = vrot.slane %v1021_v33, 4 }
  0x7e   : > { %v1022_v2 = vsel %vm5327_vm15, %v1013_v57, %v1021_v33  ;;  %v1047_v4 = vrot.slane %v1045_v58, 6  ;;  %v1055_v5 = vshrl.u32 %v909_v55, 16  ;;  %v1058_v9 = vshll.u32 %v909_v55, 16  ;;  %v1117_v22 = vld [vmem:[%s5028_s23 + $0x8] sm:$0xf] }
  0x7f   : > { %1108 = vst.msk [vmem:[#allocation6 + $0x24] sm:$0xf] %vm422_vm2, %v1022_v2  ;;  %v1033_v6 = vrot.slane %v1031_v59, 4  ;;  %v1041_v7 = vor.u32 %v1040_v61, %v1037_v60  ;;  %v1050_v8 = vrot.slane %v1048_v62, 7  ;;  %v1032_v11 = vsel %vm5327_vm15, %v1023_v3, %v1031_v59  ;;  %v1118_v28 = vld [vmem:[%s5028_s23 + $0xc] sm:$0xf] }
  0x80   : > { %v1057_v12 = vrot.slane %v1055_v5, 6  ;;  %v1065_v14 = vshrl.u32 %v910_v63, 16  ;;  %v1068_v15 = vshll.u32 %v910_v63, 16  ;;  %1109 = vst.msk [vmem:[#allocation6 + $0x28] sm:$0xf] %vm422_vm2, %v1032_v11  ;;  %v1060_v20 = vrot.slane %v1058_v9, 7 }
  0x81   : > { %v1042_v17 = vsel %vm5327_vm15, %v1033_v6, %v1041_v7  ;;  %v1043_v18 = vrot.slane %v1041_v7, 4  ;;  %v1051_v19 = vor.u32 %v1050_v8, %v1047_v4  ;;  %v1075_v25 = vshrl.u32 %v911_v10, 16  ;;  %v1119_v34 = vld [vmem:[%s5028_s23 + $0x10] sm:$0xf]  ;;  %v1120_v39 = vld [vmem:[%s5028_s23 + $0x14] sm:$0xf] }
  0x82   : > { %1110 = vst.msk [vmem:[#allocation6 + $0x2c] sm:$0xf] %vm422_vm2, %v1042_v17  ;;  %v1067_v23 = vrot.slane %v1065_v14, 6  ;;  %v1070_v24 = vrot.slane %v1068_v15, 7  ;;  %v1078_v26 = vshll.u32 %v911_v10, 16  ;;  %v1061_v31 = vor.u32 %v1060_v20, %v1057_v12 }
  0x83   : > { %v1052_v29 = vsel %vm5327_vm15, %v1043_v18, %v1051_v19  ;;  %v1053_v30 = vrot.slane %v1051_v19, 4  ;;  %v3877_v1 = vrot.slane %v1115_v16, 11  ;;  %v1077_v36 = vrot.slane %v1075_v25, 6  ;;  %v1121_v44 = vld [vmem:[%s5028_s23 + $0x18] sm:$0xf] }
  0x84   : > { %1111 = vst.msk [vmem:[#allocation6 + $0x30] sm:$0xf] %vm422_vm2, %v1052_v29  ;;  %v1071_v35 = vor.u32 %v1070_v24, %v1067_v23  ;;  %v1080_v37 = vrot.slane %v1078_v26, 7  ;;  %v1154_v38 = vrot.slane %v1116_v21, 7  ;;  %v1063_v41 = vrot.slane %v1061_v31, 4 }
  0x85   : > { %v1062_v40 = vsel %vm5327_vm15, %v1053_v30, %v1061_v31  ;;  %v1157_v42 = vrot.slane %v1117_v22, 7  ;;  %v1160_v43 = vrot.slane %v1118_v28, 7  ;;  %v1122_v48 = vld [vmem:[%s5028_s23 + $0x1c] sm:$0xf]  ;;  %v1123_v49 = vld [vmem:[%s5028_s23 + $0x20] sm:$0xf] }
  0x86   : > { %1112 = vst.msk [vmem:[#allocation6 + $0x34] sm:$0xf] %vm422_vm2, %v1062_v40  ;;  %v1073_v27 = vrot.slane %v1071_v35, 4  ;;  %v1081_v45 = vor.u32 %v1080_v37, %v1077_v36  ;;  %v1155_v46 = vsel %vm5386_vm3, %v3877_v1, %v1154_v38  ;;  %v1156_v47 = vrot.slane %v1154_v38, 4  ;;  %v1124_v54 = vld [vmem:[%s5028_s23 + $0x24] sm:$0xf] }
  0x87   : > { %v1072_v50 = vsel %vm5327_vm15, %v1063_v41, %v1071_v35  ;;  %1217 = vst.msk [vmem:[#allocation7] sm:$0xf] %vm422_vm2, %v1155_v46  ;;  %v1159_v51 = vrot.slane %v1157_v42, 4  ;;  %v1162_v52 = vrot.slane %v1160_v43, 4  ;;  %v1163_v53 = vrot.slane %v1119_v34, 7 }
  0x88   : > { %1113 = vst.msk [vmem:[#allocation6 + $0x38] sm:$0xf] %vm422_vm2, %v1072_v50  ;;  %v1082_v55 = vsel %vm5327_vm15, %v1073_v27, %v1081_v45  ;;  %v1158_v56 = vsel %vm5386_vm3, %v1156_v47, %v1157_v42  ;;  %v1166_v57 = vrot.slane %v1120_v39, 7  ;;  %v1169_v33 = vrot.slane %v1121_v44, 7  ;;  %v1125_v58 = vld [vmem:[%s5028_s23 + $0x28] sm:$0xf] }
  0x89   : > { %v1126_v59 = vld [vmem:[%s5028_s23 + $0x2c] sm:$0xf]  ;;  %1114 = vst.msk [vmem:[#allocation6 + $0x3c] sm:$0xf] %vm422_vm2, %v1082_v55  ;;  %1218 = vst.msk [vmem:[#allocation7 + $0x4] sm:$0xf] %vm422_vm2, %v1158_v56  ;;  %v1161_v60 = vsel %vm5386_vm3, %v1159_v51, %v1160_v43  ;;  %v1164_v13 = vsel %vm5386_vm3, %v1162_v52, %v1163_v53 }
  0x8a   : > { %v1165_v61 = vrot.slane %v1163_v53, 4  ;;  %v1172_v62 = vrot.slane %v1122_v48, 7  ;;  %v1127_v63 = vld [vmem:[%s5028_s23 + $0x30] sm:$0xf]  ;;  %1219 = vst.msk [vmem:[#allocation7 + $0x8] sm:$0xf] %vm422_vm2, %v1161_v60 }
  0x8b   : > { %1220 = vst.msk [vmem:[#allocation7 + $0xc] sm:$0xf] %vm422_vm2, %v1164_v13  ;;  %v1168_v2 = vrot.slane %v1166_v57, 4  ;;  %v1171_v3 = vrot.slane %v1169_v33, 4  ;;  %v1175_v4 = vrot.slane %v1123_v49, 7  ;;  %v1178_v5 = vrot.slane %v1124_v54, 7 }
  0x8c   : > { %v1128_v6 = vld [vmem:[%s5028_s23 + $0x34] sm:$0xf]  ;;  %v1167_v7 = vsel %vm5386_vm3, %v1165_v61, %v1166_v57  ;;  %v1174_v8 = vrot.slane %v1172_v62, 4  ;;  %v1181_v9 = vrot.slane %v1125_v58, 7  ;;  %v1184_v10 = vrot.slane %v1126_v59, 7 }
  0x8d   : > { %v1129_v11 = vld [vmem:[%s5028_s23 + $0x38] sm:$0xf]  ;;  %1221 = vst.msk [vmem:[#allocation7 + $0x10] sm:$0xf] %vm422_vm2, %v1167_v7  ;;  %v1170_v12 = vsel %vm5386_vm3, %v1168_v2, %v1169_v33  ;;  %v1173_v14 = vsel %vm5386_vm3, %v1171_v3, %v1172_v62  ;;  %v1177_v15 = vrot.slane %v1175_v4, 4  ;;  %v1180_v16 = vrot.slane %v1178_v5, 4 }
  0x8e   : > { %v1130_v17 = vld [vmem:[%s5028_s23 + $0x3c] sm:$0xf]  ;;  %1222 = vst.msk [vmem:[#allocation7 + $0x14] sm:$0xf] %vm422_vm2, %v1170_v12  ;;  %1223 = vst.msk [vmem:[#allocation7 + $0x18] sm:$0xf] %vm422_vm2, %v1173_v14  ;;  %v1176_v18 = vsel %vm5386_vm3, %v1174_v8, %v1175_v4 }
  0x8f   : > { %v1183_v19 = vrot.slane %v1181_v9, 4  ;;  %v1186_v20 = vrot.slane %v1184_v10, 4  ;;  %v1187_v21 = vrot.slane %v1127_v63, 7  ;;  %v1131_v22 = vld [vmem:[%s5028_s23 + $0x40] sm:$0x7]  ;;  %v1179_v23 = vsel %vm5386_vm3, %v1177_v15, %v1178_v5 }
  0x90   : > { %1224 = vst.msk [vmem:[#allocation7 + $0x1c] sm:$0xf] %vm422_vm2, %v1176_v18  ;;  %v1182_v24 = vsel %vm5386_vm3, %v1180_v16, %v1181_v9  ;;  %v1190_v25 = vrot.slane %v1128_v6, 7  ;;  %v1193_v26 = vrot.slane %v1129_v11, 7  ;;  %1225 = vst.msk [vmem:[#allocation7 + $0x20] sm:$0xf] %vm422_vm2, %v1179_v23 }
  0x91   : > { %1226 = vst.msk [vmem:[#allocation7 + $0x24] sm:$0xf] %vm422_vm2, %v1182_v24  ;;  %v1185_v28 = vsel %vm5386_vm3, %v1183_v19, %v1184_v10  ;;  %v1188_v29 = vsel %vm5386_vm3, %v1186_v20, %v1187_v21  ;;  %v1189_v30 = vrot.slane %v1187_v21, 4  ;;  %v1196_v31 = vrot.slane %v1130_v17, 7 }
  0x92   : > { %1227 = vst.msk [vmem:[#allocation7 + $0x28] sm:$0xf] %vm422_vm2, %v1185_v28  ;;  %1228 = vst.msk [vmem:[#allocation7 + $0x2c] sm:$0xf] %vm422_vm2, %v1188_v29  ;;  %v1192_v1 = vrot.slane %v1190_v25, 4  ;;  %v1195_v34 = vrot.slane %v1193_v26, 4 }
  0x93   : > { %v1199_v35 = vrot.slane %v1131_v22, 7  ;;  %v1191_v36 = vsel %vm5386_vm3, %v1189_v30, %v1190_v25  ;;  %v1198_v37 = vrot.slane %v1196_v31, 4 }
  0x94   : > { %1229 = vst.msk [vmem:[#allocation7 + $0x30] sm:$0xf] %vm422_vm2, %v1191_v36  ;;  %v1194_v38 = vsel %vm5386_vm3, %v1192_v1, %v1193_v26  ;;  %v1197_v39 = vsel %vm5386_vm3, %v1195_v34, %v1196_v31 }
  0x95   : > { %1230 = vst.msk [vmem:[#allocation7 + $0x34] sm:$0xf] %vm422_vm2, %v1194_v38  ;;  %1231 = vst.msk [vmem:[#allocation7 + $0x38] sm:$0xf] %vm422_vm2, %v1197_v39  ;;  %v1200_v40 = vsel %vm5386_vm3, %v1198_v37, %v1199_v35 }
  0x96   : > { %1232 = vst.msk [vmem:[#allocation7 + $0x3c] sm:$0xf] %vm422_vm2, %v1200_v40 }
  0x97 LB: >> { %v4810_v41 = vld [vmem:[%s6121_s1 + $0x38] sm:$0xff]   ;;  %v4980_v42 = vmov 0.0   ;;  %v4812_v43 = vld [vmem:[%s6121_s1 + $0x30] sm:$0xff]   ;;  %vm4981_vm2 = vmmov 0   ;;  %s5480_s7 = sshll.u32 %s4978_s27, 4  ;;  %v4814_v27 = vld [vmem:[%s6121_s1 + $0x28] sm:$0xff]   ;;  %s4978_s27 = sphi %s5461_s27, %s1239_s27  }
  0x98   : >> { %4439 = vmatprep.subr.bf16.mxu0 %v4980_v42  ;;  %4451 = vmatprep.subr.bf16.mxu1 %v4980_v42  ;;  %v4811_v32 = vld [vmem:[%s6121_s1 + $0x18] sm:$0xff]   ;;  %v4813_v44 = vld [vmem:[%s6121_s1 + $0x10] sm:$0xff]   ;;  %s1256_s10 = sadd.s32 32, %s5480_s7  ;;  %v4815_v45 = vld [vmem:[%s6121_s1 + $0x8] sm:$0xff]   ;;  %s1241_s21 = sadd.s32 48, %s5480_s7  ;;  %vm1301_vm4 = vcmask 523264  }
  0x99   : >> { %4440 = vmatpush3.bf16.msra.mxu0 %v4810_v41  ;;  %4447 = vmatprep.mubr.msk.bf16.mxu0 %vm4981_vm2, %v4980_v42  ;;  %s1257_s11 = sshra.s32 %s1256_s10, 3  ;;  %s1242_s22 = sshra.s32 %s1241_s21, 3  ;;  %v4816_v46 = vld [vmem:[%s6121_s1 + $0x20] sm:$0xff]   ;;  %v4820_v49 = vld [vmem:[%s6121_s1 + $0x58] sm:$0xff]   ;;  %v4822_v52 = vld [vmem:[%s6121_s1 + $0x50] sm:$0xff]  }
  0x9a   : >> { %4452 = vmatpush3.bf16.msra.mxu1 %v4811_v32  ;;  %4441 = vmatprep.subr.bf16.mxu0 %v4980_v42  ;;  %s5490_s12 = sshll.u32 %s1257_s11, 2  ;;  %s5505_s28 = sshll.u32 %s1242_s22, 2  ;;  %v4817_v47 = vld [vmem:[%s6121_s1] sm:$0xff]   ;;  %v4821_v51 = vld [vmem:[%s6121_s1 + $0x78] sm:$0xff]   ;;  %v4823_v53 = vld [vmem:[%s6121_s1 + $0x70] sm:$0xff]  }
  0x9b   : >> { %4453 = vmatprep.subr.bf16.mxu1 %v4980_v42  ;;  %4459 = vmatprep.mubr.msk.bf16.mxu1 %vm4981_vm2, %v4980_v42  ;;  %s1260_s20 = scalar_lea.vmem [#allocation3], %s5490_s12  ;;  %s1245_s4 = scalar_lea.vmem [#allocation4], %s5505_s28  ;;  %v4824_v54 = vld [vmem:[%s6121_s1 + $0x48] sm:$0xff]   ;;  %v4826_v56 = vld [vmem:[%s6121_s1 + $0x40] sm:$0xff]   ;;  %v4830_v59 = vld [vmem:[%s6121_s1 + $0x98] sm:$0xff]  }
  0x9c   : >> { %v4818_v48 = vld [vmem:[%s1260_s20] sm:$0xff]   ;;  %s1420_s16 = scalar_lea.vmem [#allocation4], %s5490_s12  ;;  %s1508_s19 = scalar_lea.vmem [#allocation5], %s5490_s12  ;;  %v4825_v55 = vld [vmem:[%s6121_s1 + $0x68] sm:$0xff]   ;;  %v4831_v60 = vld [vmem:[%s6121_s1 + $0xb8] sm:$0xff]  }
  0x9d   : >> { %4442 = vmatpush3.bf16.msra.mxu0 %v4812_v43  ;;  %v5518_v50 = vld [vmem:[%s1245_s4] sm:$0xff]   ;;  %s1596_s5 = scalar_lea.vmem [#allocation3], %s5505_s28  ;;  %s1847_s6 = sadd.s32 64, %s5480_s7  ;;  %v4832_v13 = vld [vmem:[%s6121_s1 + $0x90] sm:$0xff]   ;;  %v4834_v62 = vld [vmem:[%s6121_s1 + $0x88] sm:$0xff]  }
  0x9e   : >> { %4454 = vmatpush3.bf16.msra.mxu1 %v4813_v44  ;;  %4443 = vmatprep.subr.bf16.mxu0 %v4980_v42  ;;  %v4827_v57 = vld [vmem:[%s6121_s1 + $0x60] sm:$0xff]   ;;  %s1848_s17 = sshra.s32 %s1847_s6, 3  ;;  %v4833_v61 = vld [vmem:[%s6121_s1 + $0xb0] sm:$0xff]   ;;  %s1760_s22 = scalar_lea.vmem [#allocation5], %s5505_s28  ;;  %v4835_v63 = vld [vmem:[%s6121_s1 + $0xa8] sm:$0xff]  }
  0x9f   : >> { %4455 = vmatprep.subr.bf16.mxu1 %v4980_v42  ;;  %v4828_v33 = vld [vmem:[%s1420_s16] sm:$0xff]   ;;  %v4839_v5 = vld [vmem:[%s6121_s1 + $0xd8] sm:$0xff]   ;;  %s2114_s21 = sadd.s32 16, %s5480_s7  ;;  %v4841_v7 = vld [vmem:[%s6121_s1 + $0xd0] sm:$0xff]   ;;  %s2633_s11 = sadd.s32 80, %s5480_s7 }
  0xa0   : >> { %v4829_v58 = vld [vmem:[%s1508_s19] sm:$0xff]   ;;  %s5573_s19 = sshll.u32 %s1848_s17, 2  ;;  %v4840_v6 = vld [vmem:[%s6121_s1 + $0xf8] sm:$0xff]   ;;  %s2115_s29 = sshra.s32 %s2114_s21, 3  ;;  %v4842_v8 = vld [vmem:[%s6121_s1 + $0xf0] sm:$0xff]  }
  0xa1   : >> { %4444 = vmatpush3.bf16.msra.mxu0 %v4814_v27  ;;  %s1851_s25 = scalar_lea.vmem [#allocation3], %s5573_s19  ;;  %v4836_v2 = vld [vmem:[%s6121_s1 + $0x80] sm:$0xff]   ;;  %s1939_s20 = scalar_lea.vmem [#allocation4], %s5573_s19  ;;  %v4843_v9 = vld [vmem:[%s6121_s1 + $0xc8] sm:$0xff]   ;;  %v4849_v16 = vld [vmem:[%s6121_s1 + $0x118] sm:$0xff]  }
  0xa2   : >> { %4456 = vmatpush3.bf16.msra.mxu1 %v4815_v45  ;;  %4445 = vmatprep.subr.bf16.mxu0 %v4980_v42  ;;  %v4837_v3 = vld [vmem:[%s6121_s1 + $0xa0] sm:$0xff]   ;;  %s2027_s12 = scalar_lea.vmem [#allocation5], %s5573_s19  ;;  %s5630_s8 = sshll.u32 %s2115_s29, 2  ;;  %v4844_v10 = vld [vmem:[%s6121_s1 + $0xe8] sm:$0xff]   ;;  %v4850_v17 = vld [vmem:[%s6121_s1 + $0x138] sm:$0xff]  }
  0xa3   : >> { %4457 = vmatprep.subr.bf16.mxu1 %v4980_v42  ;;  %v4838_v4 = vld [vmem:[%s1596_s5] sm:$0xff]   ;;  %s2118_s16 = scalar_lea.vmem [#allocation2], %s5630_s8  ;;  %s2206_s5 = scalar_lea.vmem [#allocation4], %s5630_s8  ;;  %v4851_v18 = vld [vmem:[%s6121_s1 + $0x110] sm:$0xff]   ;;  %v4853_v20 = vld [vmem:[%s6121_s1 + $0x108] sm:$0xff]  }
  0xa4   : >> { %v4845_v11 = vld [vmem:[%s6121_s1 + $0xc0] sm:$0xff]   ;;  %v4852_v19 = vld [vmem:[%s6121_s1 + $0x130] sm:$0xff]   ;;  %s2294_s18 = scalar_lea.vmem [#allocation6], %s5630_s8  ;;  %s2382_s21 = scalar_lea.vmem [#allocation2], %s5505_s28  ;;  %v4854_v21 = vld [vmem:[%s6121_s1 + $0x128] sm:$0xff]  }
  0xa5   : >> { %4446 = vmatpush3.bf16.msra.mxu0 %v4816_v46  ;;  %v4846_v12 = vld [vmem:[%s6121_s1 + $0xe0] sm:$0xff]   ;;  %s2546_s17 = scalar_lea.vmem [#allocation6], %s5505_s28  ;;  %v4859_v26 = vld [vmem:[%s6121_s1 + $0x158] sm:$0xff]   ;;  %s2634_s9 = sshra.s32 %s2633_s11, 3  ;;  %v4861_v29 = vld [vmem:[%s6121_s1 + $0x150] sm:$0xff]  }
  0xa6   : >> { %4458 = vmatpush3.bf16.msra.mxu1 %v4817_v47  ;;  %4463 = vmatprep.subr.bf16.mxu0 %v4980_v42  ;;  %v4847_v14 = vld [vmem:[%s1760_s22] sm:$0xff]   ;;  %v4860_v28 = vld [vmem:[%s6121_s1 + $0x178] sm:$0xff]   ;;  %v4862_v30 = vld [vmem:[%s6121_s1 + $0x170] sm:$0xff]   ;;  %s3167_s11 = scalar_lea.vmem %s5028_s23, %s5505_s28  ;;  %s3418_s30 = sadd.s32 96, %s5480_s7 }
  0xa7   : >> { %4475 = vmatprep.subr.bf16.mxu1 %v4980_v42  ;;  %v4848_v15 = vld [vmem:[%s1851_s25] sm:$0xff]   ;;  %v4863_v31 = vld [vmem:[%s6121_s1 + $0x148] sm:$0xff]   ;;  %v4869_v38 = vld [vmem:[%s6121_s1 + $0x198] sm:$0xff]   ;;  %s1239_s27 = sadd.s32 1, %s4978_s27  }
  0xa8   : >> { %4448 = vmatmul.mubr.msk.bf16.vlgmr.msra.gmra.mxu0 %vm1301_vm4, %v4818_v48  ;;  %v4855_v22 = vld [vmem:[%s6121_s1 + $0x100] sm:$0xff]   ;;  %v4864_v1 = vld [vmem:[%s6121_s1 + $0x168] sm:$0xff]   ;;  %v4870_v39 = vld [vmem:[%s6121_s1 + $0x1b8] sm:$0xff]   ;;  %p1236_p5 = scmp.ge.s32.totalorder %s1239_s27, 2  }
  0xa9   : >> { %4460 = vmatmul.mubr.msk.bf16.vlgmr.msra.gmra.mxu1 %vm1301_vm4, %v5518_v50  ;;  %4464 = vmatpush3.bf16.msra.mxu0 %v4820_v49  ;;  %v4856_v23 = vld [vmem:[%s6121_s1 + $0x120] sm:$0xff]   ;;  %v4871_v40 = vld [vmem:[%s6121_s1 + $0x190] sm:$0xff]   ;;  %v4873_v32 = vld [vmem:[%s6121_s1 + $0x188] sm:$0xff]  }
  0xaa   : >> { %4476 = vmatpush3.bf16.msra.mxu1 %v4821_v51  ;;  %4465 = vmatprep.subr.bf16.mxu0 %v4980_v42  ;;  %v4857_v24 = vld [vmem:[%s1939_s20] sm:$0xff]   ;;  %s2900_s20 = sshra.s32 %s5480_s7, 3  ;;  %v4872_v41 = vld [vmem:[%s6121_s1 + $0x1b0] sm:$0xff]   ;;  %v4874_v43 = vld [vmem:[%s6121_s1 + $0x1a8] sm:$0xff]  }
  0xab   : >> { %4477 = vmatprep.subr.bf16.mxu1 %v4980_v42  ;;  %4471 = vmatprep.mubr.msk.bf16.mxu0 %vm4981_vm2, %v4980_v42  ;;  %v4858_v25 = vld [vmem:[%s2027_s12] sm:$0xff]   ;;  %s5713_s12 = sshll.u32 %s2634_s9, 2  ;;  %s5747_s25 = sshll.u32 %s2900_s20, 2  ;;  %v4879_v47 = vld [vmem:[%s6121_s1 + $0x1d8] sm:$0xff]   ;;  %v4881_v49 = vld [vmem:[%s6121_s1 + $0x1d0] sm:$0xff]  }
  0xac   : >> { %4483 = vmatprep.mubr.msk.bf16.mxu1 %vm4981_vm2, %v4980_v42  ;;  %s2637_s24 = scalar_lea.vmem [#allocation2], %s5713_s12  ;;  %s2725_s6 = scalar_lea.vmem [#allocation4], %s5713_s12  ;;  %v4865_v34 = vld [vmem:[%s6121_s1 + $0x140] sm:$0xff]   ;;  %v4880_v48 = vld [vmem:[%s6121_s1 + $0x1f8] sm:$0xff]   ;;  %v4882_v51 = vld [vmem:[%s6121_s1 + $0x1f0] sm:$0xff]  }
  0xad   : >> { %4466 = vmatpush3.bf16.msra.mxu0 %v4822_v52  ;;  %v4866_v35 = vld [vmem:[%s6121_s1 + $0x160] sm:$0xff]   ;;  %s2903_s19 = scalar_lea.vmem %s5028_s23, %s5747_s25  ;;  %s2991_s10 = scalar_lea.vmem [#allocation4], %s5747_s25  ;;  %v4883_v52 = vld [vmem:[%s6121_s1 + $0x1c8] sm:$0xff]  }
  0xae   : >> { %4478 = vmatpush3.bf16.msra.mxu1 %v4823_v53  ;;  %4467 = vmatprep.subr.bf16.mxu0 %v4980_v42  ;;  %v4867_v36 = vld [vmem:[%s2118_s16] sm:$0xff]   ;;  %s2813_s16 = scalar_lea.vmem [#allocation6], %s5713_s12  ;;  %s3079_s29 = scalar_lea.vmem [#allocation7], %s5747_s25  ;;  %v4884_v53 = vld [vmem:[%s6121_s1 + $0x1e8] sm:$0xff]  }
  0xaf   : >> { %4479 = vmatprep.subr.bf16.mxu1 %v4980_v42  ;;  %v4868_v37 = vld [vmem:[%s2206_s5] sm:$0xff]  }
  0xb0   : >> { %v4875_v44 = vld [vmem:[%s6121_s1 + $0x180] sm:$0xff]  }
  0xb1   : >> { %4468 = vmatpush3.bf16.msra.mxu0 %v4824_v54  ;;  %v4876_v27 = vld [vmem:[%s6121_s1 + $0x1a0] sm:$0xff]  }
  0xb2   : >> { %4480 = vmatpush3.bf16.msra.mxu1 %v4825_v55  ;;  %4469 = vmatprep.subr.bf16.mxu0 %v4980_v42  ;;  %v4877_v45 = vld [vmem:[%s2294_s18] sm:$0xff]   ;;  %s3419_s18 = sshra.s32 %s3418_s30, 3  ;;  %s3331_s30 = scalar_lea.vmem [#allocation7], %s5505_s28 }
  0xb3   : >> { %4481 = vmatprep.subr.bf16.mxu1 %v4980_v42  ;;  %v4878_v46 = vld [vmem:[%s2382_s21] sm:$0xff]   ;;  %s5832_s22 = sshll.u32 %s3419_s18, 2 }
  0xb4   : >> { %v4885_v54 = vld [vmem:[%s6121_s1 + $0x1c0] sm:$0xff]   ;;  %s3510_s9 = scalar_lea.vmem [#allocation4], %s5832_s22  ;;  %s3598_s5 = scalar_lea.vmem [#allocation7], %s5832_s22 }
  0xb5   : >> { %4470 = vmatpush3.bf16.msra.mxu0 %v4826_v56  ;;  %v4886_v55 = vld [vmem:[%s6121_s1 + $0x1e0] sm:$0xff]  }
  0xb6   : >> { %4482 = vmatpush3.bf16.msra.mxu1 %v4827_v57  ;;  %4487 = vmatprep.subr.bf16.mxu0 %v4980_v42  ;;  %v4887_v56 = vld [vmem:[%s2546_s17] sm:$0xff]   ;;  %v4888_v57 = vld [vmem:[%s6121_s1 + $0x218] sm:$0xff]  }
  0xb7   : >> { %4499 = vmatprep.subr.bf16.mxu1 %v4980_v42 }
  0xb8   : >> { %4472 = vmatmul.mubr.msk.bf16.vlgmr.msra.gmra.mxu0 %vm1301_vm4, %v4828_v33  ;;  %v4889_v33 = vld [vmem:[%s6121_s1 + $0x238] sm:$0xff]  }
  0xb9   : >> { %4484 = vmatmul.mubr.msk.bf16.vlgmr.msra.gmra.mxu1 %vm1301_vm4, %v4829_v58  ;;  %4488 = vmatpush3.bf16.msra.mxu0 %v4830_v59  ;;  %v4890_v58 = vld [vmem:[%s6121_s1 + $0x210] sm:$0xff]  }
  0xba   : >> { %4500 = vmatpush3.bf16.msra.mxu1 %v4831_v60  ;;  %4489 = vmatprep.subr.bf16.mxu0 %v4980_v42  ;;  %v4891_v59 = vld [vmem:[%s6121_s1 + $0x230] sm:$0xff]   ;;  %v4893_v60 = vld [vmem:[%s6121_s1 + $0x228] sm:$0xff]  }
  0xbb   : >> { %4501 = vmatprep.subr.bf16.mxu1 %v4980_v42  ;;  %4495 = vmatprep.mubr.msk.bf16.mxu0 %vm4981_vm2, %v4980_v42 }
  0xbc   : >> { %4507 = vmatprep.mubr.msk.bf16.mxu1 %vm4981_vm2, %v4980_v42 }
  0xbd   : >> { %4490 = vmatpush3.bf16.msra.mxu0 %v4832_v13  ;;  %v4894_v13 = vld [vmem:[%s6121_s1 + $0x200] sm:$0xff]  }
  0xbe   : >> { %4502 = vmatpush3.bf16.msra.mxu1 %v4833_v61  ;;  %4491 = vmatprep.subr.bf16.mxu0 %v4980_v42  ;;  %v4895_v61 = vld [vmem:[%s6121_s1 + $0x220] sm:$0xff]  }
  0xbf   : >> { %4503 = vmatprep.subr.bf16.mxu1 %v4980_v42 }
  0xc1   : >> { %4492 = vmatpush3.bf16.msra.mxu0 %v4834_v62  ;;  %v4896_v62 = vld [vmem:[%s2637_s24] sm:$0xff]  }
  0xc2   : >> { %4504 = vmatpush3.bf16.msra.mxu1 %v4835_v63  ;;  %4493 = vmatprep.subr.bf16.mxu0 %v4980_v42  ;;  %v4897_v63 = vld [vmem:[%s2725_s6] sm:$0xff]  }
  0xc3   : >> { %4505 = vmatprep.subr.bf16.mxu1 %v4980_v42 }
  0xc5   : >> { %4494 = vmatpush3.bf16.msra.mxu0 %v4836_v2  ;;  %v4898_v2 = vld [vmem:[%s6121_s1 + $0x258] sm:$0xff]  }
  0xc6   : >> { %4506 = vmatpush3.bf16.msra.mxu1 %v4837_v3  ;;  %4511 = vmatprep.subr.bf16.mxu0 %v4980_v42  ;;  %v4899_v3 = vld [vmem:[%s6121_s1 + $0x278] sm:$0xff]  }
  0xc7   : >> { %4523 = vmatprep.subr.bf16.mxu1 %v4980_v42 }
  0xc8   : >> { %4496 = vmatmul.mubr.msk.bf16.vlgmr.msra.gmra.mxu0 %vm1301_vm4, %v4838_v4  ;;  %v4900_v4 = vld [vmem:[%s6121_s1 + $0x250] sm:$0xff]  }
  0xc9   : >> { %4508 = vmatmul.mubr.msk.bf16.vlgmr.msra.gmra.mxu1 %vm1301_vm4, %v5518_v50  ;;  %4512 = vmatpush3.bf16.msra.mxu0 %v4839_v5  ;;  %v4901_v5 = vld [vmem:[%s6121_s1 + $0x270] sm:$0xff]  }
  0xca   : >> { %4524 = vmatpush3.bf16.msra.mxu1 %v4840_v6  ;;  %4513 = vmatprep.subr.bf16.mxu0 %v4980_v42  ;;  %v4902_v6 = vld [vmem:[%s6121_s1 + $0x248] sm:$0xff]  }
  0xcb   : >> { %4525 = vmatprep.subr.bf16.mxu1 %v4980_v42  ;;  %4519 = vmatprep.mubr.msk.bf16.mxu0 %vm4981_vm2, %v4980_v42 }
  0xcc   : >> { %4531 = vmatprep.mubr.msk.bf16.mxu1 %vm4981_vm2, %v4980_v42 }
  0xcd   : >> { %4514 = vmatpush3.bf16.msra.mxu0 %v4841_v7  ;;  %v4903_v7 = vld [vmem:[%s6121_s1 + $0x268] sm:$0xff]  }
  0xce   : >> { %4526 = vmatpush3.bf16.msra.mxu1 %v4842_v8  ;;  %4515 = vmatprep.subr.bf16.mxu0 %v4980_v42  ;;  %v4904_v8 = vld [vmem:[%s6121_s1 + $0x240] sm:$0xff]  }
  0xcf   : >> { %4527 = vmatprep.subr.bf16.mxu1 %v4980_v42 }
  0xd1   : >> { %4516 = vmatpush3.bf16.msra.mxu0 %v4843_v9  ;;  %v4905_v9 = vld [vmem:[%s6121_s1 + $0x260] sm:$0xff]  }
  0xd2   : >> { %4528 = vmatpush3.bf16.msra.mxu1 %v4844_v10  ;;  %4517 = vmatprep.subr.bf16.mxu0 %v4980_v42  ;;  %v4906_v10 = vld [vmem:[%s2813_s16] sm:$0xff]  }
  0xd3   : >> { %4529 = vmatprep.subr.bf16.mxu1 %v4980_v42 }
  0xd5   : >> { %4518 = vmatpush3.bf16.msra.mxu0 %v4845_v11  ;;  %v4907_v11 = vld [vmem:[%s2903_s19] sm:$0xff]  }
  0xd6   : >> { %4530 = vmatpush3.bf16.msra.mxu1 %v4846_v12  ;;  %4535 = vmatprep.subr.bf16.mxu0 %v4980_v42  ;;  %v4908_v12 = vld [vmem:[%s6121_s1 + $0x298] sm:$0xff]  }
  0xd7   : >> { %4547 = vmatprep.subr.bf16.mxu1 %v4980_v42 }
  0xd8   : >> { %4520 = vmatmul.mubr.msk.bf16.vlgmr.msra.gmra.mxu0 %vm1301_vm4, %v4847_v14  ;;  %v4909_v14 = vld [vmem:[%s6121_s1 + $0x2b8] sm:$0xff]  }
  0xd9   : >> { %4532 = vmatmul.mubr.msk.bf16.vlgmr.msra.gmra.mxu1 %vm1301_vm4, %v4848_v15  ;;  %4536 = vmatpush3.bf16.msra.mxu0 %v4849_v16  ;;  %v4910_v15 = vld [vmem:[%s6121_s1 + $0x290] sm:$0xff]  }
  0xda   : >> { %4548 = vmatpush3.bf16.msra.mxu1 %v4850_v17  ;;  %4537 = vmatprep.subr.bf16.mxu0 %v4980_v42  ;;  %v4911_v16 = vld [vmem:[%s6121_s1 + $0x2b0] sm:$0xff]   ;;  %v4912_v17 = vld [vmem:[%s6121_s1 + $0x288] sm:$0xff]  }
  0xdb   : >> { %4549 = vmatprep.subr.bf16.mxu1 %v4980_v42  ;;  %4543 = vmatprep.mubr.msk.bf16.mxu0 %vm4981_vm2, %v4980_v42 }
  0xdc   : >> { %4555 = vmatprep.mubr.msk.bf16.mxu1 %vm4981_vm2, %v4980_v42 }
  0xdd   : >> { %4538 = vmatpush3.bf16.msra.mxu0 %v4851_v18  ;;  %v4913_v18 = vld [vmem:[%s6121_s1 + $0x2a8] sm:$0xff]  }
  0xde   : >> { %4550 = vmatpush3.bf16.msra.mxu1 %v4852_v19  ;;  %4539 = vmatprep.subr.bf16.mxu0 %v4980_v42  ;;  %v4914_v19 = vld [vmem:[%s6121_s1 + $0x280] sm:$0xff]  }
  0xdf   : >> { %4551 = vmatprep.subr.bf16.mxu1 %v4980_v42 }
  0xe1   : >> { %4540 = vmatpush3.bf16.msra.mxu0 %v4853_v20  ;;  %v4915_v20 = vld [vmem:[%s6121_s1 + $0x2a0] sm:$0xff]  }
  0xe2   : >> { %4552 = vmatpush3.bf16.msra.mxu1 %v4854_v21  ;;  %4541 = vmatprep.subr.bf16.mxu0 %v4980_v42  ;;  %v4916_v21 = vld [vmem:[%s2991_s10] sm:$0xff]   ;;  %s6136_s10 = scalar_lea.vmem %s5028_s23, %s5832_s22  ;;  %s3706_s22 = scalar_lea.vmem %s5033_s26, %s5747_s25 }
  0xe3   : >> { %4553 = vmatprep.subr.bf16.mxu1 %v4980_v42 }
  0xe5   : >> { %4542 = vmatpush3.bf16.msra.mxu0 %v4855_v22  ;;  %v4917_v22 = vld [vmem:[%s3079_s29] sm:$0xff]  }
  0xe6   : >> { %4554 = vmatpush3.bf16.msra.mxu1 %v4856_v23  ;;  %4559 = vmatprep.subr.bf16.mxu0 %v4980_v42  ;;  %v4918_v23 = vld [vmem:[%s6121_s1 + $0x2d8] sm:$0xff]  }
  0xe7   : >> { %4571 = vmatprep.subr.bf16.mxu1 %v4980_v42 }
  0xe8   : >> { %4544 = vmatmul.mubr.msk.bf16.vlgmr.msra.gmra.mxu0 %vm1301_vm4, %v4857_v24  ;;  %v4919_v24 = vld [vmem:[%s6121_s1 + $0x2f8] sm:$0xff]  }
  0xe9   : >> { %4556 = vmatmul.mubr.msk.bf16.vlgmr.msra.gmra.mxu1 %vm1301_vm4, %v4858_v25  ;;  %4560 = vmatpush3.bf16.msra.mxu0 %v4859_v26  ;;  %v4920_v25 = vld [vmem:[%s6121_s1 + $0x2d0] sm:$0xff]  }
  0xea   : >> { %4572 = vmatpush3.bf16.msra.mxu1 %v4860_v28  ;;  %4561 = vmatprep.subr.bf16.mxu0 %v4980_v42  ;;  %v4921_v26 = vld [vmem:[%s6121_s1 + $0x2f0] sm:$0xff]   ;;  %v4922_v28 = vld [vmem:[%s6121_s1 + $0x2c8] sm:$0xff]  }
  0xeb   : >> { %4573 = vmatprep.subr.bf16.mxu1 %v4980_v42  ;;  %4567 = vmatprep.mubr.msk.bf16.mxu0 %vm4981_vm2, %v4980_v42 }
  0xec   : >> { %4579 = vmatprep.mubr.msk.bf16.mxu1 %vm4981_vm2, %v4980_v42 }
  0xed   : >> { %4562 = vmatpush3.bf16.msra.mxu0 %v4861_v29  ;;  %v4923_v29 = vld [vmem:[%s6121_s1 + $0x2e8] sm:$0xff]  }
  0xee   : >> { %4574 = vmatpush3.bf16.msra.mxu1 %v4862_v30  ;;  %4563 = vmatprep.subr.bf16.mxu0 %v4980_v42  ;;  %v4924_v30 = vld [vmem:[%s6121_s1 + $0x2c0] sm:$0xff]  }
  0xef   : >> { %4575 = vmatprep.subr.bf16.mxu1 %v4980_v42 }
  0xf1   : >> { %4564 = vmatpush3.bf16.msra.mxu0 %v4863_v31  ;;  %v4925_v31 = vld [vmem:[%s6121_s1 + $0x2e0] sm:$0xff]  }
  0xf2   : >> { %4576 = vmatpush3.bf16.msra.mxu1 %v4864_v1  ;;  %4565 = vmatprep.subr.bf16.mxu0 %v4980_v42  ;;  %v4926_v1 = vld [vmem:[%s3167_s11] sm:$0xff]  }
  0xf3   : >> { %4577 = vmatprep.subr.bf16.mxu1 %v4980_v42 }
  0xf5   : >> { %4566 = vmatpush3.bf16.msra.mxu0 %v4865_v34  ;;  %v4927_v34 = vld [vmem:[%s6121_s1 + $0x318] sm:$0xff]  }
  0xf6   : >> { %4578 = vmatpush3.bf16.msra.mxu1 %v4866_v35  ;;  %4583 = vmatprep.subr.bf16.mxu0 %v4980_v42  ;;  %v4928_v35 = vld [vmem:[%s6121_s1 + $0x338] sm:$0xff]  }
  0xf7   : >> { %4595 = vmatprep.subr.bf16.mxu1 %v4980_v42 }
  0xf8   : >> { %4568 = vmatmul.mubr.msk.bf16.vlgmr.msra.gmra.mxu0 %vm1301_vm4, %v4867_v36  ;;  %v4947_v36 = vld [vmem:[%s1245_s4] sm:$0xff]  }
  0xf9   : >> { %4580 = vmatmul.mubr.msk.bf16.vlgmr.msra.gmra.mxu1 %vm1301_vm4, %v4868_v37  ;;  %4584 = vmatpush3.bf16.msra.mxu0 %v4869_v38  ;;  %v4929_v37 = vld [vmem:[%s6121_s1 + $0x310] sm:$0xff]  }
  0xfa   : >> { %4596 = vmatpush3.bf16.msra.mxu1 %v4870_v39  ;;  %4585 = vmatprep.subr.bf16.mxu0 %v4980_v42  ;;  %v4930_v38 = vld [vmem:[%s6121_s1 + $0x330] sm:$0xff]   ;;  %v4931_v39 = vld [vmem:[%s6121_s1 + $0x308] sm:$0xff]  }
  0xfb   : >> { %4597 = vmatprep.subr.bf16.mxu1 %v4980_v42  ;;  %4591 = vmatprep.mubr.msk.bf16.mxu0 %vm4981_vm2, %v4980_v42 }
  0xfc   : >> { %4603 = vmatprep.mubr.msk.bf16.mxu1 %vm4981_vm2, %v4980_v42 }
  0xfd   : >> { %4586 = vmatpush3.bf16.msra.mxu0 %v4871_v40  ;;  %v4932_v40 = vld [vmem:[%s6121_s1 + $0x328] sm:$0xff]  }
  0xfe   : >> { %4598 = vmatpush3.bf16.msra.mxu1 %v4872_v41  ;;  %4587 = vmatprep.subr.bf16.mxu0 %v4980_v42  ;;  %v4933_v41 = vld [vmem:[%s6121_s1 + $0x300] sm:$0xff]  }
  0xff   : >> { %4599 = vmatprep.subr.bf16.mxu1 %v4980_v42 }
 0x101   : >> { %4588 = vmatpush3.bf16.msra.mxu0 %v4873_v32  ;;  %v4934_v32 = vld [vmem:[%s6121_s1 + $0x320] sm:$0xff]  }
 0x102   : >> { %4600 = vmatpush3.bf16.msra.mxu1 %v4874_v43  ;;  %4589 = vmatprep.subr.bf16.mxu0 %v4980_v42  ;;  %v4935_v43 = vld [vmem:[%s3331_s30] sm:$0xff]  }
 0x103   : >> { %4601 = vmatprep.subr.bf16.mxu1 %v4980_v42 }
 0x105   : >> { %4590 = vmatpush3.bf16.msra.mxu0 %v4875_v44  ;;  %v4936_v44 = vld [vmem:[%s6136_s10] sm:$0xff]  }
 0x106   : >> { %4602 = vmatpush3.bf16.msra.mxu1 %v4876_v27  ;;  %4607 = vmatprep.subr.bf16.mxu0 %v4980_v42  ;;  %v4937_v27 = vld [vmem:[%s6121_s1 + $0x358] sm:$0xff]  }
 0x107   : >> { %4619 = vmatprep.subr.bf16.mxu1 %v4980_v42 }
 0x108   : >> { %4592 = vmatmul.mubr.msk.bf16.vlgmr.msra.gmra.mxu0 %vm1301_vm4, %v4877_v45  ;;  %v4938_v45 = vld [vmem:[%s6121_s1 + $0x378] sm:$0xff]  }
 0x109   : >> { %4604 = vmatmul.mubr.msk.bf16.vlgmr.msra.gmra.mxu1 %vm1301_vm4, %v4878_v46  ;;  %4608 = vmatpush3.bf16.msra.mxu0 %v4879_v47 }
 0x10a   : >> { %4620 = vmatpush3.bf16.msra.mxu1 %v4880_v48  ;;  %4609 = vmatprep.subr.bf16.mxu0 %v4980_v42  ;;  %v4939_v48 = vld [vmem:[%s6121_s1 + $0x350] sm:$0xff]  }
 0x10b   : >> { %4621 = vmatprep.subr.bf16.mxu1 %v4980_v42  ;;  %4615 = vmatprep.mubr.msk.bf16.mxu0 %vm4981_vm2, %v4980_v42 }
 0x10c   : >> { %4627 = vmatprep.mubr.msk.bf16.mxu1 %vm4981_vm2, %v4980_v42 }
 0x10d   : >> { %4610 = vmatpush3.bf16.msra.mxu0 %v4881_v49 }
 0x10e   : >> { %4622 = vmatpush3.bf16.msra.mxu1 %v4882_v51  ;;  %4611 = vmatprep.subr.bf16.mxu0 %v4980_v42 }
 0x10f   : >> { %4623 = vmatprep.subr.bf16.mxu1 %v4980_v42 }
 0x111   : >> { %4612 = vmatpush3.bf16.msra.mxu0 %v4883_v52  ;;  %v4940_v52 = vld [vmem:[%s6121_s1 + $0x370] sm:$0xff]  }
 0x112   : >> { %4624 = vmatpush3.bf16.msra.mxu1 %v4884_v53  ;;  %4613 = vmatprep.subr.bf16.mxu0 %v4980_v42 }
 0x113   : >> { %4625 = vmatprep.subr.bf16.mxu1 %v4980_v42 }
 0x115   : >> { %4614 = vmatpush3.bf16.msra.mxu0 %v4885_v54 }
 0x116   : >> { %4626 = vmatpush3.bf16.msra.mxu1 %v4886_v55  ;;  %4631 = vmatprep.subr.bf16.mxu0 %v4980_v42 }
 0x117   : >> { %4643 = vmatprep.subr.bf16.mxu1 %v4980_v42 }
 0x118   : >> { %4616 = vmatmul.mubr.msk.bf16.vlgmr.msra.gmra.mxu0 %vm1301_vm4, %v5518_v50  ;;  %v4892_v50 = vld [vmem:[%s6121_s1 + $0x208] sm:$0xff]  }
 0x119   : >> { %4628 = vmatmul.mubr.msk.bf16.vlgmr.msra.gmra.mxu1 %vm1301_vm4, %v4887_v56  ;;  %4632 = vmatpush3.bf16.msra.mxu0 %v4888_v57  ;;  %v4941_v56 = vld [vmem:[%s6121_s1 + $0x348] sm:$0xff]  }
 0x11a   : >> { %4644 = vmatpush3.bf16.msra.mxu1 %v4889_v33  ;;  %4633 = vmatprep.subr.bf16.mxu0 %v4980_v42 }
 0x11b   : >> { %4645 = vmatprep.subr.bf16.mxu1 %v4980_v42  ;;  %4639 = vmatprep.mubr.msk.bf16.mxu0 %vm4981_vm2, %v4980_v42 }
 0x11c   : >> { %4651 = vmatprep.mubr.msk.bf16.mxu1 %vm4981_vm2, %v4980_v42 }
 0x11d   : >> { %4634 = vmatpush3.bf16.msra.mxu0 %v4890_v58  ;;  %v4942_v58 = vld [vmem:[%s6121_s1 + $0x368] sm:$0xff]  }
 0x11e   : >> { %4646 = vmatpush3.bf16.msra.mxu1 %v4891_v59  ;;  %4635 = vmatprep.subr.bf16.mxu0 %v4980_v42 }
 0x11f   : >> { %4647 = vmatprep.subr.bf16.mxu1 %v4980_v42 }
 0x121   : >> { %4636 = vmatpush3.bf16.msra.mxu0 %v4892_v50  ;;  %v4943_v50 = vld [vmem:[%s6121_s1 + $0x340] sm:$0xff]  }
 0x122   : >> { %4648 = vmatpush3.bf16.msra.mxu1 %v4893_v60  ;;  %4637 = vmatprep.subr.bf16.mxu0 %v4980_v42  ;;  %v4944_v60 = vld [vmem:[%s6121_s1 + $0x360] sm:$0xff]  }
 0x123   : >> { %4649 = vmatprep.subr.bf16.mxu1 %v4980_v42 }
 0x125   : >> { %4638 = vmatpush3.bf16.msra.mxu0 %v4894_v13  ;;  %v4945_v13 = vld [vmem:[%s3510_s9] sm:$0xff]  }
 0x126   : >> { %4650 = vmatpush3.bf16.msra.mxu1 %v4895_v61  ;;  %4655 = vmatprep.subr.bf16.mxu0 %v4980_v42  ;;  %v4946_v61 = vld [vmem:[%s3598_s5] sm:$0xff]  }
 0x127   : >> { %4667 = vmatprep.subr.bf16.mxu1 %v4980_v42 }
 0x128   : >> { %4640 = vmatmul.mubr.msk.bf16.vlgmr.msra.gmra.mxu0 %vm1301_vm4, %v4896_v62 }
 0x129   : >> { %4652 = vmatmul.mubr.msk.bf16.vlgmr.msra.gmra.mxu1 %vm1301_vm4, %v4897_v63  ;;  %4656 = vmatpush3.bf16.msra.mxu0 %v4898_v2 }
 0x12a   : >> { %4668 = vmatpush3.bf16.msra.mxu1 %v4899_v3  ;;  %4657 = vmatprep.subr.bf16.mxu0 %v4980_v42 }
 0x12b   : >> { %4669 = vmatprep.subr.bf16.mxu1 %v4980_v42  ;;  %4663 = vmatprep.mubr.msk.bf16.mxu0 %vm4981_vm2, %v4980_v42 }
 0x12c   : >> { %4675 = vmatprep.mubr.msk.bf16.mxu1 %vm4981_vm2, %v4980_v42 }
 0x12d   : >> { %4658 = vmatpush3.bf16.msra.mxu0 %v4900_v4 }
 0x12e   : >> { %4670 = vmatpush3.bf16.msra.mxu1 %v4901_v5  ;;  %4659 = vmatprep.subr.bf16.mxu0 %v4980_v42 }
 0x12f   : >> { %4671 = vmatprep.subr.bf16.mxu1 %v4980_v42 }
 0x131   : >> { %4660 = vmatpush3.bf16.msra.mxu0 %v4902_v6 }
 0x132   : >> { %4672 = vmatpush3.bf16.msra.mxu1 %v4903_v7  ;;  %4661 = vmatprep.subr.bf16.mxu0 %v4980_v42 }
 0x133   : >> { %4673 = vmatprep.subr.bf16.mxu1 %v4980_v42 }
 0x135   : >> { %4662 = vmatpush3.bf16.msra.mxu0 %v4904_v8 }
 0x136   : >> { %4674 = vmatpush3.bf16.msra.mxu1 %v4905_v9  ;;  %4679 = vmatprep.subr.bf16.mxu0 %v4980_v42 }
 0x137   : >> { %4691 = vmatprep.subr.bf16.mxu1 %v4980_v42 }
 0x138   : >> { %4664 = vmatmul.mubr.msk.bf16.vlgmr.msra.gmra.mxu0 %vm1301_vm4, %v4906_v10 }
 0x139   : >> { %4676 = vmatmul.mubr.msk.bf16.vlgmr.msra.gmra.mxu1 %vm1301_vm4, %v4907_v11  ;;  %4680 = vmatpush3.bf16.msra.mxu0 %v4908_v12 }
 0x13a   : >> { %4692 = vmatpush3.bf16.msra.mxu1 %v4909_v14  ;;  %4681 = vmatprep.subr.bf16.mxu0 %v4980_v42 }
 0x13b   : >> { %4693 = vmatprep.subr.bf16.mxu1 %v4980_v42  ;;  %4687 = vmatprep.mubr.msk.bf16.mxu0 %vm4981_vm2, %v4980_v42 }
 0x13c   : >> { %4699 = vmatprep.mubr.msk.bf16.mxu1 %vm4981_vm2, %v4980_v42 }
 0x13d   : >> { %4682 = vmatpush3.bf16.msra.mxu0 %v4910_v15 }
 0x13e   : >> { %4694 = vmatpush3.bf16.msra.mxu1 %v4911_v16  ;;  %4683 = vmatprep.subr.bf16.mxu0 %v4980_v42 }
 0x13f   : >> { %4695 = vmatprep.subr.bf16.mxu1 %v4980_v42 }
 0x141   : >> { %4684 = vmatpush3.bf16.msra.mxu0 %v4912_v17 }
 0x142   : >> { %4696 = vmatpush3.bf16.msra.mxu1 %v4913_v18  ;;  %4685 = vmatprep.subr.bf16.mxu0 %v4980_v42 }
 0x143   : >> { %4697 = vmatprep.subr.bf16.mxu1 %v4980_v42 }
 0x145   : >> { %4686 = vmatpush3.bf16.msra.mxu0 %v4914_v19 }
 0x146   : >> { %4698 = vmatpush3.bf16.msra.mxu1 %v4915_v20  ;;  %4703 = vmatprep.subr.bf16.mxu0 %v4980_v42 }
 0x147   : >> { %4715 = vmatprep.subr.bf16.mxu1 %v4980_v42 }
 0x148   : >> { %4688 = vmatmul.mubr.msk.bf16.vlgmr.msra.gmra.mxu0 %vm1301_vm4, %v4916_v21 }
 0x149   : >> { %4700 = vmatmul.mubr.msk.bf16.vlgmr.msra.gmra.mxu1 %vm1301_vm4, %v4917_v22  ;;  %4704 = vmatpush3.bf16.msra.mxu0 %v4918_v23 }
 0x14a   : >> { %4716 = vmatpush3.bf16.msra.mxu1 %v4919_v24  ;;  %4705 = vmatprep.subr.bf16.mxu0 %v4980_v42 }
 0x14b   : >> { %4717 = vmatprep.subr.bf16.mxu1 %v4980_v42  ;;  %4711 = vmatprep.mubr.msk.bf16.mxu0 %vm4981_vm2, %v4980_v42 }
 0x14c   : >> { %4723 = vmatprep.mubr.msk.bf16.mxu1 %vm4981_vm2, %v4980_v42 }
 0x14d   : >> { %4706 = vmatpush3.bf16.msra.mxu0 %v4920_v25 }
 0x14e   : >> { %4718 = vmatpush3.bf16.msra.mxu1 %v4921_v26  ;;  %4707 = vmatprep.subr.bf16.mxu0 %v4980_v42 }
 0x14f   : >> { %4719 = vmatprep.subr.bf16.mxu1 %v4980_v42 }
 0x151   : >> { %4708 = vmatpush3.bf16.msra.mxu0 %v4922_v28 }
 0x152   : >> { %4720 = vmatpush3.bf16.msra.mxu1 %v4923_v29  ;;  %4709 = vmatprep.subr.bf16.mxu0 %v4980_v42 }
 0x153   : >> { %4721 = vmatprep.subr.bf16.mxu1 %v4980_v42 }
 0x155   : >> { %4710 = vmatpush3.bf16.msra.mxu0 %v4924_v30 }
 0x156   : >> { %4722 = vmatpush3.bf16.msra.mxu1 %v4925_v31  ;;  %4727 = vmatprep.subr.bf16.mxu0 %v4980_v42 }
 0x157   : >> { %4739 = vmatprep.subr.bf16.mxu1 %v4980_v42 }
 0x158   : >> { %4712 = vmatmul.mubr.msk.bf16.vlgmr.msra.gmra.mxu0 %vm1301_vm4, %v4926_v1 }
 0x159   : >> { %4724 = vmatmul.mubr.msk.bf16.vlgmr.msra.gmra.mxu1 %vm1301_vm4, %v4947_v36  ;;  %4728 = vmatpush3.bf16.msra.mxu0 %v4927_v34 }
 0x15a   : >> { %4740 = vmatpush3.bf16.msra.mxu1 %v4928_v35  ;;  %4729 = vmatprep.subr.bf16.mxu0 %v4980_v42 }
 0x15b   : >> { %4741 = vmatprep.subr.bf16.mxu1 %v4980_v42  ;;  %4735 = vmatprep.mubr.msk.bf16.mxu0 %vm4981_vm2, %v4980_v42 }
 0x15c   : >> { %4747 = vmatprep.mubr.msk.bf16.mxu1 %vm4981_vm2, %v4980_v42 }
 0x15d   : >> { %4730 = vmatpush3.bf16.msra.mxu0 %v4929_v37 }
 0x15e   : >> { %4742 = vmatpush3.bf16.msra.mxu1 %v4930_v38  ;;  %4731 = vmatprep.subr.bf16.mxu0 %v4980_v42 }
 0x15f   : >> { %4743 = vmatprep.subr.bf16.mxu1 %v4980_v42 }
 0x161   : >> { %4732 = vmatpush3.bf16.msra.mxu0 %v4931_v39 }
 0x162   : >> { %4744 = vmatpush3.bf16.msra.mxu1 %v4932_v40  ;;  %4733 = vmatprep.subr.bf16.mxu0 %v4980_v42 }
 0x163   : >> { %4745 = vmatprep.subr.bf16.mxu1 %v4980_v42 }
 0x165   : >> { %4734 = vmatpush3.bf16.msra.mxu0 %v4933_v41 }
 0x166   : >> { %4746 = vmatpush3.bf16.msra.mxu1 %v4934_v32  ;;  %4751 = vmatprep.subr.bf16.mxu0 %v4980_v42 }
 0x167   : >> { %4763 = vmatprep.subr.bf16.mxu1 %v4980_v42 }
 0x168   : >> { %v1339_v46 = vpop.f32.mrf.mxu0  ;;  %4736 = vmatmul.mubr.msk.bf16.vlgmr.msra.gmra.mxu0 %vm1301_vm4, %v4935_v43 }
 0x169   : >> { %v1412_v47 = vpop.f32.mrf.mxu1  ;;  %4748 = vmatmul.mubr.msk.bf16.vlgmr.msra.gmra.mxu1 %vm1301_vm4, %v4936_v44  ;;  %4752 = vmatpush3.bf16.msra.mxu0 %v4937_v27 }
 0x16a   : >> { %v1413_v49 = vadd.f32 %v1412_v47, %v1339_v46  ;;  %4764 = vmatpush3.bf16.msra.mxu1 %v4938_v45  ;;  %v4449_v51 = vpop.f32.mrf.mxu0  ;;  %4753 = vmatprep.subr.bf16.mxu0 %v4980_v42 }
 0x16b   : >> { %v4461_v53 = vpop.f32.mrf.mxu1  ;;  %4765 = vmatprep.subr.bf16.mxu1 %v4980_v42  ;;  %4759 = vmatprep.mubr.msk.bf16.mxu0 %vm4981_vm2, %v4980_v42 }
 0x16c   : >> { %v1342_v54 = vpop.f32.mrf.mxu0  ;;  %4771 = vmatprep.mubr.msk.bf16.mxu1 %vm4981_vm2, %v4980_v42 }
 0x16d   : >> { %v1415_v55 = vpop.f32.mrf.mxu1  ;;  %4754 = vmatpush3.bf16.msra.mxu0 %v4939_v48 }
 0x16e   : >> { %v1416_v57 = vadd.f32 %v1415_v55, %v1342_v54  ;;  %4766 = vmatpush3.bf16.msra.mxu1 %v4940_v52  ;;  %v4450_v33 = vpop.f32.mrf.mxu0  ;;  %4755 = vmatprep.subr.bf16.mxu0 %v4980_v42 }
 0x16f   : >> { %v4462_v59 = vpop.f32.mrf.mxu1  ;;  %4767 = vmatprep.subr.bf16.mxu1 %v4980_v42 }
 0x171   : >> { %4756 = vmatpush3.bf16.msra.mxu0 %v4941_v56 }
 0x172   : >> { %4768 = vmatpush3.bf16.msra.mxu1 %v4942_v58  ;;  %4757 = vmatprep.subr.bf16.mxu0 %v4980_v42 }
 0x173   : >> { %4769 = vmatprep.subr.bf16.mxu1 %v4980_v42 }
 0x175   : >> { %4758 = vmatpush3.bf16.msra.mxu0 %v4943_v50 }
 0x176   : >> { %4770 = vmatpush3.bf16.msra.mxu1 %v4944_v60 }
 0x178   : >> { %v1498_v62 = vpop.f32.mrf.mxu0  ;;  %4760 = vmatmul.mubr.msk.bf16.vlgmr.msra.gmra.mxu0 %vm1301_vm4, %v4945_v13 }
 0x179   : >> { %v1505_v63 = vadd.f32 %v1498_v62, %v1413_v49  ;;  %v1586_v2 = vpop.f32.mrf.mxu1  ;;  %4772 = vmatmul.mubr.msk.bf16.vlgmr.msra.gmra.mxu1 %vm1301_vm4, %v4946_v61 }
 0x17a   : >> { %v4473_v3 = vpop.f32.mrf.mxu0 }
 0x17b   : >> { %v1593_v4 = vadd.f32 %v1586_v2, %v1505_v63  ;;  %v4485_v5 = vpop.f32.mrf.mxu1 }
 0x17c   : >> { %v1501_v6 = vpop.f32.mrf.mxu0 }
 0x17d   : >> { %v1506_v7 = vadd.f32 %v1501_v6, %v1416_v57  ;;  %v1589_v8 = vpop.f32.mrf.mxu1 }
 0x17e   : >> { %v4474_v42 = vpop.f32.mrf.mxu0 }
 0x17f   : >> { %v1594_v9 = vadd.f32 %v1589_v8, %v1506_v7  ;;  %v4486_v10 = vpop.f32.mrf.mxu1 }
 0x188   : >> { %v1674_v11 = vpop.f32.mrf.mxu0 }
 0x189   : >> { %v1681_v12 = vadd.f32 %v1674_v11, %v1593_v4  ;;  %v1750_v14 = vpop.f32.mrf.mxu1 }
 0x18a   : >> { %v4497_v15 = vpop.f32.mrf.mxu0 }
 0x18b   : >> { %v1757_v16 = vadd.f32 %v1750_v14, %v1681_v12  ;;  %v4509_v17 = vpop.f32.mrf.mxu1 }
 0x18c   : >> { %v1677_v18 = vpop.f32.mrf.mxu0 }
 0x18d   : >> { %v1682_v19 = vadd.f32 %v1677_v18, %v1594_v9  ;;  %v1753_v20 = vpop.f32.mrf.mxu1 }
 0x18e   : >> { %v4498_v21 = vpop.f32.mrf.mxu0 }
 0x18f   : >> { %v1758_v22 = vadd.f32 %v1753_v20, %v1682_v19  ;;  %v4510_v23 = vpop.f32.mrf.mxu1 }
 0x198   : >> { %v1838_v24 = vpop.f32.mrf.mxu0 }
 0x199   : >> { %v1845_v25 = vadd.f32 %v1838_v24, %v1757_v16  ;;  %v1929_v26 = vpop.f32.mrf.mxu1 }
 0x19a   : >> { %v4521_v28 = vpop.f32.mrf.mxu0 }
 0x19b   : >> { %v1936_v29 = vadd.f32 %v1929_v26, %v1845_v25  ;;  %v4533_v30 = vpop.f32.mrf.mxu1 }
 0x19c   : >> { %v1841_v31 = vpop.f32.mrf.mxu0 }
 0x19d   : >> { %v1846_v1 = vadd.f32 %v1841_v31, %v1758_v22  ;;  %v1932_v34 = vpop.f32.mrf.mxu1 }
 0x19e   : >> { %v4522_v35 = vpop.f32.mrf.mxu0 }
 0x19f   : >> { %v1937_v36 = vadd.f32 %v1932_v34, %v1846_v1  ;;  %v4534_v37 = vpop.f32.mrf.mxu1 }
 0x1a8   : >> { %v2017_v38 = vpop.f32.mrf.mxu0 }
 0x1a9   : >> { %v2024_v39 = vadd.f32 %v2017_v38, %v1936_v29  ;;  %v2105_v40 = vpop.f32.mrf.mxu1 }
 0x1aa   : >> { %v4545_v41 = vpop.f32.mrf.mxu0 }
 0x1ab   : >> { %v2112_v32 = vadd.f32 %v2105_v40, %v2024_v39  ;;  %v4557_v43 = vpop.f32.mrf.mxu1 }
 0x1ac   : >> { %v2020_v44 = vpop.f32.mrf.mxu0 }
 0x1ad   : >> { %v2025_v27 = vadd.f32 %v2020_v44, %v1937_v36  ;;  %v2108_v45 = vpop.f32.mrf.mxu1 }
 0x1ae   : >> { %v4546_v46 = vpop.f32.mrf.mxu0 }
 0x1af   : >> { %v2113_v47 = vadd.f32 %v2108_v45, %v2025_v27  ;;  %v4558_v48 = vpop.f32.mrf.mxu1 }
 0x1b8   : >> { %v2196_v49 = vpop.f32.mrf.mxu0 }
 0x1b9   : >> { %v2203_v51 = vadd.f32 %v2196_v49, %v2112_v32  ;;  %v2284_v52 = vpop.f32.mrf.mxu1 }
 0x1ba   : >> { %v4569_v53 = vpop.f32.mrf.mxu0 }
 0x1bb   : >> { %v2291_v54 = vadd.f32 %v2284_v52, %v2203_v51  ;;  %v4581_v55 = vpop.f32.mrf.mxu1 }
 0x1bc   : >> { %v2199_v56 = vpop.f32.mrf.mxu0 }
 0x1bd   : >> { %v2204_v57 = vadd.f32 %v2199_v56, %v2113_v47  ;;  %v2287_v33 = vpop.f32.mrf.mxu1 }
 0x1be   : >> { %v4570_v58 = vpop.f32.mrf.mxu0 }
 0x1bf   : >> { %v2292_v59 = vadd.f32 %v2287_v33, %v2204_v57  ;;  %v4582_v50 = vpop.f32.mrf.mxu1 }
 0x1c8   : >> { %v2372_v60 = vpop.f32.mrf.mxu0 }
 0x1c9   : >> { %v2379_v13 = vadd.f32 %v2372_v60, %v2291_v54  ;;  %v2460_v61 = vpop.f32.mrf.mxu1 }
 0x1ca   : >> { %v4593_v62 = vpop.f32.mrf.mxu0 }
 0x1cb   : >> { %v2467_v63 = vadd.f32 %v2460_v61, %v2379_v13  ;;  %v4605_v2 = vpop.f32.mrf.mxu1 }
 0x1cc   : >> { %v2375_v3 = vpop.f32.mrf.mxu0 }
 0x1cd   : >> { %v2380_v4 = vadd.f32 %v2375_v3, %v2292_v59  ;;  %v2463_v5 = vpop.f32.mrf.mxu1 }
 0x1ce   : >> { %v4594_v6 = vpop.f32.mrf.mxu0 }
 0x1cf   : >> { %v2468_v7 = vadd.f32 %v2463_v5, %v2380_v4  ;;  %v4606_v8 = vpop.f32.mrf.mxu1 }
 0x1d8   : >> { %v2536_v42 = vpop.f32.mrf.mxu0 }
 0x1d9   : >> { %v2543_v9 = vadd.f32 %v2536_v42, %v2467_v63  ;;  %v2624_v10 = vpop.f32.mrf.mxu1 }
 0x1da   : >> { %v4617_v11 = vpop.f32.mrf.mxu0 }
 0x1db   : >> { %v2631_v12 = vadd.f32 %v2624_v10, %v2543_v9  ;;  %v4629_v14 = vpop.f32.mrf.mxu1 }
 0x1dc   : >> { %v2539_v15 = vpop.f32.mrf.mxu0 }
 0x1dd   : >> { %v2544_v16 = vadd.f32 %v2539_v15, %v2468_v7  ;;  %v2627_v17 = vpop.f32.mrf.mxu1 }
 0x1de   : >> { %v4618_v18 = vpop.f32.mrf.mxu0 }
 0x1df   : >> { %v2632_v19 = vadd.f32 %v2627_v17, %v2544_v16  ;;  %v4630_v20 = vpop.f32.mrf.mxu1 }
 0x1e8   : >> { %v2715_v21 = vpop.f32.mrf.mxu0 }
 0x1e9   : >> { %v2722_v22 = vadd.f32 %v2715_v21, %v2631_v12  ;;  %v2803_v23 = vpop.f32.mrf.mxu1 }
 0x1ea   : >> { %v4641_v24 = vpop.f32.mrf.mxu0 }
 0x1eb   : >> { %v2810_v25 = vadd.f32 %v2803_v23, %v2722_v22  ;;  %v4653_v26 = vpop.f32.mrf.mxu1 }
 0x1ec   : >> { %v2718_v28 = vpop.f32.mrf.mxu0 }
 0x1ed   : >> { %v2806_v29 = vpop.f32.mrf.mxu1  ;;  %v2723_v56 = vadd.f32 %v2718_v28, %v2632_v19 }
 0x1ee   : >> { %v4642_v30 = vpop.f32.mrf.mxu0 }
 0x1ef   : >> { %v4654_v31 = vpop.f32.mrf.mxu1  ;;  %v2811_v58 = vadd.f32 %v2806_v29, %v2723_v56 }
 0x1f8   : >> { %v2891_v1 = vpop.f32.mrf.mxu0 }
 0x1f9   : >> { %v2981_v34 = vpop.f32.mrf.mxu1  ;;  %v2898_v33 = vadd.f32 %v2891_v1, %v2810_v25 }
 0x1fa   : >> { %v4665_v35 = vpop.f32.mrf.mxu0 }
 0x1fb   : >> { %v4677_v36 = vpop.f32.mrf.mxu1  ;;  %v2988_v59 = vadd.f32 %v2981_v34, %v2898_v33 }
 0x1fc   : >> { %v2894_v37 = vpop.f32.mrf.mxu0 }
 0x1fd   : >> { %v2984_v38 = vpop.f32.mrf.mxu1  ;;  %v2899_v50 = vadd.f32 %v2894_v37, %v2811_v58 }
 0x1fe   : >> { %v4666_v39 = vpop.f32.mrf.mxu0 }
 0x1ff   : >> { %v4678_v40 = vpop.f32.mrf.mxu1  ;;  %v2989_v61 = vadd.f32 %v2984_v38, %v2899_v50 }
 0x208   : >> { %v3069_v41 = vpop.f32.mrf.mxu0 }
 0x209   : >> { %v3157_v32 = vpop.f32.mrf.mxu1  ;;  %v3076_v60 = vadd.f32 %v3069_v41, %v2988_v59 }
 0x20a   : >> { %v4689_v43 = vpop.f32.mrf.mxu0 }
 0x20b   : >> { %v4701_v44 = vpop.f32.mrf.mxu1  ;;  %v3164_v2 = vadd.f32 %v3157_v32, %v3076_v60 }
 0x20c   : >> { %v3072_v27 = vpop.f32.mrf.mxu0 }
 0x20d   : >> { %v3160_v45 = vpop.f32.mrf.mxu1  ;;  %v3077_v3 = vadd.f32 %v3072_v27, %v2989_v61 }
 0x20e   : >> { %v4690_v46 = vpop.f32.mrf.mxu0 }
 0x20f   : >> { %v4702_v47 = vpop.f32.mrf.mxu1  ;;  %v3165_v42 = vadd.f32 %v3160_v45, %v3077_v3 }
 0x218   : >> { %v3245_v48 = vpop.f32.mrf.mxu0 }
 0x219   : >> { %v3321_v49 = vpop.f32.mrf.mxu1  ;;  %v3252_v6 = vadd.f32 %v3245_v48, %v3164_v2 }
 0x21a   : >> { %v4713_v51 = vpop.f32.mrf.mxu0 }
 0x21b   : >> { %v4725_v52 = vpop.f32.mrf.mxu1  ;;  %v3328_v10 = vadd.f32 %v3321_v49, %v3252_v6 }
 0x21c   : >> { %v3248_v53 = vpop.f32.mrf.mxu0 }
 0x21d   : >> { %v3324_v54 = vpop.f32.mrf.mxu1  ;;  %v3253_v11 = vadd.f32 %v3248_v53, %v3165_v42 }
 0x21e   : >> { %v4714_v55 = vpop.f32.mrf.mxu0 }
 0x21f   : >> { %v4726_v57 = vpop.f32.mrf.mxu1  ;;  %v3329_v14 = vadd.f32 %v3324_v54, %v3253_v11 }
 0x228   : >> { %v3409_v13 = vpop.f32.mrf.mxu0 }
 0x229   : >> { %v3500_v62 = vpop.f32.mrf.mxu1  ;;  %v3416_v12 = vadd.f32 %v3409_v13, %v3328_v10 }
 0x22a   : >> { %v4737_v63 = vpop.f32.mrf.mxu0 }
 0x22b   : >> { %v4749_v4 = vpop.f32.mrf.mxu1  ;;  %v3507_v15 = vadd.f32 %v3500_v62, %v3416_v12 }
 0x22c   : >> { %v3412_v5 = vpop.f32.mrf.mxu0 }
 0x22d   : >> { %v3503_v7 = vpop.f32.mrf.mxu1  ;;  %v3417_v16 = vadd.f32 %v3412_v5, %v3329_v14 }
 0x22e   : >> { %v4738_v8 = vpop.f32.mrf.mxu0 }
 0x22f   : >> { %v4750_v9 = vpop.f32.mrf.mxu1  ;;  %v3508_v21 = vadd.f32 %v3503_v7, %v3417_v16 }
 0x238   : >> { %v3588_v17 = vpop.f32.mrf.mxu0 }
 0x239   : >> { %v3595_v18 = vadd.f32 %v3588_v17, %v3507_v15  ;;  %v3676_v19 = vpop.f32.mrf.mxu1 }
 0x23a   : >> { %v4761_v20 = vpop.f32.mrf.mxu0 }
 0x23b   : >> { %v3683_v22 = vadd.f32 %v3676_v19, %v3595_v18  ;;  %v4773_v23 = vpop.f32.mrf.mxu1 }
 0x23c   : >> { %v3591_v24 = vpop.f32.mrf.mxu0 }
 0x23d   : >> { %v3596_v25 = vadd.f32 %v3591_v24, %v3508_v21  ;;  %v3679_v26 = vpop.f32.mrf.mxu1  ;;  %v3691_v29 = vadd.f32 %v5023_v0, %v3683_v22 }
 0x23e   : >> { %v4762_v28 = vpop.f32.mrf.mxu0 }
 0x23f   : >> { %v3684_v30 = vadd.f32 %v3679_v26, %v3596_v25  ;;  %v4774_v31 = vpop.f32.mrf.mxu1  ;;  %v3693_v34 = vmax.f32 %v3691_v29, 0.0 }
 0x241   : >> { %v3692_v1 = vadd.f32 %v5023_v0, %v3684_v30 }
 0x243   : >> { %v3694_v35 = vmax.f32 %v3692_v1, 0.0  ;;  %1238 = sbr.rel (!%p1236_p5) target bundleno = 151 (0x97), region = 125 }
 0x245   : >> { %v4297_v36 = vpack.c.bf16 %v3694_v35, %v3693_v34 }
 0x247   : >> { %4298 = vst [vmem:[%s3706_s22] sm:$0xff] %v4297_v36  }
 0x248 PF: > { %s13_s14 = sadd.s32 1, %s4974_s14   ;;  %s6137_s12 = smov %s4970_s13 }
 0x249   : > { %p10_p6 = scmp.ge.s32.totalorder %s13_s14, 4   ;;  %s6138_s13 = smov %s6140_s15 }
 0x24b   :  { %12 = sbr.rel (!%p10_p6) target bundleno = 2 (0x2), region = 136 }

// kernel: _lambda_.20
= control target key start
LH: loop header
LB: loop body
LE: loop exit
PB: predicated region body
PF: predicated region fallthrough
CT: control target
= control target key end

     0   :  { %s1763_s12 = smov 0   ;;  %s1765_s13 = smov 0   ;;  %s2114_s0 = inlined_call_operand.vmem [shape: bf16[2,1,176,32], index: 0, kind: input, shape index: {}]   ;;  %s2115_s1 = inlined_call_operand.vmem [shape: bf16[9,32,128], index: 1, kind: input, shape index: {}]   ;;  %s2116_s2 = inlined_call_operand.vmem [shape: f32[2,1,128], index: 2, kind: input, shape index: {}]   ;;  %s2117_s3 = inlined_call_operand.vmem [shape: bf16[2,1,128,128], index: 3, kind: output, shape index: {}]  }
   0x1   :  { %s1767_s14 = smov 0  }
   0x2 LB: > { %s25_s15 = sadd.s32 1, %s1731_s13  ;;  %p1451_p0 = scmp.ge.s32.totalorder %s1735_s14, 1  ;;  %s1735_s14 = sphi %s1767_s14, %s13_s14   ;;  %s1731_s13 = sphi %s1765_s13, %s2123_s13   ;;  %s1727_s12 = sphi %s1763_s12, %s2122_s12  }
   0x3   : > { %p27_p1 = scmp.ge.s32.totalorder %s25_s15, 2  ;;  %p165_p2 = scmp.lt.s32.totalorder %s1735_s14, 3 }
   0x5   : > { %s2125_s15 = smov (%p27_p1, %s25_s15), 0  ;;  %p166_p3 = pnand %p1451_p0, %p165_p2 }
   0x6   : > { %p200_p4 = scmp.lt.s32.totalorder (!%p166_p3), %s1727_s12, 1  ;;  %s1970_s27 = smov (!%p166_p3), 0  }
   0x7   : > { %169 = sbr.rel (%p166_p3) target bundleno = 321 (0x141), region = 32 }
   0xc   : > { %s2127_s12 = smov (!%p200_p4, %s1727_s12), 1  ;;  %vm243_vm0 = vsmask.f32 3328  ;;  %vm244_vm1 = vsmask.f32 7440  ;;  %vm470_vm2 = vcmask 257024  }
   0xd   : > { %s1647_s16 = smul.u32 88, %s2127_s12  ;;  %s211_s19 = scalar_lea.vmem %s2116_s2, %s2127_s12  ;;  %vm1804_vm3 = vmor %vm243_vm0, %vm244_vm1  ;;  %vm533_vm4 = vcmask 1042432   ;;  %vm534_vm5 = vcmask 1046532  }
   0xe   : > { %s1540_s20 = sshll.u32 %s2127_s12, 6  ;;  %v1784_v0 = vld [vmem:[%s211_s19] ss:$0 sm:$0xff]  ;;  %vm1880_vm6 = vmor %vm533_vm4, %vm534_vm5 }
   0xf   : > { %s1789_s23 = scalar_lea.vmem %s2114_s0, %s1647_s16  ;;  %s1794_s26 = scalar_lea.vmem %s2117_s3, %s1540_s20 }
  0x10   : > { %v222_v1 = vld [vmem:[%s1789_s23] sm:$0xf]  ;;  %v223_v2 = vld [vmem:[%s1789_s23 + $0x4] sm:$0xf]  ;;  %v224_v3 = vld [vmem:[%s1789_s23 + $0x8] sm:$0xf] }
  0x11   : > { %v247_v4 = vshrl.u32 %v222_v1, 16  ;;  %v250_v5 = vshll.u32 %v222_v1, 16  ;;  %v256_v6 = vshll.u32 %v223_v2, 16  ;;  %v260_v7 = vshrl.u32 %v223_v2, 16  ;;  %v225_v8 = vld [vmem:[%s1789_s23 + $0xc] sm:$0xf] }
  0x12   : > { %v266_v9 = vshll.u32 %v224_v3, 16  ;;  %v270_v10 = vshrl.u32 %v224_v3, 16  ;;  %v276_v11 = vshll.u32 %v225_v8, 16  ;;  %v280_v12 = vshrl.u32 %v225_v8, 16  ;;  %v226_v13 = vld [vmem:[%s1789_s23 + $0x10] sm:$0xf] }
  0x13   : > { %v249_v14 = vrot.slane %v247_v4, 4  ;;  %v252_v15 = vrot.slane %v250_v5, 5  ;;  %v258_v16 = vrot.slane %v256_v6, 5  ;;  %v262_v17 = vrot.slane %v260_v7, 4  ;;  %v227_v18 = vld [vmem:[%s1789_s23 + $0x14] sm:$0xf] }
  0x14   : > { %v268_v19 = vrot.slane %v266_v9, 5  ;;  %v272_v20 = vrot.slane %v270_v10, 4  ;;  %v278_v21 = vrot.slane %v276_v11, 5  ;;  %v282_v22 = vrot.slane %v280_v12, 4  ;;  %v228_v32 = vld [vmem:[%s1789_s23 + $0x18] sm:$0xf] }
  0x15   : > { %v253_v23 = vor.u32 %v252_v15, %v249_v14  ;;  %v263_v24 = vor.u32 %v262_v17, %v258_v16  ;;  %v286_v25 = vshll.u32 %v226_v13, 16  ;;  %v290_v26 = vshrl.u32 %v226_v13, 16  ;;  %v229_v41 = vld [vmem:[%s1789_s23 + $0x1c] sm:$0xf]  ;;  %v230_v46 = vld [vmem:[%s1789_s23 + $0x20] sm:$0xf] }
  0x16   : > { %v273_v28 = vor.u32 %v272_v20, %v268_v19  ;;  %v283_v29 = vor.u32 %v282_v22, %v278_v21  ;;  %v296_v30 = vshll.u32 %v227_v18, 16  ;;  %v300_v31 = vshrl.u32 %v227_v18, 16  ;;  %v231_v51 = vld [vmem:[%s1789_s23 + $0x24] sm:$0xf]  ;;  %v232_v60 = vld [vmem:[%s1789_s23 + $0x28] sm:$0xf] }
  0x17   : > { %v254_v33 = vrot.slane %v253_v23, 4  ;;  %v264_v34 = vrot.slane %v263_v24, 4  ;;  %v288_v35 = vrot.slane %v286_v25, 5  ;;  %v292_v36 = vrot.slane %v290_v26, 4  ;;  %v233_v2 = vld [vmem:[%s1789_s23 + $0x2c] sm:$0xf] }
  0x18   : > { %v274_v37 = vrot.slane %v273_v28, 4  ;;  %v284_v38 = vrot.slane %v283_v29, 4  ;;  %v298_v39 = vrot.slane %v296_v30, 5  ;;  %v302_v40 = vrot.slane %v300_v31, 4  ;;  %v234_v15 = vld [vmem:[%s1789_s23 + $0x30] sm:$0xf] }
  0x19   : > { %v259_v42 = vsel %vm1804_vm3, %v254_v33, %v258_v16  ;;  %v269_v43 = vsel %vm1804_vm3, %v264_v34, %v268_v19  ;;  %v293_v44 = vor.u32 %v292_v36, %v288_v35  ;;  %v306_v45 = vshll.u32 %v228_v32, 16  ;;  %v235_v20 = vld [vmem:[%s1789_s23 + $0x34] sm:$0xf]  ;;  %v236_v30 = vld [vmem:[%s1789_s23 + $0x38] sm:$0xf] }
  0x1a   : > { %471 = vst.msk [vmem:[#allocation2] sm:$0xf] %vm470_vm2, %v259_v42  ;;  %472 = vst.msk [vmem:[#allocation2 + $0x4] sm:$0xf] %vm470_vm2, %v269_v43  ;;  %v279_v47 = vsel %vm1804_vm3, %v274_v37, %v278_v21  ;;  %v289_v48 = vsel %vm1804_vm3, %v284_v38, %v288_v35  ;;  %v303_v49 = vor.u32 %v302_v40, %v298_v39  ;;  %v310_v50 = vshrl.u32 %v228_v32, 16 }
  0x1b   : > { %473 = vst.msk [vmem:[#allocation2 + $0x8] sm:$0xf] %vm470_vm2, %v279_v47  ;;  %474 = vst.msk [vmem:[#allocation2 + $0xc] sm:$0xf] %vm470_vm2, %v289_v48  ;;  %v294_v52 = vrot.slane %v293_v44, 4  ;;  %v308_v53 = vrot.slane %v306_v45, 5 }
  0x1c   : > { %v316_v54 = vshll.u32 %v229_v41, 16  ;;  %v320_v55 = vshrl.u32 %v229_v41, 16  ;;  %v304_v56 = vrot.slane %v303_v49, 4  ;;  %v312_v57 = vrot.slane %v310_v50, 4  ;;  %v238_v48 = vld [vmem:[%s1789_s23 + $0x40] sm:$0xf] }
  0x1d   : > { %v326_v58 = vshll.u32 %v230_v46, 16  ;;  %v330_v59 = vshrl.u32 %v230_v46, 16  ;;  %v299_v61 = vsel %vm1804_vm3, %v294_v52, %v298_v39  ;;  %v336_v1 = vshll.u32 %v231_v51, 16  ;;  %v237_v39 = vld [vmem:[%s1789_s23 + $0x3c] sm:$0xf] }
  0x1e   : > { %v318_v62 = vrot.slane %v316_v54, 5  ;;  %v322_v63 = vrot.slane %v320_v55, 4  ;;  %475 = vst.msk [vmem:[#allocation2 + $0x10] sm:$0xf] %vm470_vm2, %v299_v61  ;;  %v309_v3 = vsel %vm1804_vm3, %v304_v56, %v308_v53  ;;  %v313_v4 = vor.u32 %v312_v57, %v308_v53  ;;  %v239_v53 = vld [vmem:[%s1789_s23 + $0x44] sm:$0xf] }
  0x1f   : > { %v328_v5 = vrot.slane %v326_v58, 5  ;;  %v332_v6 = vrot.slane %v330_v59, 4  ;;  %476 = vst.msk [vmem:[#allocation2 + $0x14] sm:$0xf] %vm470_vm2, %v309_v3  ;;  %v338_v8 = vrot.slane %v336_v1, 5  ;;  %v340_v9 = vshrl.u32 %v231_v51, 16 }
  0x20   : > { %v323_v7 = vor.u32 %v322_v63, %v318_v62  ;;  %v346_v10 = vshll.u32 %v232_v60, 16  ;;  %v314_v11 = vrot.slane %v313_v4, 4  ;;  %v350_v13 = vshrl.u32 %v232_v60, 16  ;;  %v240_v3 = vld [vmem:[%s1789_s23 + $0x48] sm:$0xf] }
  0x21   : > { %v333_v12 = vor.u32 %v332_v6, %v328_v5  ;;  %v356_v14 = vshll.u32 %v233_v2, 16  ;;  %v342_v17 = vrot.slane %v340_v9, 4  ;;  %v360_v19 = vshrl.u32 %v233_v2, 16 }
  0x22   : > { %v324_v16 = vrot.slane %v323_v7, 4  ;;  %v348_v18 = vrot.slane %v346_v10, 5  ;;  %v319_v21 = vsel %vm1804_vm3, %v314_v11, %v318_v62  ;;  %v352_v23 = vrot.slane %v350_v13, 4  ;;  %v242_v13 = vld [vmem:[%s1789_s23 + $0x50] sm:$0x1] }
  0x23   : > { %v334_v22 = vrot.slane %v333_v12, 4  ;;  %v358_v24 = vrot.slane %v356_v14, 5  ;;  %477 = vst.msk [vmem:[#allocation2 + $0x18] sm:$0xf] %vm470_vm2, %v319_v21  ;;  %v343_v26 = vor.u32 %v342_v17, %v338_v8  ;;  %v362_v28 = vrot.slane %v360_v19, 4 }
  0x24   : > { %v329_v25 = vsel %vm1804_vm3, %v324_v16, %v328_v5  ;;  %v366_v29 = vshll.u32 %v234_v15, 16  ;;  %v353_v32 = vor.u32 %v352_v23, %v348_v18  ;;  %v370_v33 = vshrl.u32 %v234_v15, 16  ;;  %v491_v14 = vld [vmem:[%s1789_s23] sm:$0xe]  ;;  %v492_v19 = vld [vmem:[%s1789_s23 + $0x4] sm:$0xf] }
  0x25   : > { %478 = vst.msk [vmem:[#allocation2 + $0x1c] sm:$0xf] %vm470_vm2, %v329_v25  ;;  %v339_v31 = vsel %vm1804_vm3, %v334_v22, %v338_v8  ;;  %v376_v34 = vshll.u32 %v235_v20, 16  ;;  %v344_v35 = vrot.slane %v343_v26, 4  ;;  %v363_v36 = vor.u32 %v362_v28, %v358_v24  ;;  %v241_v8 = vld [vmem:[%s1789_s23 + $0x4c] sm:$0xf] }
  0x26   : > { %479 = vst.msk [vmem:[#allocation2 + $0x20] sm:$0xf] %vm470_vm2, %v339_v31  ;;  %v368_v37 = vrot.slane %v366_v29, 5  ;;  %v380_v38 = vshrl.u32 %v235_v20, 16  ;;  %v354_v40 = vrot.slane %v353_v32, 4  ;;  %v372_v41 = vrot.slane %v370_v33, 4 }
  0x27   : > { %v378_v42 = vrot.slane %v376_v34, 5  ;;  %v386_v43 = vshll.u32 %v236_v30, 16  ;;  %v349_v44 = vsel %vm1804_vm3, %v344_v35, %v348_v18  ;;  %v364_v45 = vrot.slane %v363_v36, 4  ;;  %v495_v35 = vld [vmem:[%s1789_s23 + $0x10] sm:$0xf] }
  0x28   : > { %v382_v46 = vrot.slane %v380_v38, 4  ;;  %v390_v47 = vshrl.u32 %v236_v30, 16  ;;  %480 = vst.msk [vmem:[#allocation2 + $0x24] sm:$0xf] %vm470_vm2, %v349_v44  ;;  %v359_v49 = vsel %vm1804_vm3, %v354_v40, %v358_v24  ;;  %v373_v50 = vor.u32 %v372_v41, %v368_v37  ;;  %v493_v24 = vld [vmem:[%s1789_s23 + $0x8] sm:$0xf] }
  0x29   : > { %v388_v51 = vrot.slane %v386_v43, 5  ;;  %v396_v52 = vshll.u32 %v237_v39, 16  ;;  %481 = vst.msk [vmem:[#allocation2 + $0x28] sm:$0xf] %vm470_vm2, %v359_v49  ;;  %v369_v54 = vsel %vm1804_vm3, %v364_v45, %v368_v37  ;;  %v400_v57 = vshrl.u32 %v237_v39, 16 }
  0x2a   : > { %v383_v55 = vor.u32 %v382_v46, %v378_v42  ;;  %v392_v56 = vrot.slane %v390_v47, 4  ;;  %482 = vst.msk [vmem:[#allocation2 + $0x2c] sm:$0xf] %vm470_vm2, %v369_v54  ;;  %v374_v58 = vrot.slane %v373_v50, 4  ;;  %v406_v60 = vshll.u32 %v238_v48, 16 }
  0x2b   : > { %v398_v59 = vrot.slane %v396_v52, 5  ;;  %v410_v61 = vshrl.u32 %v238_v48, 16  ;;  %v402_v1 = vrot.slane %v400_v57, 4  ;;  %v416_v2 = vshll.u32 %v239_v53, 16  ;;  %v494_v30 = vld [vmem:[%s1789_s23 + $0xc] sm:$0xf] }
  0x2c   : > { %v384_v62 = vrot.slane %v383_v55, 4  ;;  %v393_v63 = vor.u32 %v392_v56, %v388_v51  ;;  %v379_v4 = vsel %vm1804_vm3, %v374_v58, %v378_v42  ;;  %v408_v5 = vrot.slane %v406_v60, 5  ;;  %v496_v41 = vld [vmem:[%s1789_s23 + $0x14] sm:$0xf]  ;;  %v497_v42 = vld [vmem:[%s1789_s23 + $0x18] sm:$0xf] }
  0x2d   : > { %v412_v6 = vrot.slane %v410_v61, 4  ;;  %v420_v7 = vshrl.u32 %v239_v53, 16  ;;  %483 = vst.msk [vmem:[#allocation2 + $0x30] sm:$0xf] %vm470_vm2, %v379_v4  ;;  %v403_v11 = vor.u32 %v402_v1, %v398_v59  ;;  %v418_v12 = vrot.slane %v416_v2, 5 }
  0x2e   : > { %v389_v9 = vsel %vm1804_vm3, %v384_v62, %v388_v51  ;;  %v394_v10 = vrot.slane %v393_v63, 4  ;;  %v426_v17 = vshll.u32 %v240_v3, 16  ;;  %v430_v18 = vshrl.u32 %v240_v3, 16  ;;  %v498_v47 = vld [vmem:[%s1789_s23 + $0x1c] sm:$0xf] }
  0x2f   : > { %484 = vst.msk [vmem:[#allocation2 + $0x34] sm:$0xf] %vm470_vm2, %v389_v9  ;;  %v413_v15 = vor.u32 %v412_v6, %v408_v5  ;;  %v422_v16 = vrot.slane %v420_v7, 4  ;;  %v404_v21 = vrot.slane %v403_v11, 4  ;;  %v436_v22 = vshll.u32 %v241_v8, 16 }
  0x30   : > { %v399_v20 = vsel %vm1804_vm3, %v394_v10, %v398_v59  ;;  %v440_v23 = vshrl.u32 %v241_v8, 16  ;;  %v428_v28 = vrot.slane %v426_v17, 5  ;;  %v432_v29 = vrot.slane %v430_v18, 4  ;;  %v499_v52 = vld [vmem:[%s1789_s23 + $0x20] sm:$0xf] }
  0x31   : > { %485 = vst.msk [vmem:[#allocation2 + $0x38] sm:$0xf] %vm470_vm2, %v399_v20  ;;  %v414_v25 = vrot.slane %v413_v15, 4  ;;  %v423_v26 = vor.u32 %v422_v16, %v418_v12  ;;  %v409_v31 = vsel %vm1804_vm3, %v404_v21, %v408_v5  ;;  %v438_v32 = vrot.slane %v436_v22, 5  ;;  %v500_v57 = vld [vmem:[%s1789_s23 + $0x24] sm:$0xf] }
  0x32   : > { %v442_v33 = vrot.slane %v440_v23, 4  ;;  %v446_v34 = vshll.u32 %v242_v13, 16  ;;  %486 = vst.msk [vmem:[#allocation2 + $0x3c] sm:$0xf] %vm470_vm2, %v409_v31  ;;  %v433_v38 = vor.u32 %v432_v29, %v428_v28  ;;  %v1455_v40 = vrot.slane %v491_v14, 9 }
  0x33   : > { %v419_v36 = vsel %vm1804_vm3, %v414_v25, %v418_v12  ;;  %v424_v37 = vrot.slane %v423_v26, 4  ;;  %v538_v45 = vrot.slane %v492_v19, 5  ;;  %v541_v46 = vrot.slane %v493_v24, 5  ;;  %v501_v62 = vld [vmem:[%s1789_s23 + $0x28] sm:$0xf] }
  0x34   : > { %487 = vst.msk [vmem:[#allocation2 + $0x40] sm:$0xf] %vm470_vm2, %v419_v36  ;;  %v443_v43 = vor.u32 %v442_v33, %v438_v32  ;;  %v448_v44 = vrot.slane %v446_v34, 5  ;;  %v434_v49 = vrot.slane %v433_v38, 4  ;;  %v544_v50 = vrot.slane %v494_v30, 5 }
  0x35   : > { %v429_v48 = vsel %vm1804_vm3, %v424_v37, %v428_v28  ;;  %v547_v51 = vrot.slane %v495_v35, 5  ;;  %v539_v54 = vsel %vm1880_vm6, %v1455_v40, %v538_v45  ;;  %v540_v55 = vrot.slane %v538_v45, 4  ;;  %v502_v4 = vld [vmem:[%s1789_s23 + $0x2c] sm:$0xf]  ;;  %v503_v5 = vld [vmem:[%s1789_s23 + $0x30] sm:$0xf] }
  0x36   : > { %488 = vst.msk [vmem:[#allocation2 + $0x44] sm:$0xf] %vm470_vm2, %v429_v48  ;;  %v444_v53 = vrot.slane %v443_v43, 4  ;;  %v543_v56 = vrot.slane %v541_v46, 4  ;;  %v439_v58 = vsel %vm1804_vm3, %v434_v49, %v438_v32  ;;  %617 = vst.msk [vmem:[#allocation3] sm:$0xf] %vm470_vm2, %v539_v54 }
  0x37   : > { %v546_v59 = vrot.slane %v544_v50, 4  ;;  %v549_v60 = vrot.slane %v547_v51, 4  ;;  %v550_v61 = vrot.slane %v496_v41, 5  ;;  %489 = vst.msk [vmem:[#allocation2 + $0x48] sm:$0xf] %vm470_vm2, %v439_v58  ;;  %v542_v1 = vsel %vm1880_vm6, %v540_v55, %v541_v46 }
  0x38   : > { %v449_v63 = vsel %vm1804_vm3, %v444_v53, %v448_v44  ;;  %v545_v2 = vsel %vm1880_vm6, %v543_v56, %v544_v50  ;;  %v553_v3 = vrot.slane %v497_v42, 5  ;;  %618 = vst.msk [vmem:[#allocation3 + $0x4] sm:$0xf] %vm470_vm2, %v542_v1  ;;  %v556_v8 = vrot.slane %v498_v47, 5  ;;  %v504_v9 = vld [vmem:[%s1789_s23 + $0x34] sm:$0xf] }
  0x39   : > { %490 = vst.msk [vmem:[#allocation2 + $0x4c] sm:$0xf] %vm470_vm2, %v449_v63  ;;  %619 = vst.msk [vmem:[#allocation3 + $0x8] sm:$0xf] %vm470_vm2, %v545_v2  ;;  %v548_v27 = vsel %vm1880_vm6, %v546_v59, %v547_v51  ;;  %v551_v6 = vsel %vm1880_vm6, %v549_v60, %v550_v61  ;;  %v552_v7 = vrot.slane %v550_v61, 4  ;;  %v559_v12 = vrot.slane %v499_v52, 5 }
  0x3a   : > { %v505_v10 = vld [vmem:[%s1789_s23 + $0x38] sm:$0xf]  ;;  %620 = vst.msk [vmem:[#allocation3 + $0xc] sm:$0xf] %vm470_vm2, %v548_v27  ;;  %621 = vst.msk [vmem:[#allocation3 + $0x10] sm:$0xf] %vm470_vm2, %v551_v6 }
  0x3b   : > { %v555_v11 = vrot.slane %v553_v3, 4  ;;  %v562_v13 = vrot.slane %v500_v57, 5  ;;  %v565_v14 = vrot.slane %v501_v62, 5  ;;  %v506_v15 = vld [vmem:[%s1789_s23 + $0x3c] sm:$0xf]  ;;  %v554_v16 = vsel %vm1880_vm6, %v552_v7, %v553_v3 }
  0x3c   : > { %v558_v17 = vrot.slane %v556_v8, 4  ;;  %v568_v18 = vrot.slane %v502_v4, 5  ;;  %v571_v19 = vrot.slane %v503_v5, 5  ;;  %v507_v20 = vld [vmem:[%s1789_s23 + $0x40] sm:$0xf]  ;;  %v561_v22 = vrot.slane %v559_v12, 4 }
  0x3d   : > { %622 = vst.msk [vmem:[#allocation3 + $0x14] sm:$0xf] %vm470_vm2, %v554_v16  ;;  %v557_v21 = vsel %vm1880_vm6, %v555_v11, %v556_v8  ;;  %v564_v23 = vrot.slane %v562_v13, 4  ;;  %v567_v24 = vrot.slane %v565_v14, 4  ;;  %v508_v25 = vld [vmem:[%s1789_s23 + $0x44] sm:$0xf] }
  0x3e   : > { %623 = vst.msk [vmem:[#allocation3 + $0x18] sm:$0xf] %vm470_vm2, %v557_v21  ;;  %v560_v26 = vsel %vm1880_vm6, %v558_v17, %v559_v12  ;;  %v570_v28 = vrot.slane %v568_v18, 4  ;;  %v573_v29 = vrot.slane %v571_v19, 4  ;;  %v574_v30 = vrot.slane %v504_v9, 5 }
  0x3f   : > { %v509_v31 = vld [vmem:[%s1789_s23 + $0x48] sm:$0xf]  ;;  %624 = vst.msk [vmem:[#allocation3 + $0x1c] sm:$0xf] %vm470_vm2, %v560_v26  ;;  %v563_v32 = vsel %vm1880_vm6, %v561_v22, %v562_v13  ;;  %v566_v33 = vsel %vm1880_vm6, %v564_v23, %v565_v14  ;;  %v569_v34 = vsel %vm1880_vm6, %v567_v24, %v568_v18  ;;  %v577_v35 = vrot.slane %v505_v10, 5 }
  0x40   : > { %v510_v36 = vld [vmem:[%s1789_s23 + $0x4c] sm:$0xf]  ;;  %v511_v37 = vld [vmem:[%s1789_s23 + $0x50] sm:$0x1]  ;;  %625 = vst.msk [vmem:[#allocation3 + $0x20] sm:$0xf] %vm470_vm2, %v563_v32  ;;  %v572_v38 = vsel %vm1880_vm6, %v570_v28, %v571_v19  ;;  %v575_v40 = vsel %vm1880_vm6, %v573_v29, %v574_v30 }
  0x41   : > { %626 = vst.msk [vmem:[#allocation3 + $0x24] sm:$0xf] %vm470_vm2, %v566_v33  ;;  %627 = vst.msk [vmem:[#allocation3 + $0x28] sm:$0xf] %vm470_vm2, %v569_v34  ;;  %v576_v41 = vrot.slane %v574_v30, 4  ;;  %v580_v42 = vrot.slane %v506_v15, 5 }
  0x42   : > { %628 = vst.msk [vmem:[#allocation3 + $0x2c] sm:$0xf] %vm470_vm2, %v572_v38  ;;  %629 = vst.msk [vmem:[#allocation3 + $0x30] sm:$0xf] %vm470_vm2, %v575_v40  ;;  %v579_v43 = vrot.slane %v577_v35, 4  ;;  %v583_v44 = vrot.slane %v507_v20, 5 }
  0x43   : > { %v586_v45 = vrot.slane %v508_v25, 5  ;;  %v589_v46 = vrot.slane %v509_v31, 5  ;;  %v578_v47 = vsel %vm1880_vm6, %v576_v41, %v577_v35  ;;  %v582_v48 = vrot.slane %v580_v42, 4 }
  0x44   : > { %v592_v49 = vrot.slane %v510_v36, 5  ;;  %v595_v50 = vrot.slane %v511_v37, 5  ;;  %630 = vst.msk [vmem:[#allocation3 + $0x34] sm:$0xf] %vm470_vm2, %v578_v47  ;;  %v581_v51 = vsel %vm1880_vm6, %v579_v43, %v580_v42  ;;  %v585_v52 = vrot.slane %v583_v44, 4 }
  0x45   : > { %v588_v53 = vrot.slane %v586_v45, 4  ;;  %v591_v54 = vrot.slane %v589_v46, 4  ;;  %631 = vst.msk [vmem:[#allocation3 + $0x38] sm:$0xf] %vm470_vm2, %v581_v51  ;;  %v584_v55 = vsel %vm1880_vm6, %v582_v48, %v583_v44 }
  0x46   : > { %v594_v56 = vrot.slane %v592_v49, 4  ;;  %632 = vst.msk [vmem:[#allocation3 + $0x3c] sm:$0xf] %vm470_vm2, %v584_v55  ;;  %v587_v57 = vsel %vm1880_vm6, %v585_v52, %v586_v45 }
  0x47   : > { %v590_v58 = vsel %vm1880_vm6, %v588_v53, %v589_v46  ;;  %v593_v59 = vsel %vm1880_vm6, %v591_v54, %v592_v49  ;;  %633 = vst.msk [vmem:[#allocation3 + $0x40] sm:$0xf] %vm470_vm2, %v587_v57 }
  0x48   : > { %634 = vst.msk [vmem:[#allocation3 + $0x44] sm:$0xf] %vm470_vm2, %v590_v58  ;;  %635 = vst.msk [vmem:[#allocation3 + $0x48] sm:$0xf] %vm470_vm2, %v593_v59  ;;  %v596_v60 = vsel %vm1880_vm6, %v594_v56, %v595_v50 }
  0x49   : > { %636 = vst.msk [vmem:[#allocation3 + $0x4c] sm:$0xf] %vm470_vm2, %v596_v60 }
  0x4a LB: >> { %v1682_v61 = vld [vmem:[%s2115_s1 + $0x18] sm:$0xff]   ;;  %v1741_v62 = vmov 0.0   ;;  %v1683_v39 = vld [vmem:[%s2115_s1 + $0x8] sm:$0xff]   ;;  %v1684_v63 = vld [vmem:[%s2115_s1 + $0x10] sm:$0xff]   ;;  %vm1742_vm7 = vmmov 0   ;;  %s1989_s7 = sshll.u32 %s1739_s27, 4  ;;  %s1739_s27 = sphi %s1970_s27, %s643_s27  }
  0x4b   : >> { %1575 = vmatprep.subr.bf16.mxu0 %v1741_v62  ;;  %1583 = vmatprep.subr.bf16.mxu1 %v1741_v62  ;;  %v1685_v1 = vld [vmem:[%s2115_s1] sm:$0xff]   ;;  %s645_s10 = sshra.s32 %s1989_s7, 3  ;;  %v1688_v2 = vld [vmem:[%s2115_s1 + $0x28] sm:$0xff]   ;;  %vm681_vm8 = vcmask 261120   ;;  %s859_s19 = sadd.s32 16, %s1989_s7  ;;  %v1689_v5 = vld [vmem:[%s2115_s1 + $0x38] sm:$0xff]  }
  0x4c   : >> { %1576 = vmatpush3.bf16.msra.mxu0 %v1682_v61  ;;  %1579 = vmatprep.mubr.msk.bf16.mxu0 %vm1742_vm7, %v1741_v62  ;;  %s1999_s11 = sshll.u32 %s645_s10, 2  ;;  %s860_s22 = sshra.s32 %s859_s19, 3  ;;  %v1690_v27 = vld [vmem:[%s2115_s1 + $0x20] sm:$0xff]   ;;  %v1691_v6 = vld [vmem:[%s2115_s1 + $0x30] sm:$0xff]   ;;  %v1694_v9 = vld [vmem:[%s2115_s1 + $0x48] sm:$0xff]  }
  0x4d   : >> { %1584 = vmatpush3.bf16.msra.mxu1 %v1683_v39  ;;  %1577 = vmatprep.subr.bf16.mxu0 %v1741_v62  ;;  %s648_s12 = scalar_lea.vmem %s1789_s23, %s1999_s11  ;;  %s656_s18 = scalar_lea.vmem [#allocation2], %s1999_s11  ;;  %v1695_v10 = vld [vmem:[%s2115_s1 + $0x58] sm:$0xff]   ;;  %v1696_v11 = vld [vmem:[%s2115_s1 + $0x40] sm:$0xff]   ;;  %v1697_v12 = vld [vmem:[%s2115_s1 + $0x50] sm:$0xff]  }
  0x4e   : >> { %1585 = vmatprep.subr.bf16.mxu1 %v1741_v62  ;;  %1587 = vmatprep.mubr.msk.bf16.mxu1 %vm1742_vm7, %v1741_v62  ;;  %v1686_v3 = vld [vmem:[%s656_s18] sm:$0xff]   ;;  %s2014_s24 = sshll.u32 %s860_s22, 2  ;;  %s788_s29 = scalar_lea.vmem [#allocation3], %s1999_s11  ;;  %v1700_v15 = vld [vmem:[%s2115_s1 + $0x68] sm:$0xff]   ;;  %v1701_v16 = vld [vmem:[%s2115_s1 + $0x78] sm:$0xff]  }
  0x4f   : >> { %v1687_v4 = vld [vmem:[%s648_s12] sm:$0xff]   ;;  %s863_s30 = scalar_lea.vmem %s1789_s23, %s2014_s24  ;;  %s1078_s6 = sadd.s32 32, %s1989_s7  ;;  %v1703_v18 = vld [vmem:[%s2115_s1 + $0x70] sm:$0xff]   ;;  %v1706_v21 = vld [vmem:[%s2115_s1 + $0x88] sm:$0xff]  }
  0x50   : >> { %1578 = vmatpush3.bf16.msra.mxu0 %v1684_v63  ;;  %v1692_v7 = vld [vmem:[%s788_s29] sm:$0xff]   ;;  %s1079_s16 = sshra.s32 %s1078_s6, 3  ;;  %s935_s7 = scalar_lea.vmem [#allocation2], %s2014_s24 }
  0x51   : >> { %1586 = vmatpush3.bf16.msra.mxu1 %v1685_v1  ;;  %1591 = vmatprep.subr.bf16.mxu0 %v1741_v62  ;;  %v1693_v8 = vld [vmem:[%s863_s30] sm:$0xff]   ;;  %s1007_s17 = scalar_lea.vmem [#allocation3], %s2014_s24  ;;  %s2048_s20 = sshll.u32 %s1079_s16, 2 }
  0x52   : >> { %1599 = vmatprep.subr.bf16.mxu1 %v1741_v62  ;;  %v1698_v13 = vld [vmem:[%s935_s7] sm:$0xff]   ;;  %s1082_s24 = scalar_lea.vmem %s1789_s23, %s2048_s20  ;;  %s1154_s4 = scalar_lea.vmem [#allocation2], %s2048_s20 }
  0x53   : >> { %1580 = vmatmul.mubr.msk.bf16.vlgmr.msra.gmra.mxu0 %vm681_vm8, %v1686_v3  ;;  %v1699_v14 = vld [vmem:[%s1007_s17] sm:$0xff]   ;;  %s1226_s8 = scalar_lea.vmem [#allocation3], %s2048_s20  ;;  %s1318_s18 = scalar_lea.vmem %s1794_s26, %s1999_s11 }
  0x54   : >> { %1588 = vmatmul.mubr.msk.bf16.vlgmr.msra.gmra.mxu1 %vm681_vm8, %v1687_v4  ;;  %1592 = vmatpush3.bf16.msra.mxu0 %v1688_v2  ;;  %v1702_v17 = vld [vmem:[%s2115_s1 + $0x60] sm:$0xff]   ;;  %s643_s27 = sadd.s32 1, %s1739_s27  }
  0x55   : >> { %1600 = vmatpush3.bf16.msra.mxu1 %v1689_v5  ;;  %1593 = vmatprep.subr.bf16.mxu0 %v1741_v62  ;;  %v1704_v19 = vld [vmem:[%s1082_s24] sm:$0xff]   ;;  %p640_p5 = scmp.ge.s32.totalorder %s643_s27, 8  }
  0x56   : >> { %1601 = vmatprep.subr.bf16.mxu1 %v1741_v62  ;;  %1595 = vmatprep.mubr.msk.bf16.mxu0 %vm1742_vm7, %v1741_v62  ;;  %v1705_v20 = vld [vmem:[%s1154_s4] sm:$0xff]  }
  0x57   : >> { %1603 = vmatprep.mubr.msk.bf16.mxu1 %vm1742_vm7, %v1741_v62  ;;  %v1707_v22 = vld [vmem:[%s2115_s1 + $0x80] sm:$0xff]  }
  0x58   : >> { %1594 = vmatpush3.bf16.msra.mxu0 %v1690_v27  ;;  %v1708_v23 = vld [vmem:[%s1226_s8] sm:$0xff]  }
  0x59   : >> { %1602 = vmatpush3.bf16.msra.mxu1 %v1691_v6  ;;  %1607 = vmatprep.subr.bf16.mxu0 %v1741_v62 }
  0x5a   : >> { %1615 = vmatprep.subr.bf16.mxu1 %v1741_v62 }
  0x5b   : >> { %1596 = vmatmul.mubr.msk.bf16.vlgmr.msra.gmra.mxu0 %vm681_vm8, %v1692_v7 }
  0x5c   : >> { %1604 = vmatmul.mubr.msk.bf16.vlgmr.msra.gmra.mxu1 %vm681_vm8, %v1693_v8  ;;  %1608 = vmatpush3.bf16.msra.mxu0 %v1694_v9 }
  0x5d   : >> { %1616 = vmatpush3.bf16.msra.mxu1 %v1695_v10  ;;  %1609 = vmatprep.subr.bf16.mxu0 %v1741_v62 }
  0x5e   : >> { %1617 = vmatprep.subr.bf16.mxu1 %v1741_v62  ;;  %1611 = vmatprep.mubr.msk.bf16.mxu0 %vm1742_vm7, %v1741_v62 }
  0x5f   : >> { %1619 = vmatprep.mubr.msk.bf16.mxu1 %vm1742_vm7, %v1741_v62 }
  0x60   : >> { %1610 = vmatpush3.bf16.msra.mxu0 %v1696_v11 }
  0x61   : >> { %1618 = vmatpush3.bf16.msra.mxu1 %v1697_v12  ;;  %1623 = vmatprep.subr.bf16.mxu0 %v1741_v62 }
  0x62   : >> { %1631 = vmatprep.subr.bf16.mxu1 %v1741_v62 }
  0x63   : >> { %1612 = vmatmul.mubr.msk.bf16.vlgmr.msra.gmra.mxu0 %vm681_vm8, %v1698_v13 }
  0x64   : >> { %1620 = vmatmul.mubr.msk.bf16.vlgmr.msra.gmra.mxu1 %vm681_vm8, %v1699_v14  ;;  %1624 = vmatpush3.bf16.msra.mxu0 %v1700_v15 }
  0x65   : >> { %1632 = vmatpush3.bf16.msra.mxu1 %v1701_v16  ;;  %1625 = vmatprep.subr.bf16.mxu0 %v1741_v62 }
  0x66   : >> { %1633 = vmatprep.subr.bf16.mxu1 %v1741_v62  ;;  %1627 = vmatprep.mubr.msk.bf16.mxu0 %vm1742_vm7, %v1741_v62 }
  0x67   : >> { %1635 = vmatprep.mubr.msk.bf16.mxu1 %vm1742_vm7, %v1741_v62 }
  0x68   : >> { %1626 = vmatpush3.bf16.msra.mxu0 %v1702_v17 }
  0x69   : >> { %1634 = vmatpush3.bf16.msra.mxu1 %v1703_v18  ;;  %1639 = vmatprep.subr.bf16.mxu0 %v1741_v62 }
  0x6b   : >> { %1628 = vmatmul.mubr.msk.bf16.vlgmr.msra.gmra.mxu0 %vm681_vm8, %v1704_v19 }
  0x6c   : >> { %1636 = vmatmul.mubr.msk.bf16.vlgmr.msra.gmra.mxu1 %vm681_vm8, %v1705_v20  ;;  %1640 = vmatpush3.bf16.msra.mxu0 %v1706_v21 }
  0x6d   : >> { %1641 = vmatprep.subr.bf16.mxu0 %v1741_v62  ;;  %1643 = vmatprep.mubr.msk.bf16.mxu0 %vm1742_vm7, %v1741_v62 }
  0x70   : >> { %1642 = vmatpush3.bf16.msra.mxu0 %v1707_v22 }
  0x73   : >> { %1644 = vmatmul.mubr.msk.bf16.vlgmr.msra.gmra.mxu0 %vm681_vm8, %v1708_v23 }
 0x113   : >> { %v719_v24 = vpop.f32.mrf.mxu0 }
 0x114   : >> { %v780_v25 = vpop.f32.mrf.mxu1 }
 0x115   : >> { %v1581_v26 = vpop.f32.mrf.mxu0  ;;  %v781_v38 = vadd.f32 %v780_v25, %v719_v24 }
 0x116   : >> { %v1589_v28 = vpop.f32.mrf.mxu1 }
 0x117   : >> { %v722_v29 = vpop.f32.mrf.mxu0 }
 0x118   : >> { %v783_v30 = vpop.f32.mrf.mxu1 }
 0x119   : >> { %v1582_v31 = vpop.f32.mrf.mxu0  ;;  %v784_v45 = vadd.f32 %v783_v30, %v722_v29 }
 0x11a   : >> { %v1590_v32 = vpop.f32.mrf.mxu1 }
 0x11b   : >> { %v850_v33 = vpop.f32.mrf.mxu0 }
 0x11c   : >> { %v925_v34 = vpop.f32.mrf.mxu1  ;;  %v857_v42 = vadd.f32 %v850_v33, %v781_v38 }
 0x11d   : >> { %v1597_v35 = vpop.f32.mrf.mxu0 }
 0x11e   : >> { %v1605_v36 = vpop.f32.mrf.mxu1  ;;  %v932_v48 = vadd.f32 %v925_v34, %v857_v42 }
 0x11f   : >> { %v853_v37 = vpop.f32.mrf.mxu0 }
 0x120   : >> { %v928_v40 = vpop.f32.mrf.mxu1  ;;  %v858_v49 = vadd.f32 %v853_v37, %v784_v45 }
 0x121   : >> { %v1598_v41 = vpop.f32.mrf.mxu0 }
 0x122   : >> { %v1606_v43 = vpop.f32.mrf.mxu1  ;;  %v933_v55 = vadd.f32 %v928_v40, %v858_v49 }
 0x123   : >> { %v997_v44 = vpop.f32.mrf.mxu0 }
 0x124   : >> { %v1069_v46 = vpop.f32.mrf.mxu1  ;;  %v1004_v52 = vadd.f32 %v997_v44, %v932_v48 }
 0x125   : >> { %v1613_v47 = vpop.f32.mrf.mxu0 }
 0x126   : >> { %v1621_v50 = vpop.f32.mrf.mxu1  ;;  %v1076_v58 = vadd.f32 %v1069_v46, %v1004_v52 }
 0x127   : >> { %v1000_v51 = vpop.f32.mrf.mxu0 }
 0x128   : >> { %v1072_v53 = vpop.f32.mrf.mxu1  ;;  %v1005_v59 = vadd.f32 %v1000_v51, %v933_v55 }
 0x129   : >> { %v1614_v54 = vpop.f32.mrf.mxu0 }
 0x12a   : >> { %v1622_v56 = vpop.f32.mrf.mxu1  ;;  %v1077_v1 = vadd.f32 %v1072_v53, %v1005_v59 }
 0x12b   : >> { %v1144_v57 = vpop.f32.mrf.mxu0 }
 0x12c   : >> { %v1216_v60 = vpop.f32.mrf.mxu1  ;;  %v1151_v62 = vadd.f32 %v1144_v57, %v1076_v58 }
 0x12d   : >> { %v1629_v61 = vpop.f32.mrf.mxu0 }
 0x12e   : >> { %v1637_v39 = vpop.f32.mrf.mxu1  ;;  %v1223_v4 = vadd.f32 %v1216_v60, %v1151_v62 }
 0x12f   : >> { %v1147_v63 = vpop.f32.mrf.mxu0 }
 0x130   : >> { %v1219_v2 = vpop.f32.mrf.mxu1  ;;  %v1152_v5 = vadd.f32 %v1147_v63, %v1077_v1 }
 0x131   : >> { %v1630_v3 = vpop.f32.mrf.mxu0 }
 0x132   : >> { %v1638_v27 = vpop.f32.mrf.mxu1  ;;  %v1224_v9 = vadd.f32 %v1219_v2, %v1152_v5 }
 0x133   : >> { %v1288_v6 = vpop.f32.mrf.mxu0 }
 0x134   : >> { %v1295_v7 = vadd.f32 %v1288_v6, %v1223_v4 }
 0x135   : >> { %v1645_v8 = vpop.f32.mrf.mxu0 }
 0x136   : >> { %v1303_v11 = vadd.f32 %v1784_v0, %v1295_v7 }
 0x137   : >> { %v1291_v10 = vpop.f32.mrf.mxu0 }
 0x138   : >> { %v1296_v12 = vadd.f32 %v1291_v10, %v1224_v9  ;;  %v1305_v15 = vmax.f32 %v1303_v11, 0.0 }
 0x139   : >> { %v1646_v13 = vpop.f32.mrf.mxu0 }
 0x13a   : >> { %v1304_v14 = vadd.f32 %v1784_v0, %v1296_v12 }
 0x13c   : >> { %v1306_v16 = vmax.f32 %v1304_v14, 0.0  ;;  %642 = sbr.rel (!%p640_p5) target bundleno = 74 (0x4a), region = 90 }
 0x13e   : >> { %v1546_v17 = vpack.c.bf16 %v1306_v16, %v1305_v15 }
 0x140   : >> { %1547 = vst [vmem:[%s1318_s18] sm:$0xff] %v1546_v17  }
 0x141 PF: > { %s13_s14 = sadd.s32 1, %s1735_s14   ;;  %s2122_s12 = smov %s1731_s13 }
 0x142   : > { %p10_p6 = scmp.ge.s32.totalorder %s13_s14, 4   ;;  %s2123_s13 = smov %s2125_s15 }
 0x144   :  { %12 = sbr.rel (!%p10_p6) target bundleno = 2 (0x2), region = 101 }

// kernel: _lambda_.21
= control target key start
LH: loop header
LB: loop body
LE: loop exit
PB: predicated region body
PF: predicated region fallthrough
CT: control target
= control target key end

     0   :  { %s1761_s12 = smov 0   ;;  %s1763_s13 = smov 0   ;;  %s2112_s0 = inlined_call_operand.vmem [shape: bf16[2,1,176,32], index: 0, kind: input, shape index: {}]   ;;  %s2113_s1 = inlined_call_operand.vmem [shape: bf16[9,32,128], index: 1, kind: input, shape index: {}]   ;;  %s2114_s2 = inlined_call_operand.vmem [shape: f32[2,1,128], index: 2, kind: input, shape index: {}]   ;;  %s2115_s3 = inlined_call_operand.vmem [shape: bf16[2,1,128,128], index: 3, kind: output, shape index: {}]  }
   0x1   :  { %s1765_s14 = smov 0  }
   0x2 LB: > { %s25_s15 = sadd.s32 1, %s1729_s13  ;;  %p1449_p0 = scmp.ge.s32.totalorder %s1733_s14, 1  ;;  %s1733_s14 = sphi %s1765_s14, %s13_s14   ;;  %s1729_s13 = sphi %s1763_s13, %s2121_s13   ;;  %s1725_s12 = sphi %s1761_s12, %s2120_s12  }
   0x3   : > { %p27_p1 = scmp.ge.s32.totalorder %s25_s15, 2  ;;  %p165_p2 = scmp.lt.s32.totalorder %s1733_s14, 3 }
   0x5   : > { %s2123_s15 = smov (%p27_p1, %s25_s15), 0  ;;  %p166_p3 = pnand %p1449_p0, %p165_p2 }
   0x6   : > { %p200_p4 = scmp.lt.s32.totalorder (!%p166_p3), %s1725_s12, 1  ;;  %s1968_s27 = smov (!%p166_p3), 0  }
   0x7   : > { %169 = sbr.rel (%p166_p3) target bundleno = 319 (0x13f), region = 32 }
   0xc   : > { %s2125_s12 = smov (!%p200_p4, %s1725_s12), 1  ;;  %vm243_vm0 = vsmask.f32 3328  ;;  %vm244_vm1 = vsmask.f32 7440  ;;  %vm470_vm2 = vcmask 257024  }
   0xd   : > { %s1645_s16 = smul.u32 88, %s2125_s12  ;;  %s211_s19 = scalar_lea.vmem %s2114_s2, %s2125_s12  ;;  %vm1802_vm3 = vmor %vm243_vm0, %vm244_vm1  ;;  %vm533_vm4 = vcmask 1042432   ;;  %vm534_vm5 = vcmask 1046532  }
   0xe   : > { %s1538_s20 = sshll.u32 %s2125_s12, 6  ;;  %v1782_v0 = vld [vmem:[%s211_s19] ss:$0 sm:$0xff]  ;;  %vm1878_vm6 = vmor %vm533_vm4, %vm534_vm5 }
   0xf   : > { %s1787_s23 = scalar_lea.vmem %s2112_s0, %s1645_s16  ;;  %s1792_s26 = scalar_lea.vmem %s2115_s3, %s1538_s20 }
  0x10   : > { %v222_v1 = vld [vmem:[%s1787_s23] sm:$0xf]  ;;  %v223_v2 = vld [vmem:[%s1787_s23 + $0x4] sm:$0xf]  ;;  %v224_v3 = vld [vmem:[%s1787_s23 + $0x8] sm:$0xf] }
  0x11   : > { %v247_v4 = vshrl.u32 %v222_v1, 16  ;;  %v250_v5 = vshll.u32 %v222_v1, 16  ;;  %v256_v6 = vshll.u32 %v223_v2, 16  ;;  %v260_v7 = vshrl.u32 %v223_v2, 16  ;;  %v225_v8 = vld [vmem:[%s1787_s23 + $0xc] sm:$0xf] }
  0x12   : > { %v266_v9 = vshll.u32 %v224_v3, 16  ;;  %v270_v10 = vshrl.u32 %v224_v3, 16  ;;  %v276_v11 = vshll.u32 %v225_v8, 16  ;;  %v280_v12 = vshrl.u32 %v225_v8, 16  ;;  %v226_v13 = vld [vmem:[%s1787_s23 + $0x10] sm:$0xf] }
  0x13   : > { %v249_v14 = vrot.slane %v247_v4, 4  ;;  %v252_v15 = vrot.slane %v250_v5, 5  ;;  %v258_v16 = vrot.slane %v256_v6, 5  ;;  %v262_v17 = vrot.slane %v260_v7, 4  ;;  %v227_v18 = vld [vmem:[%s1787_s23 + $0x14] sm:$0xf] }
  0x14   : > { %v268_v19 = vrot.slane %v266_v9, 5  ;;  %v272_v20 = vrot.slane %v270_v10, 4  ;;  %v278_v21 = vrot.slane %v276_v11, 5  ;;  %v282_v22 = vrot.slane %v280_v12, 4  ;;  %v228_v32 = vld [vmem:[%s1787_s23 + $0x18] sm:$0xf] }
  0x15   : > { %v253_v23 = vor.u32 %v252_v15, %v249_v14  ;;  %v263_v24 = vor.u32 %v262_v17, %v258_v16  ;;  %v286_v25 = vshll.u32 %v226_v13, 16  ;;  %v290_v26 = vshrl.u32 %v226_v13, 16  ;;  %v229_v41 = vld [vmem:[%s1787_s23 + $0x1c] sm:$0xf]  ;;  %v230_v46 = vld [vmem:[%s1787_s23 + $0x20] sm:$0xf] }
  0x16   : > { %v273_v28 = vor.u32 %v272_v20, %v268_v19  ;;  %v283_v29 = vor.u32 %v282_v22, %v278_v21  ;;  %v296_v30 = vshll.u32 %v227_v18, 16  ;;  %v300_v31 = vshrl.u32 %v227_v18, 16  ;;  %v231_v51 = vld [vmem:[%s1787_s23 + $0x24] sm:$0xf]  ;;  %v232_v60 = vld [vmem:[%s1787_s23 + $0x28] sm:$0xf] }
  0x17   : > { %v254_v33 = vrot.slane %v253_v23, 4  ;;  %v264_v34 = vrot.slane %v263_v24, 4  ;;  %v288_v35 = vrot.slane %v286_v25, 5  ;;  %v292_v36 = vrot.slane %v290_v26, 4  ;;  %v233_v2 = vld [vmem:[%s1787_s23 + $0x2c] sm:$0xf] }
  0x18   : > { %v274_v37 = vrot.slane %v273_v28, 4  ;;  %v284_v38 = vrot.slane %v283_v29, 4  ;;  %v298_v39 = vrot.slane %v296_v30, 5  ;;  %v302_v40 = vrot.slane %v300_v31, 4  ;;  %v234_v15 = vld [vmem:[%s1787_s23 + $0x30] sm:$0xf] }
  0x19   : > { %v259_v42 = vsel %vm1802_vm3, %v254_v33, %v258_v16  ;;  %v269_v43 = vsel %vm1802_vm3, %v264_v34, %v268_v19  ;;  %v293_v44 = vor.u32 %v292_v36, %v288_v35  ;;  %v306_v45 = vshll.u32 %v228_v32, 16  ;;  %v235_v20 = vld [vmem:[%s1787_s23 + $0x34] sm:$0xf]  ;;  %v236_v30 = vld [vmem:[%s1787_s23 + $0x38] sm:$0xf] }
  0x1a   : > { %471 = vst.msk [vmem:[#allocation2] sm:$0xf] %vm470_vm2, %v259_v42  ;;  %472 = vst.msk [vmem:[#allocation2 + $0x4] sm:$0xf] %vm470_vm2, %v269_v43  ;;  %v279_v47 = vsel %vm1802_vm3, %v274_v37, %v278_v21  ;;  %v289_v48 = vsel %vm1802_vm3, %v284_v38, %v288_v35  ;;  %v303_v49 = vor.u32 %v302_v40, %v298_v39  ;;  %v310_v50 = vshrl.u32 %v228_v32, 16 }
  0x1b   : > { %473 = vst.msk [vmem:[#allocation2 + $0x8] sm:$0xf] %vm470_vm2, %v279_v47  ;;  %474 = vst.msk [vmem:[#allocation2 + $0xc] sm:$0xf] %vm470_vm2, %v289_v48  ;;  %v294_v52 = vrot.slane %v293_v44, 4  ;;  %v308_v53 = vrot.slane %v306_v45, 5 }
  0x1c   : > { %v316_v54 = vshll.u32 %v229_v41, 16  ;;  %v320_v55 = vshrl.u32 %v229_v41, 16  ;;  %v304_v56 = vrot.slane %v303_v49, 4  ;;  %v312_v57 = vrot.slane %v310_v50, 4  ;;  %v238_v48 = vld [vmem:[%s1787_s23 + $0x40] sm:$0xf] }
  0x1d   : > { %v326_v58 = vshll.u32 %v230_v46, 16  ;;  %v330_v59 = vshrl.u32 %v230_v46, 16  ;;  %v299_v61 = vsel %vm1802_vm3, %v294_v52, %v298_v39  ;;  %v336_v1 = vshll.u32 %v231_v51, 16  ;;  %v237_v39 = vld [vmem:[%s1787_s23 + $0x3c] sm:$0xf] }
  0x1e   : > { %v318_v62 = vrot.slane %v316_v54, 5  ;;  %v322_v63 = vrot.slane %v320_v55, 4  ;;  %475 = vst.msk [vmem:[#allocation2 + $0x10] sm:$0xf] %vm470_vm2, %v299_v61  ;;  %v309_v3 = vsel %vm1802_vm3, %v304_v56, %v308_v53  ;;  %v313_v4 = vor.u32 %v312_v57, %v308_v53  ;;  %v239_v53 = vld [vmem:[%s1787_s23 + $0x44] sm:$0xf] }
  0x1f   : > { %v328_v5 = vrot.slane %v326_v58, 5  ;;  %v332_v6 = vrot.slane %v330_v59, 4  ;;  %476 = vst.msk [vmem:[#allocation2 + $0x14] sm:$0xf] %vm470_vm2, %v309_v3  ;;  %v338_v8 = vrot.slane %v336_v1, 5  ;;  %v340_v9 = vshrl.u32 %v231_v51, 16 }
  0x20   : > { %v323_v7 = vor.u32 %v322_v63, %v318_v62  ;;  %v346_v10 = vshll.u32 %v232_v60, 16  ;;  %v314_v11 = vrot.slane %v313_v4, 4  ;;  %v350_v13 = vshrl.u32 %v232_v60, 16  ;;  %v240_v3 = vld [vmem:[%s1787_s23 + $0x48] sm:$0xf] }
  0x21   : > { %v333_v12 = vor.u32 %v332_v6, %v328_v5  ;;  %v356_v14 = vshll.u32 %v233_v2, 16  ;;  %v342_v17 = vrot.slane %v340_v9, 4  ;;  %v360_v19 = vshrl.u32 %v233_v2, 16 }
  0x22   : > { %v324_v16 = vrot.slane %v323_v7, 4  ;;  %v348_v18 = vrot.slane %v346_v10, 5  ;;  %v319_v21 = vsel %vm1802_vm3, %v314_v11, %v318_v62  ;;  %v352_v23 = vrot.slane %v350_v13, 4  ;;  %v242_v13 = vld [vmem:[%s1787_s23 + $0x50] sm:$0x1] }
  0x23   : > { %v334_v22 = vrot.slane %v333_v12, 4  ;;  %v358_v24 = vrot.slane %v356_v14, 5  ;;  %477 = vst.msk [vmem:[#allocation2 + $0x18] sm:$0xf] %vm470_vm2, %v319_v21  ;;  %v343_v26 = vor.u32 %v342_v17, %v338_v8  ;;  %v362_v28 = vrot.slane %v360_v19, 4 }
  0x24   : > { %v329_v25 = vsel %vm1802_vm3, %v324_v16, %v328_v5  ;;  %v366_v29 = vshll.u32 %v234_v15, 16  ;;  %v353_v32 = vor.u32 %v352_v23, %v348_v18  ;;  %v370_v33 = vshrl.u32 %v234_v15, 16  ;;  %v491_v14 = vld [vmem:[%s1787_s23] sm:$0xe]  ;;  %v492_v19 = vld [vmem:[%s1787_s23 + $0x4] sm:$0xf] }
  0x25   : > { %478 = vst.msk [vmem:[#allocation2 + $0x1c] sm:$0xf] %vm470_vm2, %v329_v25  ;;  %v339_v31 = vsel %vm1802_vm3, %v334_v22, %v338_v8  ;;  %v376_v34 = vshll.u32 %v235_v20, 16  ;;  %v344_v35 = vrot.slane %v343_v26, 4  ;;  %v363_v36 = vor.u32 %v362_v28, %v358_v24  ;;  %v241_v8 = vld [vmem:[%s1787_s23 + $0x4c] sm:$0xf] }
  0x26   : > { %479 = vst.msk [vmem:[#allocation2 + $0x20] sm:$0xf] %vm470_vm2, %v339_v31  ;;  %v368_v37 = vrot.slane %v366_v29, 5  ;;  %v380_v38 = vshrl.u32 %v235_v20, 16  ;;  %v354_v40 = vrot.slane %v353_v32, 4  ;;  %v372_v41 = vrot.slane %v370_v33, 4 }
  0x27   : > { %v378_v42 = vrot.slane %v376_v34, 5  ;;  %v386_v43 = vshll.u32 %v236_v30, 16  ;;  %v349_v44 = vsel %vm1802_vm3, %v344_v35, %v348_v18  ;;  %v364_v45 = vrot.slane %v363_v36, 4  ;;  %v495_v35 = vld [vmem:[%s1787_s23 + $0x10] sm:$0xf] }
  0x28   : > { %v382_v46 = vrot.slane %v380_v38, 4  ;;  %v390_v47 = vshrl.u32 %v236_v30, 16  ;;  %480 = vst.msk [vmem:[#allocation2 + $0x24] sm:$0xf] %vm470_vm2, %v349_v44  ;;  %v359_v49 = vsel %vm1802_vm3, %v354_v40, %v358_v24  ;;  %v373_v50 = vor.u32 %v372_v41, %v368_v37  ;;  %v493_v24 = vld [vmem:[%s1787_s23 + $0x8] sm:$0xf] }
  0x29   : > { %v388_v51 = vrot.slane %v386_v43, 5  ;;  %v396_v52 = vshll.u32 %v237_v39, 16  ;;  %481 = vst.msk [vmem:[#allocation2 + $0x28] sm:$0xf] %vm470_vm2, %v359_v49  ;;  %v369_v54 = vsel %vm1802_vm3, %v364_v45, %v368_v37  ;;  %v400_v57 = vshrl.u32 %v237_v39, 16 }
  0x2a   : > { %v383_v55 = vor.u32 %v382_v46, %v378_v42  ;;  %v392_v56 = vrot.slane %v390_v47, 4  ;;  %482 = vst.msk [vmem:[#allocation2 + $0x2c] sm:$0xf] %vm470_vm2, %v369_v54  ;;  %v374_v58 = vrot.slane %v373_v50, 4  ;;  %v406_v60 = vshll.u32 %v238_v48, 16 }
  0x2b   : > { %v398_v59 = vrot.slane %v396_v52, 5  ;;  %v410_v61 = vshrl.u32 %v238_v48, 16  ;;  %v402_v1 = vrot.slane %v400_v57, 4  ;;  %v416_v2 = vshll.u32 %v239_v53, 16  ;;  %v494_v30 = vld [vmem:[%s1787_s23 + $0xc] sm:$0xf] }
  0x2c   : > { %v384_v62 = vrot.slane %v383_v55, 4  ;;  %v393_v63 = vor.u32 %v392_v56, %v388_v51  ;;  %v379_v4 = vsel %vm1802_vm3, %v374_v58, %v378_v42  ;;  %v408_v5 = vrot.slane %v406_v60, 5  ;;  %v496_v41 = vld [vmem:[%s1787_s23 + $0x14] sm:$0xf]  ;;  %v497_v42 = vld [vmem:[%s1787_s23 + $0x18] sm:$0xf] }
  0x2d   : > { %v412_v6 = vrot.slane %v410_v61, 4  ;;  %v420_v7 = vshrl.u32 %v239_v53, 16  ;;  %483 = vst.msk [vmem:[#allocation2 + $0x30] sm:$0xf] %vm470_vm2, %v379_v4  ;;  %v403_v11 = vor.u32 %v402_v1, %v398_v59  ;;  %v418_v12 = vrot.slane %v416_v2, 5 }
  0x2e   : > { %v389_v9 = vsel %vm1802_vm3, %v384_v62, %v388_v51  ;;  %v394_v10 = vrot.slane %v393_v63, 4  ;;  %v426_v17 = vshll.u32 %v240_v3, 16  ;;  %v430_v18 = vshrl.u32 %v240_v3, 16  ;;  %v498_v47 = vld [vmem:[%s1787_s23 + $0x1c] sm:$0xf] }
  0x2f   : > { %484 = vst.msk [vmem:[#allocation2 + $0x34] sm:$0xf] %vm470_vm2, %v389_v9  ;;  %v413_v15 = vor.u32 %v412_v6, %v408_v5  ;;  %v422_v16 = vrot.slane %v420_v7, 4  ;;  %v404_v21 = vrot.slane %v403_v11, 4  ;;  %v436_v22 = vshll.u32 %v241_v8, 16 }
  0x30   : > { %v399_v20 = vsel %vm1802_vm3, %v394_v10, %v398_v59  ;;  %v440_v23 = vshrl.u32 %v241_v8, 16  ;;  %v428_v28 = vrot.slane %v426_v17, 5  ;;  %v432_v29 = vrot.slane %v430_v18, 4  ;;  %v499_v52 = vld [vmem:[%s1787_s23 + $0x20] sm:$0xf] }
  0x31   : > { %485 = vst.msk [vmem:[#allocation2 + $0x38] sm:$0xf] %vm470_vm2, %v399_v20  ;;  %v414_v25 = vrot.slane %v413_v15, 4  ;;  %v423_v26 = vor.u32 %v422_v16, %v418_v12  ;;  %v409_v31 = vsel %vm1802_vm3, %v404_v21, %v408_v5  ;;  %v438_v32 = vrot.slane %v436_v22, 5  ;;  %v500_v57 = vld [vmem:[%s1787_s23 + $0x24] sm:$0xf] }
  0x32   : > { %v442_v33 = vrot.slane %v440_v23, 4  ;;  %v446_v34 = vshll.u32 %v242_v13, 16  ;;  %486 = vst.msk [vmem:[#allocation2 + $0x3c] sm:$0xf] %vm470_vm2, %v409_v31  ;;  %v433_v38 = vor.u32 %v432_v29, %v428_v28  ;;  %v1453_v40 = vrot.slane %v491_v14, 9 }
  0x33   : > { %v419_v36 = vsel %vm1802_vm3, %v414_v25, %v418_v12  ;;  %v424_v37 = vrot.slane %v423_v26, 4  ;;  %v538_v45 = vrot.slane %v492_v19, 5  ;;  %v541_v46 = vrot.slane %v493_v24, 5  ;;  %v501_v62 = vld [vmem:[%s1787_s23 + $0x28] sm:$0xf] }
  0x34   : > { %487 = vst.msk [vmem:[#allocation2 + $0x40] sm:$0xf] %vm470_vm2, %v419_v36  ;;  %v443_v43 = vor.u32 %v442_v33, %v438_v32  ;;  %v448_v44 = vrot.slane %v446_v34, 5  ;;  %v434_v49 = vrot.slane %v433_v38, 4  ;;  %v544_v50 = vrot.slane %v494_v30, 5 }
  0x35   : > { %v429_v48 = vsel %vm1802_vm3, %v424_v37, %v428_v28  ;;  %v547_v51 = vrot.slane %v495_v35, 5  ;;  %v539_v54 = vsel %vm1878_vm6, %v1453_v40, %v538_v45  ;;  %v540_v55 = vrot.slane %v538_v45, 4  ;;  %v502_v4 = vld [vmem:[%s1787_s23 + $0x2c] sm:$0xf]  ;;  %v503_v5 = vld [vmem:[%s1787_s23 + $0x30] sm:$0xf] }
  0x36   : > { %488 = vst.msk [vmem:[#allocation2 + $0x44] sm:$0xf] %vm470_vm2, %v429_v48  ;;  %v444_v53 = vrot.slane %v443_v43, 4  ;;  %v543_v56 = vrot.slane %v541_v46, 4  ;;  %v439_v58 = vsel %vm1802_vm3, %v434_v49, %v438_v32  ;;  %617 = vst.msk [vmem:[#allocation3] sm:$0xf] %vm470_vm2, %v539_v54 }
  0x37   : > { %v546_v59 = vrot.slane %v544_v50, 4  ;;  %v549_v60 = vrot.slane %v547_v51, 4  ;;  %v550_v61 = vrot.slane %v496_v41, 5  ;;  %489 = vst.msk [vmem:[#allocation2 + $0x48] sm:$0xf] %vm470_vm2, %v439_v58  ;;  %v542_v1 = vsel %vm1878_vm6, %v540_v55, %v541_v46 }
  0x38   : > { %v449_v63 = vsel %vm1802_vm3, %v444_v53, %v448_v44  ;;  %v545_v2 = vsel %vm1878_vm6, %v543_v56, %v544_v50  ;;  %v553_v3 = vrot.slane %v497_v42, 5  ;;  %618 = vst.msk [vmem:[#allocation3 + $0x4] sm:$0xf] %vm470_vm2, %v542_v1  ;;  %v556_v8 = vrot.slane %v498_v47, 5  ;;  %v504_v9 = vld [vmem:[%s1787_s23 + $0x34] sm:$0xf] }
  0x39   : > { %490 = vst.msk [vmem:[#allocation2 + $0x4c] sm:$0xf] %vm470_vm2, %v449_v63  ;;  %619 = vst.msk [vmem:[#allocation3 + $0x8] sm:$0xf] %vm470_vm2, %v545_v2  ;;  %v548_v27 = vsel %vm1878_vm6, %v546_v59, %v547_v51  ;;  %v551_v6 = vsel %vm1878_vm6, %v549_v60, %v550_v61  ;;  %v552_v7 = vrot.slane %v550_v61, 4  ;;  %v559_v12 = vrot.slane %v499_v52, 5 }
  0x3a   : > { %v505_v10 = vld [vmem:[%s1787_s23 + $0x38] sm:$0xf]  ;;  %620 = vst.msk [vmem:[#allocation3 + $0xc] sm:$0xf] %vm470_vm2, %v548_v27  ;;  %621 = vst.msk [vmem:[#allocation3 + $0x10] sm:$0xf] %vm470_vm2, %v551_v6 }
  0x3b   : > { %v555_v11 = vrot.slane %v553_v3, 4  ;;  %v562_v13 = vrot.slane %v500_v57, 5  ;;  %v565_v14 = vrot.slane %v501_v62, 5  ;;  %v506_v15 = vld [vmem:[%s1787_s23 + $0x3c] sm:$0xf]  ;;  %v554_v16 = vsel %vm1878_vm6, %v552_v7, %v553_v3 }
  0x3c   : > { %v558_v17 = vrot.slane %v556_v8, 4  ;;  %v568_v18 = vrot.slane %v502_v4, 5  ;;  %v571_v19 = vrot.slane %v503_v5, 5  ;;  %v507_v20 = vld [vmem:[%s1787_s23 + $0x40] sm:$0xf]  ;;  %v561_v22 = vrot.slane %v559_v12, 4 }
  0x3d   : > { %622 = vst.msk [vmem:[#allocation3 + $0x14] sm:$0xf] %vm470_vm2, %v554_v16  ;;  %v557_v21 = vsel %vm1878_vm6, %v555_v11, %v556_v8  ;;  %v564_v23 = vrot.slane %v562_v13, 4  ;;  %v567_v24 = vrot.slane %v565_v14, 4  ;;  %v508_v25 = vld [vmem:[%s1787_s23 + $0x44] sm:$0xf] }
  0x3e   : > { %623 = vst.msk [vmem:[#allocation3 + $0x18] sm:$0xf] %vm470_vm2, %v557_v21  ;;  %v560_v26 = vsel %vm1878_vm6, %v558_v17, %v559_v12  ;;  %v570_v28 = vrot.slane %v568_v18, 4  ;;  %v573_v29 = vrot.slane %v571_v19, 4  ;;  %v574_v30 = vrot.slane %v504_v9, 5 }
  0x3f   : > { %v509_v31 = vld [vmem:[%s1787_s23 + $0x48] sm:$0xf]  ;;  %624 = vst.msk [vmem:[#allocation3 + $0x1c] sm:$0xf] %vm470_vm2, %v560_v26  ;;  %v563_v32 = vsel %vm1878_vm6, %v561_v22, %v562_v13  ;;  %v566_v33 = vsel %vm1878_vm6, %v564_v23, %v565_v14  ;;  %v569_v34 = vsel %vm1878_vm6, %v567_v24, %v568_v18  ;;  %v577_v35 = vrot.slane %v505_v10, 5 }
  0x40   : > { %v510_v36 = vld [vmem:[%s1787_s23 + $0x4c] sm:$0xf]  ;;  %v511_v37 = vld [vmem:[%s1787_s23 + $0x50] sm:$0x1]  ;;  %625 = vst.msk [vmem:[#allocation3 + $0x20] sm:$0xf] %vm470_vm2, %v563_v32  ;;  %v572_v38 = vsel %vm1878_vm6, %v570_v28, %v571_v19  ;;  %v575_v40 = vsel %vm1878_vm6, %v573_v29, %v574_v30 }
  0x41   : > { %626 = vst.msk [vmem:[#allocation3 + $0x24] sm:$0xf] %vm470_vm2, %v566_v33  ;;  %627 = vst.msk [vmem:[#allocation3 + $0x28] sm:$0xf] %vm470_vm2, %v569_v34  ;;  %v576_v41 = vrot.slane %v574_v30, 4  ;;  %v580_v42 = vrot.slane %v506_v15, 5 }
  0x42   : > { %628 = vst.msk [vmem:[#allocation3 + $0x2c] sm:$0xf] %vm470_vm2, %v572_v38  ;;  %629 = vst.msk [vmem:[#allocation3 + $0x30] sm:$0xf] %vm470_vm2, %v575_v40  ;;  %v579_v43 = vrot.slane %v577_v35, 4  ;;  %v583_v44 = vrot.slane %v507_v20, 5 }
  0x43   : > { %v586_v45 = vrot.slane %v508_v25, 5  ;;  %v589_v46 = vrot.slane %v509_v31, 5  ;;  %v578_v47 = vsel %vm1878_vm6, %v576_v41, %v577_v35  ;;  %v582_v48 = vrot.slane %v580_v42, 4 }
  0x44   : > { %v592_v49 = vrot.slane %v510_v36, 5  ;;  %v595_v50 = vrot.slane %v511_v37, 5  ;;  %630 = vst.msk [vmem:[#allocation3 + $0x34] sm:$0xf] %vm470_vm2, %v578_v47  ;;  %v581_v51 = vsel %vm1878_vm6, %v579_v43, %v580_v42  ;;  %v585_v52 = vrot.slane %v583_v44, 4 }
  0x45   : > { %v588_v53 = vrot.slane %v586_v45, 4  ;;  %v591_v54 = vrot.slane %v589_v46, 4  ;;  %631 = vst.msk [vmem:[#allocation3 + $0x38] sm:$0xf] %vm470_vm2, %v581_v51  ;;  %v584_v55 = vsel %vm1878_vm6, %v582_v48, %v583_v44 }
  0x46   : > { %v594_v56 = vrot.slane %v592_v49, 4  ;;  %632 = vst.msk [vmem:[#allocation3 + $0x3c] sm:$0xf] %vm470_vm2, %v584_v55  ;;  %v587_v57 = vsel %vm1878_vm6, %v585_v52, %v586_v45 }
  0x47   : > { %v590_v58 = vsel %vm1878_vm6, %v588_v53, %v589_v46  ;;  %v593_v59 = vsel %vm1878_vm6, %v591_v54, %v592_v49  ;;  %633 = vst.msk [vmem:[#allocation3 + $0x40] sm:$0xf] %vm470_vm2, %v587_v57 }
  0x48   : > { %634 = vst.msk [vmem:[#allocation3 + $0x44] sm:$0xf] %vm470_vm2, %v590_v58  ;;  %635 = vst.msk [vmem:[#allocation3 + $0x48] sm:$0xf] %vm470_vm2, %v593_v59  ;;  %v596_v60 = vsel %vm1878_vm6, %v594_v56, %v595_v50 }
  0x49   : > { %636 = vst.msk [vmem:[#allocation3 + $0x4c] sm:$0xf] %vm470_vm2, %v596_v60 }
  0x4a LB: >> { %v1680_v61 = vld [vmem:[%s2113_s1 + $0x18] sm:$0xff]   ;;  %v1739_v62 = vmov 0.0   ;;  %v1681_v39 = vld [vmem:[%s2113_s1 + $0x8] sm:$0xff]   ;;  %v1682_v63 = vld [vmem:[%s2113_s1 + $0x10] sm:$0xff]   ;;  %vm1740_vm7 = vmmov 0   ;;  %s1987_s7 = sshll.u32 %s1737_s27, 4  ;;  %s1737_s27 = sphi %s1968_s27, %s643_s27  }
  0x4b   : >> { %1573 = vmatprep.subr.bf16.mxu0 %v1739_v62  ;;  %1581 = vmatprep.subr.bf16.mxu1 %v1739_v62  ;;  %v1683_v1 = vld [vmem:[%s2113_s1] sm:$0xff]   ;;  %s645_s10 = sshra.s32 %s1987_s7, 3  ;;  %v1686_v2 = vld [vmem:[%s2113_s1 + $0x28] sm:$0xff]   ;;  %vm681_vm8 = vcmask 261120   ;;  %s859_s19 = sadd.s32 16, %s1987_s7  ;;  %v1687_v5 = vld [vmem:[%s2113_s1 + $0x38] sm:$0xff]  }
  0x4c   : >> { %1574 = vmatpush3.bf16.msra.mxu0 %v1680_v61  ;;  %1577 = vmatprep.mubr.msk.bf16.mxu0 %vm1740_vm7, %v1739_v62  ;;  %s1997_s11 = sshll.u32 %s645_s10, 2  ;;  %s860_s22 = sshra.s32 %s859_s19, 3  ;;  %v1688_v27 = vld [vmem:[%s2113_s1 + $0x20] sm:$0xff]   ;;  %v1689_v6 = vld [vmem:[%s2113_s1 + $0x30] sm:$0xff]   ;;  %v1692_v9 = vld [vmem:[%s2113_s1 + $0x48] sm:$0xff]  }
  0x4d   : >> { %1582 = vmatpush3.bf16.msra.mxu1 %v1681_v39  ;;  %1575 = vmatprep.subr.bf16.mxu0 %v1739_v62  ;;  %s648_s12 = scalar_lea.vmem %s1787_s23, %s1997_s11  ;;  %s656_s18 = scalar_lea.vmem [#allocation2], %s1997_s11  ;;  %v1693_v10 = vld [vmem:[%s2113_s1 + $0x58] sm:$0xff]   ;;  %v1694_v11 = vld [vmem:[%s2113_s1 + $0x40] sm:$0xff]   ;;  %v1695_v12 = vld [vmem:[%s2113_s1 + $0x50] sm:$0xff]  }
  0x4e   : >> { %1583 = vmatprep.subr.bf16.mxu1 %v1739_v62  ;;  %1585 = vmatprep.mubr.msk.bf16.mxu1 %vm1740_vm7, %v1739_v62  ;;  %v1684_v3 = vld [vmem:[%s656_s18] sm:$0xff]   ;;  %s2012_s24 = sshll.u32 %s860_s22, 2  ;;  %s788_s29 = scalar_lea.vmem [#allocation3], %s1997_s11  ;;  %v1698_v15 = vld [vmem:[%s2113_s1 + $0x68] sm:$0xff]   ;;  %v1699_v16 = vld [vmem:[%s2113_s1 + $0x78] sm:$0xff]  }
  0x4f   : >> { %v1685_v4 = vld [vmem:[%s648_s12] sm:$0xff]   ;;  %s863_s30 = scalar_lea.vmem %s1787_s23, %s2012_s24  ;;  %s1078_s6 = sadd.s32 32, %s1987_s7  ;;  %v1701_v18 = vld [vmem:[%s2113_s1 + $0x70] sm:$0xff]   ;;  %v1704_v21 = vld [vmem:[%s2113_s1 + $0x88] sm:$0xff]  }
  0x50   : >> { %1576 = vmatpush3.bf16.msra.mxu0 %v1682_v63  ;;  %v1690_v7 = vld [vmem:[%s788_s29] sm:$0xff]   ;;  %s1079_s16 = sshra.s32 %s1078_s6, 3  ;;  %s935_s7 = scalar_lea.vmem [#allocation2], %s2012_s24 }
  0x51   : >> { %1584 = vmatpush3.bf16.msra.mxu1 %v1683_v1  ;;  %1589 = vmatprep.subr.bf16.mxu0 %v1739_v62  ;;  %v1691_v8 = vld [vmem:[%s863_s30] sm:$0xff]   ;;  %s1007_s17 = scalar_lea.vmem [#allocation3], %s2012_s24  ;;  %s2046_s20 = sshll.u32 %s1079_s16, 2 }
  0x52   : >> { %1597 = vmatprep.subr.bf16.mxu1 %v1739_v62  ;;  %v1696_v13 = vld [vmem:[%s935_s7] sm:$0xff]   ;;  %s1082_s24 = scalar_lea.vmem %s1787_s23, %s2046_s20  ;;  %s1154_s4 = scalar_lea.vmem [#allocation2], %s2046_s20 }
  0x53   : >> { %1578 = vmatmul.mubr.msk.bf16.vlgmr.msra.gmra.mxu0 %vm681_vm8, %v1684_v3  ;;  %v1697_v14 = vld [vmem:[%s1007_s17] sm:$0xff]   ;;  %s1226_s8 = scalar_lea.vmem [#allocation3], %s2046_s20  ;;  %s1316_s18 = scalar_lea.vmem %s1792_s26, %s1997_s11 }
  0x54   : >> { %1586 = vmatmul.mubr.msk.bf16.vlgmr.msra.gmra.mxu1 %vm681_vm8, %v1685_v4  ;;  %1590 = vmatpush3.bf16.msra.mxu0 %v1686_v2  ;;  %v1700_v17 = vld [vmem:[%s2113_s1 + $0x60] sm:$0xff]   ;;  %s643_s27 = sadd.s32 1, %s1737_s27  }
  0x55   : >> { %1598 = vmatpush3.bf16.msra.mxu1 %v1687_v5  ;;  %1591 = vmatprep.subr.bf16.mxu0 %v1739_v62  ;;  %v1702_v19 = vld [vmem:[%s1082_s24] sm:$0xff]   ;;  %p640_p5 = scmp.ge.s32.totalorder %s643_s27, 8  }
  0x56   : >> { %1599 = vmatprep.subr.bf16.mxu1 %v1739_v62  ;;  %1593 = vmatprep.mubr.msk.bf16.mxu0 %vm1740_vm7, %v1739_v62  ;;  %v1703_v20 = vld [vmem:[%s1154_s4] sm:$0xff]  }
  0x57   : >> { %1601 = vmatprep.mubr.msk.bf16.mxu1 %vm1740_vm7, %v1739_v62  ;;  %v1705_v22 = vld [vmem:[%s2113_s1 + $0x80] sm:$0xff]  }
  0x58   : >> { %1592 = vmatpush3.bf16.msra.mxu0 %v1688_v27  ;;  %v1706_v23 = vld [vmem:[%s1226_s8] sm:$0xff]  }
  0x59   : >> { %1600 = vmatpush3.bf16.msra.mxu1 %v1689_v6  ;;  %1605 = vmatprep.subr.bf16.mxu0 %v1739_v62 }
  0x5a   : >> { %1613 = vmatprep.subr.bf16.mxu1 %v1739_v62 }
  0x5b   : >> { %1594 = vmatmul.mubr.msk.bf16.vlgmr.msra.gmra.mxu0 %vm681_vm8, %v1690_v7 }
  0x5c   : >> { %1602 = vmatmul.mubr.msk.bf16.vlgmr.msra.gmra.mxu1 %vm681_vm8, %v1691_v8  ;;  %1606 = vmatpush3.bf16.msra.mxu0 %v1692_v9 }
  0x5d   : >> { %1614 = vmatpush3.bf16.msra.mxu1 %v1693_v10  ;;  %1607 = vmatprep.subr.bf16.mxu0 %v1739_v62 }
  0x5e   : >> { %1615 = vmatprep.subr.bf16.mxu1 %v1739_v62  ;;  %1609 = vmatprep.mubr.msk.bf16.mxu0 %vm1740_vm7, %v1739_v62 }
  0x5f   : >> { %1617 = vmatprep.mubr.msk.bf16.mxu1 %vm1740_vm7, %v1739_v62 }
  0x60   : >> { %1608 = vmatpush3.bf16.msra.mxu0 %v1694_v11 }
  0x61   : >> { %1616 = vmatpush3.bf16.msra.mxu1 %v1695_v12  ;;  %1621 = vmatprep.subr.bf16.mxu0 %v1739_v62 }
  0x62   : >> { %1629 = vmatprep.subr.bf16.mxu1 %v1739_v62 }
  0x63   : >> { %1610 = vmatmul.mubr.msk.bf16.vlgmr.msra.gmra.mxu0 %vm681_vm8, %v1696_v13 }
  0x64   : >> { %1618 = vmatmul.mubr.msk.bf16.vlgmr.msra.gmra.mxu1 %vm681_vm8, %v1697_v14  ;;  %1622 = vmatpush3.bf16.msra.mxu0 %v1698_v15 }
  0x65   : >> { %1630 = vmatpush3.bf16.msra.mxu1 %v1699_v16  ;;  %1623 = vmatprep.subr.bf16.mxu0 %v1739_v62 }
  0x66   : >> { %1631 = vmatprep.subr.bf16.mxu1 %v1739_v62  ;;  %1625 = vmatprep.mubr.msk.bf16.mxu0 %vm1740_vm7, %v1739_v62 }
  0x67   : >> { %1633 = vmatprep.mubr.msk.bf16.mxu1 %vm1740_vm7, %v1739_v62 }
  0x68   : >> { %1624 = vmatpush3.bf16.msra.mxu0 %v1700_v17 }
  0x69   : >> { %1632 = vmatpush3.bf16.msra.mxu1 %v1701_v18  ;;  %1637 = vmatprep.subr.bf16.mxu0 %v1739_v62 }
  0x6b   : >> { %1626 = vmatmul.mubr.msk.bf16.vlgmr.msra.gmra.mxu0 %vm681_vm8, %v1702_v19 }
  0x6c   : >> { %1634 = vmatmul.mubr.msk.bf16.vlgmr.msra.gmra.mxu1 %vm681_vm8, %v1703_v20  ;;  %1638 = vmatpush3.bf16.msra.mxu0 %v1704_v21 }
  0x6d   : >> { %1639 = vmatprep.subr.bf16.mxu0 %v1739_v62  ;;  %1641 = vmatprep.mubr.msk.bf16.mxu0 %vm1740_vm7, %v1739_v62 }
  0x70   : >> { %1640 = vmatpush3.bf16.msra.mxu0 %v1705_v22 }
  0x73   : >> { %1642 = vmatmul.mubr.msk.bf16.vlgmr.msra.gmra.mxu0 %vm681_vm8, %v1706_v23 }
 0x113   : >> { %v719_v24 = vpop.f32.mrf.mxu0 }
 0x114   : >> { %v780_v25 = vpop.f32.mrf.mxu1 }
 0x115   : >> { %v1579_v26 = vpop.f32.mrf.mxu0  ;;  %v781_v41 = vadd.f32 %v780_v25, %v719_v24 }
 0x116   : >> { %v1587_v28 = vpop.f32.mrf.mxu1 }
 0x117   : >> { %v722_v29 = vpop.f32.mrf.mxu0 }
 0x118   : >> { %v783_v30 = vpop.f32.mrf.mxu1 }
 0x119   : >> { %v1580_v31 = vpop.f32.mrf.mxu0  ;;  %v784_v44 = vadd.f32 %v783_v30, %v722_v29 }
 0x11a   : >> { %v1588_v32 = vpop.f32.mrf.mxu1 }
 0x11b   : >> { %v850_v33 = vpop.f32.mrf.mxu0 }
 0x11c   : >> { %v925_v34 = vpop.f32.mrf.mxu1  ;;  %v857_v45 = vadd.f32 %v850_v33, %v781_v41 }
 0x11d   : >> { %v1595_v35 = vpop.f32.mrf.mxu0 }
 0x11e   : >> { %v1603_v36 = vpop.f32.mrf.mxu1  ;;  %v932_v51 = vadd.f32 %v925_v34, %v857_v45 }
 0x11f   : >> { %v853_v37 = vpop.f32.mrf.mxu0 }
 0x120   : >> { %v928_v38 = vpop.f32.mrf.mxu1  ;;  %v858_v48 = vadd.f32 %v853_v37, %v784_v44 }
 0x121   : >> { %v1596_v40 = vpop.f32.mrf.mxu0 }
 0x122   : >> { %v1604_v42 = vpop.f32.mrf.mxu1  ;;  %v933_v54 = vadd.f32 %v928_v38, %v858_v48 }
 0x123   : >> { %v997_v43 = vpop.f32.mrf.mxu0 }
 0x124   : >> { %v1069_v46 = vpop.f32.mrf.mxu1  ;;  %v1004_v55 = vadd.f32 %v997_v43, %v932_v51 }
 0x125   : >> { %v1611_v47 = vpop.f32.mrf.mxu0 }
 0x126   : >> { %v1619_v49 = vpop.f32.mrf.mxu1  ;;  %v1076_v61 = vadd.f32 %v1069_v46, %v1004_v55 }
 0x127   : >> { %v1000_v50 = vpop.f32.mrf.mxu0 }
 0x128   : >> { %v1072_v52 = vpop.f32.mrf.mxu1  ;;  %v1005_v58 = vadd.f32 %v1000_v50, %v933_v54 }
 0x129   : >> { %v1612_v53 = vpop.f32.mrf.mxu0 }
 0x12a   : >> { %v1620_v56 = vpop.f32.mrf.mxu1  ;;  %v1077_v63 = vadd.f32 %v1072_v52, %v1005_v58 }
 0x12b   : >> { %v1144_v57 = vpop.f32.mrf.mxu0 }
 0x12c   : >> { %v1216_v59 = vpop.f32.mrf.mxu1  ;;  %v1151_v1 = vadd.f32 %v1144_v57, %v1076_v61 }
 0x12d   : >> { %v1627_v60 = vpop.f32.mrf.mxu0 }
 0x12e   : >> { %v1635_v62 = vpop.f32.mrf.mxu1  ;;  %v1223_v6 = vadd.f32 %v1216_v59, %v1151_v1 }
 0x12f   : >> { %v1147_v39 = vpop.f32.mrf.mxu0 }
 0x130   : >> { %v1219_v2 = vpop.f32.mrf.mxu1  ;;  %v1152_v4 = vadd.f32 %v1147_v39, %v1077_v63 }
 0x131   : >> { %v1628_v3 = vpop.f32.mrf.mxu0 }
 0x132   : >> { %v1636_v5 = vpop.f32.mrf.mxu1  ;;  %v1224_v8 = vadd.f32 %v1219_v2, %v1152_v4 }
 0x133   : >> { %v1288_v27 = vpop.f32.mrf.mxu0 }
 0x134   : >> { %v1295_v9 = vadd.f32 %v1288_v27, %v1223_v6 }
 0x135   : >> { %v1643_v7 = vpop.f32.mrf.mxu0 }
 0x136   : >> { %v1303_v13 = vadd.f32 %v1782_v0, %v1295_v9 }
 0x137   : >> { %v1291_v10 = vpop.f32.mrf.mxu0 }
 0x138   : >> { %v1296_v11 = vadd.f32 %v1291_v10, %v1224_v8 }
 0x139   : >> { %v1644_v12 = vpop.f32.mrf.mxu0 }
 0x13a   : >> { %v1304_v14 = vadd.f32 %v1782_v0, %v1296_v11  ;;  %642 = sbr.rel (!%p640_p5) target bundleno = 74 (0x4a), region = 90 }
 0x13c   : >> { %v1544_v15 = vpack.c.bf16 %v1304_v14, %v1303_v13 }
 0x13e   : >> { %1545 = vst [vmem:[%s1316_s18] sm:$0xff] %v1544_v15  }
 0x13f PF: > { %s13_s14 = sadd.s32 1, %s1733_s14   ;;  %s2120_s12 = smov %s1729_s13 }
 0x140   : > { %p10_p6 = scmp.ge.s32.totalorder %s13_s14, 4   ;;  %s2121_s13 = smov %s2123_s15 }
 0x142   :  { %12 = sbr.rel (!%p10_p6) target bundleno = 2 (0x2), region = 101 }

// kernel: _lambda_.19
= control target key start
LH: loop header
LB: loop body
LE: loop exit
PB: predicated region body
PF: predicated region fallthrough
CT: control target
= control target key end

     0   :  { %s3391_s12 = smov 0   ;;  %s3393_s13 = smov 0   ;;  %s4108_s0 = inlined_call_operand.vmem [shape: bf16[2,1,176,256], index: 0, kind: input, shape index: {}]   ;;  %s4109_s1 = inlined_call_operand.vmem [shape: bf16[9,256,128], index: 1, kind: input, shape index: {}]   ;;  %s4110_s2 = inlined_call_operand.vmem [shape: f32[2,1,128], index: 2, kind: input, shape index: {}]   ;;  %s4111_s3 = inlined_call_operand.vmem [shape: bf16[2,1,128,128], index: 3, kind: output, shape index: {}]  }
   0x1   :  { %s3395_s14 = smov 0  }
   0x2 LB: > { %s25_s15 = sadd.s32 1, %s3361_s13  ;;  %p2478_p0 = scmp.ge.s32.totalorder %s3365_s14, 1  ;;  %s3365_s14 = sphi %s3395_s14, %s13_s14   ;;  %s3361_s13 = sphi %s3393_s13, %s4117_s13   ;;  %s3357_s12 = sphi %s3391_s12, %s4116_s12  }
   0x3   : > { %p27_p1 = scmp.ge.s32.totalorder %s25_s15, 2  ;;  %p165_p2 = scmp.lt.s32.totalorder %s3365_s14, 3 }
   0x5   : > { %s4119_s15 = smov (%p27_p1, %s25_s15), 0  ;;  %p166_p3 = pnand %p2478_p0, %p165_p2 }
   0x6   : > { %p200_p4 = scmp.lt.s32.totalorder (!%p166_p3), %s3357_s12, 1  ;;  %s3634_s27 = smov (!%p166_p3), 0  }
   0x7   : > { %169 = sbr.rel (%p166_p3) target bundleno = 442 (0x1ba), region = 32 }
   0xc   : > { %s4121_s12 = smov (!%p200_p4, %s3357_s12), 1  ;;  %vm243_vm0 = vsmask.f32 3328  ;;  %vm244_vm1 = vsmask.f32 7440  ;;  %vm532_vm3 = vcmask 1042432  }
   0xd   : > { %s3135_s16 = smul.u32 176, %s4121_s12  ;;  %s211_s19 = scalar_lea.vmem %s4110_s2, %s4121_s12  ;;  %vm3450_vm2 = vmor %vm243_vm0, %vm244_vm1  ;;  %vm533_vm4 = vcmask 1046532  }
   0xe   : > { %s2920_s20 = sshll.u32 %s4121_s12, 6  ;;  %v3412_v0 = vld [vmem:[%s211_s19] ss:$0 sm:$0xff]  ;;  %vm3564_vm5 = vmor %vm532_vm3, %vm533_vm4 }
   0xf   : > { %s3417_s23 = scalar_lea.vmem %s4108_s0, %s3135_s16  ;;  %s3422_s26 = scalar_lea.vmem %s4111_s3, %s2920_s20 }
  0x10   : > { %v222_v1 = vld [vmem:[%s3417_s23] sm:$0xff]  ;;  %v3426_v2 = vld [vmem:[%s3417_s23 + $0x8] sm:$0xff]  ;;  %v3429_v3 = vld [vmem:[%s3417_s23 + $0x10] sm:$0xff] }
  0x11   : > { %v247_v4 = vshrl.u32 %v222_v1, 16  ;;  %v250_v5 = vshll.u32 %v222_v1, 16  ;;  %v256_v6 = vshll.u32 %v3426_v2, 16  ;;  %v260_v7 = vshrl.u32 %v3426_v2, 16  ;;  %v3434_v8 = vld [vmem:[%s3417_s23 + $0x18] sm:$0xff]  ;;  %v3441_v13 = vld [vmem:[%s3417_s23 + $0x20] sm:$0xff] }
  0x12   : > { %v266_v9 = vshll.u32 %v3429_v3, 16  ;;  %v270_v10 = vshrl.u32 %v3429_v3, 16  ;;  %v276_v11 = vshll.u32 %v3434_v8, 16  ;;  %v280_v12 = vshrl.u32 %v3434_v8, 16  ;;  %v3444_v18 = vld [vmem:[%s3417_s23 + $0x28] sm:$0xff]  ;;  %v3457_v32 = vld [vmem:[%s3417_s23 + $0x30] sm:$0xff] }
  0x13   : > { %v249_v14 = vrot.slane %v247_v4, 4  ;;  %v252_v15 = vrot.slane %v250_v5, 5  ;;  %v258_v16 = vrot.slane %v256_v6, 5  ;;  %v262_v17 = vrot.slane %v260_v7, 4  ;;  %v3460_v41 = vld [vmem:[%s3417_s23 + $0x38] sm:$0xff]  ;;  %v3468_v46 = vld [vmem:[%s3417_s23 + $0x40] sm:$0xff] }
  0x14   : > { %v268_v19 = vrot.slane %v266_v9, 5  ;;  %v272_v20 = vrot.slane %v270_v10, 4  ;;  %v278_v21 = vrot.slane %v276_v11, 5  ;;  %v282_v22 = vrot.slane %v280_v12, 4  ;;  %v3476_v51 = vld [vmem:[%s3417_s23 + $0x48] sm:$0xff]  ;;  %v3483_v60 = vld [vmem:[%s3417_s23 + $0x50] sm:$0xff] }
  0x15   : > { %v253_v23 = vor.u32 %v252_v15, %v249_v14  ;;  %v263_v24 = vor.u32 %v262_v17, %v258_v16  ;;  %v286_v25 = vshll.u32 %v3441_v13, 16  ;;  %v290_v26 = vshrl.u32 %v3441_v13, 16  ;;  %v3489_v4 = vld [vmem:[%s3417_s23 + $0x58] sm:$0xff] }
  0x16   : > { %v273_v28 = vor.u32 %v272_v20, %v268_v19  ;;  %v283_v29 = vor.u32 %v282_v22, %v278_v21  ;;  %v296_v30 = vshll.u32 %v3444_v18, 16  ;;  %v300_v31 = vshrl.u32 %v3444_v18, 16  ;;  %v3498_v20 = vld [vmem:[%s3417_s23 + $0x60] sm:$0xff] }
  0x17   : > { %v254_v33 = vrot.slane %v253_v23, 4  ;;  %v264_v34 = vrot.slane %v263_v24, 4  ;;  %v288_v35 = vrot.slane %v286_v25, 5  ;;  %v292_v36 = vrot.slane %v290_v26, 4  ;;  %v3502_v25 = vld [vmem:[%s3417_s23 + $0x68] sm:$0xff] }
  0x18   : > { %v274_v37 = vrot.slane %v273_v28, 4  ;;  %v284_v38 = vrot.slane %v283_v29, 4  ;;  %v298_v39 = vrot.slane %v296_v30, 5  ;;  %v302_v40 = vrot.slane %v300_v31, 4 }
  0x19   : > { %v259_v42 = vsel %vm3450_vm2, %v254_v33, %v258_v16  ;;  %v269_v43 = vsel %vm3450_vm2, %v264_v34, %v268_v19  ;;  %v293_v44 = vor.u32 %v292_v36, %v288_v35  ;;  %v306_v45 = vshll.u32 %v3457_v32, 16  ;;  %v3510_v36 = vld [vmem:[%s3417_s23 + $0x70] sm:$0xff] }
  0x1a   : > { %470 = vst [vmem:[#allocation2] sm:$0xff] %v259_v42  ;;  %471 = vst [vmem:[#allocation2 + $0x8] sm:$0xff] %v269_v43  ;;  %v279_v47 = vsel %vm3450_vm2, %v274_v37, %v278_v21  ;;  %v289_v48 = vsel %vm3450_vm2, %v284_v38, %v288_v35  ;;  %v303_v49 = vor.u32 %v302_v40, %v298_v39  ;;  %v310_v50 = vshrl.u32 %v3457_v32, 16 }
  0x1b   : > { %472 = vst [vmem:[#allocation2 + $0x10] sm:$0xff] %v279_v47  ;;  %473 = vst [vmem:[#allocation2 + $0x18] sm:$0xff] %v289_v48  ;;  %v294_v52 = vrot.slane %v293_v44, 4  ;;  %v308_v53 = vrot.slane %v306_v45, 5  ;;  %v316_v54 = vshll.u32 %v3460_v41, 16  ;;  %v320_v55 = vshrl.u32 %v3460_v41, 16 }
  0x1c   : > { %v304_v56 = vrot.slane %v303_v49, 4  ;;  %v312_v57 = vrot.slane %v310_v50, 4  ;;  %v326_v58 = vshll.u32 %v3468_v46, 16  ;;  %v330_v59 = vshrl.u32 %v3468_v46, 16  ;;  %v3518_v47 = vld [vmem:[%s3417_s23 + $0x78] sm:$0xff] }
  0x1d   : > { %v299_v61 = vsel %vm3450_vm2, %v294_v52, %v298_v39  ;;  %v318_v62 = vrot.slane %v316_v54, 5  ;;  %v322_v63 = vrot.slane %v320_v55, 4  ;;  %v336_v1 = vshll.u32 %v3476_v51, 16 }
  0x1e   : > { %474 = vst [vmem:[#allocation2 + $0x20] sm:$0xff] %v299_v61  ;;  %v309_v5 = vsel %vm3450_vm2, %v304_v56, %v308_v53  ;;  %v313_v6 = vor.u32 %v312_v57, %v308_v53  ;;  %v328_v7 = vrot.slane %v326_v58, 5  ;;  %v332_v9 = vrot.slane %v330_v59, 4  ;;  %v3525_v57 = vld [vmem:[%s3417_s23 + $0x80] sm:$0xff] }
  0x1f   : > { %475 = vst [vmem:[#allocation2 + $0x28] sm:$0xff] %v309_v5  ;;  %v323_v10 = vor.u32 %v322_v63, %v318_v62  ;;  %v338_v11 = vrot.slane %v336_v1, 5  ;;  %v340_v12 = vshrl.u32 %v3476_v51, 16  ;;  %v346_v14 = vshll.u32 %v3483_v60, 16  ;;  %v3531_v63 = vld [vmem:[%s3417_s23 + $0x88] sm:$0xff] }
  0x20   : > { %v314_v15 = vrot.slane %v313_v6, 4  ;;  %v333_v16 = vor.u32 %v332_v9, %v328_v7  ;;  %v350_v17 = vshrl.u32 %v3483_v60, 16  ;;  %v356_v19 = vshll.u32 %v3489_v4, 16 }
  0x21   : > { %v324_v21 = vrot.slane %v323_v10, 4  ;;  %v342_v22 = vrot.slane %v340_v12, 4  ;;  %v348_v23 = vrot.slane %v346_v14, 5  ;;  %v360_v24 = vshrl.u32 %v3489_v4, 16 }
  0x22   : > { %v319_v26 = vsel %vm3450_vm2, %v314_v15, %v318_v62  ;;  %v334_v28 = vrot.slane %v333_v16, 4  ;;  %v352_v29 = vrot.slane %v350_v17, 4  ;;  %v358_v30 = vrot.slane %v356_v19, 5  ;;  %v3540_v19 = vld [vmem:[%s3417_s23 + $0x90] sm:$0xff] }
  0x23   : > { %476 = vst [vmem:[#allocation2 + $0x30] sm:$0xff] %v319_v26  ;;  %v329_v31 = vsel %vm3450_vm2, %v324_v21, %v328_v7  ;;  %v343_v33 = vor.u32 %v342_v22, %v338_v11  ;;  %v362_v34 = vrot.slane %v360_v24, 4  ;;  %v366_v35 = vshll.u32 %v3498_v20, 16  ;;  %v3546_v26 = vld [vmem:[%s3417_s23 + $0x98] sm:$0xff] }
  0x24   : > { %477 = vst [vmem:[#allocation2 + $0x38] sm:$0xff] %v329_v31  ;;  %v339_v37 = vsel %vm3450_vm2, %v334_v28, %v338_v11  ;;  %v353_v38 = vor.u32 %v352_v29, %v348_v23  ;;  %v370_v39 = vshrl.u32 %v3498_v20, 16  ;;  %v376_v40 = vshll.u32 %v3502_v25, 16 }
  0x25   : > { %478 = vst [vmem:[#allocation2 + $0x40] sm:$0xff] %v339_v37  ;;  %v344_v42 = vrot.slane %v343_v33, 4  ;;  %v363_v43 = vor.u32 %v362_v34, %v358_v30  ;;  %v368_v44 = vrot.slane %v366_v35, 5  ;;  %v380_v45 = vshrl.u32 %v3502_v25, 16 }
  0x26   : > { %v354_v48 = vrot.slane %v353_v38, 4  ;;  %v372_v49 = vrot.slane %v370_v39, 4  ;;  %v378_v50 = vrot.slane %v376_v40, 5  ;;  %v386_v52 = vshll.u32 %v3510_v36, 16  ;;  %v242_v38 = vld [vmem:[%s3417_s23 + $0xa0] sm:$0x11] }
  0x27   : > { %v349_v53 = vsel %vm3450_vm2, %v344_v42, %v348_v23  ;;  %v364_v54 = vrot.slane %v363_v43, 4  ;;  %v382_v55 = vrot.slane %v380_v45, 4  ;;  %v390_v56 = vshrl.u32 %v3510_v36, 16 }
  0x28   : > { %479 = vst [vmem:[#allocation2 + $0x48] sm:$0xff] %v349_v53  ;;  %v359_v58 = vsel %vm3450_vm2, %v354_v48, %v358_v30  ;;  %v373_v59 = vor.u32 %v372_v49, %v368_v44  ;;  %v388_v61 = vrot.slane %v386_v52, 5  ;;  %v396_v62 = vshll.u32 %v3518_v47, 16 }
  0x29   : > { %480 = vst [vmem:[#allocation2 + $0x50] sm:$0xff] %v359_v58  ;;  %v369_v1 = vsel %vm3450_vm2, %v364_v54, %v368_v44  ;;  %v383_v5 = vor.u32 %v382_v55, %v378_v50  ;;  %v392_v6 = vrot.slane %v390_v56, 4  ;;  %v400_v7 = vshrl.u32 %v3518_v47, 16  ;;  %v490_v44 = vld [vmem:[%s3417_s23] sm:$0xee] }
  0x2a   : > { %481 = vst [vmem:[#allocation2 + $0x58] sm:$0xff] %v369_v1  ;;  %v374_v9 = vrot.slane %v373_v59, 4  ;;  %v398_v10 = vrot.slane %v396_v62, 5  ;;  %v406_v11 = vshll.u32 %v3525_v57, 16  ;;  %v410_v12 = vshrl.u32 %v3525_v57, 16 }
  0x2b   : > { %v384_v14 = vrot.slane %v383_v5, 4  ;;  %v393_v15 = vor.u32 %v392_v6, %v388_v61  ;;  %v402_v16 = vrot.slane %v400_v7, 4  ;;  %v416_v17 = vshll.u32 %v3531_v63, 16 }
  0x2c   : > { %v379_v21 = vsel %vm3450_vm2, %v374_v9, %v378_v50  ;;  %v408_v22 = vrot.slane %v406_v11, 5  ;;  %v412_v23 = vrot.slane %v410_v12, 4  ;;  %v420_v24 = vshrl.u32 %v3531_v63, 16 }
  0x2d   : > { %482 = vst [vmem:[#allocation2 + $0x60] sm:$0xff] %v379_v21  ;;  %v389_v28 = vsel %vm3450_vm2, %v384_v14, %v388_v61  ;;  %v394_v29 = vrot.slane %v393_v15, 4  ;;  %v403_v30 = vor.u32 %v402_v16, %v398_v10  ;;  %v418_v31 = vrot.slane %v416_v17, 5 }
  0x2e   : > { %483 = vst [vmem:[#allocation2 + $0x68] sm:$0xff] %v389_v28  ;;  %v413_v33 = vor.u32 %v412_v23, %v408_v22  ;;  %v422_v34 = vrot.slane %v420_v24, 4  ;;  %v426_v35 = vshll.u32 %v3540_v19, 16  ;;  %v430_v37 = vshrl.u32 %v3540_v19, 16 }
  0x2f   : > { %v399_v39 = vsel %vm3450_vm2, %v394_v29, %v398_v10  ;;  %v404_v40 = vrot.slane %v403_v30, 4  ;;  %v436_v42 = vshll.u32 %v3546_v26, 16  ;;  %v440_v43 = vshrl.u32 %v3546_v26, 16 }
  0x30   : > { %484 = vst [vmem:[#allocation2 + $0x70] sm:$0xff] %v399_v39  ;;  %v414_v45 = vrot.slane %v413_v33, 4  ;;  %v423_v48 = vor.u32 %v422_v34, %v418_v31  ;;  %v428_v49 = vrot.slane %v426_v35, 5  ;;  %v432_v50 = vrot.slane %v430_v37, 4 }
  0x31   : > { %v409_v52 = vsel %vm3450_vm2, %v404_v40, %v408_v22  ;;  %v438_v53 = vrot.slane %v436_v42, 5  ;;  %v442_v54 = vrot.slane %v440_v43, 4  ;;  %v446_v55 = vshll.u32 %v242_v38, 16 }
  0x32   : > { %485 = vst [vmem:[#allocation2 + $0x78] sm:$0xff] %v409_v52  ;;  %v419_v56 = vsel %vm3450_vm2, %v414_v45, %v418_v31  ;;  %v424_v58 = vrot.slane %v423_v48, 4  ;;  %v433_v59 = vor.u32 %v432_v50, %v428_v49  ;;  %v2482_v62 = vrot.slane %v490_v44, 9  ;;  %v510_v48 = vld [vmem:[%s3417_s23 + $0xa0] sm:$0x11] }
  0x33   : > { %486 = vst [vmem:[#allocation2 + $0x80] sm:$0xff] %v419_v56  ;;  %v443_v1 = vor.u32 %v442_v54, %v438_v53  ;;  %v448_v5 = vrot.slane %v446_v55, 5  ;;  %v537_v6 = vrot.slane %v3426_v2, 5  ;;  %v540_v7 = vrot.slane %v3429_v3, 5 }
  0x34   : > { %v429_v9 = vsel %vm3450_vm2, %v424_v58, %v428_v49  ;;  %v434_v10 = vrot.slane %v433_v59, 4  ;;  %v543_v11 = vrot.slane %v3434_v8, 5  ;;  %v546_v12 = vrot.slane %v3441_v13, 5 }
  0x35   : > { %487 = vst [vmem:[#allocation2 + $0x88] sm:$0xff] %v429_v9  ;;  %v444_v14 = vrot.slane %v443_v1, 4  ;;  %v538_v15 = vsel %vm3564_vm5, %v2482_v62, %v537_v6  ;;  %v539_v16 = vrot.slane %v537_v6, 4  ;;  %v542_v17 = vrot.slane %v540_v7, 4 }
  0x36   : > { %v439_v2 = vsel %vm3450_vm2, %v434_v10, %v438_v53  ;;  %616 = vst [vmem:[#allocation3] sm:$0xff] %v538_v15  ;;  %v545_v3 = vrot.slane %v543_v11, 4  ;;  %v548_v21 = vrot.slane %v546_v12, 4  ;;  %v549_v22 = vrot.slane %v3444_v18, 5 }
  0x37   : > { %488 = vst [vmem:[#allocation2 + $0x90] sm:$0xff] %v439_v2  ;;  %v449_v8 = vsel %vm3450_vm2, %v444_v14, %v448_v5  ;;  %v541_v13 = vsel %vm3564_vm5, %v539_v16, %v540_v7  ;;  %v544_v23 = vsel %vm3564_vm5, %v542_v17, %v543_v11  ;;  %v552_v24 = vrot.slane %v3457_v32, 5 }
  0x38   : > { %489 = vst [vmem:[#allocation2 + $0x98] sm:$0xff] %v449_v8  ;;  %617 = vst [vmem:[#allocation3 + $0x8] sm:$0xff] %v541_v13  ;;  %v547_v28 = vsel %vm3564_vm5, %v545_v3, %v546_v12  ;;  %v550_v18 = vsel %vm3564_vm5, %v548_v21, %v549_v22  ;;  %v551_v29 = vrot.slane %v549_v22, 4  ;;  %v555_v27 = vrot.slane %v3460_v41, 5 }
  0x39   : > { %618 = vst [vmem:[#allocation3 + $0x10] sm:$0xff] %v544_v23  ;;  %619 = vst [vmem:[#allocation3 + $0x18] sm:$0xff] %v547_v28  ;;  %v554_v30 = vrot.slane %v552_v24, 4  ;;  %v558_v31 = vrot.slane %v3468_v46, 5  ;;  %v561_v33 = vrot.slane %v3476_v51, 5  ;;  %v564_v32 = vrot.slane %v3483_v60, 5 }
  0x3a   : > { %620 = vst [vmem:[#allocation3 + $0x20] sm:$0xff] %v550_v18  ;;  %v553_v34 = vsel %vm3564_vm5, %v551_v29, %v552_v24  ;;  %v557_v35 = vrot.slane %v555_v27, 4  ;;  %v567_v37 = vrot.slane %v3489_v4, 5  ;;  %v570_v38 = vrot.slane %v3498_v20, 5 }
  0x3b   : > { %621 = vst [vmem:[#allocation3 + $0x28] sm:$0xff] %v553_v34  ;;  %v556_v41 = vsel %vm3564_vm5, %v554_v30, %v555_v27  ;;  %v560_v39 = vrot.slane %v558_v31, 4  ;;  %v563_v40 = vrot.slane %v561_v33, 4  ;;  %v566_v46 = vrot.slane %v564_v32, 4 }
  0x3c   : > { %622 = vst [vmem:[#allocation3 + $0x30] sm:$0xff] %v556_v41  ;;  %v559_v51 = vsel %vm3564_vm5, %v557_v35, %v558_v31  ;;  %v569_v60 = vrot.slane %v567_v37, 4  ;;  %v572_v42 = vrot.slane %v570_v38, 4  ;;  %v573_v43 = vrot.slane %v3502_v25, 5 }
  0x3d   : > { %623 = vst [vmem:[#allocation3 + $0x38] sm:$0xff] %v559_v51  ;;  %v562_v4 = vsel %vm3564_vm5, %v560_v39, %v561_v33  ;;  %v565_v20 = vsel %vm3564_vm5, %v563_v40, %v564_v32  ;;  %v568_v44 = vsel %vm3564_vm5, %v566_v46, %v567_v37  ;;  %v576_v45 = vrot.slane %v3510_v36, 5 }
  0x3e   : > { %624 = vst [vmem:[#allocation3 + $0x40] sm:$0xff] %v562_v4  ;;  %625 = vst [vmem:[#allocation3 + $0x48] sm:$0xff] %v565_v20  ;;  %v571_v49 = vsel %vm3564_vm5, %v569_v60, %v570_v38  ;;  %v574_v25 = vsel %vm3564_vm5, %v572_v42, %v573_v43  ;;  %v575_v50 = vrot.slane %v573_v43, 4  ;;  %v579_v52 = vrot.slane %v3518_v47, 5 }
  0x3f   : > { %626 = vst [vmem:[#allocation3 + $0x50] sm:$0xff] %v568_v44  ;;  %627 = vst [vmem:[#allocation3 + $0x58] sm:$0xff] %v571_v49  ;;  %v578_v53 = vrot.slane %v576_v45, 4  ;;  %v582_v54 = vrot.slane %v3525_v57, 5  ;;  %v585_v36 = vrot.slane %v3531_v63, 5  ;;  %v588_v55 = vrot.slane %v3540_v19, 5 }
  0x40   : > { %628 = vst [vmem:[#allocation3 + $0x60] sm:$0xff] %v574_v25  ;;  %v577_v56 = vsel %vm3564_vm5, %v575_v50, %v576_v45  ;;  %v581_v58 = vrot.slane %v579_v52, 4  ;;  %v591_v59 = vrot.slane %v3546_v26, 5  ;;  %v594_v62 = vrot.slane %v510_v48, 5 }
  0x41   : > { %629 = vst [vmem:[#allocation3 + $0x68] sm:$0xff] %v577_v56  ;;  %v580_v47 = vsel %vm3564_vm5, %v578_v53, %v579_v52  ;;  %v584_v1 = vrot.slane %v582_v54, 4  ;;  %v587_v5 = vrot.slane %v585_v36, 4  ;;  %v590_v6 = vrot.slane %v588_v55, 4 }
  0x42   : > { %630 = vst [vmem:[#allocation3 + $0x70] sm:$0xff] %v580_v47  ;;  %v583_v57 = vsel %vm3564_vm5, %v581_v58, %v582_v54  ;;  %v593_v63 = vrot.slane %v591_v59, 4 }
  0x43   : > { %631 = vst [vmem:[#allocation3 + $0x78] sm:$0xff] %v583_v57  ;;  %v586_v19 = vsel %vm3564_vm5, %v584_v1, %v585_v36  ;;  %v589_v26 = vsel %vm3564_vm5, %v587_v5, %v588_v55  ;;  %v592_v7 = vsel %vm3564_vm5, %v590_v6, %v591_v59 }
  0x44   : > { %632 = vst [vmem:[#allocation3 + $0x80] sm:$0xff] %v586_v19  ;;  %633 = vst [vmem:[#allocation3 + $0x88] sm:$0xff] %v589_v26  ;;  %v595_v9 = vsel %vm3564_vm5, %v593_v63, %v594_v62 }
  0x45   : > { %634 = vst [vmem:[#allocation3 + $0x90] sm:$0xff] %v592_v7  ;;  %635 = vst [vmem:[#allocation3 + $0x98] sm:$0xff] %v595_v9 }
  0x46 LB: >> { %v3168_v10 = vld [vmem:[%s4109_s1 + $0xf8] sm:$0xff]   ;;  %v3172_v14 = vld [vmem:[%s4109_s1 + $0xf0] sm:$0xff]   ;;  %v3176_v2 = vld [vmem:[%s4109_s1 + $0xe8] sm:$0xff]   ;;  %s3721_s16 = sshll.u32 %s3369_s27, 4  ;;  %s642_s27 = sadd.s32 1, %s3369_s27   ;;  %s3369_s27 = sphi %s3634_s27, %s642_s27  }
  0x47   : >> { %v3169_v11 = vld [vmem:[%s4109_s1 + $0x78] sm:$0xff]   ;;  %2937 = vmatprep.subr.bf16.mxu0 %v3168_v10  ;;  %v3173_v15 = vld [vmem:[%s4109_s1 + $0x70] sm:$0xff]   ;;  %v3177_v3 = vld [vmem:[%s4109_s1 + $0x68] sm:$0xff]   ;;  %s648_s30 = scalar_lea.vmem %s3417_s23, %s3721_s16  ;;  %s684_s4 = scalar_lea.vmem [#allocation2], %s3721_s16 }
  0x48   : >> { %v3170_v61 = vld [vmem:[%s4109_s1 + $0xb8] sm:$0xff]   ;;  %2959 = vmatprep.subr.bf16.mxu1 %v3169_v11  ;;  %v3174_v16 = vld [vmem:[%s4109_s1 + $0xb0] sm:$0xff]   ;;  %v3178_v21 = vld [vmem:[%s4109_s1 + $0xa8] sm:$0xff]   ;;  %s1200_s11 = sadd.s32 16, %s3721_s16  ;;  %s1015_s10 = scalar_lea.vmem [#allocation3], %s3721_s16 }
  0x49   : >> { %v3171_v12 = vld [vmem:[%s4109_s1 + $0x38] sm:$0xff]   ;;  %2938 = vmatpush3.bf16.msra.mxu0 %v3170_v61  ;;  %v3175_v17 = vld [vmem:[%s4109_s1 + $0x30] sm:$0xff]   ;;  %v3179_v22 = vld [vmem:[%s4109_s1 + $0x28] sm:$0xff]   ;;  %s1201_s22 = sshra.s32 %s1200_s11, 3  ;;  %s2342_s7 = sshra.s32 %s3721_s16, 3 }
  0x4a   : >> { %2960 = vmatpush3.bf16.msra.mxu1 %v3171_v12  ;;  %2939 = vmatprep.subr.bf16.mxu0 %v3172_v14  ;;  %v3180_v8 = vld [vmem:[%s4109_s1 + $0xe0] sm:$0xff]   ;;  %v3184_v28 = vld [vmem:[%s4109_s1 + $0xd8] sm:$0xff]   ;;  %v3188_v30 = vld [vmem:[%s4109_s1 + $0xd0] sm:$0xff]   ;;  %s3829_s5 = sshll.u32 %s1201_s22, 3  ;;  %s2917_s8 = sshll.u32 %s2342_s7, 2 }
  0x4b   : >> { %2961 = vmatprep.subr.bf16.mxu1 %v3173_v15  ;;  %v3181_v13 = vld [vmem:[%s4109_s1 + $0x60] sm:$0xff]   ;;  %v3185_v18 = vld [vmem:[%s4109_s1 + $0x58] sm:$0xff]   ;;  %v3189_v31 = vld [vmem:[%s4109_s1 + $0x50] sm:$0xff]   ;;  %s1205_s11 = scalar_lea.vmem %s3417_s23, %s3829_s5  ;;  %s1391_s24 = scalar_lea.vmem [#allocation2], %s3829_s5 }
  0x4c   : >> { %v3182_v23 = vld [vmem:[%s4109_s1 + $0xa0] sm:$0xff]   ;;  %v3186_v29 = vld [vmem:[%s4109_s1 + $0x98] sm:$0xff]   ;;  %v3190_v33 = vld [vmem:[%s4109_s1 + $0x90] sm:$0xff]   ;;  %s2345_s9 = scalar_lea.vmem %s3422_s26, %s2917_s8  ;;  %p639_p5 = scmp.ge.s32.totalorder %s642_s27, 8  }
  0x4d   : >> { %2940 = vmatpush3.bf16.msra.mxu0 %v3174_v16  ;;  %v3183_v24 = vld [vmem:[%s4109_s1 + $0x20] sm:$0xff]   ;;  %v3187_v27 = vld [vmem:[%s4109_s1 + $0x18] sm:$0xff]   ;;  %v3191_v32 = vld [vmem:[%s4109_s1 + $0x10] sm:$0xff]  }
  0x4e   : >> { %2962 = vmatpush3.bf16.msra.mxu1 %v3175_v17  ;;  %2941 = vmatprep.subr.bf16.mxu0 %v3176_v2  ;;  %v3192_v34 = vld [vmem:[%s4109_s1 + $0xc8] sm:$0xff]   ;;  %v3196_v41 = vld [vmem:[%s4109_s1 + $0xc0] sm:$0xff]   ;;  %v3206_v4 = vld [vmem:[%s4109_s1 + $0x178] sm:$0xff]  }
  0x4f   : >> { %2963 = vmatprep.subr.bf16.mxu1 %v3177_v3  ;;  %v3193_v35 = vld [vmem:[%s4109_s1 + $0x48] sm:$0xff]   ;;  %v3197_v39 = vld [vmem:[%s4109_s1 + $0x40] sm:$0xff]   ;;  %v3207_v20 = vld [vmem:[%s4109_s1 + $0x138] sm:$0xff]  }
  0x50   : >> { %v3194_v37 = vld [vmem:[%s4109_s1 + $0x88] sm:$0xff]   ;;  %v3198_v40 = vld [vmem:[%s4109_s1 + $0x80] sm:$0xff]   ;;  %v3208_v44 = vld [vmem:[%s4109_s1 + $0x1f8] sm:$0xff]  }
  0x51   : >> { %2942 = vmatpush3.bf16.msra.mxu0 %v3178_v21  ;;  %v3195_v38 = vld [vmem:[%s4109_s1 + $0x8] sm:$0xff]   ;;  %v3199_v46 = vld [vmem:[%s4109_s1] sm:$0xff]   ;;  %v3209_v45 = vld [vmem:[%s4109_s1 + $0x1b8] sm:$0xff]  }
  0x52   : >> { %2964 = vmatpush3.bf16.msra.mxu1 %v3179_v22  ;;  %2943 = vmatprep.subr.bf16.mxu0 %v3180_v8  ;;  %v3200_v51 = vld [vmem:[%s684_s4] ss:$8 sps:$4 sm:$0xff]   ;;  %v3202_v60 = vld [vmem:[%s684_s4 + $0x4] ss:$8 sps:$4 sm:$0xff]   ;;  %v3210_v48 = vld [vmem:[%s4109_s1 + $0x170] sm:$0xff]   ;;  %s1577_s4 = scalar_lea.vmem [#allocation3], %s3829_s5 }
  0x53   : >> { %2965 = vmatprep.subr.bf16.mxu1 %v3181_v13  ;;  %v3203_v42 = vld [vmem:[%s648_s30] ss:$8 sps:$4 sm:$0xff]   ;;  %v3205_v43 = vld [vmem:[%s648_s30 + $0x4] ss:$8 sps:$4 sm:$0xff]   ;;  %858 = vmatprep.mubr.bf16.mxu0 %v3202_v60  ;;  %v3211_v49 = vld [vmem:[%s4109_s1 + $0x130] sm:$0xff]   ;;  %s1762_s30 = sadd.s32 32, %s3721_s16 }
  0x54   : >> { %1005 = vmatprep.mubr.bf16.mxu1 %v3205_v43  ;;  %v3212_v25 = vld [vmem:[%s4109_s1 + $0x1f0] sm:$0xff]   ;;  %v3214_v52 = vld [vmem:[%s4109_s1 + $0x168] sm:$0xff]   ;;  %v3218_v55 = vld [vmem:[%s4109_s1 + $0x160] sm:$0xff]  }
  0x55   : >> { %2944 = vmatpush3.bf16.msra.mxu0 %v3182_v23  ;;  %v3213_v50 = vld [vmem:[%s4109_s1 + $0x1b0] sm:$0xff]   ;;  %v3215_v53 = vld [vmem:[%s4109_s1 + $0x128] sm:$0xff]   ;;  %v3219_v56 = vld [vmem:[%s4109_s1 + $0x120] sm:$0xff]  }
  0x56   : >> { %2966 = vmatpush3.bf16.msra.mxu1 %v3183_v24  ;;  %2945 = vmatprep.subr.bf16.mxu0 %v3184_v28  ;;  %v3216_v54 = vld [vmem:[%s4109_s1 + $0x1e8] sm:$0xff]   ;;  %v3220_v58 = vld [vmem:[%s4109_s1 + $0x1e0] sm:$0xff]   ;;  %v3222_v62 = vld [vmem:[%s4109_s1 + $0x158] sm:$0xff]  }
  0x57   : >> { %2967 = vmatprep.subr.bf16.mxu1 %v3185_v18  ;;  %v3217_v36 = vld [vmem:[%s4109_s1 + $0x1a8] sm:$0xff]   ;;  %v3221_v59 = vld [vmem:[%s4109_s1 + $0x1a0] sm:$0xff]   ;;  %v3223_v47 = vld [vmem:[%s4109_s1 + $0x118] sm:$0xff]  }
  0x58   : >> { %v3224_v1 = vld [vmem:[%s4109_s1 + $0x1d8] sm:$0xff]   ;;  %v3226_v6 = vld [vmem:[%s4109_s1 + $0x150] sm:$0xff]   ;;  %v3230_v26 = vld [vmem:[%s4109_s1 + $0x148] sm:$0xff]  }
  0x59   : >> { %2946 = vmatpush3.bf16.msra.mxu0 %v3186_v29  ;;  %v3225_v5 = vld [vmem:[%s4109_s1 + $0x198] sm:$0xff]   ;;  %v3227_v57 = vld [vmem:[%s4109_s1 + $0x110] sm:$0xff]   ;;  %v3231_v7 = vld [vmem:[%s4109_s1 + $0x108] sm:$0xff]  }
  0x5a   : >> { %2968 = vmatpush3.bf16.msra.mxu1 %v3187_v27  ;;  %2947 = vmatprep.subr.bf16.mxu0 %v3188_v30  ;;  %v3228_v63 = vld [vmem:[%s4109_s1 + $0x1d0] sm:$0xff]   ;;  %v3232_v9 = vld [vmem:[%s4109_s1 + $0x1c8] sm:$0xff]   ;;  %v3234_v11 = vld [vmem:[%s4109_s1 + $0x140] sm:$0xff]  }
  0x5b   : >> { %2969 = vmatprep.subr.bf16.mxu1 %v3189_v31  ;;  %v3229_v19 = vld [vmem:[%s4109_s1 + $0x190] sm:$0xff]   ;;  %v3233_v10 = vld [vmem:[%s4109_s1 + $0x188] sm:$0xff]   ;;  %v3235_v61 = vld [vmem:[%s4109_s1 + $0x100] sm:$0xff]  }
  0x5c   : >> { %v3236_v12 = vld [vmem:[%s4109_s1 + $0x1c0] sm:$0xff]   ;;  %v3241_v17 = vld [vmem:[%s4109_s1 + $0x278] sm:$0xff]   ;;  %v3248_v13 = vld [vmem:[%s4109_s1 + $0x270] sm:$0xff]  }
  0x5d   : >> { %2948 = vmatpush3.bf16.msra.mxu0 %v3190_v33  ;;  %v3237_v14 = vld [vmem:[%s1015_s10] ss:$8 sps:$4 sm:$0xff]   ;;  %v3239_v15 = vld [vmem:[%s1015_s10 + $0x4] ss:$8 sps:$4 sm:$0xff]   ;;  %v3245_v21 = vld [vmem:[%s4109_s1 + $0x238] sm:$0xff]  }
  0x5e   : >> { %2970 = vmatpush3.bf16.msra.mxu1 %v3191_v32  ;;  %2949 = vmatprep.subr.bf16.mxu0 %v3192_v34  ;;  %v3240_v16 = vld [vmem:[%s4109_s1 + $0x180] sm:$0xff]   ;;  %v3246_v22 = vld [vmem:[%s4109_s1 + $0x2f8] sm:$0xff]   ;;  %v3249_v23 = vld [vmem:[%s4109_s1 + $0x230] sm:$0xff]  }
  0x5f   : >> { %2971 = vmatprep.subr.bf16.mxu1 %v3193_v35  ;;  %v3242_v2 = vld [vmem:[%s1205_s11] ss:$8 sps:$4 sm:$0xff]   ;;  %v3244_v3 = vld [vmem:[%s1205_s11 + $0x4] ss:$8 sps:$4 sm:$0xff]   ;;  %v3247_v8 = vld [vmem:[%s4109_s1 + $0x2b8] sm:$0xff]   ;;  %s1763_s11 = sshra.s32 %s1762_s30, 3 }
  0x60   : >> { %v3250_v24 = vld [vmem:[%s4109_s1 + $0x2f0] sm:$0xff]   ;;  %v3252_v18 = vld [vmem:[%s4109_s1 + $0x268] sm:$0xff]   ;;  %v3256_v31 = vld [vmem:[%s4109_s1 + $0x260] sm:$0xff]   ;;  %s4020_s21 = sshll.u32 %s1763_s11, 3 }
  0x61   : >> { %2950 = vmatpush3.bf16.msra.mxu0 %v3194_v37  ;;  %v3251_v28 = vld [vmem:[%s4109_s1 + $0x2b0] sm:$0xff]   ;;  %v3253_v29 = vld [vmem:[%s4109_s1 + $0x228] sm:$0xff]   ;;  %v3257_v33 = vld [vmem:[%s4109_s1 + $0x220] sm:$0xff]   ;;  %s1953_s17 = scalar_lea.vmem [#allocation2], %s4020_s21 }
  0x62   : >> { %2972 = vmatpush3.bf16.msra.mxu1 %v3195_v38  ;;  %2951 = vmatprep.subr.bf16.mxu0 %v3196_v41  ;;  %v3254_v27 = vld [vmem:[%s4109_s1 + $0x2e8] sm:$0xff]   ;;  %v3258_v32 = vld [vmem:[%s4109_s1 + $0x2e0] sm:$0xff]   ;;  %v3260_v35 = vld [vmem:[%s4109_s1 + $0x258] sm:$0xff]  }
  0x63   : >> { %2973 = vmatprep.subr.bf16.mxu1 %v3197_v39  ;;  %v3255_v30 = vld [vmem:[%s4109_s1 + $0x2a8] sm:$0xff]   ;;  %v3259_v34 = vld [vmem:[%s4109_s1 + $0x2a0] sm:$0xff]   ;;  %v3261_v37 = vld [vmem:[%s4109_s1 + $0x218] sm:$0xff]  }
  0x64   : >> { %v3262_v38 = vld [vmem:[%s4109_s1 + $0x2d8] sm:$0xff]   ;;  %v3264_v39 = vld [vmem:[%s4109_s1 + $0x250] sm:$0xff]   ;;  %v3268_v60 = vld [vmem:[%s4109_s1 + $0x248] sm:$0xff]  }
  0x65   : >> { %2952 = vmatpush3.bf16.msra.mxu0 %v3198_v40  ;;  %v3263_v41 = vld [vmem:[%s4109_s1 + $0x298] sm:$0xff]   ;;  %v3265_v40 = vld [vmem:[%s4109_s1 + $0x210] sm:$0xff]   ;;  %v3270_v43 = vld [vmem:[%s4109_s1 + $0x2c8] sm:$0xff]  }
  0x66   : >> { %2974 = vmatpush3.bf16.msra.mxu1 %v3199_v46  ;;  %2981 = vmatprep.subr.bf16.mxu0 %v3206_v4  ;;  %v3266_v46 = vld [vmem:[%s4109_s1 + $0x2d0] sm:$0xff]   ;;  %v3271_v4 = vld [vmem:[%s4109_s1 + $0x288] sm:$0xff]  }
  0x67   : >> { %3003 = vmatprep.subr.bf16.mxu1 %v3208_v44  ;;  %v3273_v44 = vld [vmem:[%s4109_s1 + $0x200] sm:$0xff]  }
  0x68   : >> { %859 = vmatmul.mubr.bf16.vlgmr.msra.gmra.mxu0 %v3200_v51  ;;  %v3267_v51 = vld [vmem:[%s4109_s1 + $0x290] sm:$0xff]  }
  0x69   : >> { %1006 = vmatmul.mubr.bf16.vlgmr.msra.gmra.mxu1 %v3203_v42  ;;  %2982 = vmatpush3.bf16.msra.mxu0 %v3207_v20  ;;  %v3269_v42 = vld [vmem:[%s4109_s1 + $0x208] sm:$0xff]   ;;  %v3272_v20 = vld [vmem:[%s4109_s1 + $0x240] sm:$0xff]  }
  0x6a   : >> { %3004 = vmatpush3.bf16.msra.mxu1 %v3209_v45  ;;  %2983 = vmatprep.subr.bf16.mxu0 %v3210_v48  ;;  %v3274_v45 = vld [vmem:[%s4109_s1 + $0x2c0] sm:$0xff]  }
  0x6b   : >> { %3005 = vmatprep.subr.bf16.mxu1 %v3212_v25  ;;  %1189 = vmatprep.mubr.bf16.mxu0 %v3239_v15  ;;  %v3275_v48 = vld [vmem:[%s1391_s24] ss:$8 sps:$4 sm:$0xff]   ;;  %v3305_v15 = vld [vmem:[%s4109_s1 + $0x390] sm:$0xff]  }
  0x6c   : >> { %1379 = vmatprep.mubr.bf16.mxu1 %v3244_v3  ;;  %v3278_v25 = vld [vmem:[%s4109_s1 + $0x280] sm:$0xff]   ;;  %v3309_v3 = vld [vmem:[%s4109_s1 + $0x388] sm:$0xff]  }
  0x6d   : >> { %2984 = vmatpush3.bf16.msra.mxu0 %v3211_v49  ;;  %v3277_v49 = vld [vmem:[%s1391_s24 + $0x4] ss:$8 sps:$4 sm:$0xff]  }
  0x6e   : >> { %3006 = vmatpush3.bf16.msra.mxu1 %v3213_v50  ;;  %2985 = vmatprep.subr.bf16.mxu0 %v3214_v52  ;;  %v3279_v50 = vld [vmem:[%s4109_s1 + $0x378] sm:$0xff]   ;;  %v3280_v52 = vld [vmem:[%s1577_s4] ss:$8 sps:$4 sm:$0xff]  }
  0x6f   : >> { %3007 = vmatprep.subr.bf16.mxu1 %v3216_v54  ;;  %v3283_v54 = vld [vmem:[%s4109_s1 + $0x338] sm:$0xff]  }
  0x71   : >> { %2986 = vmatpush3.bf16.msra.mxu0 %v3215_v53  ;;  %v3282_v53 = vld [vmem:[%s1577_s4 + $0x4] ss:$8 sps:$4 sm:$0xff]   ;;  %s1767_s4 = scalar_lea.vmem %s3417_s23, %s4020_s21 }
  0x72   : >> { %3008 = vmatpush3.bf16.msra.mxu1 %v3217_v36  ;;  %2987 = vmatprep.subr.bf16.mxu0 %v3218_v55  ;;  %v3284_v36 = vld [vmem:[%s4109_s1 + $0x3f8] sm:$0xff]  }
  0x73   : >> { %3009 = vmatprep.subr.bf16.mxu1 %v3220_v58  ;;  %v3285_v55 = vld [vmem:[%s4109_s1 + $0x3b8] sm:$0xff]   ;;  %v3287_v58 = vld [vmem:[%s4109_s1 + $0x330] sm:$0xff]  }
  0x75   : >> { %2988 = vmatpush3.bf16.msra.mxu0 %v3219_v56  ;;  %v3286_v56 = vld [vmem:[%s4109_s1 + $0x370] sm:$0xff]  }
  0x76   : >> { %3010 = vmatpush3.bf16.msra.mxu1 %v3221_v59  ;;  %2989 = vmatprep.subr.bf16.mxu0 %v3222_v62  ;;  %v3288_v59 = vld [vmem:[%s4109_s1 + $0x3f0] sm:$0xff]  }
  0x77   : >> { %3011 = vmatprep.subr.bf16.mxu1 %v3224_v1  ;;  %v3289_v62 = vld [vmem:[%s4109_s1 + $0x3b0] sm:$0xff]   ;;  %v3291_v1 = vld [vmem:[%s4109_s1 + $0x328] sm:$0xff]  }
  0x79   : >> { %2990 = vmatpush3.bf16.msra.mxu0 %v3223_v47  ;;  %v3290_v47 = vld [vmem:[%s4109_s1 + $0x368] sm:$0xff]  }
  0x7a   : >> { %3012 = vmatpush3.bf16.msra.mxu1 %v3225_v5  ;;  %2991 = vmatprep.subr.bf16.mxu0 %v3226_v6  ;;  %v3292_v5 = vld [vmem:[%s4109_s1 + $0x3e8] sm:$0xff]  }
  0x7b   : >> { %3013 = vmatprep.subr.bf16.mxu1 %v3228_v63  ;;  %v3293_v6 = vld [vmem:[%s4109_s1 + $0x3a8] sm:$0xff]   ;;  %v3295_v63 = vld [vmem:[%s4109_s1 + $0x320] sm:$0xff]  }
  0x7d   : >> { %2992 = vmatpush3.bf16.msra.mxu0 %v3227_v57  ;;  %v3294_v57 = vld [vmem:[%s4109_s1 + $0x360] sm:$0xff]  }
  0x7e   : >> { %3014 = vmatpush3.bf16.msra.mxu1 %v3229_v19  ;;  %2993 = vmatprep.subr.bf16.mxu0 %v3230_v26  ;;  %v3296_v19 = vld [vmem:[%s4109_s1 + $0x3e0] sm:$0xff]  }
  0x7f   : >> { %3015 = vmatprep.subr.bf16.mxu1 %v3232_v9  ;;  %v3297_v26 = vld [vmem:[%s4109_s1 + $0x3a0] sm:$0xff]   ;;  %v3299_v9 = vld [vmem:[%s4109_s1 + $0x318] sm:$0xff]  }
  0x81   : >> { %2994 = vmatpush3.bf16.msra.mxu0 %v3231_v7  ;;  %v3298_v7 = vld [vmem:[%s4109_s1 + $0x358] sm:$0xff]  }
  0x82   : >> { %3016 = vmatpush3.bf16.msra.mxu1 %v3233_v10  ;;  %2995 = vmatprep.subr.bf16.mxu0 %v3234_v11  ;;  %v3300_v10 = vld [vmem:[%s4109_s1 + $0x3d8] sm:$0xff]  }
  0x83   : >> { %3017 = vmatprep.subr.bf16.mxu1 %v3236_v12  ;;  %v3301_v11 = vld [vmem:[%s4109_s1 + $0x398] sm:$0xff]   ;;  %v3303_v12 = vld [vmem:[%s4109_s1 + $0x310] sm:$0xff]  }
  0x85   : >> { %2996 = vmatpush3.bf16.msra.mxu0 %v3235_v61  ;;  %v3302_v61 = vld [vmem:[%s4109_s1 + $0x350] sm:$0xff]  }
  0x86   : >> { %3018 = vmatpush3.bf16.msra.mxu1 %v3240_v16  ;;  %3025 = vmatprep.subr.bf16.mxu0 %v3241_v17  ;;  %v3306_v16 = vld [vmem:[%s4109_s1 + $0x348] sm:$0xff]  }
  0x87   : >> { %3047 = vmatprep.subr.bf16.mxu1 %v3246_v22  ;;  %v3307_v17 = vld [vmem:[%s4109_s1 + $0x308] sm:$0xff]   ;;  %v3311_v22 = vld [vmem:[%s4109_s1 + $0x300] sm:$0xff]  }
  0x88   : >> { %1190 = vmatmul.mubr.bf16.vlgmr.msra.gmra.mxu0 %v3237_v14  ;;  %v3304_v14 = vld [vmem:[%s4109_s1 + $0x3d0] sm:$0xff]  }
  0x89   : >> { %3026 = vmatpush3.bf16.msra.mxu0 %v3245_v21  ;;  %1380 = vmatmul.mubr.bf16.vlgmr.msra.gmra.mxu1 %v3242_v2  ;;  %v3308_v2 = vld [vmem:[%s4109_s1 + $0x3c8] sm:$0xff]   ;;  %v3310_v21 = vld [vmem:[%s4109_s1 + $0x340] sm:$0xff]  }
  0x8a   : >> { %3048 = vmatpush3.bf16.msra.mxu1 %v3247_v8  ;;  %3027 = vmatprep.subr.bf16.mxu0 %v3248_v13  ;;  %v3312_v8 = vld [vmem:[%s4109_s1 + $0x3c0] sm:$0xff]  }
  0x8b   : >> { %3049 = vmatprep.subr.bf16.mxu1 %v3250_v24  ;;  %1565 = vmatprep.mubr.bf16.mxu0 %v3277_v49  ;;  %v3313_v13 = vld [vmem:[%s1767_s4] ss:$8 sps:$4 sm:$0xff]  }
  0x8c   : >> { %1751 = vmatprep.mubr.bf16.mxu1 %v3282_v53  ;;  %v3316_v24 = vld [vmem:[%s4109_s1 + $0x380] sm:$0xff]  }
  0x8d   : >> { %3028 = vmatpush3.bf16.msra.mxu0 %v3249_v23  ;;  %v3315_v23 = vld [vmem:[%s1767_s4 + $0x4] ss:$8 sps:$4 sm:$0xff]  }
  0x8e   : >> { %3050 = vmatpush3.bf16.msra.mxu1 %v3251_v28  ;;  %3029 = vmatprep.subr.bf16.mxu0 %v3252_v18  ;;  %v3317_v28 = vld [vmem:[%s4109_s1 + $0x478] sm:$0xff]   ;;  %v3318_v18 = vld [vmem:[%s1953_s17] ss:$8 sps:$4 sm:$0xff]  }
  0x8f   : >> { %3051 = vmatprep.subr.bf16.mxu1 %v3254_v27  ;;  %v3321_v27 = vld [vmem:[%s4109_s1 + $0x438] sm:$0xff]  }
  0x91   : >> { %3030 = vmatpush3.bf16.msra.mxu0 %v3253_v29  ;;  %v3320_v29 = vld [vmem:[%s1953_s17 + $0x4] ss:$8 sps:$4 sm:$0xff]   ;;  %s2139_s17 = scalar_lea.vmem [#allocation3], %s4020_s21 }
  0x92   : >> { %3052 = vmatpush3.bf16.msra.mxu1 %v3255_v30  ;;  %3031 = vmatprep.subr.bf16.mxu0 %v3256_v31  ;;  %v3322_v30 = vld [vmem:[%s4109_s1 + $0x470] sm:$0xff]  }
  0x93   : >> { %3053 = vmatprep.subr.bf16.mxu1 %v3258_v32  ;;  %v3323_v31 = vld [vmem:[%s4109_s1 + $0x430] sm:$0xff]   ;;  %v3325_v32 = vld [vmem:[%s4109_s1 + $0x428] sm:$0xff]  }
  0x95   : >> { %3032 = vmatpush3.bf16.msra.mxu0 %v3257_v33  ;;  %v3324_v33 = vld [vmem:[%s4109_s1 + $0x468] sm:$0xff]  }
  0x96   : >> { %3054 = vmatpush3.bf16.msra.mxu1 %v3259_v34  ;;  %3033 = vmatprep.subr.bf16.mxu0 %v3260_v35  ;;  %v3326_v34 = vld [vmem:[%s4109_s1 + $0x460] sm:$0xff]  }
  0x97   : >> { %3055 = vmatprep.subr.bf16.mxu1 %v3262_v38  ;;  %v3327_v35 = vld [vmem:[%s4109_s1 + $0x420] sm:$0xff]   ;;  %v3329_v38 = vld [vmem:[%s4109_s1 + $0x418] sm:$0xff]  }
  0x99   : >> { %3034 = vmatpush3.bf16.msra.mxu0 %v3261_v37  ;;  %v3328_v37 = vld [vmem:[%s4109_s1 + $0x458] sm:$0xff]  }
  0x9a   : >> { %3056 = vmatpush3.bf16.msra.mxu1 %v3263_v41  ;;  %3035 = vmatprep.subr.bf16.mxu0 %v3264_v39  ;;  %v3330_v41 = vld [vmem:[%s4109_s1 + $0x450] sm:$0xff]   ;;  %v3338_v39 = vld [vmem:[%s2139_s17 + $0x4] ss:$8 sps:$4 sm:$0xff]  }
  0x9b   : >> { %3057 = vmatprep.subr.bf16.mxu1 %v3266_v46  ;;  %v3332_v46 = vld [vmem:[%s4109_s1 + $0x448] sm:$0xff]  }
  0x9d   : >> { %3036 = vmatpush3.bf16.msra.mxu0 %v3265_v40  ;;  %v3331_v40 = vld [vmem:[%s4109_s1 + $0x410] sm:$0xff]  }
  0x9e   : >> { %3058 = vmatpush3.bf16.msra.mxu1 %v3267_v51  ;;  %3037 = vmatprep.subr.bf16.mxu0 %v3268_v60  ;;  %v3333_v51 = vld [vmem:[%s4109_s1 + $0x408] sm:$0xff]   ;;  %v3334_v60 = vld [vmem:[%s4109_s1 + $0x440] sm:$0xff]  }
  0x9f   : >> { %3059 = vmatprep.subr.bf16.mxu1 %v3270_v43  ;;  %v3336_v43 = vld [vmem:[%s2139_s17] ss:$8 sps:$4 sm:$0xff]  }
  0xa1   : >> { %3038 = vmatpush3.bf16.msra.mxu0 %v3269_v42  ;;  %v3335_v42 = vld [vmem:[%s4109_s1 + $0x400] sm:$0xff]  }
  0xa2   : >> { %3060 = vmatpush3.bf16.msra.mxu1 %v3271_v4  ;;  %3039 = vmatprep.subr.bf16.mxu0 %v3272_v20 }
  0xa3   : >> { %3061 = vmatprep.subr.bf16.mxu1 %v3274_v45 }
  0xa5   : >> { %3040 = vmatpush3.bf16.msra.mxu0 %v3273_v44 }
  0xa6   : >> { %3062 = vmatpush3.bf16.msra.mxu1 %v3278_v25  ;;  %3069 = vmatprep.subr.bf16.mxu0 %v3279_v50 }
  0xa7   : >> { %3091 = vmatprep.subr.bf16.mxu1 %v3284_v36 }
  0xa8   : >> { %1566 = vmatmul.mubr.bf16.vlgmr.msra.gmra.mxu0 %v3275_v48 }
  0xa9   : >> { %3070 = vmatpush3.bf16.msra.mxu0 %v3283_v54  ;;  %1752 = vmatmul.mubr.bf16.vlgmr.msra.gmra.mxu1 %v3280_v52 }
  0xaa   : >> { %3092 = vmatpush3.bf16.msra.mxu1 %v3285_v55  ;;  %3071 = vmatprep.subr.bf16.mxu0 %v3286_v56 }
  0xab   : >> { %3093 = vmatprep.subr.bf16.mxu1 %v3288_v59  ;;  %1941 = vmatprep.mubr.bf16.mxu0 %v3315_v23 }
  0xac   : >> { %2127 = vmatprep.mubr.bf16.mxu1 %v3320_v29 }
  0xad   : >> { %3072 = vmatpush3.bf16.msra.mxu0 %v3287_v58 }
  0xae   : >> { %3094 = vmatpush3.bf16.msra.mxu1 %v3289_v62  ;;  %3073 = vmatprep.subr.bf16.mxu0 %v3290_v47 }
  0xaf   : >> { %3095 = vmatprep.subr.bf16.mxu1 %v3292_v5 }
  0xb1   : >> { %3074 = vmatpush3.bf16.msra.mxu0 %v3291_v1 }
  0xb2   : >> { %3096 = vmatpush3.bf16.msra.mxu1 %v3293_v6  ;;  %3075 = vmatprep.subr.bf16.mxu0 %v3294_v57 }
  0xb3   : >> { %3097 = vmatprep.subr.bf16.mxu1 %v3296_v19 }
  0xb5   : >> { %3076 = vmatpush3.bf16.msra.mxu0 %v3295_v63 }
  0xb6   : >> { %3098 = vmatpush3.bf16.msra.mxu1 %v3297_v26  ;;  %3077 = vmatprep.subr.bf16.mxu0 %v3298_v7 }
  0xb7   : >> { %3099 = vmatprep.subr.bf16.mxu1 %v3300_v10 }
  0xb9   : >> { %3078 = vmatpush3.bf16.msra.mxu0 %v3299_v9 }
  0xba   : >> { %3100 = vmatpush3.bf16.msra.mxu1 %v3301_v11  ;;  %3079 = vmatprep.subr.bf16.mxu0 %v3302_v61 }
  0xbb   : >> { %3101 = vmatprep.subr.bf16.mxu1 %v3304_v14 }
  0xbd   : >> { %3080 = vmatpush3.bf16.msra.mxu0 %v3303_v12 }
  0xbe   : >> { %3102 = vmatpush3.bf16.msra.mxu1 %v3305_v15  ;;  %3081 = vmatprep.subr.bf16.mxu0 %v3306_v16 }
  0xbf   : >> { %3103 = vmatprep.subr.bf16.mxu1 %v3308_v2 }
  0xc1   : >> { %3082 = vmatpush3.bf16.msra.mxu0 %v3307_v17 }
  0xc2   : >> { %3104 = vmatpush3.bf16.msra.mxu1 %v3309_v3  ;;  %3083 = vmatprep.subr.bf16.mxu0 %v3310_v21 }
  0xc3   : >> { %3105 = vmatprep.subr.bf16.mxu1 %v3312_v8 }
  0xc5   : >> { %3084 = vmatpush3.bf16.msra.mxu0 %v3311_v22 }
  0xc6   : >> { %3106 = vmatpush3.bf16.msra.mxu1 %v3316_v24  ;;  %3113 = vmatprep.subr.bf16.mxu0 %v3317_v28 }
  0xc8   : >> { %1942 = vmatmul.mubr.bf16.vlgmr.msra.gmra.mxu0 %v3313_v13 }
  0xc9   : >> { %3114 = vmatpush3.bf16.msra.mxu0 %v3321_v27  ;;  %2128 = vmatmul.mubr.bf16.vlgmr.msra.gmra.mxu1 %v3318_v18 }
  0xca   : >> { %3115 = vmatprep.subr.bf16.mxu0 %v3322_v30  ;;  %2313 = vmatprep.mubr.bf16.mxu0 %v3338_v39 }
  0xcd   : >> { %3116 = vmatpush3.bf16.msra.mxu0 %v3323_v31 }
  0xce   : >> { %3117 = vmatprep.subr.bf16.mxu0 %v3324_v33 }
  0xd1   : >> { %3118 = vmatpush3.bf16.msra.mxu0 %v3325_v32 }
  0xd2   : >> { %3119 = vmatprep.subr.bf16.mxu0 %v3326_v34 }
  0xd5   : >> { %3120 = vmatpush3.bf16.msra.mxu0 %v3327_v35 }
  0xd6   : >> { %3121 = vmatprep.subr.bf16.mxu0 %v3328_v37 }
  0xd9   : >> { %3122 = vmatpush3.bf16.msra.mxu0 %v3329_v38 }
  0xda   : >> { %3123 = vmatprep.subr.bf16.mxu0 %v3330_v41 }
  0xdd   : >> { %3124 = vmatpush3.bf16.msra.mxu0 %v3331_v40 }
  0xde   : >> { %3125 = vmatprep.subr.bf16.mxu0 %v3332_v46 }
  0xe1   : >> { %3126 = vmatpush3.bf16.msra.mxu0 %v3333_v51 }
  0xe2   : >> { %3127 = vmatprep.subr.bf16.mxu0 %v3334_v60 }
  0xe5   : >> { %3128 = vmatpush3.bf16.msra.mxu0 %v3335_v42 }
  0xe8   : >> { %2314 = vmatmul.mubr.bf16.vlgmr.msra.gmra.mxu0 %v3336_v43 }
 0x128   : >> { %v2953_v4 = vpop.f32.mrf.mxu0 }
 0x129   : >> { %v2975_v20 = vpop.f32.mrf.mxu1 }
 0x12a   : >> { %v2954_v44 = vpop.f32.mrf.mxu0 }
 0x12b   : >> { %v2976_v45 = vpop.f32.mrf.mxu1  ;;  %v2955_v57 = vadd.f32 %v2954_v44, %v2953_v4 }
 0x12c   : >> { %v2956_v48 = vpop.f32.mrf.mxu0  ;;  %v2977_v63 = vadd.f32 %v2976_v45, %v2975_v20 }
 0x12d   : >> { %v2978_v49 = vpop.f32.mrf.mxu1 }
 0x12e   : >> { %v2957_v25 = vpop.f32.mrf.mxu0  ;;  %v1008_v10 = vadd.f32 %v2977_v63, %v2955_v57 }
 0x12f   : >> { %v2979_v52 = vpop.f32.mrf.mxu1  ;;  %v2958_v11 = vadd.f32 %v2957_v25, %v2956_v48 }
 0x130   : >> { %v2980_v61 = vadd.f32 %v2979_v52, %v2978_v49 }
 0x132   : >> { %v1011_v3 = vadd.f32 %v2980_v61, %v2958_v11 }
 0x148   : >> { %v2997_v50 = vpop.f32.mrf.mxu0 }
 0x149   : >> { %v3019_v54 = vpop.f32.mrf.mxu1 }
 0x14a   : >> { %v2998_v53 = vpop.f32.mrf.mxu0 }
 0x14b   : >> { %v3020_v55 = vpop.f32.mrf.mxu1  ;;  %v2999_v7 = vadd.f32 %v2998_v53, %v2997_v50 }
 0x14c   : >> { %v3000_v36 = vpop.f32.mrf.mxu0  ;;  %v3021_v15 = vadd.f32 %v3020_v55, %v3019_v54 }
 0x14d   : >> { %v3022_v58 = vpop.f32.mrf.mxu1  ;;  %v1198_v14 = vadd.f32 %v2999_v7, %v1008_v10 }
 0x14e   : >> { %v3001_v56 = vpop.f32.mrf.mxu0 }
 0x14f   : >> { %v3023_v62 = vpop.f32.mrf.mxu1  ;;  %v3002_v16 = vadd.f32 %v3001_v56, %v3000_v36  ;;  %v1388_v22 = vadd.f32 %v3021_v15, %v1198_v14 }
 0x150   : >> { %v3024_v13 = vadd.f32 %v3023_v62, %v3022_v58 }
 0x151   : >> { %v1199_v8 = vadd.f32 %v3002_v16, %v1011_v3 }
 0x153   : >> { %v1389_v27 = vadd.f32 %v3024_v13, %v1199_v8 }
 0x168   : >> { %v3041_v59 = vpop.f32.mrf.mxu0 }
 0x169   : >> { %v3063_v1 = vpop.f32.mrf.mxu1 }
 0x16a   : >> { %v3042_v47 = vpop.f32.mrf.mxu0 }
 0x16b   : >> { %v3064_v6 = vpop.f32.mrf.mxu1  ;;  %v3043_v21 = vadd.f32 %v3042_v47, %v3041_v59 }
 0x16c   : >> { %v3044_v5 = vpop.f32.mrf.mxu0  ;;  %v3065_v18 = vadd.f32 %v3064_v6, %v3063_v1 }
 0x16d   : >> { %v3066_v26 = vpop.f32.mrf.mxu1  ;;  %v1574_v28 = vadd.f32 %v3043_v21, %v1388_v22 }
 0x16e   : >> { %v3045_v19 = vpop.f32.mrf.mxu0 }
 0x16f   : >> { %v3067_v12 = vpop.f32.mrf.mxu1  ;;  %v3046_v29 = vadd.f32 %v3045_v19, %v3044_v5  ;;  %v1760_v32 = vadd.f32 %v3065_v18, %v1574_v28 }
 0x170   : >> { %v3068_v35 = vadd.f32 %v3067_v12, %v3066_v26 }
 0x171   : >> { %v1575_v34 = vadd.f32 %v3046_v29, %v1389_v27 }
 0x173   : >> { %v1761_v46 = vadd.f32 %v3068_v35, %v1575_v34 }
 0x188   : >> { %v3085_v9 = vpop.f32.mrf.mxu0 }
 0x189   : >> { %v3107_v2 = vpop.f32.mrf.mxu1 }
 0x18a   : >> { %v3086_v17 = vpop.f32.mrf.mxu0 }
 0x18b   : >> { %v3108_v24 = vpop.f32.mrf.mxu1  ;;  %v3087_v30 = vadd.f32 %v3086_v17, %v3085_v9 }
 0x18c   : >> { %v3088_v23 = vpop.f32.mrf.mxu0  ;;  %v3109_v38 = vadd.f32 %v3108_v24, %v3107_v2 }
 0x18d   : >> { %v3110_v33 = vpop.f32.mrf.mxu1  ;;  %v1950_v37 = vadd.f32 %v3087_v30, %v1760_v32 }
 0x18e   : >> { %v3089_v31 = vpop.f32.mrf.mxu0 }
 0x18f   : >> { %v3090_v41 = vadd.f32 %v3089_v31, %v3088_v23  ;;  %v3111_v39 = vpop.f32.mrf.mxu1  ;;  %v2136_v60 = vadd.f32 %v3109_v38, %v1950_v37 }
 0x190   : >> { %v3112_v43 = vadd.f32 %v3111_v39, %v3110_v33 }
 0x191   : >> { %v1951_v42 = vadd.f32 %v3090_v41, %v1761_v46 }
 0x193   : >> { %v2137_v48 = vadd.f32 %v3112_v43, %v1951_v42 }
 0x1a8   : >> { %v3129_v40 = vpop.f32.mrf.mxu0 }
 0x1aa   : >> { %v3130_v51 = vpop.f32.mrf.mxu0 }
 0x1ab   : >> { %v3131_v4 = vadd.f32 %v3130_v51, %v3129_v40 }
 0x1ac   : >> { %v3132_v20 = vpop.f32.mrf.mxu0 }
 0x1ad   : >> { %v2322_v44 = vadd.f32 %v3131_v4, %v2136_v60 }
 0x1ae   : >> { %v3133_v45 = vpop.f32.mrf.mxu0 }
 0x1af   : >> { %v3134_v49 = vadd.f32 %v3133_v45, %v3132_v20  ;;  %v2330_v25 = vadd.f32 %v3412_v0, %v2322_v44 }
 0x1b1   : >> { %v2323_v50 = vadd.f32 %v3134_v49, %v2137_v48  ;;  %v2332_v53 = vmax.f32 %v2330_v25, 0.0 }
 0x1b3   : >> { %v2331_v52 = vadd.f32 %v3412_v0, %v2323_v50 }
 0x1b5   : >> { %v2333_v54 = vmax.f32 %v2331_v52, 0.0  ;;  %641 = sbr.rel (!%p639_p5) target bundleno = 70 (0x46), region = 90 }
 0x1b7   : >> { %v2935_v36 = vpack.c.bf16 %v2333_v54, %v2332_v53 }
 0x1b9   : >> { %2936 = vst [vmem:[%s2345_s9] sm:$0xff] %v2935_v36  }
 0x1ba PF: > { %s13_s14 = sadd.s32 1, %s3365_s14   ;;  %s4116_s12 = smov %s3361_s13 }
 0x1bb   : > { %p10_p6 = scmp.ge.s32.totalorder %s13_s14, 4   ;;  %s4117_s13 = smov %s4119_s15 }
 0x1bd   :  { %12 = sbr.rel (!%p10_p6) target bundleno = 2 (0x2), region = 101 }

</bundles_post_ra>
